<compile_context>
chip_gen: v7x
topology: tpu7x:2x2x1
jax: 0.10.0
libtpu: 0.0.40
codegen_flags: <defaults>
</compile_context>

<pallas_src>
import functools

import jax
import jax.numpy as jnp
from jax import lax
from jax.experimental import pallas as pl
from jax.experimental.pallas import tpu as pltpu

HIDDENS = [32, 64, 128, 256]
LATENT_DIM = 128
KL_WEIGHT = 3e-4
BN_EPS = 1e-5
IMAGE_LEN = 32


def _full_spec(shape):
    nd = len(shape)
    return pl.BlockSpec(shape, lambda i, _nd=nd: (0,) * _nd)


# --------------------------------------------------------------------------
# Pallas kernels
# --------------------------------------------------------------------------
def _mm_bias_act_kernel(a_ref, w_ref, b_ref, o_ref, *, relu):
    a = a_ref[...].astype(jnp.bfloat16)
    acc = jnp.dot(a, w_ref[...], preferred_element_type=jnp.float32)
    acc = acc + b_ref[...]
    if relu:
        acc = jnp.maximum(acc, 0.0)
    o_ref[...] = acc.astype(o_ref.dtype)


def matmul_bias_act(a, w, bias, *, relu=False, out_dtype=jnp.float32, tile_m=256):
    """(M,K)@(K,N)+bias (optional ReLU). M is tiled when possible ("parallel")."""
    m, k = a.shape
    n = w.shape[1]
    bias2d = bias.reshape(1, n).astype(jnp.float32)
    if m > tile_m and m % tile_m == 0:
        grid = (m // tile_m,)
        a_spec = pl.BlockSpec((tile_m, k), lambda i: (i, 0))
        o_spec = pl.BlockSpec((tile_m, n), lambda i: (i, 0))
    else:
        grid = (1,)
        a_spec = pl.BlockSpec((m, k), lambda i: (0, 0))
        o_spec = pl.BlockSpec((m, n), lambda i: (0, 0))
    w_spec = pl.BlockSpec((k, n), lambda i: (0, 0))
    b_spec = pl.BlockSpec((1, n), lambda i: (0, 0))
    return pl.pallas_call(
        functools.partial(_mm_bias_act_kernel, relu=relu),
        out_shape=jax.ShapeDtypeStruct((m, n), out_dtype),
        grid=grid,
        in_specs=[a_spec, w_spec, b_spec],
        out_specs=o_spec,
        compiler_params=pltpu.CompilerParams(
            dimension_semantics=("parallel",)),
    )(a, w, bias2d)


def _mm_bias_bn_relu_kernel(a_ref, w_ref, b_ref, g_ref, be_ref, o_ref, *, groups):
    # matmul + bias, then BatchNorm2d (training-mode batch stats, biased var)
    # + ReLU fused in the epilogue.  For the sub-pixel deconv layout the N axis
    # holds `groups` parity copies of the Cout channels; per-channel stats are
    # accumulated over rows AND groups (== all N*H_out*W_out positions).
    a = a_ref[...].astype(jnp.bfloat16)
    acc = jnp.dot(a, w_ref[...], preferred_element_type=jnp.float32)
    acc = acc + b_ref[...]
    m, n = acc.shape
    c = n // groups
    colsum = jnp.sum(acc, axis=0, keepdims=True)
    colsq = jnp.sum(acc * acc, axis=0, keepdims=True)
    if groups > 1:
        csum = colsum[:, 0:c]
        csq = colsq[:, 0:c]
        for g in range(1, groups):
            csum = csum + colsum[:, g * c:(g + 1) * c]
            csq = csq + colsq[:, g * c:(g + 1) * c]
    else:
        csum, csq = colsum, colsq
    inv_count = 1.0 / float(m * groups)
    mu = csum * inv_count
    var = csq * inv_count - mu * mu
    inv = lax.rsqrt(var + BN_EPS)
    scale = inv * g_ref[...]
    shift = be_ref[...] - mu * scale
    if groups > 1:
        scale = jnp.concatenate([scale] * groups, axis=-1)
        shift = jnp.concatenate([shift] * groups, axis=-1)
    o_ref[...] = jnp.maximum(acc * scale + shift, 0.0).astype(o_ref.dtype)


def matmul_bias_bn_relu(a, w, bias, gamma, beta, *, groups=1,
                        out_dtype=jnp.bfloat16):
    # NOTE: single full-M block by design -- BatchNorm batch statistics span
    # all rows, so tiling M here would change the numerics without a
    # cross-tile reduction.
    m, k = a.shape
    n = w.shape[1]
    c = n // groups
    return pl.pallas_call(
        functools.partial(_mm_bias_bn_relu_kernel, groups=groups),
        out_shape=jax.ShapeDtypeStruct((m, n), out_dtype),
        grid=(1,),
        in_specs=[_full_spec((m, k)), _full_spec((k, n)), _full_spec((1, n)),
                  _full_spec((1, c)), _full_spec((1, c))],
        out_specs=_full_spec((m, n)),
    )(a, w, bias.reshape(1, n).astype(jnp.float32),
      gamma.reshape(1, c).astype(jnp.float32),
      beta.reshape(1, c).astype(jnp.float32))


def _bottleneck_kernel(flat_ref, wmv_ref, bmv_ref, eps_ref, wp_ref, bp_ref,
                       mean_ref, lv_ref, proj_ref, *, latent):
    # mean/var projections (concatenated weight), reparameterization and the
    # decoder projector fused into one kernel (this path is weight-load bound).
    flat = flat_ref[...].astype(jnp.bfloat16)
    mv = jnp.dot(flat, wmv_ref[...], preferred_element_type=jnp.float32)
    mv = mv + bmv_ref[...]
    mean = mv[:, :latent]
    log_var = mv[:, latent:]
    # z = eps * exp(log_var / 2) + mean   (eps ~ U[0,1), like torch.rand_like)
    z = eps_ref[...] * jnp.exp(log_var * 0.5) + mean
    proj = jnp.dot(z.astype(jnp.bfloat16), wp_ref[...],
                   preferred_element_type=jnp.float32)
    proj = proj + bp_ref[...]
    mean_ref[...] = mean
    lv_ref[...] = log_var
    proj_ref[...] = proj.astype(proj_ref.dtype)


def bottleneck(flat, mv_w, mv_b, eps, proj_w, proj_b, latent):
    n, f = flat.shape
    two_l = mv_w.shape[1]
    fp = proj_w.shape[1]
    return pl.pallas_call(
        functools.partial(_bottleneck_kernel, latent=latent),
        out_shape=(jax.ShapeDtypeStruct((n, latent), jnp.float32),
                   jax.ShapeDtypeStruct((n, latent), jnp.float32),
                   jax.ShapeDtypeStruct((n, fp), jnp.bfloat16)),
        grid=(1,),
        in_specs=[_full_spec((n, f)), _full_spec((f, two_l)),
                  _full_spec((1, two_l)), _full_spec((n, latent)),
                  _full_spec((latent, fp)), _full_spec((1, fp))],
        out_specs=(_full_spec((n, latent)), _full_spec((n, latent)),
                   _full_spec((n, fp))),
    )(flat, mv_w, mv_b.reshape(1, two_l), eps, proj_w, proj_b.reshape(1, fp))


def _loss_kernel(x_ref, o_ref, m_ref, lv_ref, loss_ref, *,
                 kl_weight, inv_elems, inv_batch):
    d = o_ref[...] - x_ref[...]
    recon = jnp.sum(jnp.sum(d * d, axis=1, keepdims=True), axis=0, keepdims=True)
    m = m_ref[...]
    lv = lv_ref[...]
    kl_rows = -0.5 * jnp.sum(1.0 + lv - m * m - jnp.exp(lv), axis=1, keepdims=True)
    kl = jnp.sum(kl_rows, axis=0, keepdims=True)
    loss_ref[...] = recon * inv_elems + kl_weight * (kl * inv_batch)


def vae_loss(x_nhwc, out_nhwc, mean, log_var, kl_weight=KL_WEIGHT):
    # MSE is permutation-invariant over elements, so NHWC == NCHW here.
    n = x_nhwc.shape[0]
    xf = x_nhwc.reshape(n, -1).astype(jnp.float32)
    of = out_nhwc.reshape(n, -1).astype(jnp.float32)
    d = xf.shape[1]
    l = mean.shape[1]
    loss = pl.pallas_call(
        functools.partial(_loss_kernel, kl_weight=float(kl_weight),
                          inv_elems=1.0 / float(n * d), inv_batch=1.0 / float(n)),
        out_shape=jax.ShapeDtypeStruct((1, 1), jnp.float32),
        grid=(1,),
        in_specs=[_full_spec((n, d)), _full_spec((n, d)),
                  _full_spec((n, l)), _full_spec((n, l))],
        out_specs=_full_spec((1, 1)),
    )(xf, of, mean, log_var)
    return loss[0, 0]


# --------------------------------------------------------------------------
# im2col / layer glue (plain JAX) -> fused Pallas matmul kernels
# --------------------------------------------------------------------------
def _im2col_s2_3x3(x):
    """3x3, stride-2, pad-1 patches of NHWC x -> (N*OH*OW, 9*C)."""
    n, h, w, c = x.shape
    oh, ow = h // 2, w // 2
    xp = jnp.pad(x, ((0, 0), (1, 1), (1, 1), (0, 0)))
    cols = [xp[:, ki:ki + 2 * oh:2, kj:kj + 2 * ow:2, :]
            for ki in range(3) for kj in range(3)]
    return jnp.concatenate(cols, axis=-1).reshape(n * oh * ow, 9 * c), (n, oh, ow)


def _im2col_s1_2x2(x):
    """2x2, stride-1 patches (pad bottom/right) -> (N*H*W, 4*C)."""
    n, h, w, c = x.shape
    xp = jnp.pad(x, ((0, 0), (0, 1), (0, 1), (0, 0)))
    cols = [xp[:, di:di + h, dj:dj + w, :] for di in range(2) for dj in range(2)]
    return jnp.concatenate(cols, axis=-1).reshape(n * h * w, 4 * c)


def conv2d_s2_bn_relu(x, wmat, bias, gamma, beta):
    """Conv2d(k=3,s=2,p=1) + BatchNorm2d + ReLU, fused in one Pallas kernel."""
    cout = wmat.shape[1]
    a, (n, oh, ow) = _im2col_s2_3x3(x)
    y = matmul_bias_bn_relu(a, wmat, bias, gamma, beta, groups=1,
                            out_dtype=jnp.bfloat16)
    return y.reshape(n, oh, ow, cout)


def _depth_to_space(y, n, h, w, cw):
    y = y.reshape(n, h, w, 2, 2, cw)
    y = jnp.transpose(y, (0, 1, 3, 2, 4, 5))
    return y.reshape(n, 2 * h, 2 * w, cw)


def deconv_s2_bn_relu(x, w2, bias2, gamma, beta):
    """ConvTranspose2d(k=3,s=2,p=1,op=1) + BN + ReLU via sub-pixel 2x2 conv."""
    n, h, w, _ = x.shape
    cw = w2.shape[1] // 4
    a = _im2col_s1_2x2(x)
    y = matmul_bias_bn_relu(a, w2, bias2, gamma, beta, groups=4,
                            out_dtype=jnp.bfloat16)
    return _depth_to_space(y, n, h, w, cw)


def deconv_s2_relu_final(x, w2, bias2, cout):
    """Final ConvTranspose2d + ReLU; output is a lane-dense 128-wide slab
    (4 parity groups x 32 padded channels), sliced to `cout` afterwards."""
    n, h, w, _ = x.shape
    cw = w2.shape[1] // 4
    a = _im2col_s1_2x2(x)
    y = matmul_bias_act(a, w2, bias2, relu=True, out_dtype=jnp.float32,
                        tile_m=256)
    y = _depth_to_space(y, n, h, w, cw)
    return y[..., :cout]


# --------------------------------------------------------------------------
# Weight preparation (done ONCE at init -- no per-forward layout work)
# --------------------------------------------------------------------------
def _conv_wmat(w_oihw):
    cout, cin, kh, kw = w_oihw.shape
    return jnp.transpose(w_oihw, (2, 3, 1, 0)).reshape(kh * kw * cin, cout)


def _deconv_subpixel_weight(w_iohw, group_width=None):
    """torch ConvTranspose2d weight (Cin,Cout,3,3) -> 2x2 stride-1 sub-pixel
    conv weight (4*Cin, 4*group_width); output columns grouped by parity
    g = 2*dr + dc with channels minor."""
    cin, cout, _, _ = w_iohw.shape
    cw = cout if group_width is None else group_width
    w2 = jnp.zeros((2, 2, cin, 4, cw), jnp.float32)
    for dr in range(2):
        for dc in range(2):
            g = dr * 2 + dc
            for di in range(2):
                for dj in range(2):
                    kh = dr - 2 * di + 1
                    kw = dc - 2 * dj + 1
                    if 0 <= kh <= 2 and 0 <= kw <= 2:
                        w2 = w2.at[di, dj, :, g, :cout].set(w_iohw[:, :, kh, kw])
    return w2.reshape(4 * cin, 4 * cw)


def _deconv_subpixel_bias(b, group_width=None):
    cout = b.shape[0]
    cw = cout if group_width is None else group_width
    bg = jnp.zeros((4, cw), jnp.float32).at[:, :cout].set(b)
    return bg.reshape(4 * cw)


def init_params(key, hiddens=HIDDENS, latent_dim=LATENT_DIM,
                image_length=IMAGE_LEN):
    """Deterministic synthetic init (torch layer shapes), pre-laid-out for the
    kernels: conv weights as (K, Cout) bf16, deconv weights as sub-pixel 2x2
    weights, linear weights with the NCHW-flatten permutation folded in."""
    keys = iter(jax.random.split(key, 32))
    scale = 0.05
    params = {"enc": [], "dec": []}

    prev, il = 3, image_length
    for cur in hiddens:
        w = jax.random.normal(next(keys), (cur, prev, 3, 3), jnp.float32) * scale
        params["enc"].append(dict(
            w=_conv_wmat(w).astype(jnp.bfloat16),
            b=jnp.zeros((cur,), jnp.float32),
            gamma=jnp.ones((cur,), jnp.float32),
            beta=jnp.zeros((cur,), jnp.float32)))
        prev = cur
        il //= 2

    flat = prev * il * il
    mean_w = jax.random.normal(next(keys), (latent_dim, flat), jnp.float32) * scale
    var_w = jax.random.normal(next(keys), (latent_dim, flat), jnp.float32) * scale

    def _rows_nchw_to_nhwc(wt):  # (latent, C*H*W) -> (H*W*C, latent)
        return jnp.transpose(wt.reshape(latent_dim, prev, il, il),
                             (2, 3, 1, 0)).reshape(flat, latent_dim)

    params["mv_w"] = jnp.concatenate(
        [_rows_nchw_to_nhwc(mean_w), _rows_nchw_to_nhwc(var_w)],
        axis=1).astype(jnp.bfloat16)                       # (flat, 2*latent)
    params["mv_b"] = jnp.zeros((2 * latent_dim,), jnp.float32)

    proj_w = jax.random.normal(next(keys), (flat, latent_dim), jnp.float32) * scale
    proj_b = jnp.zeros((flat,), jnp.float32)
    wp = jnp.transpose(proj_w.reshape(prev, il, il, latent_dim),
                       (1, 2, 0, 3)).reshape(flat, latent_dim)
    params["proj_w"] = jnp.transpose(wp, (1, 0)).astype(jnp.bfloat16)  # (latent, flat) NHWC cols
    params["proj_b"] = jnp.transpose(proj_b.reshape(prev, il, il),
                                     (1, 2, 0)).reshape(flat)

    for i in range(len(hiddens) - 1, 0, -1):
        cin, cout = hiddens[i], hiddens[i - 1]
        w = jax.random.normal(next(keys), (cin, cout, 3, 3), jnp.float32) * scale
        params["dec"].append(dict(
            w=_deconv_subpixel_weight(w).astype(jnp.bfloat16),
            b=_deconv_subpixel_bias(jnp.zeros((cout,), jnp.float32)),
            gamma=jnp.ones((cout,), jnp.float32),
            beta=jnp.zeros((cout,), jnp.float32)))

    w_last = jax.random.normal(next(keys), (hiddens[0], 3, 3, 3), jnp.float32) * scale
    b_last = jnp.zeros((3,), jnp.float32)
    params["dec_last"] = dict(
        w=_deconv_subpixel_weight(w_last, group_width=32).astype(jnp.bfloat16),
        b=_deconv_subpixel_bias(b_last, group_width=32))
    return params


# --------------------------------------------------------------------------
# Forward pass: (out, mean, log_var, loss)
# --------------------------------------------------------------------------
def vae_forward(params, x_nchw, eps_key, kl_weight=KL_WEIGHT):
    n = x_nchw.shape[0]
    x_nhwc = jnp.transpose(x_nchw, (0, 2, 3, 1)).astype(jnp.float32)

    # ---- encode (Conv+BN+ReLU fused kernels) ----
    h = x_nhwc.astype(jnp.bfloat16)
    for layer in params["enc"]:
        h = conv2d_s2_bn_relu(h, layer["w"], layer["b"],
                              layer["gamma"], layer["beta"])
    _, eh, ew, ec = h.shape                    # static Python ints under jit
    flat = h.reshape(n, eh * ew * ec)          # NCHW-flatten folded into mv_w

    # ---- bottleneck: mean/var + reparameterization + decoder projector ----
    eps = jax.random.uniform(eps_key, (n, LATENT_DIM), jnp.float32)
    mean, log_var, proj = bottleneck(flat, params["mv_w"], params["mv_b"], eps,
                                     params["proj_w"], params["proj_b"],
                                     LATENT_DIM)
    hdec = proj.reshape(n, eh, ew, ec)         # proj_w already in NHWC order

    # ---- decode (sub-pixel ConvTranspose + BN + ReLU fused kernels) ----
    for layer in params["dec"]:
        hdec = deconv_s2_bn_relu(hdec, layer["w"], layer["b"],
                                 layer["gamma"], layer["beta"])
    out_nhwc = deconv_s2_relu_final(hdec, params["dec_last"]["w"],
                                    params["dec_last"]["b"], cout=3)
    out_nchw = jnp.transpose(out_nhwc, (0, 3, 1, 2))

    # ---- loss ----
    loss = vae_loss(x_nhwc, out_nhwc, mean, log_var, kl_weight)
    return out_nchw, mean, log_var, loss


if __name__ == "__main__":
    key = jax.random.PRNGKey(0)
    pkey, xkey, ekey = jax.random.split(key, 3)
    params = init_params(pkey)
    # The module hard-codes 3 input channels and 32x32 images; batch=2.
    x = jax.random.normal(xkey, (2, 3, 32, 32), jnp.float32)

    fwd = jax.jit(vae_forward)
    out, mean, log_var, loss = fwd(params, x, ekey)
    jax.block_until_ready((out, mean, log_var, loss))

    assert out.shape == (2, 3, 32, 32)
    assert mean.shape == (2, LATENT_DIM) and log_var.shape == (2, LATENT_DIM)
    assert loss.shape == ()
    assert bool(jnp.isfinite(loss))
    print("KERNEL_OK")
</pallas_src>

<mosaic_0001>
module attributes {stable_mosaic.version = 11 : i64} {
  func.func @_mm_bias_bn_relu_kernel(%arg0: i32, %arg1: memref<512x27xbf16, #tpu.memory_space<vmem>>, %arg2: memref<27x32xbf16, #tpu.memory_space<vmem>>, %arg3: memref<1x32xf32, #tpu.memory_space<vmem>>, %arg4: memref<1x32xf32, #tpu.memory_space<vmem>>, %arg5: memref<1x32xf32, #tpu.memory_space<vmem>>, %arg6: memref<512x32xbf16, #tpu.memory_space<vmem>>) attributes {dimension_semantics = [#tpu.dimension_semantics<arbitrary>], iteration_bounds = array<i64: 1>, scalar_prefetch = 0 : i64, scratch_operands = 0 : i64, tpu.core_type = #tpu.core_type<tc>, window_params = [{pipeline_mode = #tpu.pipeline_mode<synchronous>, transform_indices = @transform_0, window_bounds = array<i64: 512, 27>}, {pipeline_mode = #tpu.pipeline_mode<synchronous>, transform_indices = @transform_1, window_bounds = array<i64: 27, 32>}, {pipeline_mode = #tpu.pipeline_mode<synchronous>, transform_indices = @transform_2, window_bounds = array<i64: 1, 32>}, {pipeline_mode = #tpu.pipeline_mode<synchronous>, transform_indices = @transform_3, window_bounds = array<i64: 1, 32>}, {pipeline_mode = #tpu.pipeline_mode<synchronous>, transform_indices = @transform_4, window_bounds = array<i64: 1, 32>}, {pipeline_mode = #tpu.pipeline_mode<synchronous>, transform_indices = @transform_5, window_bounds = array<i64: 512, 32>}]} {
    %c0 = arith.constant 0 : index
    %c0_0 = arith.constant 0 : index
    %0 = vector.load %arg1[%c0, %c0_0] : memref<512x27xbf16, #tpu.memory_space<vmem>>, vector<512x27xbf16>
    %c0_1 = arith.constant 0 : index
    %c0_2 = arith.constant 0 : index
    %1 = vector.load %arg2[%c0_1, %c0_2] : memref<27x32xbf16, #tpu.memory_space<vmem>>, vector<27x32xbf16>
    %cst = arith.constant dense<0.000000e+00> : vector<512x32xf32>
    %2 = tpu.matmul %0, %1, %cst {dimension_numbers = #tpu.dot_dimension_numbers<[1], [0], [0], [1], [0, 0, 1, 1], [], []>} : vector<512x27xbf16>, vector<27x32xbf16>, vector<512x32xf32> -> vector<512x32xf32>
    %c0_3 = arith.constant 0 : index
    %c0_4 = arith.constant 0 : index
    %3 = vector.load %arg3[%c0_3, %c0_4] : memref<1x32xf32, #tpu.memory_space<vmem>>, vector<1x32xf32>
    %4 = vector.broadcast %3 : vector<1x32xf32> to vector<512x32xf32>
    %5 = arith.addf %2, %4 : vector<512x32xf32>
    %cst_5 = arith.constant dense<0.000000e+00> : vector<32xf32>
    %6 = vector.multi_reduction <add>, %5, %cst_5 [0] : vector<512x32xf32> to vector<32xf32>
    %7 = vector.shape_cast %6 : vector<32xf32> to vector<1x32xf32>
    %8 = arith.mulf %5, %5 : vector<512x32xf32>
    %cst_6 = arith.constant dense<0.000000e+00> : vector<32xf32>
    %9 = vector.multi_reduction <add>, %8, %cst_6 [0] : vector<512x32xf32> to vector<32xf32>
    %10 = vector.shape_cast %9 : vector<32xf32> to vector<1x32xf32>
    %cst_7 = arith.constant 0.001953125 : f32
    %11 = vector.broadcast %cst_7 : f32 to vector<1x32xf32>
    %12 = arith.mulf %7, %11 : vector<1x32xf32>
    %cst_8 = arith.constant 0.001953125 : f32
    %13 = vector.broadcast %cst_8 : f32 to vector<1x32xf32>
    %14 = arith.mulf %10, %13 : vector<1x32xf32>
    %15 = arith.mulf %12, %12 : vector<1x32xf32>
    %16 = arith.subf %14, %15 : vector<1x32xf32>
    %cst_9 = arith.constant 9.99999974E-6 : f32
    %17 = vector.broadcast %cst_9 : f32 to vector<1x32xf32>
    %18 = arith.addf %16, %17 : vector<1x32xf32>
    %19 = math.rsqrt %18 : vector<1x32xf32>
    %c0_10 = arith.constant 0 : index
    %c0_11 = arith.constant 0 : index
    %20 = vector.load %arg4[%c0_10, %c0_11] : memref<1x32xf32, #tpu.memory_space<vmem>>, vector<1x32xf32>
    %21 = arith.mulf %19, %20 : vector<1x32xf32>
    %c0_12 = arith.constant 0 : index
    %c0_13 = arith.constant 0 : index
    %22 = vector.load %arg5[%c0_12, %c0_13] : memref<1x32xf32, #tpu.memory_space<vmem>>, vector<1x32xf32>
    %23 = arith.mulf %12, %21 : vector<1x32xf32>
    %24 = arith.subf %22, %23 : vector<1x32xf32>
    %25 = vector.broadcast %21 : vector<1x32xf32> to vector<512x32xf32>
    %26 = arith.mulf %5, %25 : vector<512x32xf32>
    %27 = vector.broadcast %24 : vector<1x32xf32> to vector<512x32xf32>
    %28 = arith.addf %26, %27 : vector<512x32xf32>
    %cst_14 = arith.constant 0.000000e+00 : f32
    %29 = vector.broadcast %cst_14 : f32 to vector<512x32xf32>
    %30 = arith.maximumf %28, %29 : vector<512x32xf32>
    %31 = arith.truncf %30 : vector<512x32xf32> to vector<512x32xbf16>
    %c0_15 = arith.constant 0 : index
    %c0_16 = arith.constant 0 : index
    %32 = vector.load %arg6[%c0_15, %c0_16] : memref<512x32xbf16, #tpu.memory_space<vmem>>, vector<512x32xbf16>
    tpu.vector_store %arg6[%c0_15, %c0_16], %31 {strides = array<i32>} : memref<512x32xbf16, #tpu.memory_space<vmem>>, vector<512x32xbf16>,
    return
  }
  func.func @transform_0(%arg0: i32) -> (i32, i32) {
    %c0_i32 = arith.constant 0 : i32
    %c0_i32_0 = arith.constant 0 : i32
    %c0_i32_1 = arith.constant 0 : i32
    return %c0_i32, %c0_i32_0 : i32, i32
  }
  func.func @transform_1(%arg0: i32) -> (i32, i32) {
    %c0_i32 = arith.constant 0 : i32
    %c0_i32_0 = arith.constant 0 : i32
    %c0_i32_1 = arith.constant 0 : i32
    return %c0_i32, %c0_i32_0 : i32, i32
  }
  func.func @transform_2(%arg0: i32) -> (i32, i32) {
    %c0_i32 = arith.constant 0 : i32
    %c0_i32_0 = arith.constant 0 : i32
    %c0_i32_1 = arith.constant 0 : i32
    return %c0_i32, %c0_i32_0 : i32, i32
  }
  func.func @transform_3(%arg0: i32) -> (i32, i32) {
    %c0_i32 = arith.constant 0 : i32
    %c0_i32_0 = arith.constant 0 : i32
    %c0_i32_1 = arith.constant 0 : i32
    return %c0_i32, %c0_i32_0 : i32, i32
  }
  func.func @transform_4(%arg0: i32) -> (i32, i32) {
    %c0_i32 = arith.constant 0 : i32
    %c0_i32_0 = arith.constant 0 : i32
    %c0_i32_1 = arith.constant 0 : i32
    return %c0_i32, %c0_i32_0 : i32, i32
  }
  func.func @transform_5(%arg0: i32) -> (i32, i32) {
    %c0_i32 = arith.constant 0 : i32
    %c0_i32_0 = arith.constant 0 : i32
    %c0_i32_1 = arith.constant 0 : i32
    return %c0_i32, %c0_i32_0 : i32, i32
  }
}

module attributes {stable_mosaic.version = 11 : i64} {
  func.func @_mm_bias_bn_relu_kernel(%arg0: i32, %arg1: memref<128x288xbf16, #tpu.memory_space<vmem>>, %arg2: memref<288x64xbf16, #tpu.memory_space<vmem>>, %arg3: memref<1x64xf32, #tpu.memory_space<vmem>>, %arg4: memref<1x64xf32, #tpu.memory_space<vmem>>, %arg5: memref<1x64xf32, #tpu.memory_space<vmem>>, %arg6: memref<128x64xbf16, #tpu.memory_space<vmem>>) attributes {dimension_semantics = [#tpu.dimension_semantics<arbitrary>], iteration_bounds = array<i64: 1>, scalar_prefetch = 0 : i64, scratch_operands = 0 : i64, tpu.core_type = #tpu.core_type<tc>, window_params = [{pipeline_mode = #tpu.pipeline_mode<synchronous>, transform_indices = @transform_0, window_bounds = array<i64: 128, 288>}, {pipeline_mode = #tpu.pipeline_mode<synchronous>, transform_indices = @transform_1, window_bounds = array<i64: 288, 64>}, {pipeline_mode = #tpu.pipeline_mode<synchronous>, transform_indices = @transform_2, window_bounds = array<i64: 1, 64>}, {pipeline_mode = #tpu.pipeline_mode<synchronous>, transform_indices = @transform_3, window_bounds = array<i64: 1, 64>}, {pipeline_mode = #tpu.pipeline_mode<synchronous>, transform_indices = @transform_4, window_bounds = array<i64: 1, 64>}, {pipeline_mode = #tpu.pipeline_mode<synchronous>, transform_indices = @transform_5, window_bounds = array<i64: 128, 64>}]} {
    %c0 = arith.constant 0 : index
    %c0_0 = arith.constant 0 : index
    %0 = vector.load %arg1[%c0, %c0_0] : memref<128x288xbf16, #tpu.memory_space<vmem>>, vector<128x288xbf16>
    %c0_1 = arith.constant 0 : index
    %c0_2 = arith.constant 0 : index
    %1 = vector.load %arg2[%c0_1, %c0_2] : memref<288x64xbf16, #tpu.memory_space<vmem>>, vector<288x64xbf16>
    %cst = arith.constant dense<0.000000e+00> : vector<128x64xf32>
    %2 = tpu.matmul %0, %1, %cst {dimension_numbers = #tpu.dot_dimension_numbers<[1], [0], [0], [1], [0, 0, 1, 1], [], []>} : vector<128x288xbf16>, vector<288x64xbf16>, vector<128x64xf32> -> vector<128x64xf32>
    %c0_3 = arith.constant 0 : index
    %c0_4 = arith.constant 0 : index
    %3 = vector.load %arg3[%c0_3, %c0_4] : memref<1x64xf32, #tpu.memory_space<vmem>>, vector<1x64xf32>
    %4 = vector.broadcast %3 : vector<1x64xf32> to vector<128x64xf32>
    %5 = arith.addf %2, %4 : vector<128x64xf32>
    %cst_5 = arith.constant dense<0.000000e+00> : vector<64xf32>
    %6 = vector.multi_reduction <add>, %5, %cst_5 [0] : vector<128x64xf32> to vector<64xf32>
    %7 = vector.shape_cast %6 : vector<64xf32> to vector<1x64xf32>
    %8 = arith.mulf %5, %5 : vector<128x64xf32>
    %cst_6 = arith.constant dense<0.000000e+00> : vector<64xf32>
    %9 = vector.multi_reduction <add>, %8, %cst_6 [0] : vector<128x64xf32> to vector<64xf32>
    %10 = vector.shape_cast %9 : vector<64xf32> to vector<1x64xf32>
    %cst_7 = arith.constant 7.812500e-03 : f32
    %11 = vector.broadcast %cst_7 : f32 to vector<1x64xf32>
    %12 = arith.mulf %7, %11 : vector<1x64xf32>
    %cst_8 = arith.constant 7.812500e-03 : f32
    %13 = vector.broadcast %cst_8 : f32 to vector<1x64xf32>
    %14 = arith.mulf %10, %13 : vector<1x64xf32>
    %15 = arith.mulf %12, %12 : vector<1x64xf32>
    %16 = arith.subf %14, %15 : vector<1x64xf32>
    %cst_9 = arith.constant 9.99999974E-6 : f32
    %17 = vector.broadcast %cst_9 : f32 to vector<1x64xf32>
    %18 = arith.addf %16, %17 : vector<1x64xf32>
    %19 = math.rsqrt %18 : vector<1x64xf32>
    %c0_10 = arith.constant 0 : index
    %c0_11 = arith.constant 0 : index
    %20 = vector.load %arg4[%c0_10, %c0_11] : memref<1x64xf32, #tpu.memory_space<vmem>>, vector<1x64xf32>
    %21 = arith.mulf %19, %20 : vector<1x64xf32>
    %c0_12 = arith.constant 0 : index
    %c0_13 = arith.constant 0 : index
    %22 = vector.load %arg5[%c0_12, %c0_13] : memref<1x64xf32, #tpu.memory_space<vmem>>, vector<1x64xf32>
    %23 = arith.mulf %12, %21 : vector<1x64xf32>
    %24 = arith.subf %22, %23 : vector<1x64xf32>
    %25 = vector.broadcast %21 : vector<1x64xf32> to vector<128x64xf32>
    %26 = arith.mulf %5, %25 : vector<128x64xf32>
    %27 = vector.broadcast %24 : vector<1x64xf32> to vector<128x64xf32>
    %28 = arith.addf %26, %27 : vector<128x64xf32>
    %cst_14 = arith.constant 0.000000e+00 : f32
    %29 = vector.broadcast %cst_14 : f32 to vector<128x64xf32>
    %30 = arith.maximumf %28, %29 : vector<128x64xf32>
    %31 = arith.truncf %30 : vector<128x64xf32> to vector<128x64xbf16>
    %c0_15 = arith.constant 0 : index
    %c0_16 = arith.constant 0 : index
    %32 = vector.load %arg6[%c0_15, %c0_16] : memref<128x64xbf16, #tpu.memory_space<vmem>>, vector<128x64xbf16>
    tpu.vector_store %arg6[%c0_15, %c0_16], %31 {strides = array<i32>} : memref<128x64xbf16, #tpu.memory_space<vmem>>, vector<128x64xbf16>,
    return
  }
  func.func @transform_0(%arg0: i32) -> (i32, i32) {
    %c0_i32 = arith.constant 0 : i32
    %c0_i32_0 = arith.constant 0 : i32
    %c0_i32_1 = arith.constant 0 : i32
    return %c0_i32, %c0_i32_0 : i32, i32
  }
  func.func @transform_1(%arg0: i32) -> (i32, i32) {
    %c0_i32 = arith.constant 0 : i32
    %c0_i32_0 = arith.constant 0 : i32
    %c0_i32_1 = arith.constant 0 : i32
    return %c0_i32, %c0_i32_0 : i32, i32
  }
  func.func @transform_2(%arg0: i32) -> (i32, i32) {
    %c0_i32 = arith.constant 0 : i32
    %c0_i32_0 = arith.constant 0 : i32
    %c0_i32_1 = arith.constant 0 : i32
    return %c0_i32, %c0_i32_0 : i32, i32
  }
  func.func @transform_3(%arg0: i32) -> (i32, i32) {
    %c0_i32 = arith.constant 0 : i32
    %c0_i32_0 = arith.constant 0 : i32
    %c0_i32_1 = arith.constant 0 : i32
    return %c0_i32, %c0_i32_0 : i32, i32
  }
  func.func @transform_4(%arg0: i32) -> (i32, i32) {
    %c0_i32 = arith.constant 0 : i32
    %c0_i32_0 = arith.constant 0 : i32
    %c0_i32_1 = arith.constant 0 : i32
    return %c0_i32, %c0_i32_0 : i32, i32
  }
  func.func @transform_5(%arg0: i32) -> (i32, i32) {
    %c0_i32 = arith.constant 0 : i32
    %c0_i32_0 = arith.constant 0 : i32
    %c0_i32_1 = arith.constant 0 : i32
    return %c0_i32, %c0_i32_0 : i32, i32
  }
}

module attributes {stable_mosaic.version = 11 : i64} {
  func.func @_mm_bias_bn_relu_kernel(%arg0: i32, %arg1: memref<32x576xbf16, #tpu.memory_space<vmem>>, %arg2: memref<576x128xbf16, #tpu.memory_space<vmem>>, %arg3: memref<1x128xf32, #tpu.memory_space<vmem>>, %arg4: memref<1x128xf32, #tpu.memory_space<vmem>>, %arg5: memref<1x128xf32, #tpu.memory_space<vmem>>, %arg6: memref<32x128xbf16, #tpu.memory_space<vmem>>) attributes {dimension_semantics = [#tpu.dimension_semantics<arbitrary>], iteration_bounds = array<i64: 1>, scalar_prefetch = 0 : i64, scratch_operands = 0 : i64, tpu.core_type = #tpu.core_type<tc>, window_params = [{pipeline_mode = #tpu.pipeline_mode<synchronous>, transform_indices = @transform_0, window_bounds = array<i64: 32, 576>}, {pipeline_mode = #tpu.pipeline_mode<synchronous>, transform_indices = @transform_1, window_bounds = array<i64: 576, 128>}, {pipeline_mode = #tpu.pipeline_mode<synchronous>, transform_indices = @transform_2, window_bounds = array<i64: 1, 128>}, {pipeline_mode = #tpu.pipeline_mode<synchronous>, transform_indices = @transform_3, window_bounds = array<i64: 1, 128>}, {pipeline_mode = #tpu.pipeline_mode<synchronous>, transform_indices = @transform_4, window_bounds = array<i64: 1, 128>}, {pipeline_mode = #tpu.pipeline_mode<synchronous>, transform_indices = @transform_5, window_bounds = array<i64: 32, 128>}]} {
    %c0 = arith.constant 0 : index
    %c0_0 = arith.constant 0 : index
    %0 = vector.load %arg1[%c0, %c0_0] : memref<32x576xbf16, #tpu.memory_space<vmem>>, vector<32x576xbf16>
    %c0_1 = arith.constant 0 : index
    %c0_2 = arith.constant 0 : index
    %1 = vector.load %arg2[%c0_1, %c0_2] : memref<576x128xbf16, #tpu.memory_space<vmem>>, vector<576x128xbf16>
    %cst = arith.constant dense<0.000000e+00> : vector<32x128xf32>
    %2 = tpu.matmul %0, %1, %cst {dimension_numbers = #tpu.dot_dimension_numbers<[1], [0], [0], [1], [0, 0, 1, 1], [], []>} : vector<32x576xbf16>, vector<576x128xbf16>, vector<32x128xf32> -> vector<32x128xf32>
    %c0_3 = arith.constant 0 : index
    %c0_4 = arith.constant 0 : index
    %3 = vector.load %arg3[%c0_3, %c0_4] : memref<1x128xf32, #tpu.memory_space<vmem>>, vector<1x128xf32>
    %4 = vector.broadcast %3 : vector<1x128xf32> to vector<32x128xf32>
    %5 = arith.addf %2, %4 : vector<32x128xf32>
    %cst_5 = arith.constant dense<0.000000e+00> : vector<128xf32>
    %6 = vector.multi_reduction <add>, %5, %cst_5 [0] : vector<32x128xf32> to vector<128xf32>
    %7 = vector.shape_cast %6 : vector<128xf32> to vector<1x128xf32>
    %8 = arith.mulf %5, %5 : vector<32x128xf32>
    %cst_6 = arith.constant dense<0.000000e+00> : vector<128xf32>
    %9 = vector.multi_reduction <add>, %8, %cst_6 [0] : vector<32x128xf32> to vector<128xf32>
    %10 = vector.shape_cast %9 : vector<128xf32> to vector<1x128xf32>
    %cst_7 = arith.constant 3.125000e-02 : f32
    %11 = vector.broadcast %cst_7 : f32 to vector<1x128xf32>
    %12 = arith.mulf %7, %11 : vector<1x128xf32>
    %cst_8 = arith.constant 3.125000e-02 : f32
    %13 = vector.broadcast %cst_8 : f32 to vector<1x128xf32>
    %14 = arith.mulf %10, %13 : vector<1x128xf32>
    %15 = arith.mulf %12, %12 : vector<1x128xf32>
    %16 = arith.subf %14, %15 : vector<1x128xf32>
    %cst_9 = arith.constant 9.99999974E-6 : f32
    %17 = vector.broadcast %cst_9 : f32 to vector<1x128xf32>
    %18 = arith.addf %16, %17 : vector<1x128xf32>
    %19 = math.rsqrt %18 : vector<1x128xf32>
    %c0_10 = arith.constant 0 : index
    %c0_11 = arith.constant 0 : index
    %20 = vector.load %arg4[%c0_10, %c0_11] : memref<1x128xf32, #tpu.memory_space<vmem>>, vector<1x128xf32>
    %21 = arith.mulf %19, %20 : vector<1x128xf32>
    %c0_12 = arith.constant 0 : index
    %c0_13 = arith.constant 0 : index
    %22 = vector.load %arg5[%c0_12, %c0_13] : memref<1x128xf32, #tpu.memory_space<vmem>>, vector<1x128xf32>
    %23 = arith.mulf %12, %21 : vector<1x128xf32>
    %24 = arith.subf %22, %23 : vector<1x128xf32>
    %25 = vector.broadcast %21 : vector<1x128xf32> to vector<32x128xf32>
    %26 = arith.mulf %5, %25 : vector<32x128xf32>
    %27 = vector.broadcast %24 : vector<1x128xf32> to vector<32x128xf32>
    %28 = arith.addf %26, %27 : vector<32x128xf32>
    %cst_14 = arith.constant 0.000000e+00 : f32
    %29 = vector.broadcast %cst_14 : f32 to vector<32x128xf32>
    %30 = arith.maximumf %28, %29 : vector<32x128xf32>
    %31 = arith.truncf %30 : vector<32x128xf32> to vector<32x128xbf16>
    %c0_15 = arith.constant 0 : index
    %c0_16 = arith.constant 0 : index
    %32 = vector.load %arg6[%c0_15, %c0_16] : memref<32x128xbf16, #tpu.memory_space<vmem>>, vector<32x128xbf16>
    tpu.vector_store %arg6[%c0_15, %c0_16], %31 {strides = array<i32>} : memref<32x128xbf16, #tpu.memory_space<vmem>>, vector<32x128xbf16>,
    return
  }
  func.func @transform_0(%arg0: i32) -> (i32, i32) {
    %c0_i32 = arith.constant 0 : i32
    %c0_i32_0 = arith.constant 0 : i32
    %c0_i32_1 = arith.constant 0 : i32
    return %c0_i32, %c0_i32_0 : i32, i32
  }
  func.func @transform_1(%arg0: i32) -> (i32, i32) {
    %c0_i32 = arith.constant 0 : i32
    %c0_i32_0 = arith.constant 0 : i32
    %c0_i32_1 = arith.constant 0 : i32
    return %c0_i32, %c0_i32_0 : i32, i32
  }
  func.func @transform_2(%arg0: i32) -> (i32, i32) {
    %c0_i32 = arith.constant 0 : i32
    %c0_i32_0 = arith.constant 0 : i32
    %c0_i32_1 = arith.constant 0 : i32
    return %c0_i32, %c0_i32_0 : i32, i32
  }
  func.func @transform_3(%arg0: i32) -> (i32, i32) {
    %c0_i32 = arith.constant 0 : i32
    %c0_i32_0 = arith.constant 0 : i32
    %c0_i32_1 = arith.constant 0 : i32
    return %c0_i32, %c0_i32_0 : i32, i32
  }
  func.func @transform_4(%arg0: i32) -> (i32, i32) {
    %c0_i32 = arith.constant 0 : i32
    %c0_i32_0 = arith.constant 0 : i32
    %c0_i32_1 = arith.constant 0 : i32
    return %c0_i32, %c0_i32_0 : i32, i32
  }
  func.func @transform_5(%arg0: i32) -> (i32, i32) {
    %c0_i32 = arith.constant 0 : i32
    %c0_i32_0 = arith.constant 0 : i32
    %c0_i32_1 = arith.constant 0 : i32
    return %c0_i32, %c0_i32_0 : i32, i32
  }
}

module attributes {stable_mosaic.version = 11 : i64} {
  func.func @_mm_bias_bn_relu_kernel(%arg0: i32, %arg1: memref<8x1152xbf16, #tpu.memory_space<vmem>>, %arg2: memref<1152x256xbf16, #tpu.memory_space<vmem>>, %arg3: memref<1x256xf32, #tpu.memory_space<vmem>>, %arg4: memref<1x256xf32, #tpu.memory_space<vmem>>, %arg5: memref<1x256xf32, #tpu.memory_space<vmem>>, %arg6: memref<8x256xbf16, #tpu.memory_space<vmem>>) attributes {dimension_semantics = [#tpu.dimension_semantics<arbitrary>], iteration_bounds = array<i64: 1>, scalar_prefetch = 0 : i64, scratch_operands = 0 : i64, tpu.core_type = #tpu.core_type<tc>, window_params = [{pipeline_mode = #tpu.pipeline_mode<synchronous>, transform_indices = @transform_0, window_bounds = array<i64: 8, 1152>}, {pipeline_mode = #tpu.pipeline_mode<synchronous>, transform_indices = @transform_1, window_bounds = array<i64: 1152, 256>}, {pipeline_mode = #tpu.pipeline_mode<synchronous>, transform_indices = @transform_2, window_bounds = array<i64: 1, 256>}, {pipeline_mode = #tpu.pipeline_mode<synchronous>, transform_indices = @transform_3, window_bounds = array<i64: 1, 256>}, {pipeline_mode = #tpu.pipeline_mode<synchronous>, transform_indices = @transform_4, window_bounds = array<i64: 1, 256>}, {pipeline_mode = #tpu.pipeline_mode<synchronous>, transform_indices = @transform_5, window_bounds = array<i64: 8, 256>}]} {
    %c0 = arith.constant 0 : index
    %c0_0 = arith.constant 0 : index
    %0 = vector.load %arg1[%c0, %c0_0] : memref<8x1152xbf16, #tpu.memory_space<vmem>>, vector<8x1152xbf16>
    %c0_1 = arith.constant 0 : index
    %c0_2 = arith.constant 0 : index
    %1 = vector.load %arg2[%c0_1, %c0_2] : memref<1152x256xbf16, #tpu.memory_space<vmem>>, vector<1152x256xbf16>
    %cst = arith.constant dense<0.000000e+00> : vector<8x256xf32>
    %2 = tpu.matmul %0, %1, %cst {dimension_numbers = #tpu.dot_dimension_numbers<[1], [0], [0], [1], [0, 0, 1, 1], [], []>} : vector<8x1152xbf16>, vector<1152x256xbf16>, vector<8x256xf32> -> vector<8x256xf32>
    %c0_3 = arith.constant 0 : index
    %c0_4 = arith.constant 0 : index
    %3 = vector.load %arg3[%c0_3, %c0_4] : memref<1x256xf32, #tpu.memory_space<vmem>>, vector<1x256xf32>
    %4 = vector.broadcast %3 : vector<1x256xf32> to vector<8x256xf32>
    %5 = arith.addf %2, %4 : vector<8x256xf32>
    %cst_5 = arith.constant dense<0.000000e+00> : vector<256xf32>
    %6 = vector.multi_reduction <add>, %5, %cst_5 [0] : vector<8x256xf32> to vector<256xf32>
    %7 = vector.shape_cast %6 : vector<256xf32> to vector<1x256xf32>
    %8 = arith.mulf %5, %5 : vector<8x256xf32>
    %cst_6 = arith.constant dense<0.000000e+00> : vector<256xf32>
    %9 = vector.multi_reduction <add>, %8, %cst_6 [0] : vector<8x256xf32> to vector<256xf32>
    %10 = vector.shape_cast %9 : vector<256xf32> to vector<1x256xf32>
    %cst_7 = arith.constant 1.250000e-01 : f32
    %11 = vector.broadcast %cst_7 : f32 to vector<1x256xf32>
    %12 = arith.mulf %7, %11 : vector<1x256xf32>
    %cst_8 = arith.constant 1.250000e-01 : f32
    %13 = vector.broadcast %cst_8 : f32 to vector<1x256xf32>
    %14 = arith.mulf %10, %13 : vector<1x256xf32>
    %15 = arith.mulf %12, %12 : vector<1x256xf32>
    %16 = arith.subf %14, %15 : vector<1x256xf32>
    %cst_9 = arith.constant 9.99999974E-6 : f32
    %17 = vector.broadcast %cst_9 : f32 to vector<1x256xf32>
    %18 = arith.addf %16, %17 : vector<1x256xf32>
    %19 = math.rsqrt %18 : vector<1x256xf32>
    %c0_10 = arith.constant 0 : index
    %c0_11 = arith.constant 0 : index
    %20 = vector.load %arg4[%c0_10, %c0_11] : memref<1x256xf32, #tpu.memory_space<vmem>>, vector<1x256xf32>
    %21 = arith.mulf %19, %20 : vector<1x256xf32>
    %c0_12 = arith.constant 0 : index
    %c0_13 = arith.constant 0 : index
    %22 = vector.load %arg5[%c0_12, %c0_13] : memref<1x256xf32, #tpu.memory_space<vmem>>, vector<1x256xf32>
    %23 = arith.mulf %12, %21 : vector<1x256xf32>
    %24 = arith.subf %22, %23 : vector<1x256xf32>
    %25 = vector.broadcast %21 : vector<1x256xf32> to vector<8x256xf32>
    %26 = arith.mulf %5, %25 : vector<8x256xf32>
    %27 = vector.broadcast %24 : vector<1x256xf32> to vector<8x256xf32>
    %28 = arith.addf %26, %27 : vector<8x256xf32>
    %cst_14 = arith.constant 0.000000e+00 : f32
    %29 = vector.broadcast %cst_14 : f32 to vector<8x256xf32>
    %30 = arith.maximumf %28, %29 : vector<8x256xf32>
    %31 = arith.truncf %30 : vector<8x256xf32> to vector<8x256xbf16>
    %c0_15 = arith.constant 0 : index
    %c0_16 = arith.constant 0 : index
    %32 = vector.load %arg6[%c0_15, %c0_16] : memref<8x256xbf16, #tpu.memory_space<vmem>>, vector<8x256xbf16>
    tpu.vector_store %arg6[%c0_15, %c0_16], %31 {strides = array<i32>} : memref<8x256xbf16, #tpu.memory_space<vmem>>, vector<8x256xbf16>,
    return
  }
  func.func @transform_0(%arg0: i32) -> (i32, i32) {
    %c0_i32 = arith.constant 0 : i32
    %c0_i32_0 = arith.constant 0 : i32
    %c0_i32_1 = arith.constant 0 : i32
    return %c0_i32, %c0_i32_0 : i32, i32
  }
  func.func @transform_1(%arg0: i32) -> (i32, i32) {
    %c0_i32 = arith.constant 0 : i32
    %c0_i32_0 = arith.constant 0 : i32
    %c0_i32_1 = arith.constant 0 : i32
    return %c0_i32, %c0_i32_0 : i32, i32
  }
  func.func @transform_2(%arg0: i32) -> (i32, i32) {
    %c0_i32 = arith.constant 0 : i32
    %c0_i32_0 = arith.constant 0 : i32
    %c0_i32_1 = arith.constant 0 : i32
    return %c0_i32, %c0_i32_0 : i32, i32
  }
  func.func @transform_3(%arg0: i32) -> (i32, i32) {
    %c0_i32 = arith.constant 0 : i32
    %c0_i32_0 = arith.constant 0 : i32
    %c0_i32_1 = arith.constant 0 : i32
    return %c0_i32, %c0_i32_0 : i32, i32
  }
  func.func @transform_4(%arg0: i32) -> (i32, i32) {
    %c0_i32 = arith.constant 0 : i32
    %c0_i32_0 = arith.constant 0 : i32
    %c0_i32_1 = arith.constant 0 : i32
    return %c0_i32, %c0_i32_0 : i32, i32
  }
  func.func @transform_5(%arg0: i32) -> (i32, i32) {
    %c0_i32 = arith.constant 0 : i32
    %c0_i32_0 = arith.constant 0 : i32
    %c0_i32_1 = arith.constant 0 : i32
    return %c0_i32, %c0_i32_0 : i32, i32
  }
}

module attributes {stable_mosaic.version = 11 : i64} {
  func.func @_mm_bias_bn_relu_kernel(%arg0: i32, %arg1: memref<8x1024xbf16, #tpu.memory_space<vmem>>, %arg2: memref<1024x512xbf16, #tpu.memory_space<vmem>>, %arg3: memref<1x512xf32, #tpu.memory_space<vmem>>, %arg4: memref<1x128xf32, #tpu.memory_space<vmem>>, %arg5: memref<1x128xf32, #tpu.memory_space<vmem>>, %arg6: memref<8x512xbf16, #tpu.memory_space<vmem>>) attributes {dimension_semantics = [#tpu.dimension_semantics<arbitrary>], iteration_bounds = array<i64: 1>, scalar_prefetch = 0 : i64, scratch_operands = 0 : i64, tpu.core_type = #tpu.core_type<tc>, window_params = [{pipeline_mode = #tpu.pipeline_mode<synchronous>, transform_indices = @transform_0, window_bounds = array<i64: 8, 1024>}, {pipeline_mode = #tpu.pipeline_mode<synchronous>, transform_indices = @transform_1, window_bounds = array<i64: 1024, 512>}, {pipeline_mode = #tpu.pipeline_mode<synchronous>, transform_indices = @transform_2, window_bounds = array<i64: 1, 512>}, {pipeline_mode = #tpu.pipeline_mode<synchronous>, transform_indices = @transform_3, window_bounds = array<i64: 1, 128>}, {pipeline_mode = #tpu.pipeline_mode<synchronous>, transform_indices = @transform_4, window_bounds = array<i64: 1, 128>}, {pipeline_mode = #tpu.pipeline_mode<synchronous>, transform_indices = @transform_5, window_bounds = array<i64: 8, 512>}]} {
    %c0 = arith.constant 0 : index
    %c0_0 = arith.constant 0 : index
    %0 = vector.load %arg1[%c0, %c0_0] : memref<8x1024xbf16, #tpu.memory_space<vmem>>, vector<8x1024xbf16>
    %c0_1 = arith.constant 0 : index
    %c0_2 = arith.constant 0 : index
    %1 = vector.load %arg2[%c0_1, %c0_2] : memref<1024x512xbf16, #tpu.memory_space<vmem>>, vector<1024x512xbf16>
    %cst = arith.constant dense<0.000000e+00> : vector<8x512xf32>
    %2 = tpu.matmul %0, %1, %cst {dimension_numbers = #tpu.dot_dimension_numbers<[1], [0], [0], [1], [0, 0, 1, 1], [], []>} : vector<8x1024xbf16>, vector<1024x512xbf16>, vector<8x512xf32> -> vector<8x512xf32>
    %c0_3 = arith.constant 0 : index
    %c0_4 = arith.constant 0 : index
    %3 = vector.load %arg3[%c0_3, %c0_4] : memref<1x512xf32, #tpu.memory_space<vmem>>, vector<1x512xf32>
    %4 = vector.broadcast %3 : vector<1x512xf32> to vector<8x512xf32>
    %5 = arith.addf %2, %4 : vector<8x512xf32>
    %cst_5 = arith.constant dense<0.000000e+00> : vector<512xf32>
    %6 = vector.multi_reduction <add>, %5, %cst_5 [0] : vector<8x512xf32> to vector<512xf32>
    %7 = vector.shape_cast %6 : vector<512xf32> to vector<1x512xf32>
    %8 = arith.mulf %5, %5 : vector<8x512xf32>
    %cst_6 = arith.constant dense<0.000000e+00> : vector<512xf32>
    %9 = vector.multi_reduction <add>, %8, %cst_6 [0] : vector<8x512xf32> to vector<512xf32>
    %10 = vector.shape_cast %9 : vector<512xf32> to vector<1x512xf32>
    %11 = vector.extract_strided_slice %7 {offsets = [0, 0], sizes = [1, 128], strides = [1, 1]} : vector<1x512xf32> to vector<1x128xf32>
    %12 = vector.extract_strided_slice %10 {offsets = [0, 0], sizes = [1, 128], strides = [1, 1]} : vector<1x512xf32> to vector<1x128xf32>
    %13 = vector.extract_strided_slice %7 {offsets = [0, 128], sizes = [1, 128], strides = [1, 1]} : vector<1x512xf32> to vector<1x128xf32>
    %14 = arith.addf %11, %13 : vector<1x128xf32>
    %15 = vector.extract_strided_slice %10 {offsets = [0, 128], sizes = [1, 128], strides = [1, 1]} : vector<1x512xf32> to vector<1x128xf32>
    %16 = arith.addf %12, %15 : vector<1x128xf32>
    %17 = vector.extract_strided_slice %7 {offsets = [0, 256], sizes = [1, 128], strides = [1, 1]} : vector<1x512xf32> to vector<1x128xf32>
    %18 = arith.addf %14, %17 : vector<1x128xf32>
    %19 = vector.extract_strided_slice %10 {offsets = [0, 256], sizes = [1, 128], strides = [1, 1]} : vector<1x512xf32> to vector<1x128xf32>
    %20 = arith.addf %16, %19 : vector<1x128xf32>
    %21 = vector.extract_strided_slice %7 {offsets = [0, 384], sizes = [1, 128], strides = [1, 1]} : vector<1x512xf32> to vector<1x128xf32>
    %22 = arith.addf %18, %21 : vector<1x128xf32>
    %23 = vector.extract_strided_slice %10 {offsets = [0, 384], sizes = [1, 128], strides = [1, 1]} : vector<1x512xf32> to vector<1x128xf32>
    %24 = arith.addf %20, %23 : vector<1x128xf32>
    %cst_7 = arith.constant 3.125000e-02 : f32
    %25 = vector.broadcast %cst_7 : f32 to vector<1x128xf32>
    %26 = arith.mulf %22, %25 : vector<1x128xf32>
    %cst_8 = arith.constant 3.125000e-02 : f32
    %27 = vector.broadcast %cst_8 : f32 to vector<1x128xf32>
    %28 = arith.mulf %24, %27 : vector<1x128xf32>
    %29 = arith.mulf %26, %26 : vector<1x128xf32>
    %30 = arith.subf %28, %29 : vector<1x128xf32>
    %cst_9 = arith.constant 9.99999974E-6 : f32
    %31 = vector.broadcast %cst_9 : f32 to vector<1x128xf32>
    %32 = arith.addf %30, %31 : vector<1x128xf32>
    %33 = math.rsqrt %32 : vector<1x128xf32>
    %c0_10 = arith.constant 0 : index
    %c0_11 = arith.constant 0 : index
    %34 = vector.load %arg4[%c0_10, %c0_11] : memref<1x128xf32, #tpu.memory_space<vmem>>, vector<1x128xf32>
    %35 = arith.mulf %33, %34 : vector<1x128xf32>
    %c0_12 = arith.constant 0 : index
    %c0_13 = arith.constant 0 : index
    %36 = vector.load %arg5[%c0_12, %c0_13] : memref<1x128xf32, #tpu.memory_space<vmem>>, vector<1x128xf32>
    %37 = arith.mulf %26, %35 : vector<1x128xf32>
    %38 = arith.subf %36, %37 : vector<1x128xf32>
    %39 = tpu.concatenate %35, %35, %35, %35 in 1 : vector<1x128xf32>, vector<1x128xf32>, vector<1x128xf32>, vector<1x128xf32> -> vector<1x512xf32>
    %40 = tpu.concatenate %38, %38, %38, %38 in 1 : vector<1x128xf32>, vector<1x128xf32>, vector<1x128xf32>, vector<1x128xf32> -> vector<1x512xf32>
    %41 = vector.broadcast %39 : vector<1x512xf32> to vector<8x512xf32>
    %42 = arith.mulf %5, %41 : vector<8x512xf32>
    %43 = vector.broadcast %40 : vector<1x512xf32> to vector<8x512xf32>
    %44 = arith.addf %42, %43 : vector<8x512xf32>
    %cst_14 = arith.constant 0.000000e+00 : f32
    %45 = vector.broadcast %cst_14 : f32 to vector<8x512xf32>
    %46 = arith.maximumf %44, %45 : vector<8x512xf32>
    %47 = arith.truncf %46 : vector<8x512xf32> to vector<8x512xbf16>
    %c0_15 = arith.constant 0 : index
    %c0_16 = arith.constant 0 : index
    %48 = vector.load %arg6[%c0_15, %c0_16] : memref<8x512xbf16, #tpu.memory_space<vmem>>, vector<8x512xbf16>
    tpu.vector_store %arg6[%c0_15, %c0_16], %47 {strides = array<i32>} : memref<8x512xbf16, #tpu.memory_space<vmem>>, vector<8x512xbf16>,
    return
  }
  func.func @transform_0(%arg0: i32) -> (i32, i32) {
    %c0_i32 = arith.constant 0 : i32
    %c0_i32_0 = arith.constant 0 : i32
    %c0_i32_1 = arith.constant 0 : i32
    return %c0_i32, %c0_i32_0 : i32, i32
  }
  func.func @transform_1(%arg0: i32) -> (i32, i32) {
    %c0_i32 = arith.constant 0 : i32
    %c0_i32_0 = arith.constant 0 : i32
    %c0_i32_1 = arith.constant 0 : i32
    return %c0_i32, %c0_i32_0 : i32, i32
  }
  func.func @transform_2(%arg0: i32) -> (i32, i32) {
    %c0_i32 = arith.constant 0 : i32
    %c0_i32_0 = arith.constant 0 : i32
    %c0_i32_1 = arith.constant 0 : i32
    return %c0_i32, %c0_i32_0 : i32, i32
  }
  func.func @transform_3(%arg0: i32) -> (i32, i32) {
    %c0_i32 = arith.constant 0 : i32
    %c0_i32_0 = arith.constant 0 : i32
    %c0_i32_1 = arith.constant 0 : i32
    return %c0_i32, %c0_i32_0 : i32, i32
  }
  func.func @transform_4(%arg0: i32) -> (i32, i32) {
    %c0_i32 = arith.constant 0 : i32
    %c0_i32_0 = arith.constant 0 : i32
    %c0_i32_1 = arith.constant 0 : i32
    return %c0_i32, %c0_i32_0 : i32, i32
  }
  func.func @transform_5(%arg0: i32) -> (i32, i32) {
    %c0_i32 = arith.constant 0 : i32
    %c0_i32_0 = arith.constant 0 : i32
    %c0_i32_1 = arith.constant 0 : i32
    return %c0_i32, %c0_i32_0 : i32, i32
  }
}

module attributes {stable_mosaic.version = 11 : i64} {
  func.func @_bottleneck_kernel(%arg0: i32, %arg1: memref<2x1024xbf16, #tpu.memory_space<vmem>>, %arg2: memref<1024x256xbf16, #tpu.memory_space<vmem>>, %arg3: memref<1x256xf32, #tpu.memory_space<vmem>>, %arg4: memref<2x128xf32, #tpu.memory_space<vmem>>, %arg5: memref<128x1024xbf16, #tpu.memory_space<vmem>>, %arg6: memref<1x1024xf32, #tpu.memory_space<vmem>>, %arg7: memref<2x128xf32, #tpu.memory_space<vmem>>, %arg8: memref<2x128xf32, #tpu.memory_space<vmem>>, %arg9: memref<2x1024xbf16, #tpu.memory_space<vmem>>) attributes {dimension_semantics = [#tpu.dimension_semantics<arbitrary>], iteration_bounds = array<i64: 1>, scalar_prefetch = 0 : i64, scratch_operands = 0 : i64, tpu.core_type = #tpu.core_type<tc>, window_params = [{pipeline_mode = #tpu.pipeline_mode<synchronous>, transform_indices = @transform_0, window_bounds = array<i64: 2, 1024>}, {pipeline_mode = #tpu.pipeline_mode<synchronous>, transform_indices = @transform_1, window_bounds = array<i64: 1024, 256>}, {pipeline_mode = #tpu.pipeline_mode<synchronous>, transform_indices = @transform_2, window_bounds = array<i64: 1, 256>}, {pipeline_mode = #tpu.pipeline_mode<synchronous>, transform_indices = @transform_3, window_bounds = array<i64: 2, 128>}, {pipeline_mode = #tpu.pipeline_mode<synchronous>, transform_indices = @transform_4, window_bounds = array<i64: 128, 1024>}, {pipeline_mode = #tpu.pipeline_mode<synchronous>, transform_indices = @transform_5, window_bounds = array<i64: 1, 1024>}, {pipeline_mode = #tpu.pipeline_mode<synchronous>, transform_indices = @transform_6, window_bounds = array<i64: 2, 128>}, {pipeline_mode = #tpu.pipeline_mode<synchronous>, transform_indices = @transform_7, window_bounds = array<i64: 2, 128>}, {pipeline_mode = #tpu.pipeline_mode<synchronous>, transform_indices = @transform_8, window_bounds = array<i64: 2, 1024>}]} {
    %c0 = arith.constant 0 : index
    %c0_0 = arith.constant 0 : index
    %0 = vector.load %arg1[%c0, %c0_0] : memref<2x1024xbf16, #tpu.memory_space<vmem>>, vector<2x1024xbf16>
    %c0_1 = arith.constant 0 : index
    %c0_2 = arith.constant 0 : index
    %1 = vector.load %arg2[%c0_1, %c0_2] : memref<1024x256xbf16, #tpu.memory_space<vmem>>, vector<1024x256xbf16>
    %cst = arith.constant dense<0.000000e+00> : vector<2x256xf32>
    %2 = tpu.matmul %0, %1, %cst {dimension_numbers = #tpu.dot_dimension_numbers<[1], [0], [0], [1], [0, 0, 1, 1], [], []>} : vector<2x1024xbf16>, vector<1024x256xbf16>, vector<2x256xf32> -> vector<2x256xf32>
    %c0_3 = arith.constant 0 : index
    %c0_4 = arith.constant 0 : index
    %3 = vector.load %arg3[%c0_3, %c0_4] : memref<1x256xf32, #tpu.memory_space<vmem>>, vector<1x256xf32>
    %4 = vector.broadcast %3 : vector<1x256xf32> to vector<2x256xf32>
    %5 = arith.addf %2, %4 : vector<2x256xf32>
    %6 = vector.extract_strided_slice %5 {offsets = [0, 0], sizes = [2, 128], strides = [1, 1]} : vector<2x256xf32> to vector<2x128xf32>
    %7 = vector.extract_strided_slice %5 {offsets = [0, 128], sizes = [2, 128], strides = [1, 1]} : vector<2x256xf32> to vector<2x128xf32>
    %c0_5 = arith.constant 0 : index
    %c0_6 = arith.constant 0 : index
    %8 = vector.load %arg4[%c0_5, %c0_6] : memref<2x128xf32, #tpu.memory_space<vmem>>, vector<2x128xf32>
    %cst_7 = arith.constant 5.000000e-01 : f32
    %9 = vector.broadcast %cst_7 : f32 to vector<2x128xf32>
    %10 = arith.mulf %7, %9 : vector<2x128xf32>
    %11 = math.exp %10 : vector<2x128xf32>
    %12 = arith.mulf %8, %11 : vector<2x128xf32>
    %13 = arith.addf %12, %6 : vector<2x128xf32>
    %14 = arith.truncf %13 : vector<2x128xf32> to vector<2x128xbf16>
    %c0_8 = arith.constant 0 : index
    %c0_9 = arith.constant 0 : index
    %15 = vector.load %arg5[%c0_8, %c0_9] : memref<128x1024xbf16, #tpu.memory_space<vmem>>, vector<128x1024xbf16>
    %cst_10 = arith.constant dense<0.000000e+00> : vector<2x1024xf32>
    %16 = tpu.matmul %14, %15, %cst_10 {dimension_numbers = #tpu.dot_dimension_numbers<[1], [0], [0], [1], [0, 0, 1, 1], [], []>} : vector<2x128xbf16>, vector<128x1024xbf16>, vector<2x1024xf32> -> vector<2x1024xf32>
    %c0_11 = arith.constant 0 : index
    %c0_12 = arith.constant 0 : index
    %17 = vector.load %arg6[%c0_11, %c0_12] : memref<1x1024xf32, #tpu.memory_space<vmem>>, vector<1x1024xf32>
    %18 = vector.broadcast %17 : vector<1x1024xf32> to vector<2x1024xf32>
    %19 = arith.addf %16, %18 : vector<2x1024xf32>
    %c0_13 = arith.constant 0 : index
    %c0_14 = arith.constant 0 : index
    %20 = vector.load %arg7[%c0_13, %c0_14] : memref<2x128xf32, #tpu.memory_space<vmem>>, vector<2x128xf32>
    tpu.vector_store %arg7[%c0_13, %c0_14], %6 {strides = array<i32>} : memref<2x128xf32, #tpu.memory_space<vmem>>, vector<2x128xf32>,
    %c0_15 = arith.constant 0 : index
    %c0_16 = arith.constant 0 : index
    %21 = vector.load %arg8[%c0_15, %c0_16] : memref<2x128xf32, #tpu.memory_space<vmem>>, vector<2x128xf32>
    tpu.vector_store %arg8[%c0_15, %c0_16], %7 {strides = array<i32>} : memref<2x128xf32, #tpu.memory_space<vmem>>, vector<2x128xf32>,
    %22 = arith.truncf %19 : vector<2x1024xf32> to vector<2x1024xbf16>
    %c0_17 = arith.constant 0 : index
    %c0_18 = arith.constant 0 : index
    %23 = vector.load %arg9[%c0_17, %c0_18] : memref<2x1024xbf16, #tpu.memory_space<vmem>>, vector<2x1024xbf16>
    tpu.vector_store %arg9[%c0_17, %c0_18], %22 {strides = array<i32>} : memref<2x1024xbf16, #tpu.memory_space<vmem>>, vector<2x1024xbf16>,
    return
  }
  func.func @transform_0(%arg0: i32) -> (i32, i32) {
    %c0_i32 = arith.constant 0 : i32
    %c0_i32_0 = arith.constant 0 : i32
    %c0_i32_1 = arith.constant 0 : i32
    return %c0_i32, %c0_i32_0 : i32, i32
  }
  func.func @transform_1(%arg0: i32) -> (i32, i32) {
    %c0_i32 = arith.constant 0 : i32
    %c0_i32_0 = arith.constant 0 : i32
    %c0_i32_1 = arith.constant 0 : i32
    return %c0_i32, %c0_i32_0 : i32, i32
  }
  func.func @transform_2(%arg0: i32) -> (i32, i32) {
    %c0_i32 = arith.constant 0 : i32
    %c0_i32_0 = arith.constant 0 : i32
    %c0_i32_1 = arith.constant 0 : i32
    return %c0_i32, %c0_i32_0 : i32, i32
  }
  func.func @transform_3(%arg0: i32) -> (i32, i32) {
    %c0_i32 = arith.constant 0 : i32
    %c0_i32_0 = arith.constant 0 : i32
    %c0_i32_1 = arith.constant 0 : i32
    return %c0_i32, %c0_i32_0 : i32, i32
  }
  func.func @transform_4(%arg0: i32) -> (i32, i32) {
    %c0_i32 = arith.constant 0 : i32
    %c0_i32_0 = arith.constant 0 : i32
    %c0_i32_1 = arith.constant 0 : i32
    return %c0_i32, %c0_i32_0 : i32, i32
  }
  func.func @transform_5(%arg0: i32) -> (i32, i32) {
    %c0_i32 = arith.constant 0 : i32
    %c0_i32_0 = arith.constant 0 : i32
    %c0_i32_1 = arith.constant 0 : i32
    return %c0_i32, %c0_i32_0 : i32, i32
  }
  func.func @transform_6(%arg0: i32) -> (i32, i32) {
    %c0_i32 = arith.constant 0 : i32
    %c0_i32_0 = arith.constant 0 : i32
    %c0_i32_1 = arith.constant 0 : i32
    return %c0_i32, %c0_i32_0 : i32, i32
  }
  func.func @transform_7(%arg0: i32) -> (i32, i32) {
    %c0_i32 = arith.constant 0 : i32
    %c0_i32_0 = arith.constant 0 : i32
    %c0_i32_1 = arith.constant 0 : i32
    return %c0_i32, %c0_i32_0 : i32, i32
  }
  func.func @transform_8(%arg0: i32) -> (i32, i32) {
    %c0_i32 = arith.constant 0 : i32
    %c0_i32_0 = arith.constant 0 : i32
    %c0_i32_1 = arith.constant 0 : i32
    return %c0_i32, %c0_i32_0 : i32, i32
  }
}

module attributes {stable_mosaic.version = 11 : i64} {
  func.func @_mm_bias_bn_relu_kernel(%arg0: i32, %arg1: memref<32x512xbf16, #tpu.memory_space<vmem>>, %arg2: memref<512x256xbf16, #tpu.memory_space<vmem>>, %arg3: memref<1x256xf32, #tpu.memory_space<vmem>>, %arg4: memref<1x64xf32, #tpu.memory_space<vmem>>, %arg5: memref<1x64xf32, #tpu.memory_space<vmem>>, %arg6: memref<32x256xbf16, #tpu.memory_space<vmem>>) attributes {dimension_semantics = [#tpu.dimension_semantics<arbitrary>], iteration_bounds = array<i64: 1>, scalar_prefetch = 0 : i64, scratch_operands = 0 : i64, tpu.core_type = #tpu.core_type<tc>, window_params = [{pipeline_mode = #tpu.pipeline_mode<synchronous>, transform_indices = @transform_0, window_bounds = array<i64: 32, 512>}, {pipeline_mode = #tpu.pipeline_mode<synchronous>, transform_indices = @transform_1, window_bounds = array<i64: 512, 256>}, {pipeline_mode = #tpu.pipeline_mode<synchronous>, transform_indices = @transform_2, window_bounds = array<i64: 1, 256>}, {pipeline_mode = #tpu.pipeline_mode<synchronous>, transform_indices = @transform_3, window_bounds = array<i64: 1, 64>}, {pipeline_mode = #tpu.pipeline_mode<synchronous>, transform_indices = @transform_4, window_bounds = array<i64: 1, 64>}, {pipeline_mode = #tpu.pipeline_mode<synchronous>, transform_indices = @transform_5, window_bounds = array<i64: 32, 256>}]} {
    %c0 = arith.constant 0 : index
    %c0_0 = arith.constant 0 : index
    %0 = vector.load %arg1[%c0, %c0_0] : memref<32x512xbf16, #tpu.memory_space<vmem>>, vector<32x512xbf16>
    %c0_1 = arith.constant 0 : index
    %c0_2 = arith.constant 0 : index
    %1 = vector.load %arg2[%c0_1, %c0_2] : memref<512x256xbf16, #tpu.memory_space<vmem>>, vector<512x256xbf16>
    %cst = arith.constant dense<0.000000e+00> : vector<32x256xf32>
    %2 = tpu.matmul %0, %1, %cst {dimension_numbers = #tpu.dot_dimension_numbers<[1], [0], [0], [1], [0, 0, 1, 1], [], []>} : vector<32x512xbf16>, vector<512x256xbf16>, vector<32x256xf32> -> vector<32x256xf32>
    %c0_3 = arith.constant 0 : index
    %c0_4 = arith.constant 0 : index
    %3 = vector.load %arg3[%c0_3, %c0_4] : memref<1x256xf32, #tpu.memory_space<vmem>>, vector<1x256xf32>
    %4 = vector.broadcast %3 : vector<1x256xf32> to vector<32x256xf32>
    %5 = arith.addf %2, %4 : vector<32x256xf32>
    %cst_5 = arith.constant dense<0.000000e+00> : vector<256xf32>
    %6 = vector.multi_reduction <add>, %5, %cst_5 [0] : vector<32x256xf32> to vector<256xf32>
    %7 = vector.shape_cast %6 : vector<256xf32> to vector<1x256xf32>
    %8 = arith.mulf %5, %5 : vector<32x256xf32>
    %cst_6 = arith.constant dense<0.000000e+00> : vector<256xf32>
    %9 = vector.multi_reduction <add>, %8, %cst_6 [0] : vector<32x256xf32> to vector<256xf32>
    %10 = vector.shape_cast %9 : vector<256xf32> to vector<1x256xf32>
    %11 = vector.extract_strided_slice %7 {offsets = [0, 0], sizes = [1, 64], strides = [1, 1]} : vector<1x256xf32> to vector<1x64xf32>
    %12 = vector.extract_strided_slice %10 {offsets = [0, 0], sizes = [1, 64], strides = [1, 1]} : vector<1x256xf32> to vector<1x64xf32>
    %13 = vector.extract_strided_slice %7 {offsets = [0, 64], sizes = [1, 64], strides = [1, 1]} : vector<1x256xf32> to vector<1x64xf32>
    %14 = arith.addf %11, %13 : vector<1x64xf32>
    %15 = vector.extract_strided_slice %10 {offsets = [0, 64], sizes = [1, 64], strides = [1, 1]} : vector<1x256xf32> to vector<1x64xf32>
    %16 = arith.addf %12, %15 : vector<1x64xf32>
    %17 = vector.extract_strided_slice %7 {offsets = [0, 128], sizes = [1, 64], strides = [1, 1]} : vector<1x256xf32> to vector<1x64xf32>
    %18 = arith.addf %14, %17 : vector<1x64xf32>
    %19 = vector.extract_strided_slice %10 {offsets = [0, 128], sizes = [1, 64], strides = [1, 1]} : vector<1x256xf32> to vector<1x64xf32>
    %20 = arith.addf %16, %19 : vector<1x64xf32>
    %21 = vector.extract_strided_slice %7 {offsets = [0, 192], sizes = [1, 64], strides = [1, 1]} : vector<1x256xf32> to vector<1x64xf32>
    %22 = arith.addf %18, %21 : vector<1x64xf32>
    %23 = vector.extract_strided_slice %10 {offsets = [0, 192], sizes = [1, 64], strides = [1, 1]} : vector<1x256xf32> to vector<1x64xf32>
    %24 = arith.addf %20, %23 : vector<1x64xf32>
    %cst_7 = arith.constant 7.812500e-03 : f32
    %25 = vector.broadcast %cst_7 : f32 to vector<1x64xf32>
    %26 = arith.mulf %22, %25 : vector<1x64xf32>
    %cst_8 = arith.constant 7.812500e-03 : f32
    %27 = vector.broadcast %cst_8 : f32 to vector<1x64xf32>
    %28 = arith.mulf %24, %27 : vector<1x64xf32>
    %29 = arith.mulf %26, %26 : vector<1x64xf32>
    %30 = arith.subf %28, %29 : vector<1x64xf32>
    %cst_9 = arith.constant 9.99999974E-6 : f32
    %31 = vector.broadcast %cst_9 : f32 to vector<1x64xf32>
    %32 = arith.addf %30, %31 : vector<1x64xf32>
    %33 = math.rsqrt %32 : vector<1x64xf32>
    %c0_10 = arith.constant 0 : index
    %c0_11 = arith.constant 0 : index
    %34 = vector.load %arg4[%c0_10, %c0_11] : memref<1x64xf32, #tpu.memory_space<vmem>>, vector<1x64xf32>
    %35 = arith.mulf %33, %34 : vector<1x64xf32>
    %c0_12 = arith.constant 0 : index
    %c0_13 = arith.constant 0 : index
    %36 = vector.load %arg5[%c0_12, %c0_13] : memref<1x64xf32, #tpu.memory_space<vmem>>, vector<1x64xf32>
    %37 = arith.mulf %26, %35 : vector<1x64xf32>
    %38 = arith.subf %36, %37 : vector<1x64xf32>
    %39 = tpu.concatenate %35, %35, %35, %35 in 1 : vector<1x64xf32>, vector<1x64xf32>, vector<1x64xf32>, vector<1x64xf32> -> vector<1x256xf32>
    %40 = tpu.concatenate %38, %38, %38, %38 in 1 : vector<1x64xf32>, vector<1x64xf32>, vector<1x64xf32>, vector<1x64xf32> -> vector<1x256xf32>
    %41 = vector.broadcast %39 : vector<1x256xf32> to vector<32x256xf32>
    %42 = arith.mulf %5, %41 : vector<32x256xf32>
    %43 = vector.broadcast %40 : vector<1x256xf32> to vector<32x256xf32>
    %44 = arith.addf %42, %43 : vector<32x256xf32>
    %cst_14 = arith.constant 0.000000e+00 : f32
    %45 = vector.broadcast %cst_14 : f32 to vector<32x256xf32>
    %46 = arith.maximumf %44, %45 : vector<32x256xf32>
    %47 = arith.truncf %46 : vector<32x256xf32> to vector<32x256xbf16>
    %c0_15 = arith.constant 0 : index
    %c0_16 = arith.constant 0 : index
    %48 = vector.load %arg6[%c0_15, %c0_16] : memref<32x256xbf16, #tpu.memory_space<vmem>>, vector<32x256xbf16>
    tpu.vector_store %arg6[%c0_15, %c0_16], %47 {strides = array<i32>} : memref<32x256xbf16, #tpu.memory_space<vmem>>, vector<32x256xbf16>,
    return
  }
  func.func @transform_0(%arg0: i32) -> (i32, i32) {
    %c0_i32 = arith.constant 0 : i32
    %c0_i32_0 = arith.constant 0 : i32
    %c0_i32_1 = arith.constant 0 : i32
    return %c0_i32, %c0_i32_0 : i32, i32
  }
  func.func @transform_1(%arg0: i32) -> (i32, i32) {
    %c0_i32 = arith.constant 0 : i32
    %c0_i32_0 = arith.constant 0 : i32
    %c0_i32_1 = arith.constant 0 : i32
    return %c0_i32, %c0_i32_0 : i32, i32
  }
  func.func @transform_2(%arg0: i32) -> (i32, i32) {
    %c0_i32 = arith.constant 0 : i32
    %c0_i32_0 = arith.constant 0 : i32
    %c0_i32_1 = arith.constant 0 : i32
    return %c0_i32, %c0_i32_0 : i32, i32
  }
  func.func @transform_3(%arg0: i32) -> (i32, i32) {
    %c0_i32 = arith.constant 0 : i32
    %c0_i32_0 = arith.constant 0 : i32
    %c0_i32_1 = arith.constant 0 : i32
    return %c0_i32, %c0_i32_0 : i32, i32
  }
  func.func @transform_4(%arg0: i32) -> (i32, i32) {
    %c0_i32 = arith.constant 0 : i32
    %c0_i32_0 = arith.constant 0 : i32
    %c0_i32_1 = arith.constant 0 : i32
    return %c0_i32, %c0_i32_0 : i32, i32
  }
  func.func @transform_5(%arg0: i32) -> (i32, i32) {
    %c0_i32 = arith.constant 0 : i32
    %c0_i32_0 = arith.constant 0 : i32
    %c0_i32_1 = arith.constant 0 : i32
    return %c0_i32, %c0_i32_0 : i32, i32
  }
}

module attributes {stable_mosaic.version = 11 : i64} {
  func.func @_mm_bias_bn_relu_kernel(%arg0: i32, %arg1: memref<128x256xbf16, #tpu.memory_space<vmem>>, %arg2: memref<256x128xbf16, #tpu.memory_space<vmem>>, %arg3: memref<1x128xf32, #tpu.memory_space<vmem>>, %arg4: memref<1x32xf32, #tpu.memory_space<vmem>>, %arg5: memref<1x32xf32, #tpu.memory_space<vmem>>, %arg6: memref<128x128xbf16, #tpu.memory_space<vmem>>) attributes {dimension_semantics = [#tpu.dimension_semantics<arbitrary>], iteration_bounds = array<i64: 1>, scalar_prefetch = 0 : i64, scratch_operands = 0 : i64, tpu.core_type = #tpu.core_type<tc>, window_params = [{pipeline_mode = #tpu.pipeline_mode<synchronous>, transform_indices = @transform_0, window_bounds = array<i64: 128, 256>}, {pipeline_mode = #tpu.pipeline_mode<synchronous>, transform_indices = @transform_1, window_bounds = array<i64: 256, 128>}, {pipeline_mode = #tpu.pipeline_mode<synchronous>, transform_indices = @transform_2, window_bounds = array<i64: 1, 128>}, {pipeline_mode = #tpu.pipeline_mode<synchronous>, transform_indices = @transform_3, window_bounds = array<i64: 1, 32>}, {pipeline_mode = #tpu.pipeline_mode<synchronous>, transform_indices = @transform_4, window_bounds = array<i64: 1, 32>}, {pipeline_mode = #tpu.pipeline_mode<synchronous>, transform_indices = @transform_5, window_bounds = array<i64: 128, 128>}]} {
    %c0 = arith.constant 0 : index
    %c0_0 = arith.constant 0 : index
    %0 = vector.load %arg1[%c0, %c0_0] : memref<128x256xbf16, #tpu.memory_space<vmem>>, vector<128x256xbf16>
    %c0_1 = arith.constant 0 : index
    %c0_2 = arith.constant 0 : index
    %1 = vector.load %arg2[%c0_1, %c0_2] : memref<256x128xbf16, #tpu.memory_space<vmem>>, vector<256x128xbf16>
    %cst = arith.constant dense<0.000000e+00> : vector<128x128xf32>
    %2 = tpu.matmul %0, %1, %cst {dimension_numbers = #tpu.dot_dimension_numbers<[1], [0], [0], [1], [0, 0, 1, 1], [], []>} : vector<128x256xbf16>, vector<256x128xbf16>, vector<128x128xf32> -> vector<128x128xf32>
    %c0_3 = arith.constant 0 : index
    %c0_4 = arith.constant 0 : index
    %3 = vector.load %arg3[%c0_3, %c0_4] : memref<1x128xf32, #tpu.memory_space<vmem>>, vector<1x128xf32>
    %4 = vector.broadcast %3 : vector<1x128xf32> to vector<128x128xf32>
    %5 = arith.addf %2, %4 : vector<128x128xf32>
    %cst_5 = arith.constant dense<0.000000e+00> : vector<128xf32>
    %6 = vector.multi_reduction <add>, %5, %cst_5 [0] : vector<128x128xf32> to vector<128xf32>
    %7 = vector.shape_cast %6 : vector<128xf32> to vector<1x128xf32>
    %8 = arith.mulf %5, %5 : vector<128x128xf32>
    %cst_6 = arith.constant dense<0.000000e+00> : vector<128xf32>
    %9 = vector.multi_reduction <add>, %8, %cst_6 [0] : vector<128x128xf32> to vector<128xf32>
    %10 = vector.shape_cast %9 : vector<128xf32> to vector<1x128xf32>
    %11 = vector.extract_strided_slice %7 {offsets = [0, 0], sizes = [1, 32], strides = [1, 1]} : vector<1x128xf32> to vector<1x32xf32>
    %12 = vector.extract_strided_slice %10 {offsets = [0, 0], sizes = [1, 32], strides = [1, 1]} : vector<1x128xf32> to vector<1x32xf32>
    %13 = vector.extract_strided_slice %7 {offsets = [0, 32], sizes = [1, 32], strides = [1, 1]} : vector<1x128xf32> to vector<1x32xf32>
    %14 = arith.addf %11, %13 : vector<1x32xf32>
    %15 = vector.extract_strided_slice %10 {offsets = [0, 32], sizes = [1, 32], strides = [1, 1]} : vector<1x128xf32> to vector<1x32xf32>
    %16 = arith.addf %12, %15 : vector<1x32xf32>
    %17 = vector.extract_strided_slice %7 {offsets = [0, 64], sizes = [1, 32], strides = [1, 1]} : vector<1x128xf32> to vector<1x32xf32>
    %18 = arith.addf %14, %17 : vector<1x32xf32>
    %19 = vector.extract_strided_slice %10 {offsets = [0, 64], sizes = [1, 32], strides = [1, 1]} : vector<1x128xf32> to vector<1x32xf32>
    %20 = arith.addf %16, %19 : vector<1x32xf32>
    %21 = vector.extract_strided_slice %7 {offsets = [0, 96], sizes = [1, 32], strides = [1, 1]} : vector<1x128xf32> to vector<1x32xf32>
    %22 = arith.addf %18, %21 : vector<1x32xf32>
    %23 = vector.extract_strided_slice %10 {offsets = [0, 96], sizes = [1, 32], strides = [1, 1]} : vector<1x128xf32> to vector<1x32xf32>
    %24 = arith.addf %20, %23 : vector<1x32xf32>
    %cst_7 = arith.constant 0.001953125 : f32
    %25 = vector.broadcast %cst_7 : f32 to vector<1x32xf32>
    %26 = arith.mulf %22, %25 : vector<1x32xf32>
    %cst_8 = arith.constant 0.001953125 : f32
    %27 = vector.broadcast %cst_8 : f32 to vector<1x32xf32>
    %28 = arith.mulf %24, %27 : vector<1x32xf32>
    %29 = arith.mulf %26, %26 : vector<1x32xf32>
    %30 = arith.subf %28, %29 : vector<1x32xf32>
    %cst_9 = arith.constant 9.99999974E-6 : f32
    %31 = vector.broadcast %cst_9 : f32 to vector<1x32xf32>
    %32 = arith.addf %30, %31 : vector<1x32xf32>
    %33 = math.rsqrt %32 : vector<1x32xf32>
    %c0_10 = arith.constant 0 : index
    %c0_11 = arith.constant 0 : index
    %34 = vector.load %arg4[%c0_10, %c0_11] : memref<1x32xf32, #tpu.memory_space<vmem>>, vector<1x32xf32>
    %35 = arith.mulf %33, %34 : vector<1x32xf32>
    %c0_12 = arith.constant 0 : index
    %c0_13 = arith.constant 0 : index
    %36 = vector.load %arg5[%c0_12, %c0_13] : memref<1x32xf32, #tpu.memory_space<vmem>>, vector<1x32xf32>
    %37 = arith.mulf %26, %35 : vector<1x32xf32>
    %38 = arith.subf %36, %37 : vector<1x32xf32>
    %39 = tpu.concatenate %35, %35, %35, %35 in 1 : vector<1x32xf32>, vector<1x32xf32>, vector<1x32xf32>, vector<1x32xf32> -> vector<1x128xf32>
    %40 = tpu.concatenate %38, %38, %38, %38 in 1 : vector<1x32xf32>, vector<1x32xf32>, vector<1x32xf32>, vector<1x32xf32> -> vector<1x128xf32>
    %41 = vector.broadcast %39 : vector<1x128xf32> to vector<128x128xf32>
    %42 = arith.mulf %5, %41 : vector<128x128xf32>
    %43 = vector.broadcast %40 : vector<1x128xf32> to vector<128x128xf32>
    %44 = arith.addf %42, %43 : vector<128x128xf32>
    %cst_14 = arith.constant 0.000000e+00 : f32
    %45 = vector.broadcast %cst_14 : f32 to vector<128x128xf32>
    %46 = arith.maximumf %44, %45 : vector<128x128xf32>
    %47 = arith.truncf %46 : vector<128x128xf32> to vector<128x128xbf16>
    %c0_15 = arith.constant 0 : index
    %c0_16 = arith.constant 0 : index
    %48 = vector.load %arg6[%c0_15, %c0_16] : memref<128x128xbf16, #tpu.memory_space<vmem>>, vector<128x128xbf16>
    tpu.vector_store %arg6[%c0_15, %c0_16], %47 {strides = array<i32>} : memref<128x128xbf16, #tpu.memory_space<vmem>>, vector<128x128xbf16>,
    return
  }
  func.func @transform_0(%arg0: i32) -> (i32, i32) {
    %c0_i32 = arith.constant 0 : i32
    %c0_i32_0 = arith.constant 0 : i32
    %c0_i32_1 = arith.constant 0 : i32
    return %c0_i32, %c0_i32_0 : i32, i32
  }
  func.func @transform_1(%arg0: i32) -> (i32, i32) {
    %c0_i32 = arith.constant 0 : i32
    %c0_i32_0 = arith.constant 0 : i32
    %c0_i32_1 = arith.constant 0 : i32
    return %c0_i32, %c0_i32_0 : i32, i32
  }
  func.func @transform_2(%arg0: i32) -> (i32, i32) {
    %c0_i32 = arith.constant 0 : i32
    %c0_i32_0 = arith.constant 0 : i32
    %c0_i32_1 = arith.constant 0 : i32
    return %c0_i32, %c0_i32_0 : i32, i32
  }
  func.func @transform_3(%arg0: i32) -> (i32, i32) {
    %c0_i32 = arith.constant 0 : i32
    %c0_i32_0 = arith.constant 0 : i32
    %c0_i32_1 = arith.constant 0 : i32
    return %c0_i32, %c0_i32_0 : i32, i32
  }
  func.func @transform_4(%arg0: i32) -> (i32, i32) {
    %c0_i32 = arith.constant 0 : i32
    %c0_i32_0 = arith.constant 0 : i32
    %c0_i32_1 = arith.constant 0 : i32
    return %c0_i32, %c0_i32_0 : i32, i32
  }
  func.func @transform_5(%arg0: i32) -> (i32, i32) {
    %c0_i32 = arith.constant 0 : i32
    %c0_i32_0 = arith.constant 0 : i32
    %c0_i32_1 = arith.constant 0 : i32
    return %c0_i32, %c0_i32_0 : i32, i32
  }
}

module attributes {stable_mosaic.version = 11 : i64} {
  func.func @_mm_bias_act_kernel(%arg0: i32, %arg1: memref<256x128xbf16, #tpu.memory_space<vmem>>, %arg2: memref<128x128xbf16, #tpu.memory_space<vmem>>, %arg3: memref<1x128xf32, #tpu.memory_space<vmem>>, %arg4: memref<256x128xf32, #tpu.memory_space<vmem>>) attributes {dimension_semantics = [#tpu.dimension_semantics<parallel>], iteration_bounds = array<i64: 2>, scalar_prefetch = 0 : i64, scratch_operands = 0 : i64, tpu.core_type = #tpu.core_type<tc>, window_params = [{transform_indices = @transform_0, window_bounds = array<i64: 256, 128>}, {pipeline_mode = #tpu.pipeline_mode<synchronous>, transform_indices = @transform_1, window_bounds = array<i64: 128, 128>}, {pipeline_mode = #tpu.pipeline_mode<synchronous>, transform_indices = @transform_2, window_bounds = array<i64: 1, 128>}, {transform_indices = @transform_3, window_bounds = array<i64: 256, 128>}]} {
    %c0 = arith.constant 0 : index
    %c0_0 = arith.constant 0 : index
    %0 = vector.load %arg1[%c0, %c0_0] : memref<256x128xbf16, #tpu.memory_space<vmem>>, vector<256x128xbf16>
    %c0_1 = arith.constant 0 : index
    %c0_2 = arith.constant 0 : index
    %1 = vector.load %arg2[%c0_1, %c0_2] : memref<128x128xbf16, #tpu.memory_space<vmem>>, vector<128x128xbf16>
    %cst = arith.constant dense<0.000000e+00> : vector<256x128xf32>
    %2 = tpu.matmul %0, %1, %cst {dimension_numbers = #tpu.dot_dimension_numbers<[1], [0], [0], [1], [0, 0, 1, 1], [], []>} : vector<256x128xbf16>, vector<128x128xbf16>, vector<256x128xf32> -> vector<256x128xf32>
    %c0_3 = arith.constant 0 : index
    %c0_4 = arith.constant 0 : index
    %3 = vector.load %arg3[%c0_3, %c0_4] : memref<1x128xf32, #tpu.memory_space<vmem>>, vector<1x128xf32>
    %4 = vector.broadcast %3 : vector<1x128xf32> to vector<256x128xf32>
    %5 = arith.addf %2, %4 : vector<256x128xf32>
    %cst_5 = arith.constant 0.000000e+00 : f32
    %6 = vector.broadcast %cst_5 : f32 to vector<256x128xf32>
    %7 = arith.maximumf %5, %6 : vector<256x128xf32>
    %c0_6 = arith.constant 0 : index
    %c0_7 = arith.constant 0 : index
    %8 = vector.load %arg4[%c0_6, %c0_7] : memref<256x128xf32, #tpu.memory_space<vmem>>, vector<256x128xf32>
    tpu.vector_store %arg4[%c0_6, %c0_7], %7 {strides = array<i32>} : memref<256x128xf32, #tpu.memory_space<vmem>>, vector<256x128xf32>,
    return
  }
  func.func @transform_0(%arg0: i32) -> (i32, i32) {
    %c0_i32 = arith.constant 0 : i32
    %c0_i32_0 = arith.constant 0 : i32
    return %arg0, %c0_i32 : i32, i32
  }
  func.func @transform_1(%arg0: i32) -> (i32, i32) {
    %c0_i32 = arith.constant 0 : i32
    %c0_i32_0 = arith.constant 0 : i32
    %c0_i32_1 = arith.constant 0 : i32
    return %c0_i32, %c0_i32_0 : i32, i32
  }
  func.func @transform_2(%arg0: i32) -> (i32, i32) {
    %c0_i32 = arith.constant 0 : i32
    %c0_i32_0 = arith.constant 0 : i32
    %c0_i32_1 = arith.constant 0 : i32
    return %c0_i32, %c0_i32_0 : i32, i32
  }
  func.func @transform_3(%arg0: i32) -> (i32, i32) {
    %c0_i32 = arith.constant 0 : i32
    %c0_i32_0 = arith.constant 0 : i32
    return %arg0, %c0_i32 : i32, i32
  }
}

module attributes {stable_mosaic.version = 11 : i64} {
  func.func @_loss_kernel(%arg0: i32, %arg1: memref<2x3072xf32, #tpu.memory_space<vmem>>, %arg2: memref<2x3072xf32, #tpu.memory_space<vmem>>, %arg3: memref<2x128xf32, #tpu.memory_space<vmem>>, %arg4: memref<2x128xf32, #tpu.memory_space<vmem>>, %arg5: memref<1x1xf32, #tpu.memory_space<vmem>>) attributes {dimension_semantics = [#tpu.dimension_semantics<arbitrary>], iteration_bounds = array<i64: 1>, scalar_prefetch = 0 : i64, scratch_operands = 0 : i64, tpu.core_type = #tpu.core_type<tc>, window_params = [{pipeline_mode = #tpu.pipeline_mode<synchronous>, transform_indices = @transform_0, window_bounds = array<i64: 2, 3072>}, {pipeline_mode = #tpu.pipeline_mode<synchronous>, transform_indices = @transform_1, window_bounds = array<i64: 2, 3072>}, {pipeline_mode = #tpu.pipeline_mode<synchronous>, transform_indices = @transform_2, window_bounds = array<i64: 2, 128>}, {pipeline_mode = #tpu.pipeline_mode<synchronous>, transform_indices = @transform_3, window_bounds = array<i64: 2, 128>}, {pipeline_mode = #tpu.pipeline_mode<synchronous>, transform_indices = @transform_4, window_bounds = array<i64: 1, 1>}]} {
    %c0 = arith.constant 0 : index
    %c0_0 = arith.constant 0 : index
    %0 = vector.load %arg2[%c0, %c0_0] : memref<2x3072xf32, #tpu.memory_space<vmem>>, vector<2x3072xf32>
    %c0_1 = arith.constant 0 : index
    %c0_2 = arith.constant 0 : index
    %1 = vector.load %arg1[%c0_1, %c0_2] : memref<2x3072xf32, #tpu.memory_space<vmem>>, vector<2x3072xf32>
    %2 = arith.subf %0, %1 : vector<2x3072xf32>
    %3 = arith.mulf %2, %2 : vector<2x3072xf32>
    %cst = arith.constant dense<0.000000e+00> : vector<2xf32>
    %4 = vector.multi_reduction <add>, %3, %cst [1] : vector<2x3072xf32> to vector<2xf32>
    %5 = vector.shape_cast %4 : vector<2xf32> to vector<2x1xf32>
    %cst_3 = arith.constant dense<0.000000e+00> : vector<1xf32>
    %6 = vector.multi_reduction <add>, %5, %cst_3 [0] : vector<2x1xf32> to vector<1xf32>
    %7 = vector.shape_cast %6 : vector<1xf32> to vector<1x1xf32>
    %c0_4 = arith.constant 0 : index
    %c0_5 = arith.constant 0 : index
    %8 = vector.load %arg3[%c0_4, %c0_5] : memref<2x128xf32, #tpu.memory_space<vmem>>, vector<2x128xf32>
    %c0_6 = arith.constant 0 : index
    %c0_7 = arith.constant 0 : index
    %9 = vector.load %arg4[%c0_6, %c0_7] : memref<2x128xf32, #tpu.memory_space<vmem>>, vector<2x128xf32>
    %cst_8 = arith.constant 1.000000e+00 : f32
    %10 = vector.broadcast %cst_8 : f32 to vector<2x128xf32>
    %11 = arith.addf %10, %9 : vector<2x128xf32>
    %12 = arith.mulf %8, %8 : vector<2x128xf32>
    %13 = arith.subf %11, %12 : vector<2x128xf32>
    %14 = math.exp %9 : vector<2x128xf32>
    %15 = arith.subf %13, %14 : vector<2x128xf32>
    %cst_9 = arith.constant dense<0.000000e+00> : vector<2xf32>
    %16 = vector.multi_reduction <add>, %15, %cst_9 [1] : vector<2x128xf32> to vector<2xf32>
    %17 = vector.shape_cast %16 : vector<2xf32> to vector<2x1xf32>
    %cst_10 = arith.constant -5.000000e-01 : f32
    %18 = vector.broadcast %cst_10 : f32 to vector<2x1xf32>
    %19 = arith.mulf %18, %17 : vector<2x1xf32>
    %cst_11 = arith.constant dense<0.000000e+00> : vector<1xf32>
    %20 = vector.multi_reduction <add>, %19, %cst_11 [0] : vector<2x1xf32> to vector<1xf32>
    %21 = vector.shape_cast %20 : vector<1xf32> to vector<1x1xf32>
    %cst_12 = arith.constant 1.62760422E-4 : f32
    %22 = vector.broadcast %cst_12 : f32 to vector<1x1xf32>
    %23 = arith.mulf %7, %22 : vector<1x1xf32>
    %cst_13 = arith.constant 5.000000e-01 : f32
    %24 = vector.broadcast %cst_13 : f32 to vector<1x1xf32>
    %25 = arith.mulf %21, %24 : vector<1x1xf32>
    %cst_14 = arith.constant 3.000000e-04 : f32
    %26 = vector.broadcast %cst_14 : f32 to vector<1x1xf32>
    %27 = arith.mulf %26, %25 : vector<1x1xf32>
    %28 = arith.addf %23, %27 : vector<1x1xf32>
    %c0_15 = arith.constant 0 : index
    %c0_16 = arith.constant 0 : index
    %29 = vector.load %arg5[%c0_15, %c0_16] : memref<1x1xf32, #tpu.memory_space<vmem>>, vector<1x1xf32>
    tpu.vector_store %arg5[%c0_15, %c0_16], %28 {strides = array<i32>} : memref<1x1xf32, #tpu.memory_space<vmem>>, vector<1x1xf32>,
    return
  }
  func.func @transform_0(%arg0: i32) -> (i32, i32) {
    %c0_i32 = arith.constant 0 : i32
    %c0_i32_0 = arith.constant 0 : i32
    %c0_i32_1 = arith.constant 0 : i32
    return %c0_i32, %c0_i32_0 : i32, i32
  }
  func.func @transform_1(%arg0: i32) -> (i32, i32) {
    %c0_i32 = arith.constant 0 : i32
    %c0_i32_0 = arith.constant 0 : i32
    %c0_i32_1 = arith.constant 0 : i32
    return %c0_i32, %c0_i32_0 : i32, i32
  }
  func.func @transform_2(%arg0: i32) -> (i32, i32) {
    %c0_i32 = arith.constant 0 : i32
    %c0_i32_0 = arith.constant 0 : i32
    %c0_i32_1 = arith.constant 0 : i32
    return %c0_i32, %c0_i32_0 : i32, i32
  }
  func.func @transform_3(%arg0: i32) -> (i32, i32) {
    %c0_i32 = arith.constant 0 : i32
    %c0_i32_0 = arith.constant 0 : i32
    %c0_i32_1 = arith.constant 0 : i32
    return %c0_i32, %c0_i32_0 : i32, i32
  }
  func.func @transform_4(%arg0: i32) -> (i32, i32) {
    %c0_i32 = arith.constant 0 : i32
    %c0_i32_0 = arith.constant 0 : i32
    %c0_i32_1 = arith.constant 0 : i32
    return %c0_i32, %c0_i32_0 : i32, i32
  }
}

</mosaic_0001>

<bundles_post_ra>
// kernel: vae_forward.10
= control target key start
LH: loop header
LB: loop body
LE: loop exit
PB: predicated region body
PF: predicated region fallthrough
CT: control target
= control target key end

     0   :  { %vm364_vm0 = vcmask 1044480   ;;  %vm365_vm1 = vcmask 1045504   ;;  %vm267_vm2 = vcmask 220160   ;;  %v1867_v1 = vmov 65535   ;;  %s3674_s1 = inlined_call_operand.vmem [shape: bf16[27,32], index: 1, kind: input, shape index: {}]   ;;  %s3675_s0 = inlined_call_operand.vmem [shape: bf16[512,27], index: 0, kind: input, shape index: {}]   ;;  %s3676_s2 = inlined_call_operand.vmem [shape: f32[1,32], index: 2, kind: input, shape index: {}]   ;;  %s3677_s3 = inlined_call_operand.vmem [shape: f32[1,32], index: 3, kind: input, shape index: {}]   ;;  %s3678_s4 = inlined_call_operand.vmem [shape: f32[1,32], index: 4, kind: input, shape index: {}]   ;;  %s3679_s5 = inlined_call_operand.vmem [shape: bf16[512,32], index: 5, kind: output, shape index: {}]  }
   0x1   :  { %v1831_v0 = vld [vmem:[%s3674_s1] sm:$0xff]   ;;  %v366_v2 = vsel %vm364_vm0, 4294967295, %v1867_v1  ;;  %v1832_v3 = vld [vmem:[%s3674_s1 + $0x8] sm:$0x3f]   ;;  %v1835_v8 = vld [vmem:[%s3675_s0 + $0x10] sm:$0xff]   ;;  %vm660_vm3 = vcmask 261120  }
   0x2   :  { %1758 = vmatprep.subr.bf16.mxu0 %v1831_v0  ;;  %v367_v4 = vsel %vm365_vm1, %v366_v2, 0  ;;  %v1833_v5 = vld [vmem:[%s3675_s0] sm:$0xff]   ;;  %1826 = vmatprep.subr.bf16.mxu1 %v1831_v0  ;;  %v1834_v7 = vld [vmem:[%s3675_s0 + $0x8] sm:$0xff]   ;;  %v1836_v9 = vld [vmem:[%s3675_s0 + $0x18] sm:$0xff]   ;;  %vm1460_vm4 = vcmask 257024  }
   0x3   :  { %1759 = vmatpush3.bf16.msra.mxu0 %v1831_v0  ;;  %v369_v6 = vand.u32 %v1832_v3, %v367_v4  ;;  %1828 = vmatpush3.bf16.msra.mxu1 %v1831_v0  ;;  %v1837_v10 = vld [vmem:[%s3675_s0 + $0x20] sm:$0xff]   ;;  %v1850_v12 = vld [vmem:[%s3675_s0 + $0x88] sm:$0xff]   ;;  %v1851_v13 = vld [vmem:[%s3675_s0 + $0x90] sm:$0xff]  }
   0x4   :  { %1762 = vmatprep.mubr.msk.bf16.mxu0 %vm267_vm2, %v1833_v5  ;;  %v1849_v11 = vld [vmem:[%s3675_s0 + $0x80] sm:$0xff]   ;;  %v1838_v14 = vld [vmem:[%s3675_s0 + $0x28] sm:$0xff]   ;;  %v1839_v15 = vld [vmem:[%s3675_s0 + $0x30] sm:$0xff]  }
   0x5   :  { %1760 = vmatprep.subr.bf16.mxu0 %v369_v6  ;;  %1827 = vmatprep.subr.bf16.mxu1 %v369_v6  ;;  %v1852_v16 = vld [vmem:[%s3675_s0 + $0x98] sm:$0xff]   ;;  %v1853_v17 = vld [vmem:[%s3675_s0 + $0xa0] sm:$0xff]   ;;  %v1854_v20 = vld [vmem:[%s3675_s0 + $0xa8] sm:$0xff]  }
   0x6   :  { %1794 = vmatprep.mubr.msk.bf16.mxu1 %vm267_vm2, %v1849_v11  ;;  %v1840_v18 = vld [vmem:[%s3675_s0 + $0x38] sm:$0xff]   ;;  %v1841_v19 = vld [vmem:[%s3675_s0 + $0x40] sm:$0xff]   ;;  %v1855_v21 = vld [vmem:[%s3675_s0 + $0xb0] sm:$0xff]  }
   0x7   :  { %1761 = vmatpush3.bf16.msra.mxu0 %v369_v6  ;;  %1829 = vmatpush3.bf16.msra.mxu1 %v369_v6  ;;  %v1842_v22 = vld [vmem:[%s3675_s0 + $0x48] sm:$0xff]   ;;  %v1843_v23 = vld [vmem:[%s3675_s0 + $0x50] sm:$0xff]   ;;  %v1856_v24 = vld [vmem:[%s3675_s0 + $0xb8] sm:$0xff]  }
   0x8   :  { %v1857_v25 = vld [vmem:[%s3675_s0 + $0xc0] sm:$0xff]   ;;  %v1844_v26 = vld [vmem:[%s3675_s0 + $0x58] sm:$0xff]   ;;  %v1858_v28 = vld [vmem:[%s3675_s0 + $0xc8] sm:$0xff]  }
   0x9   :  { %v1845_v27 = vld [vmem:[%s3675_s0 + $0x60] sm:$0xff]   ;;  %v1859_v29 = vld [vmem:[%s3675_s0 + $0xd0] sm:$0xff]   ;;  %v1846_v30 = vld [vmem:[%s3675_s0 + $0x68] sm:$0xff]  }
   0xa   :  { %1763 = vmatmul.mubr.msk.bf16.vlgmr.msra.gmra.mrb[0].mxu0 %vm267_vm2, %v1834_v7  ;;  %1795 = vmatmul.mubr.msk.bf16.vlgmr.msra.gmra.mrb[0].mxu1 %vm267_vm2, %v1850_v12  ;;  %v1847_v31 = vld [vmem:[%s3675_s0 + $0x70] sm:$0xff]   ;;  %v1860_v32 = vld [vmem:[%s3675_s0 + $0xd8] sm:$0xff]   ;;  %v1861_v33 = vld [vmem:[%s3675_s0 + $0xe0] sm:$0xff]  }
   0xb   :  { %1766 = vmatprep.mubr.msk.bf16.mxu0 %vm267_vm2, %v1835_v8  ;;  %1798 = vmatprep.mubr.msk.bf16.mxu1 %vm267_vm2, %v1851_v13  ;;  %v1848_v34 = vld [vmem:[%s3675_s0 + $0x78] sm:$0xff]   ;;  %v1862_v35 = vld [vmem:[%s3675_s0 + $0xe8] sm:$0xff]   ;;  %v1863_v36 = vld [vmem:[%s3675_s0 + $0xf0] sm:$0xff]  }
   0xc   :  { %v1864_v37 = vld [vmem:[%s3675_s0 + $0xf8] sm:$0xff]   ;;  %v2035_v38 = vld [vmem:[%s3676_s2] ss:$0 sm:$0xff] }
  0x12   :  { %1767 = vmatmul.mubr.msk.bf16.gmra.mrb[4].mxu0 %vm267_vm2, %v1836_v9  ;;  %1799 = vmatmul.mubr.msk.bf16.gmra.mrb[4].mxu1 %vm267_vm2, %v1852_v16 }
  0x13   :  { %1770 = vmatprep.mubr.msk.bf16.mxu0 %vm267_vm2, %v1837_v10  ;;  %1802 = vmatprep.mubr.msk.bf16.mxu1 %vm267_vm2, %v1853_v17 }
  0x1a   :  { %1771 = vmatmul.mubr.msk.bf16.gmra.mrb[8].mxu0 %vm267_vm2, %v1838_v14  ;;  %1803 = vmatmul.mubr.msk.bf16.gmra.mrb[8].mxu1 %vm267_vm2, %v1854_v20 }
  0x1b   :  { %1774 = vmatprep.mubr.msk.bf16.mxu0 %vm267_vm2, %v1839_v15  ;;  %1806 = vmatprep.mubr.msk.bf16.mxu1 %vm267_vm2, %v1855_v21 }
  0x22   :  { %1775 = vmatmul.mubr.msk.bf16.gmra.mrb[12].mxu0 %vm267_vm2, %v1840_v18  ;;  %1807 = vmatmul.mubr.msk.bf16.gmra.mrb[12].mxu1 %vm267_vm2, %v1856_v24 }
  0x23   :  { %1778 = vmatprep.mubr.msk.bf16.mxu0 %vm267_vm2, %v1841_v19  ;;  %1810 = vmatprep.mubr.msk.bf16.mxu1 %vm267_vm2, %v1857_v25 }
  0x2a   :  { %1779 = vmatmul.mubr.msk.bf16.gmra.mrb[16].mxu0 %vm267_vm2, %v1842_v22  ;;  %1811 = vmatmul.mubr.msk.bf16.gmra.mrb[16].mxu1 %vm267_vm2, %v1858_v28 }
  0x2b   :  { %1782 = vmatprep.mubr.msk.bf16.mxu0 %vm267_vm2, %v1843_v23  ;;  %1814 = vmatprep.mubr.msk.bf16.mxu1 %vm267_vm2, %v1859_v29 }
  0x32   :  { %1783 = vmatmul.mubr.msk.bf16.gmra.mrb[20].mxu0 %vm267_vm2, %v1844_v26  ;;  %1815 = vmatmul.mubr.msk.bf16.gmra.mrb[20].mxu1 %vm267_vm2, %v1860_v32 }
  0x33   :  { %1786 = vmatprep.mubr.msk.bf16.mxu0 %vm267_vm2, %v1845_v27  ;;  %1818 = vmatprep.mubr.msk.bf16.mxu1 %vm267_vm2, %v1861_v33 }
  0x3a   :  { %1787 = vmatmul.mubr.msk.bf16.gmra.mrb[24].mxu0 %vm267_vm2, %v1846_v30  ;;  %1819 = vmatmul.mubr.msk.bf16.gmra.mrb[24].mxu1 %vm267_vm2, %v1862_v35 }
  0x3b   :  { %1790 = vmatprep.mubr.msk.bf16.mxu0 %vm267_vm2, %v1847_v31  ;;  %1822 = vmatprep.mubr.msk.bf16.mxu1 %vm267_vm2, %v1863_v36 }
  0x42   :  { %1791 = vmatmul.mubr.msk.bf16.gmra.mrb[28].mxu0 %vm267_vm2, %v1848_v34  ;;  %1823 = vmatmul.mubr.msk.bf16.gmra.mrb[28].mxu1 %vm267_vm2, %v1864_v37 }
  0xdd   :  { %v1764_v39 = vpop.f32.mrb[0].mxu0  ;;  %v2074_v5 = vpop.f32.mrb[0].mxu1 }
  0xde   :  { %v405_v40 = vpop.f32.mrb[1].mxu0  ;;  %v2038_v41 = vadd.f32 %v1764_v39, %v2035_v38  ;;  %v2084_v10 = vpop.f32.mrb[1].mxu1 }
  0xdf   :  { %v2041_v42 = vadd.f32 %v2035_v38, %v405_v40  ;;  %v1765_v43 = vpop.f32.mrb[2].mxu0  ;;  %v2089_v14 = vpop.f32.mrb[2].mxu1 }
  0xe0   :  { %v408_v44 = vpop.f32.mrb[3].mxu0  ;;  %v2046_v46 = vadd.f32 %v1765_v43, %v2035_v38  ;;  %v796_v48 = vmul.f32 %v2038_v41, %v2038_v41  ;;  %v664_v53 = vsel %vm660_vm3, %v2038_v41, 0.0  ;;  %v2094_v17 = vpop.f32.mrb[3].mxu1 }
  0xe1   :  { %v794_v45 = vmul.f32 %v2041_v42, %v2041_v42  ;;  %v2049_v47 = vadd.f32 %v2035_v38, %v408_v44  ;;  %v661_v49 = vsel %vm660_vm3, %v2041_v42, 0.0 }
  0xe2   :  { %v797_v55 = vmul.f32 %v2046_v46, %v2046_v46  ;;  %v861_v61 = vsel %vm660_vm3, %v796_v48, 0.0  ;;  %v666_v62 = vsel %vm660_vm3, %v2046_v46, 0.0 }
  0xe3   :  { %v662_v50 = vsel %vm660_vm3, %v2049_v47, 0.0  ;;  %v795_v51 = vmul.f32 %v2049_v47, %v2049_v47  ;;  %v858_v54 = vsel %vm660_vm3, %v794_v45, 0.0 }
  0xe4   :  { %v663_v52 = vadd.f32 %v662_v50, %v661_v49  ;;  %v863_v6 = vsel %vm660_vm3, %v797_v55, 0.0 }
  0xe5   :  { %v859_v56 = vsel %vm660_vm3, %v795_v51, 0.0  ;;  %v1768_v57 = vpop.f32.mrb[4].mxu0  ;;  %v2114_v36 = vpop.f32.mrb[4].mxu1 }
  0xe6   :  { %v665_v58 = vadd.f32 %v664_v53, %v663_v52  ;;  %v860_v59 = vadd.f32 %v859_v56, %v858_v54  ;;  %v421_v60 = vpop.f32.mrb[5].mxu0  ;;  %v2072_v2 = vadd.f32 %v1768_v57, %v2035_v38  ;;  %v2123_v44 = vpop.f32.mrb[5].mxu1 }
  0xe7   :  { %v2069_v63 = vadd.f32 %v2035_v38, %v421_v60  ;;  %v1769_v0 = vpop.f32.mrb[6].mxu0  ;;  %v2129_v50 = vpop.f32.mrb[6].mxu1 }
  0xe8   :  { %v862_v1 = vadd.f32 %v861_v61, %v860_v59  ;;  %v667_v3 = vadd.f32 %v666_v62, %v665_v58  ;;  %v424_v4 = vpop.f32.mrb[7].mxu0  ;;  %v2087_v13 = vadd.f32 %v1769_v0, %v2035_v38  ;;  %v800_v18 = vmul.f32 %v2072_v2, %v2072_v2  ;;  %v2136_v55 = vpop.f32.mrb[7].mxu1 }
  0xe9   :  { %v668_v7 = vsel %vm660_vm3, %v2069_v63, 0.0  ;;  %v798_v8 = vmul.f32 %v2069_v63, %v2069_v63  ;;  %v2082_v9 = vadd.f32 %v2035_v38, %v424_v4  ;;  %v672_v22 = vsel %vm660_vm3, %v2072_v2, 0.0 }
  0xea   :  { %v669_v11 = vadd.f32 %v668_v7, %v667_v3  ;;  %v864_v12 = vadd.f32 %v863_v6, %v862_v1  ;;  %v801_v24 = vmul.f32 %v2087_v13, %v2087_v13  ;;  %v674_v28 = vsel %vm660_vm3, %v2087_v13, 0.0 }
  0xeb   :  { %v865_v15 = vsel %vm660_vm3, %v798_v8, 0.0  ;;  %v670_v16 = vsel %vm660_vm3, %v2082_v9, 0.0  ;;  %v799_v21 = vmul.f32 %v2082_v9, %v2082_v9  ;;  %v869_v32 = vsel %vm660_vm3, %v800_v18, 0.0 }
  0xec   :  { %v866_v19 = vadd.f32 %v865_v15, %v864_v12  ;;  %v671_v20 = vadd.f32 %v670_v16, %v669_v11  ;;  %v871_v45 = vsel %vm660_vm3, %v801_v24, 0.0 }
  0xed   :  { %v1772_v23 = vpop.f32.mrb[8].mxu0  ;;  %v867_v26 = vsel %vm660_vm3, %v799_v21, 0.0  ;;  %v2154_v16 = vpop.f32.mrb[8].mxu1 }
  0xee   :  { %v673_v25 = vadd.f32 %v672_v22, %v671_v20  ;;  %v437_v27 = vpop.f32.mrb[9].mxu0  ;;  %v868_v29 = vadd.f32 %v867_v26, %v866_v19  ;;  %v2112_v33 = vadd.f32 %v1772_v23, %v2035_v38  ;;  %v2163_v22 = vpop.f32.mrb[9].mxu1 }
  0xef   :  { %v2108_v30 = vadd.f32 %v2035_v38, %v437_v27  ;;  %v1773_v31 = vpop.f32.mrb[10].mxu0  ;;  %v2169_v26 = vpop.f32.mrb[10].mxu1 }
  0xf0   :  { %v675_v34 = vadd.f32 %v674_v28, %v673_v25  ;;  %v440_v35 = vpop.f32.mrb[11].mxu0  ;;  %v870_v37 = vadd.f32 %v869_v32, %v868_v29  ;;  %v2127_v49 = vadd.f32 %v1773_v31, %v2035_v38  ;;  %v804_v56 = vmul.f32 %v2112_v33, %v2112_v33  ;;  %v2176_v32 = vpop.f32.mrb[11].mxu1 }
  0xf1   :  { %v676_v39 = vsel %vm660_vm3, %v2108_v30, 0.0  ;;  %v802_v40 = vmul.f32 %v2108_v30, %v2108_v30  ;;  %v2121_v43 = vadd.f32 %v2035_v38, %v440_v35  ;;  %v680_v58 = vsel %vm660_vm3, %v2112_v33, 0.0 }
  0xf2   :  { %v677_v48 = vadd.f32 %v676_v39, %v675_v34  ;;  %v872_v51 = vadd.f32 %v871_v45, %v870_v37  ;;  %v805_v62 = vmul.f32 %v2127_v49, %v2127_v49  ;;  %v682_v3 = vsel %vm660_vm3, %v2127_v49, 0.0 }
  0xf3   :  { %v873_v52 = vsel %vm660_vm3, %v802_v40, 0.0  ;;  %v678_v53 = vsel %vm660_vm3, %v2121_v43, 0.0  ;;  %v803_v54 = vmul.f32 %v2121_v43, %v2121_v43  ;;  %v877_v8 = vsel %vm660_vm3, %v804_v56, 0.0 }
  0xf4   :  { %v679_v57 = vadd.f32 %v678_v53, %v677_v48  ;;  %v874_v59 = vadd.f32 %v873_v52, %v872_v51  ;;  %v879_v23 = vsel %vm660_vm3, %v805_v62, 0.0 }
  0xf5   :  { %v875_v60 = vsel %vm660_vm3, %v803_v54, 0.0  ;;  %v1776_v61 = vpop.f32.mrb[12].mxu0  ;;  %v2194_v62 = vpop.f32.mrb[12].mxu1 }
  0xf6   :  { %v681_v0 = vadd.f32 %v680_v58, %v679_v57  ;;  %v453_v1 = vpop.f32.mrb[13].mxu0  ;;  %v876_v4 = vadd.f32 %v875_v60, %v874_v59  ;;  %v2152_v11 = vadd.f32 %v1776_v61, %v2035_v38 }
  0xf7   :  { %v2148_v6 = vadd.f32 %v2035_v38, %v453_v1  ;;  %v1777_v7 = vpop.f32.mrb[14].mxu0 }
  0xf8   :  { %v683_v12 = vadd.f32 %v682_v3, %v681_v0  ;;  %v456_v15 = vpop.f32.mrb[15].mxu0  ;;  %v878_v18 = vadd.f32 %v877_v8, %v876_v4  ;;  %v2167_v25 = vadd.f32 %v1777_v7, %v2035_v38  ;;  %v808_v34 = vmul.f32 %v2152_v11, %v2152_v11  ;;  %v2203_v7 = vpop.f32.mrb[13].mxu1 }
  0xf9   :  { %v684_v19 = vsel %vm660_vm3, %v2148_v6, 0.0  ;;  %v806_v20 = vmul.f32 %v2148_v6, %v2148_v6  ;;  %v2161_v21 = vadd.f32 %v2035_v38, %v456_v15  ;;  %v688_v37 = vsel %vm660_vm3, %v2152_v11, 0.0 }
  0xfa   :  { %v685_v24 = vadd.f32 %v684_v19, %v683_v12  ;;  %v880_v27 = vadd.f32 %v879_v23, %v878_v18  ;;  %v809_v48 = vmul.f32 %v2167_v25, %v2167_v25  ;;  %v690_v53 = vsel %vm660_vm3, %v2167_v25, 0.0  ;;  %v2209_v18 = vpop.f32.mrb[14].mxu1 }
  0xfb   :  { %v881_v28 = vsel %vm660_vm3, %v806_v20, 0.0  ;;  %v686_v29 = vsel %vm660_vm3, %v2161_v21, 0.0  ;;  %v807_v31 = vmul.f32 %v2161_v21, %v2161_v21  ;;  %v885_v58 = vsel %vm660_vm3, %v808_v34, 0.0 }
  0xfc   :  { %v687_v35 = vadd.f32 %v686_v29, %v685_v24  ;;  %v882_v39 = vadd.f32 %v881_v28, %v880_v27  ;;  %v887_v8 = vsel %vm660_vm3, %v809_v48, 0.0  ;;  %v2216_v27 = vpop.f32.mrb[15].mxu1 }
  0xfd   :  { %v883_v40 = vsel %vm660_vm3, %v807_v31, 0.0  ;;  %v1780_v45 = vpop.f32.mrb[16].mxu0 }
  0xfe   :  { %v689_v51 = vadd.f32 %v688_v37, %v687_v35  ;;  %v469_v52 = vpop.f32.mrb[17].mxu0  ;;  %v884_v54 = vadd.f32 %v883_v40, %v882_v39  ;;  %v2192_v59 = vadd.f32 %v1780_v45, %v2035_v38 }
  0xff   :  { %v2188_v56 = vadd.f32 %v2035_v38, %v469_v52  ;;  %v1781_v57 = vpop.f32.mrb[18].mxu0 }
 0x100   :  { %3724 = vst [vmem:[#allocation2_spill] sm:$0xff] %v2192_v59  ;;  %v691_v60 = vadd.f32 %v690_v53, %v689_v51  ;;  %v472_v61 = vpop.f32.mrb[19].mxu0  ;;  %v886_v0 = vadd.f32 %v885_v58, %v884_v54  ;;  %v2207_v15 = vadd.f32 %v1781_v57, %v2035_v38  ;;  %v812_v28 = vmul.f32 %v2192_v59, %v2192_v59 }
 0x101   :  { %v692_v1 = vsel %vm660_vm3, %v2188_v56, 0.0  ;;  %v810_v3 = vmul.f32 %v2188_v56, %v2188_v56  ;;  %v2201_v4 = vadd.f32 %v2035_v38, %v472_v61  ;;  %v696_v31 = vsel %vm660_vm3, %v2192_v59, 0.0  ;;  %v2234_v61 = vpop.f32.mrb[16].mxu1 }
 0x102   :  { %v693_v12 = vadd.f32 %v692_v1, %v691_v60  ;;  %3725 = vst [vmem:[#allocation3_spill] sm:$0xff] %v2207_v15  ;;  %v888_v19 = vadd.f32 %v887_v8, %v886_v0  ;;  %v813_v39 = vmul.f32 %v2207_v15, %v2207_v15  ;;  %v698_v48 = vsel %vm660_vm3, %v2207_v15, 0.0 }
 0x103   :  { %v889_v20 = vsel %vm660_vm3, %v810_v3, 0.0  ;;  %v694_v23 = vsel %vm660_vm3, %v2201_v4, 0.0  ;;  %v811_v24 = vmul.f32 %v2201_v4, %v2201_v4  ;;  %v893_v54 = vsel %vm660_vm3, %v812_v28, 0.0 }
 0x104   :  { %v695_v29 = vadd.f32 %v694_v23, %v693_v12  ;;  %v890_v34 = vadd.f32 %v889_v20, %v888_v19  ;;  %v2243_v12 = vpop.f32.mrb[17].mxu1  ;;  %v895_v19 = vsel %vm660_vm3, %v813_v39, 0.0 }
 0x105   :  { %v891_v35 = vsel %vm660_vm3, %v811_v24, 0.0  ;;  %v1784_v37 = vpop.f32.mrb[20].mxu0  ;;  %v2249_v24 = vpop.f32.mrb[18].mxu1 }
 0x106   :  { %v697_v40 = vadd.f32 %v696_v31, %v695_v29  ;;  %v485_v45 = vpop.f32.mrb[21].mxu0  ;;  %v892_v51 = vadd.f32 %v891_v35, %v890_v34  ;;  %v2232_v57 = vadd.f32 %v1784_v37, %v2035_v38  ;;  %v2256_v35 = vpop.f32.mrb[19].mxu1 }
 0x107   :  { %v2228_v52 = vadd.f32 %v2035_v38, %v485_v45  ;;  %v1785_v53 = vpop.f32.mrb[22].mxu0 }
 0x108   :  { %3727 = vst [vmem:[#allocation5_spill] sm:$0xff] %v2232_v57  ;;  %v699_v58 = vadd.f32 %v698_v48, %v697_v40  ;;  %v488_v60 = vpop.f32.mrb[23].mxu0  ;;  %v894_v0 = vadd.f32 %v893_v54, %v892_v51  ;;  %v2247_v23 = vadd.f32 %v1785_v53, %v2035_v38  ;;  %v816_v37 = vmul.f32 %v2232_v57, %v2232_v57 }
 0x109   :  { %3726 = vst [vmem:[#allocation4_spill] sm:$0xff] %v2228_v52  ;;  %v700_v1 = vsel %vm660_vm3, %v2228_v52, 0.0  ;;  %v814_v3 = vmul.f32 %v2228_v52, %v2228_v52  ;;  %v2241_v8 = vadd.f32 %v2035_v38, %v488_v60  ;;  %v704_v40 = vsel %vm660_vm3, %v2232_v57, 0.0 }
 0x10a   :  { %v701_v20 = vadd.f32 %v700_v1, %v699_v58  ;;  %3729 = vst [vmem:[#allocation7_spill] sm:$0xff] %v2247_v23  ;;  %v896_v28 = vadd.f32 %v895_v19, %v894_v0  ;;  %v817_v53 = vmul.f32 %v2247_v23, %v2247_v23  ;;  %v706_v60 = vsel %vm660_vm3, %v2247_v23, 0.0 }
 0x10b   :  { %3728 = vst [vmem:[#allocation6_spill] sm:$0xff] %v2241_v8  ;;  %v897_v29 = vsel %vm660_vm3, %v814_v3, 0.0  ;;  %v702_v31 = vsel %vm660_vm3, %v2241_v8, 0.0  ;;  %v815_v34 = vmul.f32 %v2241_v8, %v2241_v8  ;;  %v901_v19 = vsel %vm660_vm3, %v816_v37, 0.0 }
 0x10c   :  { %v703_v39 = vadd.f32 %v702_v31, %v701_v20  ;;  %v898_v45 = vadd.f32 %v897_v29, %v896_v28  ;;  %v2274_v31 = vpop.f32.mrb[20].mxu1  ;;  %v903_v37 = vsel %vm660_vm3, %v817_v53, 0.0 }
 0x10d   :  { %v899_v48 = vsel %vm660_vm3, %v815_v34, 0.0  ;;  %v1788_v51 = vpop.f32.mrb[24].mxu0 }
 0x10e   :  { %v705_v54 = vadd.f32 %v704_v40, %v703_v39  ;;  %v501_v58 = vpop.f32.mrb[25].mxu0  ;;  %v900_v0 = vadd.f32 %v899_v48, %v898_v45  ;;  %v2272_v20 = vadd.f32 %v1788_v51, %v2035_v38  ;;  %v2283_v48 = vpop.f32.mrb[21].mxu1 }
 0x10f   :  { %v2268_v1 = vadd.f32 %v2035_v38, %v501_v58  ;;  %v1789_v3 = vpop.f32.mrb[26].mxu0  ;;  %v2289_v58 = vpop.f32.mrb[22].mxu1 }
 0x110   :  { %3731 = vst [vmem:[#allocation9_spill] sm:$0xff] %v2272_v20  ;;  %v707_v28 = vadd.f32 %v706_v60, %v705_v54  ;;  %v504_v29 = vpop.f32.mrb[27].mxu0  ;;  %v902_v34 = vadd.f32 %v901_v19, %v900_v0  ;;  %v2287_v54 = vadd.f32 %v1789_v3, %v2035_v38  ;;  %v820_v53 = vmul.f32 %v2272_v20, %v2272_v20 }
 0x111   :  { %3730 = vst [vmem:[#allocation8_spill] sm:$0xff] %v2268_v1  ;;  %v708_v39 = vsel %vm660_vm3, %v2268_v1, 0.0  ;;  %v818_v40 = vmul.f32 %v2268_v1, %v2268_v1  ;;  %v2281_v45 = vadd.f32 %v2035_v38, %v504_v29  ;;  %v2296_v1 = vpop.f32.mrb[23].mxu1  ;;  %v712_v3 = vsel %vm660_vm3, %v2272_v20, 0.0 }
 0x112   :  { %v709_v51 = vadd.f32 %v708_v39, %v707_v28  ;;  %3733 = vst [vmem:[#allocation11_spill] sm:$0xff] %v2287_v54  ;;  %v904_v60 = vadd.f32 %v903_v37, %v902_v34  ;;  %v2316_v20 = vadd.f32 %v2035_v38, %v2084_v10 }
 0x113   :  { %3732 = vst [vmem:[#allocation10_spill] sm:$0xff] %v2281_v45  ;;  %v905_v0 = vsel %vm660_vm3, %v818_v40, 0.0  ;;  %v710_v19 = vsel %vm660_vm3, %v2281_v45, 0.0  ;;  %v819_v29 = vmul.f32 %v2281_v45, %v2281_v45  ;;  %v821_v40 = vmul.f32 %v2287_v54, %v2287_v54 }
 0x114   :  { %v711_v28 = vadd.f32 %v710_v19, %v709_v51  ;;  %v906_v39 = vadd.f32 %v905_v0, %v904_v60  ;;  %v714_v45 = vsel %vm660_vm3, %v2287_v54, 0.0  ;;  %v909_v19 = vsel %vm660_vm3, %v820_v53, 0.0  ;;  %3736 = vst [vmem:[#allocation14_spill] sm:$0xff] %v2316_v20 }
 0x115   :  { %v907_v34 = vsel %vm660_vm3, %v819_v29, 0.0  ;;  %v1792_v37 = vpop.f32.mrb[28].mxu0 }
 0x116   :  { %v713_v23 = vadd.f32 %v712_v3, %v711_v28  ;;  %v517_v57 = vpop.f32.mrb[29].mxu0  ;;  %v908_v8 = vadd.f32 %v907_v34, %v906_v39  ;;  %v2312_v60 = vadd.f32 %v1792_v37, %v2035_v38  ;;  %v2318_v28 = vpop.f32.mrb[24].mxu1 }
 0x117   :  { %v2308_v52 = vadd.f32 %v2035_v38, %v517_v57  ;;  %v1793_v51 = vpop.f32.mrb[30].mxu0  ;;  %v2327_v34 = vpop.f32.mrb[25].mxu1 }
 0x118   :  { %3735 = vst [vmem:[#allocation13_spill] sm:$0xff] %v2312_v60  ;;  %v715_v0 = vadd.f32 %v714_v45, %v713_v23  ;;  %v520_v29 = vpop.f32.mrb[31].mxu0  ;;  %v910_v3 = vadd.f32 %v909_v19, %v908_v8  ;;  %v911_v23 = vsel %vm660_vm3, %v821_v40, 0.0  ;;  %v2331_v10 = vadd.f32 %v1793_v51, %v2035_v38  ;;  %v2333_v37 = vpop.f32.mrb[26].mxu1 }
 0x119   :  { %3734 = vst [vmem:[#allocation12_spill] sm:$0xff] %v2308_v52  ;;  %v716_v39 = vsel %vm660_vm3, %v2308_v52, 0.0  ;;  %v822_v57 = vmul.f32 %v2308_v52, %v2308_v52  ;;  %v2325_v53 = vadd.f32 %v2035_v38, %v520_v29  ;;  %v2340_v52 = vpop.f32.mrb[27].mxu1  ;;  %v824_v40 = vmul.f32 %v2312_v60, %v2312_v60 }
 0x11a   :  { %v717_v45 = vadd.f32 %v716_v39, %v715_v0  ;;  %3738 = vst [vmem:[#allocation16_spill] sm:$0xff] %v2331_v10  ;;  %v912_v8 = vadd.f32 %v911_v23, %v910_v3  ;;  %v720_v51 = vsel %vm660_vm3, %v2312_v60, 0.0  ;;  %v825_v23 = vmul.f32 %v2331_v10, %v2331_v10  ;;  %v2364_v59 = vpop.f32.mrb[28].mxu1 }
 0x11b   :  { %3737 = vst [vmem:[#allocation15_spill] sm:$0xff] %v2325_v53  ;;  %v913_v19 = vsel %vm660_vm3, %v822_v57, 0.0  ;;  %v718_v54 = vsel %vm660_vm3, %v2325_v53, 0.0  ;;  %v823_v29 = vmul.f32 %v2325_v53, %v2325_v53  ;;  %v826_v57 = vmul.f32 %v2316_v20, %v2316_v20 }
 0x11c   :  { %v719_v0 = vadd.f32 %v718_v54, %v717_v45  ;;  %v914_v39 = vadd.f32 %v913_v19, %v912_v8  ;;  %v2353_v53 = vadd.f32 %v2035_v38, %v2094_v17  ;;  %v722_v54 = vsel %vm660_vm3, %v2331_v10, 0.0 }
 0x11d   :  { %v915_v3 = vsel %vm660_vm3, %v823_v29, 0.0  ;;  %v724_v8 = vsel %vm660_vm3, %v2316_v20, 0.0  ;;  %v917_v19 = vsel %vm660_vm3, %v824_v40, 0.0  ;;  %v2362_v29 = vadd.f32 %v2074_v5, %v2035_v38 }
 0x11e   :  { %v721_v15 = vadd.f32 %v720_v51, %v719_v0  ;;  %3739 = vst [vmem:[#allocation17_spill] sm:$0xff] %v2353_v53  ;;  %v916_v45 = vadd.f32 %v915_v3, %v914_v39  ;;  %v921_v17 = vsel %vm660_vm3, %v826_v57, 0.0  ;;  %v2369_v51 = vadd.f32 %v2089_v14, %v2035_v38  ;;  %v2371_v39 = vpop.f32.mrb[29].mxu1 }
 0x11f   :  { %3740 = vst [vmem:[#allocation18_spill] sm:$0xff] %v2362_v29  ;;  %v919_v3 = vsel %vm660_vm3, %v825_v23, 0.0  ;;  %v827_v40 = vmul.f32 %v2353_v53, %v2353_v53  ;;  %v2378_v5 = vadd.f32 %v2035_v38, %v2123_v44  ;;  %v726_v57 = vsel %vm660_vm3, %v2353_v53, 0.0 }
 0x120   :  { %v723_v60 = vadd.f32 %v722_v54, %v721_v15  ;;  %v918_v0 = vadd.f32 %v917_v19, %v916_v45  ;;  %v2380_v15 = vpop.f32.mrb[30].mxu1  ;;  %v828_v45 = vmul.f32 %v2362_v29, %v2362_v29  ;;  %v829_v44 = vmul.f32 %v2369_v51, %v2369_v51 }
 0x121   :  { %v2384_v14 = vpop.f32.mrb[31].mxu1  ;;  %v923_v10 = vsel %vm660_vm3, %v827_v40, 0.0 }
 0x122   :  { %v725_v20 = vadd.f32 %v724_v8, %v723_v60  ;;  %v920_v54 = vadd.f32 %v919_v3, %v918_v0  ;;  %v728_v60 = vsel %vm660_vm3, %v2362_v29, 0.0  ;;  %v830_v0 = vmul.f32 %v2378_v5, %v2378_v5 }
 0x123   :  { %v2397_v3 = vadd.f32 %v2035_v38, %v2136_v55  ;;  %v2411_v55 = vadd.f32 %v2129_v50, %v2035_v38 }
 0x124   :  { %v727_v23 = vadd.f32 %v726_v57, %v725_v20  ;;  %v922_v8 = vadd.f32 %v921_v17, %v920_v54  ;;  %v730_v20 = vsel %vm660_vm3, %v2369_v51, 0.0  ;;  %v732_v17 = vsel %vm660_vm3, %v2378_v5, 0.0 }
 0x125   :  { %v925_v54 = vsel %vm660_vm3, %v828_v45, 0.0  ;;  %v2418_v45 = vadd.f32 %v2035_v38, %v2163_v22 }
 0x126   :  { %v729_v19 = vadd.f32 %v728_v60, %v727_v23  ;;  %v924_v57 = vadd.f32 %v923_v10, %v922_v8  ;;  %v2406_v23 = vadd.f32 %v2114_v36, %v2035_v38  ;;  %v927_v60 = vsel %vm660_vm3, %v829_v44, 0.0 }
 0x127   :  { %v929_v10 = vsel %vm660_vm3, %v830_v0, 0.0  ;;  %v831_v8 = vmul.f32 %v2397_v3, %v2397_v3  ;;  %v833_v0 = vmul.f32 %v2411_v55, %v2411_v55  ;;  %v834_v22 = vmul.f32 %v2418_v45, %v2418_v45 }
 0x128   :  { %v731_v40 = vadd.f32 %v730_v20, %v729_v19  ;;  %v926_v29 = vadd.f32 %v925_v54, %v924_v57  ;;  %v734_v19 = vsel %vm660_vm3, %v2397_v3, 0.0  ;;  %v832_v44 = vmul.f32 %v2406_v23, %v2406_v23 }
 0x129   :  { %v736_v50 = vsel %vm660_vm3, %v2406_v23, 0.0  ;;  %v931_v54 = vsel %vm660_vm3, %v831_v8, 0.0 }
 0x12a   :  { %v733_v53 = vadd.f32 %v732_v17, %v731_v40  ;;  %v928_v36 = vadd.f32 %v927_v60, %v926_v29  ;;  %v2433_v29 = vadd.f32 %v2035_v38, %v2176_v32  ;;  %v740_v60 = vsel %vm660_vm3, %v2418_v45, 0.0 }
 0x12b   :  { %v2447_v32 = vadd.f32 %v2169_v26, %v2035_v38 }
 0x12c   :  { %v735_v20 = vadd.f32 %v734_v19, %v733_v53  ;;  %v930_v57 = vadd.f32 %v929_v10, %v928_v36  ;;  %v738_v53 = vsel %vm660_vm3, %v2411_v55, 0.0  ;;  %v933_v10 = vsel %vm660_vm3, %v832_v44, 0.0 }
 0x12d   :  { %v2442_v36 = vadd.f32 %v2154_v16, %v2035_v38  ;;  %v935_v19 = vsel %vm660_vm3, %v833_v0, 0.0  ;;  %v2454_v44 = vadd.f32 %v2035_v38, %v2203_v7 }
 0x12e   :  { %v737_v17 = vadd.f32 %v736_v50, %v735_v20  ;;  %v932_v40 = vadd.f32 %v931_v54, %v930_v57  ;;  %v937_v57 = vsel %vm660_vm3, %v834_v22, 0.0  ;;  %v835_v54 = vmul.f32 %v2433_v29, %v2433_v29 }
 0x12f   :  { %v836_v0 = vmul.f32 %v2442_v36, %v2442_v36  ;;  %v744_v26 = vsel %vm660_vm3, %v2442_v36, 0.0  ;;  %v837_v22 = vmul.f32 %v2447_v32, %v2447_v32  ;;  %v838_v7 = vmul.f32 %v2454_v44, %v2454_v44 }
 0x130   :  { %v739_v8 = vadd.f32 %v738_v53, %v737_v17  ;;  %v934_v20 = vadd.f32 %v933_v10, %v932_v40  ;;  %v742_v17 = vsel %vm660_vm3, %v2433_v29, 0.0  ;;  %v939_v10 = vsel %vm660_vm3, %v835_v54, 0.0 }
 0x132   :  { %v741_v50 = vadd.f32 %v740_v60, %v739_v8  ;;  %v936_v16 = vadd.f32 %v935_v19, %v934_v20  ;;  %v2469_v8 = vadd.f32 %v2035_v38, %v2216_v27  ;;  %v746_v19 = vsel %vm660_vm3, %v2447_v32, 0.0 }
 0x133   :  { %v2483_v27 = vadd.f32 %v2209_v18, %v2035_v38 }
 0x134   :  { %v743_v53 = vadd.f32 %v742_v17, %v741_v50  ;;  %v938_v40 = vadd.f32 %v937_v57, %v936_v16  ;;  %v748_v50 = vsel %vm660_vm3, %v2454_v44, 0.0  ;;  %v941_v57 = vsel %vm660_vm3, %v836_v0, 0.0 }
 0x135   :  { %v2478_v16 = vadd.f32 %v2194_v62, %v2035_v38  ;;  %v943_v17 = vsel %vm660_vm3, %v837_v22, 0.0  ;;  %v2490_v0 = vadd.f32 %v2035_v38, %v2243_v12 }
 0x136   :  { %v745_v60 = vadd.f32 %v744_v26, %v743_v53  ;;  %v940_v20 = vadd.f32 %v939_v10, %v938_v40  ;;  %v945_v40 = vsel %vm660_vm3, %v838_v7, 0.0  ;;  %v839_v10 = vmul.f32 %v2469_v8, %v2469_v8 }
 0x137   :  { %v840_v22 = vmul.f32 %v2478_v16, %v2478_v16  ;;  %v752_v18 = vsel %vm660_vm3, %v2478_v16, 0.0  ;;  %v841_v7 = vmul.f32 %v2483_v27, %v2483_v27  ;;  %v842_v12 = vmul.f32 %v2490_v0, %v2490_v0 }
 0x138   :  { %v747_v54 = vadd.f32 %v746_v19, %v745_v60  ;;  %v942_v53 = vadd.f32 %v941_v57, %v940_v20  ;;  %v750_v60 = vsel %vm660_vm3, %v2469_v8, 0.0  ;;  %v947_v57 = vsel %vm660_vm3, %v839_v10, 0.0 }
 0x13a   :  { %v749_v26 = vadd.f32 %v748_v50, %v747_v54  ;;  %v944_v62 = vadd.f32 %v943_v17, %v942_v53  ;;  %v2505_v54 = vadd.f32 %v2035_v38, %v2256_v35  ;;  %v754_v17 = vsel %vm660_vm3, %v2483_v27, 0.0 }
 0x13b   :  { %v2519_v35 = vadd.f32 %v2249_v24, %v2035_v38 }
 0x13c   :  { %v751_v19 = vadd.f32 %v750_v60, %v749_v26  ;;  %v946_v20 = vadd.f32 %v945_v40, %v944_v62  ;;  %v756_v26 = vsel %vm660_vm3, %v2490_v0, 0.0  ;;  %v949_v40 = vsel %vm660_vm3, %v840_v22, 0.0 }
 0x13d   :  { %v2514_v62 = vadd.f32 %v2234_v61, %v2035_v38  ;;  %v951_v60 = vsel %vm660_vm3, %v841_v7, 0.0  ;;  %v2526_v22 = vadd.f32 %v2035_v38, %v2283_v48 }
 0x13e   :  { %v753_v50 = vadd.f32 %v752_v18, %v751_v19  ;;  %v948_v53 = vadd.f32 %v947_v57, %v946_v20  ;;  %v953_v20 = vsel %vm660_vm3, %v842_v12, 0.0  ;;  %v843_v57 = vmul.f32 %v2505_v54, %v2505_v54 }
 0x13f   :  { %3741 = vst [vmem:[#allocation19_spill] sm:$0xff] %v2526_v22  ;;  %v844_v7 = vmul.f32 %v2514_v62, %v2514_v62  ;;  %v760_v24 = vsel %vm660_vm3, %v2514_v62, 0.0  ;;  %v845_v12 = vmul.f32 %v2519_v35, %v2519_v35  ;;  %v846_v48 = vmul.f32 %v2526_v22, %v2526_v22 }
 0x140   :  { %v755_v10 = vadd.f32 %v754_v17, %v753_v50  ;;  %v950_v19 = vadd.f32 %v949_v40, %v948_v53  ;;  %v758_v50 = vsel %vm660_vm3, %v2505_v54, 0.0  ;;  %v955_v40 = vsel %vm660_vm3, %v843_v57, 0.0 }
 0x142   :  { %v757_v18 = vadd.f32 %v756_v26, %v755_v10  ;;  %v952_v61 = vadd.f32 %v951_v60, %v950_v19  ;;  %v2541_v10 = vadd.f32 %v2035_v38, %v2296_v1  ;;  %v762_v60 = vsel %vm660_vm3, %v2519_v35, 0.0 }
 0x143   :  { %v2555_v1 = vadd.f32 %v2289_v58, %v2035_v38 }
 0x144   :  { %v759_v17 = vadd.f32 %v758_v50, %v757_v18  ;;  %v954_v53 = vadd.f32 %v953_v20, %v952_v61  ;;  %3742 = vst [vmem:[#allocation20_spill] sm:$0xff] %v2541_v10  ;;  %v764_v18 = vsel %vm660_vm3, %v2526_v22, 0.0  ;;  %v957_v20 = vsel %vm660_vm3, %v844_v7, 0.0 }
 0x145   :  { %v2550_v61 = vadd.f32 %v2274_v31, %v2035_v38  ;;  %v959_v50 = vsel %vm660_vm3, %v845_v12, 0.0  ;;  %3744 = vst [vmem:[#allocation22_spill] sm:$0xff] %v2555_v1  ;;  %v2562_v7 = vadd.f32 %v2035_v38, %v2327_v34 }
 0x146   :  { %v761_v26 = vadd.f32 %v760_v24, %v759_v17  ;;  %v956_v19 = vadd.f32 %v955_v40, %v954_v53  ;;  %v961_v53 = vsel %vm660_vm3, %v846_v48, 0.0  ;;  %v847_v40 = vmul.f32 %v2541_v10, %v2541_v10 }
 0x147   :  { %3743 = vst [vmem:[#allocation21_spill] sm:$0xff] %v2550_v61  ;;  %3745 = vst [vmem:[#allocation23_spill] sm:$0xff] %v2562_v7  ;;  %v848_v12 = vmul.f32 %v2550_v61, %v2550_v61  ;;  %v768_v58 = vsel %vm660_vm3, %v2550_v61, 0.0  ;;  %v849_v48 = vmul.f32 %v2555_v1, %v2555_v1  ;;  %v850_v34 = vmul.f32 %v2562_v7, %v2562_v7 }
 0x148   :  { %v763_v57 = vadd.f32 %v762_v60, %v761_v26  ;;  %v958_v17 = vadd.f32 %v957_v20, %v956_v19  ;;  %v766_v26 = vsel %vm660_vm3, %v2541_v10, 0.0  ;;  %v963_v20 = vsel %vm660_vm3, %v847_v40, 0.0 }
 0x14a   :  { %v765_v24 = vadd.f32 %v764_v18, %v763_v57  ;;  %v960_v31 = vadd.f32 %v959_v50, %v958_v17  ;;  %v2577_v57 = vadd.f32 %v2035_v38, %v2340_v52  ;;  %v770_v50 = vsel %vm660_vm3, %v2555_v1, 0.0 }
 0x14b   :  { %v2591_v52 = vadd.f32 %v2333_v37, %v2035_v38 }
 0x14c   :  { %v767_v60 = vadd.f32 %v766_v26, %v765_v24  ;;  %v962_v19 = vadd.f32 %v961_v53, %v960_v31  ;;  %3746 = vst [vmem:[#allocation24_spill] sm:$0xff] %v2577_v57  ;;  %v772_v24 = vsel %vm660_vm3, %v2562_v7, 0.0  ;;  %v965_v53 = vsel %vm660_vm3, %v848_v12, 0.0 }
 0x14d   :  { %v2586_v31 = vadd.f32 %v2318_v28, %v2035_v38  ;;  %v967_v26 = vsel %vm660_vm3, %v849_v48, 0.0  ;;  %v2598_v12 = vadd.f32 %v2035_v38, %v2371_v39 }
 0x14e   :  { %v769_v18 = vadd.f32 %v768_v58, %v767_v60  ;;  %v964_v17 = vadd.f32 %v963_v20, %v962_v19  ;;  %v969_v19 = vsel %vm660_vm3, %v850_v34, 0.0  ;;  %v851_v20 = vmul.f32 %v2577_v57, %v2577_v57 }
 0x14f   :  { %v852_v48 = vmul.f32 %v2586_v31, %v2586_v31  ;;  %v776_v37 = vsel %vm660_vm3, %v2586_v31, 0.0  ;;  %v853_v34 = vmul.f32 %v2591_v52, %v2591_v52  ;;  %v854_v39 = vmul.f32 %v2598_v12, %v2598_v12 }
 0x150   :  { %v771_v40 = vadd.f32 %v770_v50, %v769_v18  ;;  %v966_v60 = vadd.f32 %v965_v53, %v964_v17  ;;  %v774_v18 = vsel %vm660_vm3, %v2577_v57, 0.0  ;;  %v971_v53 = vsel %vm660_vm3, %v851_v20, 0.0 }
 0x151   :  { %v2628_v57 = vadd.f32 %v2380_v15, %v2035_v38 }
 0x152   :  { %v773_v58 = vadd.f32 %v772_v24, %v771_v40  ;;  %v968_v28 = vadd.f32 %v967_v26, %v966_v60  ;;  %v2613_v40 = vadd.f32 %v2035_v38, %v2384_v14  ;;  %v778_v26 = vsel %vm660_vm3, %v2591_v52, 0.0 }
 0x153   :  { %v977_v14 = vsel %vm660_vm3, %v854_v39, 0.0  ;;  %3747 = vst [vmem:[#allocation25_spill] sm:$0xff] %v2628_v57  ;;  %v857_v39 = vmul.f32 %v2628_v57, %v2628_v57 }
 0x154   :  { %v775_v50 = vadd.f32 %v774_v18, %v773_v58  ;;  %v970_v17 = vadd.f32 %v969_v19, %v968_v28  ;;  %v780_v58 = vsel %vm660_vm3, %v2598_v12, 0.0  ;;  %v973_v19 = vsel %vm660_vm3, %v852_v48, 0.0 }
 0x155   :  { %v2622_v28 = vadd.f32 %v2364_v59, %v2035_v38  ;;  %v975_v18 = vsel %vm660_vm3, %v853_v34, 0.0  ;;  %v782_v48 = vsel %vm660_vm3, %v2613_v40, 0.0 }
 0x156   :  { %v777_v24 = vadd.f32 %v776_v37, %v775_v50  ;;  %v972_v60 = vadd.f32 %v971_v53, %v970_v17  ;;  %v855_v17 = vmul.f32 %v2613_v40, %v2613_v40 }
 0x157   :  { %v856_v59 = vmul.f32 %v2622_v28, %v2622_v28  ;;  %v784_v34 = vsel %vm660_vm3, %v2622_v28, 0.0 }
 0x158   :  { %v779_v20 = vadd.f32 %v778_v26, %v777_v24  ;;  %v974_v50 = vadd.f32 %v973_v19, %v972_v60  ;;  %v979_v15 = vsel %vm660_vm3, %v855_v17, 0.0  ;;  %v786_v60 = vsel %vm660_vm3, %v2628_v57, 0.0 }
 0x159   :  { %v981_v19 = vsel %vm660_vm3, %v856_v59, 0.0 }
 0x15a   :  { %v781_v37 = vadd.f32 %v780_v58, %v779_v20  ;;  %v976_v53 = vadd.f32 %v975_v18, %v974_v50  ;;  %v983_v50 = vsel %vm660_vm3, %v857_v39, 0.0  ;;  %v1002_v39 = vlaneseq }
 0x15c   :  { %v783_v24 = vadd.f32 %v782_v48, %v781_v37  ;;  %v978_v26 = vadd.f32 %v977_v14, %v976_v53 }
 0x15e   :  { %v785_v38 = vadd.f32 %v784_v34, %v783_v24  ;;  %v980_v58 = vadd.f32 %v979_v15, %v978_v26 }
 0x160   :  { %v787_v20 = vadd.f32 %v786_v60, %v785_v38  ;;  %v982_v18 = vadd.f32 %v981_v19, %v980_v58  ;;  %v2645_v58 = vshrl.u32 %v1002_v39, 7  ;;  %v997_v19 = vld [vmem:[%s3677_s3] sm:$0x1] }
 0x161   :  { %v3755_v39 = vld [vmem:[#allocation10_spill] sm:$0xff] }
 0x162   :  { %v788_v37 = vrot.slane %v787_v20, 4  ;;  %v984_v48 = vadd.f32 %v983_v50, %v982_v18 }
 0x164   :  { %v789_v7 = vadd.f32 %v788_v37, %v787_v20  ;;  %v985_v14 = vrot.slane %v984_v48, 4 }
 0x166   :  { %v790_v53 = vrot.slane %v789_v7, 2  ;;  %v986_v1 = vadd.f32 %v985_v14, %v984_v48 }
 0x168   :  { %v791_v61 = vadd.f32 %v790_v53, %v789_v7  ;;  %v987_v24 = vrot.slane %v986_v1, 2  ;;  %v3704_v7 = vsub.s32 0, %v2645_v58  ;;  %v3748_v53 = vld [vmem:[#allocation2_spill] sm:$0xff] }
 0x16a   :  { %v792_v34 = vrot.slane %v791_v61, 1  ;;  %v988_v17 = vadd.f32 %v987_v24, %v986_v1  ;;  %v3749_v24 = vld [vmem:[#allocation3_spill] sm:$0xff] }
 0x16c   :  { %v793_v10 = vadd.f32 %v792_v34, %v791_v61  ;;  %v989_v22 = vrot.slane %v988_v17, 1  ;;  %v3750_v34 = vld [vmem:[#allocation4_spill] sm:$0xff] }
 0x16e   :  { %v991_v57 = vmul.f32 0.001953125, %v793_v10  ;;  %v990_v26 = vadd.f32 %v989_v22, %v988_v17  ;;  %v2654_v22 = vld [vmem:[%s3678_s4] sm:$0x1] }
 0x16f   :  { %v3751_v17 = vld [vmem:[#allocation6_spill] sm:$0xff] }
 0x170   :  { %v993_v15 = vmul.f32 %v991_v57, %v991_v57  ;;  %v992_v59 = vmul.f32 0.001953125, %v990_v26  ;;  %v3752_v26 = vld [vmem:[#allocation5_spill] sm:$0xff] }
 0x172   :  { %v994_v38 = vsub.f32 %v992_v59, %v993_v15  ;;  %v3753_v15 = vld [vmem:[#allocation7_spill] sm:$0xff] }
 0x174   :  { %v995_v60 = vadd.f32 1e-05, %v994_v38  ;;  %v3754_v38 = vld [vmem:[#allocation8_spill] sm:$0xff] }
 0x176   :  { %1865 = vrsqrt.f32 %v995_v60 }
 0x180   :  { %v1866_v20 = vpop.eup %1865 }
 0x181   :  { %v998_v1 = vmul.f32 %v1866_v20, %v997_v19  ;;  %v3756_v20 = vld [vmem:[#allocation9_spill] sm:$0xff] }
 0x183   :  { %v2656_v10 = vmul.f32 %v998_v1, %v991_v57  ;;  %v2660_v61 = vrot.slane %v998_v1, %v3704_v7  ;;  %v3764_v7 = vld [vmem:[#allocation17_spill] sm:$0xff] }
 0x185   :  { %v1001_v18 = vsub.f32 %v2654_v22, %v2656_v10  ;;  %v2666_v50 = vmul.f32 %v2660_v61, %v2041_v42  ;;  %v2670_v37 = vmul.f32 %v2660_v61, %v2049_v47  ;;  %v2674_v48 = vmul.f32 %v2660_v61, %v2038_v41  ;;  %v3757_v22 = vld [vmem:[#allocation11_spill] sm:$0xff] }
 0x186   :  { %v2678_v57 = vmul.f32 %v2660_v61, %v2046_v46  ;;  %v2682_v14 = vmul.f32 %v2660_v61, %v2069_v63  ;;  %v2686_v42 = vmul.f32 %v2660_v61, %v2082_v9  ;;  %v2690_v47 = vmul.f32 %v2660_v61, %v2072_v2 }
 0x187   :  { %v2694_v41 = vmul.f32 %v2660_v61, %v2087_v13  ;;  %v2698_v46 = vmul.f32 %v2660_v61, %v2108_v30  ;;  %v2702_v63 = vmul.f32 %v2660_v61, %v2121_v43  ;;  %v2706_v9 = vmul.f32 %v2660_v61, %v2112_v33 }
 0x188   :  { %v2710_v2 = vmul.f32 %v2660_v61, %v2127_v49  ;;  %v2714_v13 = vmul.f32 %v2660_v61, %v2148_v6  ;;  %v2718_v30 = vmul.f32 %v2660_v61, %v2161_v21  ;;  %v2722_v43 = vmul.f32 %v2660_v61, %v2152_v11 }
 0x189   :  { %v2726_v33 = vmul.f32 %v2660_v61, %v2167_v25  ;;  %v2730_v49 = vmul.f32 %v2660_v61, %v2188_v56  ;;  %v2734_v6 = vmul.f32 %v2660_v61, %v2201_v4  ;;  %v2738_v21 = vmul.f32 %v2660_v61, %v3748_v53  ;;  %v3758_v53 = vld [vmem:[#allocation12_spill] sm:$0xff] }
 0x18a   :  { %v2742_v11 = vmul.f32 %v2660_v61, %v3749_v24  ;;  %v2746_v25 = vmul.f32 %v2660_v61, %v3750_v34  ;;  %v2750_v56 = vmul.f32 %v2660_v61, %v3751_v17  ;;  %v2754_v4 = vmul.f32 %v2660_v61, %v3752_v26  ;;  %v3760_v34 = vld [vmem:[#allocation15_spill] sm:$0xff]  ;;  %v3761_v26 = vld [vmem:[#allocation13_spill] sm:$0xff] }
 0x18b   :  { %v2758_v59 = vmul.f32 %v2660_v61, %v3753_v15  ;;  %v2762_v60 = vmul.f32 %v2660_v61, %v3754_v38  ;;  %v2766_v19 = vmul.f32 %v2660_v61, %v3755_v39  ;;  %v2770_v1 = vmul.f32 %v2660_v61, %v3756_v20  ;;  %v3762_v38 = vld [vmem:[#allocation16_spill] sm:$0xff]  ;;  %v3763_v20 = vld [vmem:[#allocation14_spill] sm:$0xff] }
 0x18c   :  { %v2774_v10 = vmul.f32 %v2660_v61, %v3757_v22  ;;  %v2778_v24 = vmul.f32 %v2660_v61, %v3758_v53  ;;  %v2782_v17 = vmul.f32 %v2660_v61, %v3760_v34  ;;  %v2786_v15 = vmul.f32 %v2660_v61, %v3761_v26 }
 0x18d   :  { %v2790_v39 = vmul.f32 %v2660_v61, %v3762_v38  ;;  %v2794_v22 = vmul.f32 %v2660_v61, %v3763_v20  ;;  %v2798_v53 = vmul.f32 %v2660_v61, %v3764_v7  ;;  %v2806_v26 = vmul.f32 %v2660_v61, %v2369_v51 }
 0x18e   :  { %3759 = vst [vmem:[#allocation2_spill] sm:$0xff] %v2778_v24  ;;  %v3765_v24 = vld [vmem:[#allocation18_spill] sm:$0xff]  ;;  %v2810_v38 = vmul.f32 %v2660_v61, %v2378_v5  ;;  %v2814_v20 = vmul.f32 %v2660_v61, %v2397_v3  ;;  %v2818_v7 = vmul.f32 %v2660_v61, %v2406_v23  ;;  %v2826_v51 = vmul.f32 %v2660_v61, %v2418_v45 }
 0x18f   :  { %v2802_v34 = vmul.f32 %v2660_v61, %v3765_v24  ;;  %v2822_v24 = vmul.f32 %v2660_v61, %v2411_v55  ;;  %v2830_v5 = vmul.f32 %v2660_v61, %v2433_v29  ;;  %v2834_v3 = vmul.f32 %v2660_v61, %v2442_v36 }
 0x190   :  { %v2838_v23 = vmul.f32 %v2660_v61, %v2447_v32  ;;  %v2842_v55 = vmul.f32 %v2660_v61, %v2454_v44  ;;  %v2846_v45 = vmul.f32 %v2660_v61, %v2469_v8  ;;  %v2850_v29 = vmul.f32 %v2660_v61, %v2478_v16 }
 0x191   :  { %v2854_v36 = vmul.f32 %v2660_v61, %v2483_v27  ;;  %v2858_v32 = vmul.f32 %v2660_v61, %v2490_v0  ;;  %v2862_v44 = vmul.f32 %v2660_v61, %v2505_v54  ;;  %v2866_v8 = vmul.f32 %v2660_v61, %v2514_v62 }
 0x192   :  { %v2870_v16 = vmul.f32 %v2660_v61, %v2519_v35  ;;  %v2874_v27 = vmul.f32 %v2660_v61, %v2586_v31  ;;  %v2878_v0 = vmul.f32 %v2660_v61, %v2591_v52  ;;  %v2882_v54 = vmul.f32 %v2660_v61, %v2598_v12  ;;  %v3777_v52 = vld [vmem:[#allocation25_spill] sm:$0xff] }
 0x193   :  { %3766 = vst [vmem:[#allocation3_spill] sm:$0xff] %v2858_v32  ;;  %3767 = vst [vmem:[#allocation4_spill] sm:$0xff] %v2862_v44  ;;  %v2886_v62 = vmul.f32 %v2660_v61, %v2613_v40  ;;  %v2890_v35 = vmul.f32 %v2660_v61, %v2622_v28  ;;  %v3778_v12 = vsub.s32 0, %v2645_v58  ;;  %v3779_v40 = vld [vmem:[#allocation21_spill] sm:$0xff]  ;;  %v3780_v44 = vld [vmem:[#allocation22_spill] sm:$0xff] }
 0x194   :  { %3768 = vst [vmem:[#allocation6_spill] sm:$0xff] %v2866_v8  ;;  %3769 = vst [vmem:[#allocation5_spill] sm:$0xff] %v2870_v16  ;;  %v3775_v16 = vld [vmem:[#allocation19_spill] sm:$0xff]  ;;  %v1061_v28 = vmul.f32 %v2660_v61, %v3780_v44  ;;  %v3782_v32 = vld [vmem:[#allocation24_spill] sm:$0xff] }
 0x195   :  { %3770 = vst [vmem:[#allocation7_spill] sm:$0xff] %v2874_v27  ;;  %3771 = vst [vmem:[#allocation8_spill] sm:$0xff] %v2878_v0  ;;  %v1058_v31 = vmul.f32 %v2660_v61, %v3775_v16  ;;  %v3776_v27 = vld [vmem:[#allocation20_spill] sm:$0xff]  ;;  %v2898_v0 = vmul.f32 %v2660_v61, %v3777_v52 }
 0x196   :  { %3772 = vst [vmem:[#allocation10_spill] sm:$0xff] %v2882_v54  ;;  %3773 = vst [vmem:[#allocation9_spill] sm:$0xff] %v2886_v62  ;;  %v1059_v8 = vmul.f32 %v2660_v61, %v3776_v27  ;;  %v2902_v54 = vrot.slane %v1001_v18, %v3778_v12  ;;  %v1060_v62 = vmul.f32 %v2660_v61, %v3779_v40 }
 0x197   :  { %3774 = vst [vmem:[#allocation11_spill] sm:$0xff] %v2890_v35  ;;  %v3781_v35 = vld [vmem:[#allocation23_spill] sm:$0xff]  ;;  %v1063_v27 = vmul.f32 %v2660_v61, %v3782_v32 }
 0x198   :  { %v1062_v16 = vmul.f32 %v2660_v61, %v3781_v35  ;;  %v2914_v52 = vadd.f32 %v2902_v54, %v2666_v50  ;;  %v2918_v58 = vadd.f32 %v2902_v54, %v2670_v37  ;;  %v2922_v18 = vadd.f32 %v2902_v54, %v2674_v48 }
 0x199   :  { %v2926_v44 = vadd.f32 %v2902_v54, %v2678_v57  ;;  %v2930_v35 = vadd.f32 %v2902_v54, %v2682_v14  ;;  %v2934_v61 = vadd.f32 %v2902_v54, %v2686_v42  ;;  %v2938_v50 = vadd.f32 %v2902_v54, %v2690_v47 }
 0x19a   :  { %v2942_v37 = vadd.f32 %v2902_v54, %v2694_v41  ;;  %v2946_v48 = vadd.f32 %v2902_v54, %v2698_v46  ;;  %v2950_v57 = vadd.f32 %v2902_v54, %v2702_v63  ;;  %v2954_v14 = vadd.f32 %v2902_v54, %v2706_v9  ;;  %v3792_v12 = vld [vmem:[#allocation3_spill] sm:$0xff]  ;;  %v3794_v40 = vld [vmem:[#allocation4_spill] sm:$0xff] }
 0x19b   :  { %v2958_v42 = vadd.f32 %v2902_v54, %v2710_v2  ;;  %v2962_v47 = vadd.f32 %v2902_v54, %v2714_v13  ;;  %v2966_v41 = vadd.f32 %v2902_v54, %v2718_v30  ;;  %v2970_v46 = vadd.f32 %v2902_v54, %v2722_v43 }
 0x19c   :  { %v2974_v63 = vadd.f32 %v2902_v54, %v2726_v33  ;;  %v2978_v9 = vadd.f32 %v2902_v54, %v2730_v49  ;;  %v2982_v2 = vadd.f32 %v2902_v54, %v2734_v6  ;;  %v2986_v13 = vadd.f32 %v2902_v54, %v2738_v21 }
 0x19d   :  { %v2990_v30 = vadd.f32 %v2902_v54, %v2742_v11  ;;  %v2994_v43 = vadd.f32 %v2902_v54, %v2746_v25  ;;  %v2998_v33 = vadd.f32 %v2902_v54, %v2750_v56  ;;  %v3002_v49 = vadd.f32 %v2902_v54, %v2754_v4  ;;  %v3783_v4 = vld [vmem:[#allocation2_spill] sm:$0xff] }
 0x19e   :  { %v3006_v6 = vadd.f32 %v2902_v54, %v2758_v59  ;;  %v3010_v21 = vadd.f32 %v2902_v54, %v2762_v60  ;;  %v3014_v11 = vadd.f32 %v2902_v54, %v2766_v19  ;;  %v3018_v25 = vadd.f32 %v2902_v54, %v2770_v1 }
 0x19f   :  { %v3022_v56 = vadd.f32 %v2902_v54, %v2774_v10  ;;  %v3026_v59 = vadd.f32 %v2902_v54, %v3783_v4  ;;  %v3030_v60 = vadd.f32 %v2902_v54, %v2782_v17  ;;  %v3034_v19 = vadd.f32 %v2902_v54, %v2786_v15  ;;  %v3796_v4 = vld [vmem:[#allocation6_spill] sm:$0xff] }
 0x1a0   :  { %v3038_v1 = vadd.f32 %v2902_v54, %v2790_v39  ;;  %v3042_v10 = vadd.f32 %v2902_v54, %v2794_v22  ;;  %v3046_v32 = vadd.f32 %v2902_v54, %v2798_v53  ;;  %v3050_v17 = vadd.f32 %v2902_v54, %v2802_v34 }
 0x1a1   :  { %v3054_v15 = vadd.f32 %v2902_v54, %v2806_v26  ;;  %v3058_v39 = vadd.f32 %v2902_v54, %v2810_v38  ;;  %v3062_v22 = vadd.f32 %v2902_v54, %v2814_v20  ;;  %v3066_v53 = vadd.f32 %v2902_v54, %v2818_v7 }
 0x1a2   :  { %v3070_v34 = vadd.f32 %v2902_v54, %v2822_v24  ;;  %v3074_v26 = vadd.f32 %v2902_v54, %v2826_v51  ;;  %v3078_v38 = vadd.f32 %v2902_v54, %v2830_v5  ;;  %v3082_v20 = vadd.f32 %v2902_v54, %v2834_v3 }
 0x1a3   :  { %3784 = vst [vmem:[#allocation12_spill] sm:$0xff] %v3054_v15  ;;  %3785 = vst [vmem:[#allocation15_spill] sm:$0xff] %v3066_v53  ;;  %v3086_v7 = vadd.f32 %v2902_v54, %v2838_v23  ;;  %v3090_v24 = vadd.f32 %v2902_v54, %v2842_v55  ;;  %v3094_v51 = vadd.f32 %v2902_v54, %v2846_v45 }
 0x1a4   :  { %3786 = vst [vmem:[#allocation13_spill] sm:$0xff] %v3074_v26  ;;  %3787 = vst [vmem:[#allocation16_spill] sm:$0xff] %v3082_v20  ;;  %v3098_v5 = vadd.f32 %v2902_v54, %v2850_v29  ;;  %v3102_v3 = vadd.f32 %v2902_v54, %v2854_v36  ;;  %v3106_v23 = vadd.f32 %v2902_v54, %v3792_v12 }
 0x1a5   :  { %3788 = vst [vmem:[#allocation14_spill] sm:$0xff] %v3090_v24  ;;  %3789 = vst [vmem:[#allocation17_spill] sm:$0xff] %v3094_v51  ;;  %v3110_v55 = vadd.f32 %v2902_v54, %v3794_v40  ;;  %v3114_v45 = vadd.f32 %v2902_v54, %v3796_v4  ;;  %v3798_v51 = vld [vmem:[#allocation5_spill] sm:$0xff]  ;;  %v3124_v36 = vadd.f32 %v2902_v54, %v1059_v8 }
 0x1a6   :  { %3790 = vst [vmem:[#allocation18_spill] sm:$0xff] %v3098_v5  ;;  %3791 = vst [vmem:[#allocation19_spill] sm:$0xff] %v3102_v3  ;;  %v3118_v29 = vadd.f32 %v2902_v54, %v3798_v51  ;;  %v3121_v5 = vadd.f32 %v2902_v54, %v1058_v31  ;;  %v3127_v12 = vadd.f32 %v2902_v54, %v1060_v62  ;;  %v3802_v51 = vld [vmem:[#allocation7_spill] sm:$0xff]  ;;  %v3804_v31 = vld [vmem:[#allocation8_spill] sm:$0xff] }
 0x1a7   :  { %3793 = vst [vmem:[#allocation20_spill] sm:$0xff] %v3106_v23  ;;  %3795 = vst [vmem:[#allocation25_spill] sm:$0xff] %v3110_v55  ;;  %v3130_v40 = vadd.f32 %v2902_v54, %v1061_v28  ;;  %v3133_v55 = vadd.f32 %v2902_v54, %v1062_v16  ;;  %v3136_v4 = vadd.f32 %v2902_v54, %v1063_v27  ;;  %v3808_v28 = vld [vmem:[#allocation9_spill] sm:$0xff]  ;;  %v3810_v16 = vld [vmem:[#allocation11_spill] sm:$0xff] }
 0x1a8   :  { %3797 = vst [vmem:[#allocation21_spill] sm:$0xff] %v3114_v45  ;;  %3799 = vst [vmem:[#allocation22_spill] sm:$0xff] %v3118_v29  ;;  %v3140_v29 = vadd.f32 %v2902_v54, %v3802_v51  ;;  %v3144_v8 = vadd.f32 %v2902_v54, %v3804_v31  ;;  %v3156_v27 = vadd.f32 %v2902_v54, %v3810_v16 }
 0x1a9   :  { %3800 = vst [vmem:[#allocation23_spill] sm:$0xff] %v3124_v36  ;;  %3801 = vst [vmem:[#allocation24_spill] sm:$0xff] %v3130_v40  ;;  %v3806_v36 = vld [vmem:[#allocation10_spill] sm:$0xff]  ;;  %v3152_v40 = vadd.f32 %v2902_v54, %v3808_v28  ;;  %v3160_v51 = vadd.f32 %v2902_v54, %v2898_v0 }
 0x1aa   :  { %3803 = vst [vmem:[#allocation2_spill] sm:$0xff] %v3140_v29  ;;  %3805 = vst [vmem:[#allocation3_spill] sm:$0xff] %v3144_v8  ;;  %v3148_v62 = vadd.f32 %v2902_v54, %v3806_v36  ;;  %v3819_v23 = vmov %v3144_v8  ;;  %v3822_v26 = vmov %v3156_v27  ;;  %v3826_v54 = vmax.f32 %v2926_v44, 0.0 }
 0x1ab   :  { %3809 = vst [vmem:[#allocation6_spill] sm:$0xff] %v3152_v40  ;;  %3811 = vst [vmem:[#allocation5_spill] sm:$0xff] %v3156_v27  ;;  %v3821_v45 = vmov %v3152_v40  ;;  %v3824_v40 = vmax.f32 %v2918_v58, 0.0  ;;  %v3825_v27 = vmax.f32 %v2922_v18, 0.0  ;;  %v3827_v8 = vmax.f32 %v2930_v35, 0.0 }
 0x1ac   :  { %3807 = vst [vmem:[#allocation4_spill] sm:$0xff] %v3148_v62  ;;  %v3812_v29 = vld [vmem:[#allocation17_spill] sm:$0xff]  ;;  %v3820_v53 = vmov %v3148_v62  ;;  %v3823_v62 = vmax.f32 %v2914_v52, 0.0  ;;  %v1663_v31 = vpack.c.bf16 %v3826_v54, %v3826_v54  ;;  %v3828_v52 = vmax.f32 %v2934_v61, 0.0 }
 0x1ad   :  { %v3813_v15 = vld [vmem:[#allocation18_spill] sm:$0xff]  ;;  %v1661_v16 = vpack.c.bf16 %v3824_v40, %v3824_v40  ;;  %v1662_v0 = vpack.c.bf16 %v3825_v27, %v3825_v27  ;;  %v1664_v36 = vpack.c.bf16 %v3827_v8, %v3827_v8  ;;  %v3829_v58 = vmax.f32 %v2938_v50, 0.0 }
 0x1ae   :  { %v1660_v28 = vpack.c.bf16 %v3823_v62, %v3823_v62  ;;  %v1665_v62 = vpack.c.bf16 %v3828_v52, %v3828_v52  ;;  %v3830_v18 = vmax.f32 %v2942_v37, 0.0  ;;  %v3831_v44 = vmax.f32 %v2946_v48, 0.0  ;;  %1464 = vst.msk [vmem:[%s3679_s5 + $0xc] sm:$0xf] %vm1460_vm4, %v1663_v31 }
 0x1af   :  { %v1666_v40 = vpack.c.bf16 %v3829_v58, %v3829_v58  ;;  %v3832_v35 = vmax.f32 %v2950_v57, 0.0  ;;  %v3833_v61 = vmax.f32 %v2954_v14, 0.0  ;;  %v3834_v50 = vmax.f32 %v2958_v42, 0.0  ;;  %1462 = vst.msk [vmem:[%s3679_s5 + $0x4] sm:$0xf] %vm1460_vm4, %v1661_v16 }
 0x1b0   :  { %v3816_v20 = vld [vmem:[#allocation23_spill] sm:$0xff]  ;;  %v3817_v24 = vld [vmem:[#allocation24_spill] sm:$0xff]  ;;  %v1667_v27 = vpack.c.bf16 %v3830_v18, %v3830_v18  ;;  %v1668_v54 = vpack.c.bf16 %v3831_v44, %v3831_v44  ;;  %1461 = vst.msk [vmem:[%s3679_s5] sm:$0xf] %vm1460_vm4, %v1660_v28  ;;  %1463 = vst.msk [vmem:[%s3679_s5 + $0x8] sm:$0xf] %vm1460_vm4, %v1662_v0 }
 0x1b1   :  { %v3818_v3 = vld [vmem:[#allocation2_spill] sm:$0xff]  ;;  %v1669_v8 = vpack.c.bf16 %v3832_v35, %v3832_v35  ;;  %v1670_v52 = vpack.c.bf16 %v3833_v61, %v3833_v61  ;;  %v1671_v58 = vpack.c.bf16 %v3834_v50, %v3834_v50  ;;  %v3835_v37 = vmax.f32 %v2962_v47, 0.0  ;;  %1465 = vst.msk [vmem:[%s3679_s5 + $0x10] sm:$0xf] %vm1460_vm4, %v1664_v36  ;;  %1466 = vst.msk [vmem:[%s3679_s5 + $0x14] sm:$0xf] %vm1460_vm4, %v1665_v62 }
 0x1b2   :  { %v3836_v57 = vmax.f32 %v2966_v41, 0.0  ;;  %v3837_v42 = vmax.f32 %v2970_v46, 0.0  ;;  %v3838_v16 = vmax.f32 %v2974_v63, 0.0  ;;  %1467 = vst.msk [vmem:[%s3679_s5 + $0x18] sm:$0xf] %vm1460_vm4, %v1666_v40  ;;  %v3839_v47 = vmax.f32 %v2978_v9, 0.0 }
 0x1b3   :  { %v1672_v48 = vpack.c.bf16 %v3835_v37, %v3835_v37  ;;  %1468 = vst.msk [vmem:[%s3679_s5 + $0x1c] sm:$0xf] %vm1460_vm4, %v1667_v27  ;;  %v3840_v46 = vmax.f32 %v2982_v2, 0.0  ;;  %v3841_v31 = vmax.f32 %v2986_v13, 0.0  ;;  %v3842_v62 = vmax.f32 %v2990_v30, 0.0 }
 0x1b4   :  { %v1673_v14 = vpack.c.bf16 %v3836_v57, %v3836_v57  ;;  %v1674_v28 = vpack.c.bf16 %v3837_v42, %v3837_v42  ;;  %v1675_v0 = vpack.c.bf16 %v3838_v16, %v3838_v16  ;;  %v1676_v41 = vpack.c.bf16 %v3839_v47, %v3839_v47  ;;  %1469 = vst.msk [vmem:[%s3679_s5 + $0x20] sm:$0xf] %vm1460_vm4, %v1668_v54  ;;  %v3858_v42 = vld [vmem:[#allocation12_spill] sm:$0xff]  ;;  %v3862_v47 = vld [vmem:[#allocation15_spill] sm:$0xff] }
 0x1b5   :  { %v1677_v63 = vpack.c.bf16 %v3840_v46, %v3840_v46  ;;  %v1678_v36 = vpack.c.bf16 %v3841_v31, %v3841_v31  ;;  %v1679_v40 = vpack.c.bf16 %v3842_v62, %v3842_v62  ;;  %1470 = vst.msk [vmem:[%s3679_s5 + $0x24] sm:$0xf] %vm1460_vm4, %v1669_v8  ;;  %1471 = vst.msk [vmem:[%s3679_s5 + $0x28] sm:$0xf] %vm1460_vm4, %v1670_v52  ;;  %v3843_v9 = vmax.f32 %v2994_v43, 0.0 }
 0x1b6   :  { %1472 = vst.msk [vmem:[%s3679_s5 + $0x2c] sm:$0xf] %vm1460_vm4, %v1671_v58  ;;  %v3844_v13 = vmax.f32 %v2998_v33, 0.0  ;;  %v3845_v18 = vmax.f32 %v3002_v49, 0.0  ;;  %v3846_v44 = vmax.f32 %v3006_v6, 0.0  ;;  %v3847_v43 = vmax.f32 %v3010_v21, 0.0 }
 0x1b7   :  { %v1680_v2 = vpack.c.bf16 %v3843_v9, %v3843_v9  ;;  %1473 = vst.msk [vmem:[%s3679_s5 + $0x30] sm:$0xf] %vm1460_vm4, %v1672_v48  ;;  %1474 = vst.msk [vmem:[%s3679_s5 + $0x34] sm:$0xf] %vm1460_vm4, %v1673_v14  ;;  %v3848_v49 = vmax.f32 %v3014_v11, 0.0  ;;  %v3849_v35 = vmax.f32 %v3018_v25, 0.0 }
 0x1b8   :  { %v1681_v30 = vpack.c.bf16 %v3844_v13, %v3844_v13  ;;  %v1682_v27 = vpack.c.bf16 %v3845_v18, %v3845_v18  ;;  %v1683_v54 = vpack.c.bf16 %v3846_v44, %v3846_v44  ;;  %1475 = vst.msk [vmem:[%s3679_s5 + $0x38] sm:$0xf] %vm1460_vm4, %v1674_v28  ;;  %1476 = vst.msk [vmem:[%s3679_s5 + $0x3c] sm:$0xf] %vm1460_vm4, %v1675_v0  ;;  %v3850_v61 = vmax.f32 %v3022_v56, 0.0 }
 0x1b9   :  { %v1684_v33 = vpack.c.bf16 %v3847_v43, %v3847_v43  ;;  %v1685_v6 = vpack.c.bf16 %v3848_v49, %v3848_v49  ;;  %v1686_v8 = vpack.c.bf16 %v3849_v35, %v3849_v35  ;;  %1477 = vst.msk [vmem:[%s3679_s5 + $0x40] sm:$0xf] %vm1460_vm4, %v1676_v41  ;;  %1478 = vst.msk [vmem:[%s3679_s5 + $0x44] sm:$0xf] %vm1460_vm4, %v1677_v63  ;;  %v3851_v21 = vmax.f32 %v3026_v59, 0.0 }
 0x1ba   :  { %v1687_v52 = vpack.c.bf16 %v3850_v61, %v3850_v61  ;;  %1479 = vst.msk [vmem:[%s3679_s5 + $0x48] sm:$0xf] %vm1460_vm4, %v1678_v36  ;;  %1480 = vst.msk [vmem:[%s3679_s5 + $0x4c] sm:$0xf] %vm1460_vm4, %v1679_v40  ;;  %v3852_v25 = vmax.f32 %v3030_v60, 0.0  ;;  %v3853_v50 = vmax.f32 %v3034_v19, 0.0 }
 0x1bb   :  { %v1688_v11 = vpack.c.bf16 %v3851_v21, %v3851_v21  ;;  %v3854_v37 = vmax.f32 %v3038_v1, 0.0  ;;  %1481 = vst.msk [vmem:[%s3679_s5 + $0x50] sm:$0xf] %vm1460_vm4, %v1680_v2  ;;  %1482 = vst.msk [vmem:[%s3679_s5 + $0x54] sm:$0xf] %vm1460_vm4, %v1681_v30  ;;  %v3855_v59 = vmax.f32 %v3042_v10, 0.0 }
 0x1bc   :  { %v1689_v56 = vpack.c.bf16 %v3852_v25, %v3852_v25  ;;  %v1690_v58 = vpack.c.bf16 %v3853_v50, %v3853_v50  ;;  %1483 = vst.msk [vmem:[%s3679_s5 + $0x58] sm:$0xf] %vm1460_vm4, %v1682_v27  ;;  %1484 = vst.msk [vmem:[%s3679_s5 + $0x5c] sm:$0xf] %vm1460_vm4, %v1683_v54  ;;  %v3856_v19 = vmax.f32 %v3046_v32, 0.0  ;;  %v3857_v57 = vmax.f32 %v3050_v17, 0.0 }
 0x1bd   :  { %v1691_v48 = vpack.c.bf16 %v3854_v37, %v3854_v37  ;;  %v1692_v60 = vpack.c.bf16 %v3855_v59, %v3855_v59  ;;  %v3859_v28 = vmax.f32 %v3858_v42, 0.0  ;;  %1485 = vst.msk [vmem:[%s3679_s5 + $0x60] sm:$0xf] %vm1460_vm4, %v1684_v33  ;;  %1486 = vst.msk [vmem:[%s3679_s5 + $0x64] sm:$0xf] %vm1460_vm4, %v1685_v6  ;;  %v3860_v10 = vmax.f32 %v3058_v39, 0.0 }
 0x1be   :  { %v1693_v1 = vpack.c.bf16 %v3856_v19, %v3856_v19  ;;  %v1694_v14 = vpack.c.bf16 %v3857_v57, %v3857_v57  ;;  %1487 = vst.msk [vmem:[%s3679_s5 + $0x68] sm:$0xf] %vm1460_vm4, %v1686_v8  ;;  %1488 = vst.msk [vmem:[%s3679_s5 + $0x6c] sm:$0xf] %vm1460_vm4, %v1687_v52  ;;  %v3861_v17 = vmax.f32 %v3062_v22, 0.0  ;;  %v3863_v41 = vmax.f32 %v3862_v47, 0.0 }
 0x1bf   :  { %v1695_v16 = vpack.c.bf16 %v3859_v28, %v3859_v28  ;;  %v1696_v32 = vpack.c.bf16 %v3860_v10, %v3860_v10  ;;  %v3864_v63 = vmax.f32 %v3070_v34, 0.0  ;;  %1489 = vst.msk [vmem:[%s3679_s5 + $0x70] sm:$0xf] %vm1460_vm4, %v1688_v11  ;;  %1490 = vst.msk [vmem:[%s3679_s5 + $0x74] sm:$0xf] %vm1460_vm4, %v1689_v56  ;;  %v3865_v39 = vld [vmem:[#allocation13_spill] sm:$0xff] }
 0x1c0   :  { %v1697_v0 = vpack.c.bf16 %v3861_v17, %v3861_v17  ;;  %v1698_v46 = vpack.c.bf16 %v3863_v41, %v3863_v41  ;;  %1491 = vst.msk [vmem:[%s3679_s5 + $0x78] sm:$0xf] %vm1460_vm4, %v1690_v58  ;;  %1492 = vst.msk [vmem:[%s3679_s5 + $0x7c] sm:$0xf] %vm1460_vm4, %v1691_v48  ;;  %v3866_v22 = vmax.f32 %v3865_v39, 0.0  ;;  %v3867_v36 = vmax.f32 %v3078_v38, 0.0 }
 0x1c1   :  { %v1699_v31 = vpack.c.bf16 %v3864_v63, %v3864_v63  ;;  %v3868_v40 = vld [vmem:[#allocation16_spill] sm:$0xff]  ;;  %v3870_v13 = vmax.f32 %v3086_v7, 0.0  ;;  %1493 = vst.msk [vmem:[%s3679_s5 + $0x80] sm:$0xf] %vm1460_vm4, %v1692_v60  ;;  %1494 = vst.msk [vmem:[%s3679_s5 + $0x84] sm:$0xf] %vm1460_vm4, %v1693_v1 }
 0x1c2   :  { %v1700_v34 = vpack.c.bf16 %v3866_v22, %v3866_v22  ;;  %v1701_v62 = vpack.c.bf16 %v3867_v36, %v3867_v36  ;;  %v3869_v9 = vmax.f32 %v3868_v40, 0.0  ;;  %1495 = vst.msk [vmem:[%s3679_s5 + $0x88] sm:$0xf] %vm1460_vm4, %v1694_v14  ;;  %1496 = vst.msk [vmem:[%s3679_s5 + $0x8c] sm:$0xf] %vm1460_vm4, %v1695_v16  ;;  %v3871_v38 = vld [vmem:[#allocation14_spill] sm:$0xff] }
 0x1c3   :  { %v1703_v30 = vpack.c.bf16 %v3870_v13, %v3870_v13  ;;  %v3872_v7 = vmax.f32 %v3871_v38, 0.0  ;;  %v3873_v27 = vmax.f32 %v3812_v29, 0.0  ;;  %v3874_v54 = vmax.f32 %v3813_v15, 0.0  ;;  %v3875_v33 = vld [vmem:[#allocation19_spill] sm:$0xff]  ;;  %1497 = vst.msk [vmem:[%s3679_s5 + $0x90] sm:$0xf] %vm1460_vm4, %v1696_v32 }
 0x1c4   :  { %v1702_v2 = vpack.c.bf16 %v3869_v9, %v3869_v9  ;;  %v3876_v49 = vmax.f32 %v3875_v33, 0.0  ;;  %1498 = vst.msk [vmem:[%s3679_s5 + $0x94] sm:$0xf] %vm1460_vm4, %v1697_v0  ;;  %1499 = vst.msk [vmem:[%s3679_s5 + $0x98] sm:$0xf] %vm1460_vm4, %v1698_v46  ;;  %v3877_v15 = vld [vmem:[#allocation20_spill] sm:$0xff] }
 0x1c5   :  { %v1704_v18 = vpack.c.bf16 %v3872_v7, %v3872_v7  ;;  %v1705_v44 = vpack.c.bf16 %v3873_v27, %v3873_v27  ;;  %v1706_v43 = vpack.c.bf16 %v3874_v54, %v3874_v54  ;;  %1500 = vst.msk [vmem:[%s3679_s5 + $0x9c] sm:$0xf] %vm1460_vm4, %v1699_v31  ;;  %v3878_v29 = vmax.f32 %v3877_v15, 0.0  ;;  %v3879_v8 = vld [vmem:[#allocation25_spill] sm:$0xff]  ;;  %v3883_v56 = vld [vmem:[#allocation22_spill] sm:$0xff] }
 0x1c6   :  { %v1707_v6 = vpack.c.bf16 %v3876_v49, %v3876_v49  ;;  %v3880_v61 = vmax.f32 %v3879_v8, 0.0  ;;  %v3881_v21 = vld [vmem:[#allocation21_spill] sm:$0xff]  ;;  %v3884_v50 = vmax.f32 %v3883_v56, 0.0  ;;  %1501 = vst.msk [vmem:[%s3679_s5 + $0xa0] sm:$0xf] %vm1460_vm4, %v1700_v34  ;;  %v3885_v37 = vmax.f32 %v3121_v5, 0.0 }
 0x1c7   :  { %v1708_v35 = vpack.c.bf16 %v3878_v29, %v3878_v29  ;;  %v3882_v11 = vmax.f32 %v3881_v21, 0.0  ;;  %1502 = vst.msk [vmem:[%s3679_s5 + $0xa4] sm:$0xf] %vm1460_vm4, %v1701_v62  ;;  %1503 = vst.msk [vmem:[%s3679_s5 + $0xa8] sm:$0xf] %vm1460_vm4, %v1702_v2  ;;  %v3886_v59 = vmax.f32 %v3816_v20, 0.0 }
 0x1c8   :  { %v1709_v52 = vpack.c.bf16 %v3880_v61, %v3880_v61  ;;  %v1711_v58 = vpack.c.bf16 %v3884_v50, %v3884_v50  ;;  %1504 = vst.msk [vmem:[%s3679_s5 + $0xac] sm:$0xf] %vm1460_vm4, %v1703_v30  ;;  %v1712_v48 = vpack.c.bf16 %v3885_v37, %v3885_v37  ;;  %v3887_v19 = vmax.f32 %v3127_v12, 0.0  ;;  %1505 = vst.msk [vmem:[%s3679_s5 + $0xb0] sm:$0xf] %vm1460_vm4, %v1704_v18 }
 0x1c9   :  { %v1710_v25 = vpack.c.bf16 %v3882_v11, %v3882_v11  ;;  %v1713_v60 = vpack.c.bf16 %v3886_v59, %v3886_v59  ;;  %v3888_v57 = vmax.f32 %v3817_v24, 0.0  ;;  %1506 = vst.msk [vmem:[%s3679_s5 + $0xb4] sm:$0xf] %vm1460_vm4, %v1705_v44  ;;  %1507 = vst.msk [vmem:[%s3679_s5 + $0xb8] sm:$0xf] %vm1460_vm4, %v1706_v43  ;;  %v3889_v20 = vmax.f32 %v3133_v55, 0.0 }
 0x1ca   :  { %v1714_v1 = vpack.c.bf16 %v3887_v19, %v3887_v19  ;;  %1508 = vst.msk [vmem:[%s3679_s5 + $0xbc] sm:$0xf] %vm1460_vm4, %v1707_v6  ;;  %v3890_v5 = vmax.f32 %v3136_v4, 0.0  ;;  %v3891_v42 = vmax.f32 %v3818_v3, 0.0  ;;  %v3892_v16 = vmax.f32 %v3819_v23, 0.0 }
 0x1cb   :  { %v1715_v14 = vpack.c.bf16 %v3888_v57, %v3888_v57  ;;  %v1716_v24 = vpack.c.bf16 %v3889_v20, %v3889_v20  ;;  %1509 = vst.msk [vmem:[%s3679_s5 + $0xc0] sm:$0xf] %vm1460_vm4, %v1708_v35  ;;  %1510 = vst.msk [vmem:[%s3679_s5 + $0xc4] sm:$0xf] %vm1460_vm4, %v1709_v52  ;;  %v3893_v3 = vmax.f32 %v3820_v53, 0.0  ;;  %v3894_v55 = vmax.f32 %v3821_v45, 0.0 }
 0x1cc   :  { %v1717_v12 = vpack.c.bf16 %v3890_v5, %v3890_v5  ;;  %v1718_v28 = vpack.c.bf16 %v3891_v42, %v3891_v42  ;;  %v1719_v10 = vpack.c.bf16 %v3892_v16, %v3892_v16  ;;  %1511 = vst.msk [vmem:[%s3679_s5 + $0xc8] sm:$0xf] %vm1460_vm4, %v1710_v25  ;;  %1512 = vst.msk [vmem:[%s3679_s5 + $0xcc] sm:$0xf] %vm1460_vm4, %v1711_v58  ;;  %v3895_v32 = vmax.f32 %v3822_v26, 0.0 }
 0x1cd   :  { %v1720_v23 = vpack.c.bf16 %v3893_v3, %v3893_v3  ;;  %v1721_v4 = vpack.c.bf16 %v3894_v55, %v3894_v55  ;;  %v3896_v0 = vmax.f32 %v3160_v51, 0.0  ;;  %1513 = vst.msk [vmem:[%s3679_s5 + $0xd0] sm:$0xf] %vm1460_vm4, %v1712_v48  ;;  %1514 = vst.msk [vmem:[%s3679_s5 + $0xd4] sm:$0xf] %vm1460_vm4, %v1713_v60 }
 0x1ce   :  { %v1722_v17 = vpack.c.bf16 %v3895_v32, %v3895_v32  ;;  %1515 = vst.msk [vmem:[%s3679_s5 + $0xd8] sm:$0xf] %vm1460_vm4, %v1714_v1  ;;  %1516 = vst.msk [vmem:[%s3679_s5 + $0xdc] sm:$0xf] %vm1460_vm4, %v1715_v14 }
 0x1cf   :  { %v1723_v47 = vpack.c.bf16 %v3896_v0, %v3896_v0  ;;  %1517 = vst.msk [vmem:[%s3679_s5 + $0xe0] sm:$0xf] %vm1460_vm4, %v1716_v24  ;;  %1518 = vst.msk [vmem:[%s3679_s5 + $0xe4] sm:$0xf] %vm1460_vm4, %v1717_v12 }
 0x1d0   :  { %1519 = vst.msk [vmem:[%s3679_s5 + $0xe8] sm:$0xf] %vm1460_vm4, %v1718_v28  ;;  %1520 = vst.msk [vmem:[%s3679_s5 + $0xec] sm:$0xf] %vm1460_vm4, %v1719_v10 }
 0x1d1   :  { %1521 = vst.msk [vmem:[%s3679_s5 + $0xf0] sm:$0xf] %vm1460_vm4, %v1720_v23  ;;  %1522 = vst.msk [vmem:[%s3679_s5 + $0xf4] sm:$0xf] %vm1460_vm4, %v1721_v4 }
 0x1d2   :  { %1523 = vst.msk [vmem:[%s3679_s5 + $0xf8] sm:$0xf] %vm1460_vm4, %v1722_v17  ;;  %1524 = vst.msk [vmem:[%s3679_s5 + $0xfc] sm:$0xf] %vm1460_vm4, %v1723_v47 }

// kernel: vae_forward.11
= control target key start
LH: loop header
LB: loop body
LE: loop exit
PB: predicated region body
PF: predicated region fallthrough
CT: control target
= control target key end

     0   :  { %vm324_vm0 = vcmask 261120   ;;  %vm543_vm1 = vcmask 523264   ;;  %vm767_vm2 = vcmask 519168   ;;  %s1428_s1 = inlined_call_operand.vmem [shape: bf16[288,64], index: 1, kind: input, shape index: {}]   ;;  %s1429_s0 = inlined_call_operand.vmem [shape: bf16[128,288], index: 0, kind: input, shape index: {}]   ;;  %s1430_s2 = inlined_call_operand.vmem [shape: f32[1,64], index: 2, kind: input, shape index: {}]   ;;  %s1431_s3 = inlined_call_operand.vmem [shape: f32[1,64], index: 3, kind: input, shape index: {}]   ;;  %s1432_s4 = inlined_call_operand.vmem [shape: f32[1,64], index: 4, kind: input, shape index: {}]   ;;  %s1433_s5 = inlined_call_operand.vmem [shape: bf16[128,64], index: 5, kind: output, shape index: {}]  }
   0x1   :  { %v981_v0 = vld [vmem:[%s1428_s1 + $0x40] sm:$0xff]   ;;  %v983_v2 = vld [vmem:[%s1428_s1 + $0x48] sm:$0xff]   ;;  %v985_v4 = vld [vmem:[%s1428_s1 + $0x50] sm:$0xff]  }
   0x2   :  { %v982_v1 = vld [vmem:[%s1428_s1] sm:$0xff]   ;;  %871 = vmatprep.subr.bf16.mxu0 %v981_v0  ;;  %965 = vmatprep.subr.bf16.mxu1 %v981_v0  ;;  %v984_v3 = vld [vmem:[%s1428_s1 + $0x8] sm:$0xff]   ;;  %v986_v5 = vld [vmem:[%s1428_s1 + $0x10] sm:$0xff]  }
   0x3   :  { %872 = vmatpush3.bf16.msra.mxu0 %v982_v1  ;;  %973 = vmatpush3.bf16.msra.mxu1 %v982_v1  ;;  %v987_v6 = vld [vmem:[%s1428_s1 + $0x58] sm:$0xff]   ;;  %v989_v8 = vld [vmem:[%s1428_s1 + $0x60] sm:$0xff]   ;;  %v991_v10 = vld [vmem:[%s1428_s1 + $0x68] sm:$0xff]  }
   0x4   :  { %873 = vmatprep.subr.bf16.mxu0 %v983_v2  ;;  %966 = vmatprep.subr.bf16.mxu1 %v983_v2  ;;  %v988_v7 = vld [vmem:[%s1428_s1 + $0x18] sm:$0xff]   ;;  %v990_v9 = vld [vmem:[%s1428_s1 + $0x20] sm:$0xff]   ;;  %v992_v13 = vld [vmem:[%s1428_s1 + $0x28] sm:$0xff]  }
   0x5   :  { %v999_v11 = vld [vmem:[%s1429_s0 + $0x4] ss:$12 sps:$4 sm:$0xff]   ;;  %v1002_v12 = vld [vmem:[%s1429_s0 + $0x94] ss:$12 sps:$4 sm:$0xff]   ;;  %v995_v16 = vld [vmem:[%s1428_s1 + $0x78] sm:$0xff]  }
   0x6   :  { %v993_v14 = vld [vmem:[%s1428_s1 + $0x70] sm:$0xff]   ;;  %381 = vmatprep.mubr.bf16.mxu0 %v999_v11  ;;  %429 = vmatprep.mubr.bf16.mxu1 %v1002_v12  ;;  %v996_v17 = vld [vmem:[%s1428_s1 + $0x38] sm:$0xff]   ;;  %v997_v18 = vld [vmem:[%s1429_s0] ss:$12 sps:$4 sm:$0xff]  }
   0x7   :  { %874 = vmatpush3.bf16.msra.mxu0 %v984_v3  ;;  %974 = vmatpush3.bf16.msra.mxu1 %v984_v3  ;;  %v994_v15 = vld [vmem:[%s1428_s1 + $0x30] sm:$0xff]   ;;  %v1007_v19 = vld [vmem:[%s1428_s1 + $0x80] sm:$0xff]   ;;  %v1003_v21 = vld [vmem:[%s1429_s0 + $0x1c] ss:$12 sps:$4 sm:$0xff]  }
   0x8   :  { %875 = vmatprep.subr.bf16.mxu0 %v985_v4  ;;  %967 = vmatprep.subr.bf16.mxu1 %v985_v4  ;;  %v1000_v20 = vld [vmem:[%s1429_s0 + $0x90] ss:$12 sps:$4 sm:$0xff]   ;;  %v1005_v22 = vld [vmem:[%s1429_s0 + $0xac] ss:$12 sps:$4 sm:$0xff]   ;;  %v1009_v25 = vld [vmem:[%s1429_s0 + $0xa8] ss:$12 sps:$4 sm:$0xff]  }
   0x9   :  { %v1010_v23 = vld [vmem:[%s1428_s1 + $0x88] sm:$0xff]   ;;  %v1008_v24 = vld [vmem:[%s1429_s0 + $0x18] ss:$12 sps:$4 sm:$0xff]   ;;  %v1011_v26 = vld [vmem:[%s1429_s0 + $0x34] ss:$12 sps:$4 sm:$0xff]  }
   0xa   :  { %v1013_v27 = vld [vmem:[%s1429_s0 + $0x8] ss:$12 sps:$4 sm:$0xff]   ;;  %v1014_v28 = vld [vmem:[%s1429_s0 + $0x30] ss:$12 sps:$4 sm:$0xff]   ;;  %v1015_v29 = vld [vmem:[%s1429_s0 + $0x20] ss:$12 sps:$4 sm:$0xff]  }
   0xb   :  { %876 = vmatpush3.bf16.msra.mxu0 %v986_v5  ;;  %975 = vmatpush3.bf16.msra.mxu1 %v986_v5  ;;  %v1016_v30 = vld [vmem:[%s1429_s0 + $0x4c] ss:$12 sps:$4 sm:$0xff]   ;;  %v1019_v32 = vld [vmem:[%s1429_s0 + $0x48] ss:$12 sps:$4 sm:$0xff]   ;;  %v1020_v33 = vld [vmem:[%s1429_s0 + $0x50] ss:$12 sps:$4 sm:$0xff]  }
   0xc   :  { %877 = vmatprep.subr.bf16.mxu0 %v987_v6  ;;  %968 = vmatprep.subr.bf16.mxu1 %v987_v6  ;;  %v1018_v31 = vld [vmem:[%s1429_s0 + $0x38] ss:$12 sps:$4 sm:$0xff]   ;;  %v1023_v35 = vld [vmem:[%s1429_s0 + $0x68] ss:$12 sps:$4 sm:$0xff]   ;;  %v1024_v36 = vld [vmem:[%s1429_s0 + $0x60] ss:$12 sps:$4 sm:$0xff]  }
   0xd   :  { %v1021_v34 = vld [vmem:[%s1429_s0 + $0x64] ss:$12 sps:$4 sm:$0xff]   ;;  %v1025_v37 = vld [vmem:[%s1429_s0 + $0x80] ss:$12 sps:$4 sm:$0xff]   ;;  %v1026_v38 = vld [vmem:[%s1429_s0 + $0x7c] ss:$12 sps:$4 sm:$0xff]  }
   0xe   :  { %v1028_v39 = vld [vmem:[%s1429_s0 + $0x98] ss:$12 sps:$4 sm:$0xff]   ;;  %v1030_v41 = vld [vmem:[%s1429_s0 + $0xb0] ss:$12 sps:$4 sm:$0xff]   ;;  %v1208_v2 = vld [vmem:[%s1430_s2] ss:$0 sm:$0xff] }
   0xf   :  { %878 = vmatpush3.bf16.msra.mxu0 %v988_v7  ;;  %976 = vmatpush3.bf16.msra.mxu1 %v988_v7  ;;  %v1029_v40 = vld [vmem:[%s1429_s0 + $0x78] ss:$12 sps:$4 sm:$0xff]  }
  0x10   :  { %879 = vmatprep.subr.bf16.mxu0 %v989_v8  ;;  %969 = vmatprep.subr.bf16.mxu1 %v989_v8 }
  0x13   :  { %880 = vmatpush3.bf16.msra.mxu0 %v990_v9  ;;  %977 = vmatpush3.bf16.msra.mxu1 %v990_v9 }
  0x14   :  { %881 = vmatprep.subr.bf16.mxu0 %v991_v10  ;;  %970 = vmatprep.subr.bf16.mxu1 %v991_v10 }
  0x17   :  { %882 = vmatpush3.bf16.msra.mxu0 %v992_v13  ;;  %978 = vmatpush3.bf16.msra.mxu1 %v992_v13 }
  0x18   :  { %883 = vmatprep.subr.bf16.mxu0 %v993_v14  ;;  %971 = vmatprep.subr.bf16.mxu1 %v993_v14 }
  0x1b   :  { %884 = vmatpush3.bf16.msra.mxu0 %v994_v15  ;;  %979 = vmatpush3.bf16.msra.mxu1 %v994_v15 }
  0x1c   :  { %885 = vmatprep.subr.bf16.mxu0 %v995_v16  ;;  %972 = vmatprep.subr.bf16.mxu1 %v995_v16 }
  0x1f   :  { %886 = vmatpush3.bf16.msra.mxu0 %v996_v17  ;;  %980 = vmatpush3.bf16.msra.mxu1 %v996_v17 }
  0x20   :  { %945 = vmatprep.subr.bf16.mxu1 %v1007_v19 }
  0x22   :  { %382 = vmatmul.mubr.bf16.vlgmr.msra.gmra.mrb[0].mxu0 %v997_v18  ;;  %430 = vmatmul.mubr.bf16.vlgmr.msra.gmra.mrb[0].mxu1 %v1000_v20 }
  0x23   :  { %389 = vmatprep.mubr.bf16.mxu0 %v1003_v21  ;;  %437 = vmatprep.mubr.bf16.mxu1 %v1005_v22 }
  0x24   :  { %946 = vmatpush3.bf16.msra.mxu1 %v1007_v19 }
  0x25   :  { %947 = vmatprep.subr.bf16.mxu1 %v1010_v23 }
  0x28   :  { %948 = vmatpush3.bf16.msra.mxu1 %v1010_v23 }
  0x2a   :  { %390 = vmatmul.mubr.bf16.gmra.mrb[4].mxu0 %v1008_v24  ;;  %438 = vmatmul.mubr.bf16.gmra.mrb[4].mxu1 %v1009_v25 }
  0x2b   :  { %397 = vmatprep.mubr.bf16.mxu0 %v1011_v26  ;;  %949 = vmatprep.mubr.msk.bf16.mxu1 %vm324_vm0, %v1013_v27 }
  0x32   :  { %398 = vmatmul.mubr.bf16.gmra.mrb[8].mxu0 %v1014_v28  ;;  %950 = vmatmul.mubr.msk.bf16.vlgmr.msra.gmra.mrb[8].mxu1 %vm324_vm0, %v1015_v29 }
  0x33   :  { %405 = vmatprep.mubr.bf16.mxu0 %v1016_v30  ;;  %953 = vmatprep.mubr.msk.bf16.mxu1 %vm324_vm0, %v1018_v31 }
  0x3a   :  { %406 = vmatmul.mubr.bf16.gmra.mrb[12].mxu0 %v1019_v32  ;;  %954 = vmatmul.mubr.msk.bf16.gmra.mrb[12].mxu1 %vm324_vm0, %v1020_v33 }
  0x3b   :  { %413 = vmatprep.mubr.bf16.mxu0 %v1021_v34  ;;  %957 = vmatprep.mubr.msk.bf16.mxu1 %vm324_vm0, %v1023_v35 }
  0x42   :  { %414 = vmatmul.mubr.bf16.gmra.mrb[16].mxu0 %v1024_v36  ;;  %958 = vmatmul.mubr.msk.bf16.gmra.mrb[16].mxu1 %vm324_vm0, %v1025_v37 }
  0x43   :  { %421 = vmatprep.mubr.bf16.mxu0 %v1026_v38  ;;  %961 = vmatprep.mubr.msk.bf16.mxu1 %vm324_vm0, %v1028_v39 }
  0x4a   :  { %422 = vmatmul.mubr.bf16.gmra.mrb[20].mxu0 %v1029_v40  ;;  %962 = vmatmul.mubr.msk.bf16.gmra.mrb[20].mxu1 %vm324_vm0, %v1030_v41 }
  0xf5   :  { %v887_v42 = vpop.f32.mrb[0].mxu0  ;;  %v923_v43 = vpop.f32.mrb[0].mxu1 }
  0xf6   :  { %v888_v44 = vpop.f32.mrb[1].mxu0  ;;  %v924_v45 = vpop.f32.mrb[1].mxu1 }
  0xf7   :  { %v889_v46 = vadd.f32 %v888_v44, %v887_v42  ;;  %v890_v47 = vpop.f32.mrb[2].mxu0  ;;  %v1197_v48 = vadd.f32 %v924_v45, %v923_v43  ;;  %v926_v49 = vpop.f32.mrb[2].mxu1 }
  0xf8   :  { %v891_v50 = vpop.f32.mrb[3].mxu0  ;;  %v927_v51 = vpop.f32.mrb[3].mxu1 }
  0xf9   :  { %v892_v52 = vadd.f32 %v891_v50, %v890_v47  ;;  %v1199_v53 = vadd.f32 %v927_v51, %v926_v49  ;;  %v384_v6 = vadd.f32 %v889_v46, %v1208_v2 }
  0xfb   :  { %v387_v15 = vadd.f32 %v892_v52, %v1208_v2 }
  0xfd   :  { %v893_v54 = vpop.f32.mrb[4].mxu0  ;;  %v929_v55 = vpop.f32.mrb[4].mxu1 }
  0xfe   :  { %v894_v56 = vpop.f32.mrb[5].mxu0  ;;  %v930_v57 = vpop.f32.mrb[5].mxu1 }
  0xff   :  { %v895_v58 = vadd.f32 %v894_v56, %v893_v54  ;;  %v896_v59 = vpop.f32.mrb[6].mxu0  ;;  %v1201_v60 = vadd.f32 %v930_v57, %v929_v55  ;;  %v932_v61 = vpop.f32.mrb[6].mxu1 }
 0x100   :  { %v897_v62 = vpop.f32.mrb[7].mxu0  ;;  %v933_v63 = vpop.f32.mrb[7].mxu1 }
 0x101   :  { %v898_v0 = vadd.f32 %v897_v62, %v896_v59  ;;  %v1203_v1 = vadd.f32 %v933_v63, %v932_v61  ;;  %v392_v3 = vadd.f32 %v895_v58, %v1208_v2 }
 0x103   :  { %v395_v10 = vadd.f32 %v898_v0, %v1208_v2 }
 0x105   :  { %v899_v4 = vpop.f32.mrb[8].mxu0  ;;  %v951_v5 = vpop.f32.mrb[8].mxu1 }
 0x106   :  { %v1212_v7 = vadd.f32 %v951_v5, %v392_v3  ;;  %v900_v8 = vpop.f32.mrb[9].mxu0  ;;  %v480_v9 = vpop.f32.mrb[9].mxu1 }
 0x107   :  { %v901_v11 = vadd.f32 %v900_v8, %v899_v4  ;;  %v1215_v12 = vadd.f32 %v480_v9, %v384_v6  ;;  %v902_v13 = vpop.f32.mrb[10].mxu0  ;;  %v952_v14 = vpop.f32.mrb[10].mxu1 }
 0x108   :  { %v1218_v16 = vadd.f32 %v952_v14, %v395_v10  ;;  %v903_v17 = vpop.f32.mrb[11].mxu0  ;;  %v483_v18 = vpop.f32.mrb[11].mxu1  ;;  %v583_v22 = vmul.f32 %v1212_v7, %v1212_v7  ;;  %v547_v28 = vsel %vm543_vm1, %v1212_v7, 0.0 }
 0x109   :  { %v581_v19 = vmul.f32 %v1215_v12, %v1215_v12  ;;  %v904_v20 = vadd.f32 %v903_v17, %v902_v13  ;;  %v1222_v21 = vadd.f32 %v483_v18, %v387_v15  ;;  %v544_v23 = vsel %vm543_vm1, %v1215_v12, 0.0 }
 0x10a   :  { %v584_v26 = vmul.f32 %v1218_v16, %v1218_v16  ;;  %v400_v33 = vadd.f32 %v901_v11, %v1208_v2  ;;  %v600_v38 = vsel %vm543_vm1, %v583_v22, 0.0  ;;  %v549_v39 = vsel %vm543_vm1, %v1218_v16, 0.0 }
 0x10b   :  { %v545_v24 = vsel %vm543_vm1, %v1222_v21, 0.0  ;;  %v582_v25 = vmul.f32 %v1222_v21, %v1222_v21  ;;  %v597_v29 = vsel %vm543_vm1, %v581_v19, 0.0  ;;  %v403_v49 = vadd.f32 %v904_v20, %v1208_v2 }
 0x10c   :  { %v546_v27 = vadd.f32 %v545_v24, %v544_v23  ;;  %v602_v44 = vsel %vm543_vm1, %v584_v26, 0.0 }
 0x10d   :  { %v598_v30 = vsel %vm543_vm1, %v582_v25, 0.0  ;;  %v905_v31 = vpop.f32.mrb[12].mxu0  ;;  %v955_v32 = vpop.f32.mrb[12].mxu1 }
 0x10e   :  { %v548_v34 = vadd.f32 %v547_v28, %v546_v27  ;;  %v599_v35 = vadd.f32 %v598_v30, %v597_v29  ;;  %v906_v36 = vpop.f32.mrb[13].mxu0  ;;  %v496_v37 = vpop.f32.mrb[13].mxu1 }
 0x10f   :  { %v907_v40 = vadd.f32 %v906_v36, %v905_v31  ;;  %v1242_v41 = vadd.f32 %v496_v37, %v400_v33  ;;  %v908_v42 = vpop.f32.mrb[14].mxu0  ;;  %v956_v43 = vpop.f32.mrb[14].mxu1 }
 0x110   :  { %v601_v45 = vadd.f32 %v600_v38, %v599_v35  ;;  %v550_v46 = vadd.f32 %v549_v39, %v548_v34  ;;  %v909_v47 = vpop.f32.mrb[15].mxu0  ;;  %v499_v50 = vpop.f32.mrb[15].mxu1  ;;  %v440_v35 = vadd.f32 %v1201_v60, %v1208_v2 }
 0x111   :  { %v408_v51 = vadd.f32 %v907_v40, %v1208_v2  ;;  %v551_v52 = vsel %vm543_vm1, %v1242_v41, 0.0  ;;  %v585_v54 = vmul.f32 %v1242_v41, %v1242_v41  ;;  %v910_v55 = vadd.f32 %v909_v47, %v908_v42 }
 0x112   :  { %v552_v56 = vadd.f32 %v551_v52, %v550_v46  ;;  %v603_v57 = vadd.f32 %v602_v44, %v601_v45  ;;  %v1251_v58 = vadd.f32 %v499_v50, %v403_v49  ;;  %v432_v44 = vadd.f32 %v1197_v48, %v1208_v2 }
 0x113   :  { %v1253_v59 = vadd.f32 %v955_v32, %v408_v51  ;;  %v604_v61 = vsel %vm543_vm1, %v585_v54, 0.0  ;;  %v411_v62 = vadd.f32 %v910_v55, %v1208_v2  ;;  %v443_v55 = vadd.f32 %v1203_v1, %v1208_v2 }
 0x114   :  { %v605_v63 = vadd.f32 %v604_v61, %v603_v57  ;;  %v553_v0 = vsel %vm543_vm1, %v1251_v58, 0.0  ;;  %v586_v3 = vmul.f32 %v1251_v58, %v1251_v58  ;;  %v435_v48 = vadd.f32 %v1199_v53, %v1208_v2 }
 0x115   :  { %v587_v4 = vmul.f32 %v1253_v59, %v1253_v59  ;;  %v1263_v5 = vadd.f32 %v956_v43, %v411_v62  ;;  %v554_v6 = vadd.f32 %v553_v0, %v552_v56  ;;  %v555_v8 = vsel %vm543_vm1, %v1253_v59, 0.0  ;;  %v911_v9 = vpop.f32.mrb[16].mxu0  ;;  %v959_v10 = vpop.f32.mrb[16].mxu1 }
 0x116   :  { %v606_v11 = vsel %vm543_vm1, %v586_v3, 0.0  ;;  %v912_v13 = vpop.f32.mrb[17].mxu0  ;;  %v512_v14 = vpop.f32.mrb[17].mxu1 }
 0x117   :  { %v588_v15 = vmul.f32 %v1263_v5, %v1263_v5  ;;  %v556_v17 = vadd.f32 %v555_v8, %v554_v6  ;;  %v607_v18 = vadd.f32 %v606_v11, %v605_v63  ;;  %v608_v19 = vsel %vm543_vm1, %v587_v4, 0.0  ;;  %v914_v20 = vpop.f32.mrb[18].mxu0  ;;  %v960_v22 = vpop.f32.mrb[18].mxu1 }
 0x118   :  { %v913_v23 = vadd.f32 %v912_v13, %v911_v9  ;;  %v915_v24 = vpop.f32.mrb[19].mxu0  ;;  %v557_v25 = vsel %vm543_vm1, %v1263_v5, 0.0  ;;  %v515_v26 = vpop.f32.mrb[19].mxu1 }
 0x119   :  { %v609_v27 = vadd.f32 %v608_v19, %v607_v18  ;;  %v916_v28 = vadd.f32 %v915_v24, %v914_v20  ;;  %v558_v29 = vadd.f32 %v557_v25, %v556_v17  ;;  %v610_v30 = vsel %vm543_vm1, %v588_v15, 0.0 }
 0x11a   :  { %v416_v31 = vadd.f32 %v913_v23, %v1208_v2 }
 0x11b   :  { %v611_v32 = vadd.f32 %v610_v30, %v609_v27  ;;  %v419_v33 = vadd.f32 %v916_v28, %v1208_v2 }
 0x11c   :  { %v1276_v34 = vadd.f32 %v512_v14, %v416_v31 }
 0x11d   :  { %v1280_v36 = vadd.f32 %v515_v26, %v419_v33  ;;  %v917_v37 = vpop.f32.mrb[20].mxu0  ;;  %v963_v38 = vpop.f32.mrb[20].mxu1 }
 0x11e   :  { %v559_v39 = vsel %vm543_vm1, %v1276_v34, 0.0  ;;  %v589_v40 = vmul.f32 %v1276_v34, %v1276_v34  ;;  %v1286_v42 = vadd.f32 %v963_v38, %v440_v35  ;;  %v918_v43 = vpop.f32.mrb[21].mxu0  ;;  %v528_v45 = vpop.f32.mrb[21].mxu1 }
 0x11f   :  { %v560_v46 = vadd.f32 %v559_v39, %v558_v29  ;;  %v561_v60 = vsel %vm543_vm1, %v1280_v36, 0.0  ;;  %v590_v47 = vmul.f32 %v1280_v36, %v1280_v36  ;;  %v919_v49 = vadd.f32 %v918_v43, %v917_v37  ;;  %v920_v50 = vpop.f32.mrb[22].mxu0  ;;  %v964_v51 = vpop.f32.mrb[22].mxu1 }
 0x120   :  { %v612_v52 = vsel %vm543_vm1, %v589_v40, 0.0  ;;  %v1295_v54 = vadd.f32 %v528_v45, %v432_v44  ;;  %v921_v56 = vpop.f32.mrb[23].mxu0  ;;  %v531_v57 = vpop.f32.mrb[23].mxu1  ;;  %v1303_v3 = vadd.f32 %v964_v51, %v443_v55  ;;  %v595_v26 = vmul.f32 %v1286_v42, %v1286_v42 }
 0x121   :  { %v613_v61 = vadd.f32 %v612_v52, %v611_v32  ;;  %v562_v62 = vadd.f32 %v561_v60, %v560_v46  ;;  %v614_v63 = vsel %vm543_vm1, %v590_v47, 0.0  ;;  %v424_v0 = vadd.f32 %v919_v49, %v1208_v2 }
 0x122   :  { %v922_v8 = vadd.f32 %v921_v56, %v920_v50  ;;  %v1307_v9 = vadd.f32 %v531_v57, %v435_v48  ;;  %v567_v23 = vsel %vm543_vm1, %v1295_v54, 0.0  ;;  %v571_v31 = vsel %vm543_vm1, %v1286_v42, 0.0 }
 0x123   :  { %v615_v4 = vadd.f32 %v614_v63, %v613_v61  ;;  %v1305_v6 = vadd.f32 %v959_v10, %v424_v0  ;;  %v593_v10 = vmul.f32 %v1295_v54, %v1295_v54  ;;  %v596_v32 = vmul.f32 %v1303_v3, %v1303_v3 }
 0x124   :  { %v427_v11 = vadd.f32 %v922_v8, %v1208_v2  ;;  %v569_v28 = vsel %vm543_vm1, %v1307_v9, 0.0  ;;  %v624_v38 = vsel %vm543_vm1, %v595_v26, 0.0  ;;  %v573_v39 = vsel %vm543_vm1, %v1303_v3, 0.0 }
 0x125   :  { %v563_v1 = vsel %vm543_vm1, %v1305_v6, 0.0  ;;  %v591_v53 = vmul.f32 %v1305_v6, %v1305_v6  ;;  %v620_v27 = vsel %vm543_vm1, %v593_v10, 0.0  ;;  %v626_v44 = vsel %vm543_vm1, %v596_v32, 0.0  ;;  %v642_v10 = vld [vmem:[%s1432_s4] sm:$0x1] }
 0x126   :  { %v564_v13 = vadd.f32 %v563_v1, %v562_v62  ;;  %v1315_v15 = vadd.f32 %v960_v22, %v427_v11  ;;  %v594_v22 = vmul.f32 %v1307_v9, %v1307_v9  ;;  %v645_v1 = vlaneseq  ;;  %v640_v11 = vld [vmem:[%s1431_s3] sm:$0x1] }
 0x127   :  { %v616_v14 = vsel %vm543_vm1, %v591_v53, 0.0 }
 0x128   :  { %v617_v17 = vadd.f32 %v616_v14, %v615_v4  ;;  %v565_v18 = vsel %vm543_vm1, %v1315_v15, 0.0  ;;  %v592_v19 = vmul.f32 %v1315_v15, %v1315_v15  ;;  %v622_v33 = vsel %vm543_vm1, %v594_v22, 0.0 }
 0x129   :  { %v566_v20 = vadd.f32 %v565_v18, %v564_v13  ;;  %v646_v53 = vshrl.u32 %v645_v1, 7 }
 0x12a   :  { %v618_v2 = vsel %vm543_vm1, %v592_v19, 0.0 }
 0x12b   :  { %v568_v24 = vadd.f32 %v567_v23, %v566_v20  ;;  %v619_v25 = vadd.f32 %v618_v2, %v617_v17  ;;  %v647_v13 = vsub.s32 0, %v646_v53 }
 0x12d   :  { %v570_v29 = vadd.f32 %v569_v28, %v568_v24  ;;  %v621_v30 = vadd.f32 %v620_v27, %v619_v25 }
 0x12f   :  { %v572_v35 = vadd.f32 %v571_v31, %v570_v29  ;;  %v623_v37 = vadd.f32 %v622_v33, %v621_v30 }
 0x131   :  { %v574_v40 = vadd.f32 %v573_v39, %v572_v35  ;;  %v625_v43 = vadd.f32 %v624_v38, %v623_v37 }
 0x133   :  { %v575_v45 = vrot.slane %v574_v40, 4  ;;  %v627_v46 = vadd.f32 %v626_v44, %v625_v43 }
 0x135   :  { %v576_v60 = vadd.f32 %v575_v45, %v574_v40  ;;  %v628_v47 = vrot.slane %v627_v46, 4 }
 0x137   :  { %v577_v49 = vrot.slane %v576_v60, 2  ;;  %v629_v50 = vadd.f32 %v628_v47, %v627_v46 }
 0x139   :  { %v578_v51 = vadd.f32 %v577_v49, %v576_v60  ;;  %v630_v52 = vrot.slane %v629_v50, 2 }
 0x13b   :  { %v579_v55 = vrot.slane %v578_v51, 1  ;;  %v631_v56 = vadd.f32 %v630_v52, %v629_v50 }
 0x13d   :  { %v580_v48 = vadd.f32 %v579_v55, %v578_v51  ;;  %v632_v57 = vrot.slane %v631_v56, 1 }
 0x13f   :  { %v633_v61 = vadd.f32 %v632_v57, %v631_v56  ;;  %v634_v62 = vmul.f32 0.0078125, %v580_v48 }
 0x141   :  { %v635_v63 = vmul.f32 0.0078125, %v633_v61  ;;  %v636_v0 = vmul.f32 %v634_v62, %v634_v62 }
 0x143   :  { %v637_v4 = vsub.f32 %v635_v63, %v636_v0 }
 0x145   :  { %v638_v8 = vadd.f32 1e-05, %v637_v4 }
 0x147   :  { %1031 = vrsqrt.f32 %v638_v8 }
 0x151   :  { %v1032_v14 = vpop.eup %1031 }
 0x152   :  { %v641_v17 = vmul.f32 %v1032_v14, %v640_v11 }
 0x154   :  { %v643_v18 = vmul.f32 %v641_v17, %v634_v62  ;;  %v648_v19 = vrot.slane %v641_v17, %v647_v13 }
 0x156   :  { %v644_v20 = vsub.f32 %v642_v10, %v643_v18  ;;  %v649_v23 = vmul.f32 %v648_v19, %v1215_v12  ;;  %v652_v2 = vmul.f32 %v648_v19, %v1218_v16  ;;  %v653_v22 = vmul.f32 %v648_v19, %v1242_v41 }
 0x157   :  { %v654_v24 = vmul.f32 %v648_v19, %v1251_v58  ;;  %v655_v25 = vmul.f32 %v648_v19, %v1253_v59  ;;  %v656_v26 = vmul.f32 %v648_v19, %v1263_v5  ;;  %v657_v27 = vmul.f32 %v648_v19, %v1276_v34 }
 0x158   :  { %v658_v28 = vmul.f32 %v648_v19, %v1280_v36  ;;  %v659_v29 = vmul.f32 %v648_v19, %v1305_v6  ;;  %v660_v30 = vmul.f32 %v648_v19, %v1315_v15  ;;  %v661_v12 = vmul.f32 %v648_v19, %v1295_v54 }
 0x159   :  { %v662_v16 = vmul.f32 %v648_v19, %v1307_v9  ;;  %v663_v41 = vmul.f32 %v648_v19, %v1286_v42  ;;  %v650_v58 = vmul.f32 %v648_v19, %v1222_v21  ;;  %v651_v59 = vmul.f32 %v648_v19, %v1212_v7 }
 0x15a   :  { %v664_v5 = vmul.f32 %v648_v19, %v1303_v3  ;;  %v669_v31 = vrot.slane %v644_v20, %v647_v13 }
 0x15c   :  { %v671_v34 = vadd.f32 %v669_v31, %v649_v23  ;;  %v672_v36 = vadd.f32 %v669_v31, %v650_v58  ;;  %v673_v32 = vadd.f32 %v669_v31, %v651_v59  ;;  %v674_v6 = vadd.f32 %v669_v31, %v652_v2 }
 0x15d   :  { %v675_v33 = vadd.f32 %v669_v31, %v653_v22  ;;  %v676_v15 = vadd.f32 %v669_v31, %v654_v24  ;;  %v677_v35 = vadd.f32 %v669_v31, %v655_v25  ;;  %v678_v54 = vadd.f32 %v669_v31, %v656_v26 }
 0x15e   :  { %v679_v37 = vadd.f32 %v669_v31, %v657_v27  ;;  %v680_v9 = vadd.f32 %v669_v31, %v658_v28  ;;  %v681_v38 = vadd.f32 %v669_v31, %v659_v29  ;;  %v682_v42 = vadd.f32 %v669_v31, %v660_v30 }
 0x15f   :  { %v683_v39 = vadd.f32 %v669_v31, %v661_v12  ;;  %v684_v21 = vadd.f32 %v669_v31, %v662_v16  ;;  %v685_v40 = vadd.f32 %v669_v31, %v663_v41  ;;  %v686_v7 = vadd.f32 %v669_v31, %v664_v5 }
 0x160   :  { %v687_v43 = vmax.f32 %v671_v34, 0.0  ;;  %v688_v3 = vmax.f32 %v672_v36, 0.0  ;;  %v689_v44 = vmax.f32 %v673_v32, 0.0  ;;  %v690_v45 = vmax.f32 %v674_v6, 0.0 }
 0x161   :  { %v691_v46 = vmax.f32 %v675_v33, 0.0  ;;  %v692_v60 = vmax.f32 %v676_v15, 0.0  ;;  %v693_v47 = vmax.f32 %v677_v35, 0.0  ;;  %v694_v49 = vmax.f32 %v678_v54, 0.0 }
 0x162   :  { %v695_v50 = vmax.f32 %v679_v37, 0.0  ;;  %v696_v51 = vmax.f32 %v680_v9, 0.0  ;;  %v697_v52 = vmax.f32 %v681_v38, 0.0  ;;  %v698_v55 = vmax.f32 %v682_v42, 0.0 }
 0x163   :  { %v699_v56 = vmax.f32 %v683_v39, 0.0  ;;  %v700_v48 = vmax.f32 %v684_v21, 0.0  ;;  %v701_v57 = vmax.f32 %v685_v40, 0.0  ;;  %v702_v61 = vmax.f32 %v686_v7, 0.0 }
 0x164   :  { %v855_v62 = vpack.c.bf16 %v687_v43, %v687_v43  ;;  %v856_v63 = vpack.c.bf16 %v688_v3, %v688_v3  ;;  %v857_v0 = vpack.c.bf16 %v689_v44, %v689_v44  ;;  %v858_v4 = vpack.c.bf16 %v690_v45, %v690_v45 }
 0x165   :  { %v859_v8 = vpack.c.bf16 %v691_v46, %v691_v46  ;;  %v860_v1 = vpack.c.bf16 %v692_v60, %v692_v60  ;;  %v861_v53 = vpack.c.bf16 %v693_v47, %v693_v47  ;;  %v862_v11 = vpack.c.bf16 %v694_v49, %v694_v49 }
 0x166   :  { %v863_v13 = vpack.c.bf16 %v695_v50, %v695_v50  ;;  %v864_v14 = vpack.c.bf16 %v696_v51, %v696_v51  ;;  %v865_v17 = vpack.c.bf16 %v697_v52, %v697_v52  ;;  %v866_v10 = vpack.c.bf16 %v698_v55, %v698_v55  ;;  %768 = vst.msk [vmem:[%s1433_s5] sm:$0xf] %vm767_vm2, %v855_v62 }
 0x167   :  { %769 = vst.msk [vmem:[%s1433_s5 + $0x4] sm:$0xf] %vm767_vm2, %v856_v63  ;;  %770 = vst.msk [vmem:[%s1433_s5 + $0x8] sm:$0xf] %vm767_vm2, %v857_v0  ;;  %v867_v18 = vpack.c.bf16 %v699_v56, %v699_v56  ;;  %v868_v19 = vpack.c.bf16 %v700_v48, %v700_v48  ;;  %v869_v20 = vpack.c.bf16 %v701_v57, %v701_v57 }
 0x168   :  { %771 = vst.msk [vmem:[%s1433_s5 + $0xc] sm:$0xf] %vm767_vm2, %v858_v4  ;;  %v870_v23 = vpack.c.bf16 %v702_v61, %v702_v61  ;;  %772 = vst.msk [vmem:[%s1433_s5 + $0x10] sm:$0xf] %vm767_vm2, %v859_v8 }
 0x169   :  { %773 = vst.msk [vmem:[%s1433_s5 + $0x14] sm:$0xf] %vm767_vm2, %v860_v1  ;;  %774 = vst.msk [vmem:[%s1433_s5 + $0x18] sm:$0xf] %vm767_vm2, %v861_v53 }
 0x16a   :  { %775 = vst.msk [vmem:[%s1433_s5 + $0x1c] sm:$0xf] %vm767_vm2, %v862_v11  ;;  %776 = vst.msk [vmem:[%s1433_s5 + $0x20] sm:$0xf] %vm767_vm2, %v863_v13 }
 0x16b   :  { %777 = vst.msk [vmem:[%s1433_s5 + $0x24] sm:$0xf] %vm767_vm2, %v864_v14  ;;  %778 = vst.msk [vmem:[%s1433_s5 + $0x28] sm:$0xf] %vm767_vm2, %v865_v17 }
 0x16c   :  { %779 = vst.msk [vmem:[%s1433_s5 + $0x2c] sm:$0xf] %vm767_vm2, %v866_v10  ;;  %780 = vst.msk [vmem:[%s1433_s5 + $0x30] sm:$0xf] %vm767_vm2, %v867_v18 }
 0x16d   :  { %781 = vst.msk [vmem:[%s1433_s5 + $0x34] sm:$0xf] %vm767_vm2, %v868_v19  ;;  %782 = vst.msk [vmem:[%s1433_s5 + $0x38] sm:$0xf] %vm767_vm2, %v869_v20 }
 0x16e   :  { %783 = vst.msk [vmem:[%s1433_s5 + $0x3c] sm:$0xf] %vm767_vm2, %v870_v23 }

// kernel: vae_forward.12
= control target key start
LH: loop header
LB: loop body
LE: loop exit
PB: predicated region body
PF: predicated region fallthrough
CT: control target
= control target key end

     0   :  { %vm378_vm0 = vcmask 523264   ;;  %s988_s1 = inlined_call_operand.vmem [shape: bf16[576,128], index: 1, kind: input, shape index: {}]   ;;  %s989_s0 = inlined_call_operand.vmem [shape: bf16[32,576], index: 0, kind: input, shape index: {}]   ;;  %s990_s2 = inlined_call_operand.vmem [shape: f32[1,128], index: 2, kind: input, shape index: {}]   ;;  %s991_s3 = inlined_call_operand.vmem [shape: f32[1,128], index: 3, kind: input, shape index: {}]   ;;  %s992_s4 = inlined_call_operand.vmem [shape: f32[1,128], index: 4, kind: input, shape index: {}]   ;;  %s993_s5 = inlined_call_operand.vmem [shape: bf16[32,128], index: 5, kind: output, shape index: {}]  }
   0x1   :  { %v753_v0 = vld [vmem:[%s988_s1 + $0x40] sm:$0xff]   ;;  %v757_v4 = vld [vmem:[%s988_s1 + $0x48] sm:$0xff]   ;;  %v761_v8 = vld [vmem:[%s988_s1 + $0x50] sm:$0xff]  }
   0x2   :  { %v754_v1 = vld [vmem:[%s988_s1] sm:$0xff]   ;;  %679 = vmatprep.subr.bf16.mxu0 %v753_v0  ;;  %v758_v5 = vld [vmem:[%s988_s1 + $0x8] sm:$0xff]   ;;  %v762_v9 = vld [vmem:[%s988_s1 + $0x10] sm:$0xff]  }
   0x3   :  { %v755_v2 = vld [vmem:[%s988_s1 + $0xc0] sm:$0xff]   ;;  %680 = vmatpush3.bf16.msra.mxu0 %v754_v1  ;;  %v759_v6 = vld [vmem:[%s988_s1 + $0xc8] sm:$0xff]   ;;  %v763_v10 = vld [vmem:[%s988_s1 + $0xd0] sm:$0xff]  }
   0x4   :  { %v756_v3 = vld [vmem:[%s988_s1 + $0x80] sm:$0xff]   ;;  %707 = vmatprep.subr.bf16.mxu1 %v755_v2  ;;  %681 = vmatprep.subr.bf16.mxu0 %v757_v4  ;;  %v760_v7 = vld [vmem:[%s988_s1 + $0x88] sm:$0xff]   ;;  %v764_v11 = vld [vmem:[%s988_s1 + $0x90] sm:$0xff]  }
   0x5   :  { %708 = vmatpush3.bf16.msra.mxu1 %v756_v3  ;;  %v765_v12 = vld [vmem:[%s988_s1 + $0x58] sm:$0xff]   ;;  %v769_v16 = vld [vmem:[%s988_s1 + $0x60] sm:$0xff]   ;;  %v773_v20 = vld [vmem:[%s988_s1 + $0x68] sm:$0xff]  }
   0x6   :  { %709 = vmatprep.subr.bf16.mxu1 %v759_v6  ;;  %v766_v13 = vld [vmem:[%s988_s1 + $0x18] sm:$0xff]   ;;  %v770_v17 = vld [vmem:[%s988_s1 + $0x20] sm:$0xff]   ;;  %v774_v21 = vld [vmem:[%s988_s1 + $0x28] sm:$0xff]  }
   0x7   :  { %682 = vmatpush3.bf16.msra.mxu0 %v758_v5  ;;  %v767_v14 = vld [vmem:[%s988_s1 + $0xd8] sm:$0xff]   ;;  %v771_v18 = vld [vmem:[%s988_s1 + $0xe0] sm:$0xff]   ;;  %v775_v22 = vld [vmem:[%s988_s1 + $0xe8] sm:$0xff]  }
   0x8   :  { %683 = vmatprep.subr.bf16.mxu0 %v761_v8  ;;  %v768_v15 = vld [vmem:[%s988_s1 + $0x98] sm:$0xff]   ;;  %v772_v19 = vld [vmem:[%s988_s1 + $0xa0] sm:$0xff]   ;;  %v776_v23 = vld [vmem:[%s988_s1 + $0xa8] sm:$0xff]  }
   0x9   :  { %710 = vmatpush3.bf16.msra.mxu1 %v760_v7  ;;  %v777_v24 = vld [vmem:[%s988_s1 + $0x70] sm:$0xff]   ;;  %v781_v28 = vld [vmem:[%s988_s1 + $0x78] sm:$0xff]   ;;  %v788_v34 = vld [vmem:[%s988_s1 + $0x100] sm:$0xff]  }
   0xa   :  { %711 = vmatprep.subr.bf16.mxu1 %v763_v10  ;;  %v778_v25 = vld [vmem:[%s988_s1 + $0x30] sm:$0xff]   ;;  %v782_v29 = vld [vmem:[%s988_s1 + $0x38] sm:$0xff]   ;;  %v791_v36 = vld [vmem:[%s989_s0 + $0xc] ss:$20 sps:$4 sm:$0xff]  }
   0xb   :  { %684 = vmatpush3.bf16.msra.mxu0 %v762_v9  ;;  %v779_v26 = vld [vmem:[%s988_s1 + $0xf0] sm:$0xff]   ;;  %v783_v30 = vld [vmem:[%s988_s1 + $0xf8] sm:$0xff]   ;;  %v792_v37 = vld [vmem:[%s988_s1 + $0x108] sm:$0xff]   ;;  %466 = vmatprep.mubr.bf16.mxu1 %v791_v36 }
   0xc   :  { %685 = vmatprep.subr.bf16.mxu0 %v765_v12  ;;  %v780_v27 = vld [vmem:[%s988_s1 + $0xb0] sm:$0xff]   ;;  %v786_v32 = vld [vmem:[%s989_s0 + $0x4] ss:$20 sps:$4 sm:$0xff]   ;;  %v789_v35 = vld [vmem:[%s989_s0 + $0x8] ss:$20 sps:$4 sm:$0xff]  }
   0xd   :  { %712 = vmatpush3.bf16.msra.mxu1 %v764_v11  ;;  %v784_v31 = vld [vmem:[%s989_s0] ss:$20 sps:$4 sm:$0xff]   ;;  %v787_v33 = vld [vmem:[%s988_s1 + $0xb8] sm:$0xff]   ;;  %417 = vmatprep.mubr.bf16.mxu0 %v786_v32  ;;  %v799_v42 = vld [vmem:[%s989_s0 + $0x30] ss:$20 sps:$4 sm:$0xff]  }
   0xe   :  { %713 = vmatprep.subr.bf16.mxu1 %v767_v14  ;;  %v793_v38 = vld [vmem:[%s989_s0 + $0x2c] ss:$20 sps:$4 sm:$0xff]   ;;  %v795_v39 = vld [vmem:[%s989_s0 + $0x28] ss:$20 sps:$4 sm:$0xff]   ;;  %v796_v40 = vld [vmem:[%s988_s1 + $0x110] sm:$0xff]  }
   0xf   :  { %686 = vmatpush3.bf16.msra.mxu0 %v766_v13  ;;  %v797_v41 = vld [vmem:[%s989_s0 + $0x34] ss:$20 sps:$4 sm:$0xff]   ;;  %v800_v43 = vld [vmem:[%s988_s1 + $0x118] sm:$0xff]   ;;  %v801_v44 = vld [vmem:[%s989_s0 + $0x10] ss:$20 sps:$4 sm:$0xff]  }
  0x10   :  { %687 = vmatprep.subr.bf16.mxu0 %v769_v16  ;;  %v802_v45 = vld [vmem:[%s989_s0 + $0x38] ss:$20 sps:$4 sm:$0xff]   ;;  %v611_v47 = vld [vmem:[%s990_s2] ss:$0 sm:$0xff] }
  0x11   :  { %714 = vmatpush3.bf16.msra.mxu1 %v768_v15 }
  0x12   :  { %715 = vmatprep.subr.bf16.mxu1 %v771_v18 }
  0x13   :  { %688 = vmatpush3.bf16.msra.mxu0 %v770_v17 }
  0x14   :  { %689 = vmatprep.subr.bf16.mxu0 %v773_v20 }
  0x15   :  { %716 = vmatpush3.bf16.msra.mxu1 %v772_v19 }
  0x16   :  { %717 = vmatprep.subr.bf16.mxu1 %v775_v22 }
  0x17   :  { %690 = vmatpush3.bf16.msra.mxu0 %v774_v21 }
  0x18   :  { %691 = vmatprep.subr.bf16.mxu0 %v777_v24 }
  0x19   :  { %718 = vmatpush3.bf16.msra.mxu1 %v776_v23 }
  0x1a   :  { %719 = vmatprep.subr.bf16.mxu1 %v779_v26 }
  0x1b   :  { %692 = vmatpush3.bf16.msra.mxu0 %v778_v25 }
  0x1c   :  { %693 = vmatprep.subr.bf16.mxu0 %v781_v28 }
  0x1d   :  { %720 = vmatpush3.bf16.msra.mxu1 %v780_v27 }
  0x1e   :  { %721 = vmatprep.subr.bf16.mxu1 %v783_v30 }
  0x1f   :  { %694 = vmatpush3.bf16.msra.mxu0 %v782_v29 }
  0x20   :  { %741 = vmatprep.subr.bf16.mxu0 %v788_v34 }
  0x21   :  { %722 = vmatpush3.bf16.msra.mxu1 %v787_v33 }
  0x22   :  { %418 = vmatmul.mubr.bf16.vlgmr.msra.gmra.mrb[0].mxu0 %v784_v31 }
  0x23   :  { %742 = vmatpush3.bf16.msra.mxu0 %v788_v34  ;;  %425 = vmatprep.mubr.bf16.mxu0 %v793_v38 }
  0x24   :  { %467 = vmatmul.mubr.bf16.vlgmr.msra.gmra.mrb[0].mxu1 %v789_v35  ;;  %743 = vmatprep.subr.bf16.mxu0 %v792_v37 }
  0x25   :  { %474 = vmatprep.mubr.bf16.mxu1 %v797_v41 }
  0x27   :  { %744 = vmatpush3.bf16.msra.mxu0 %v792_v37 }
  0x28   :  { %745 = vmatprep.subr.bf16.mxu0 %v796_v40 }
  0x2a   :  { %426 = vmatmul.mubr.bf16.gmra.mrb[4].mxu0 %v795_v39 }
  0x2b   :  { %749 = vmatprep.mubr.msk.bf16.mxu0 %vm378_vm0, %v801_v44  ;;  %746 = vmatpush3.bf16.msra.mxu0 %v796_v40 }
  0x2c   :  { %475 = vmatmul.mubr.bf16.gmra.mrb[4].mxu1 %v799_v42  ;;  %747 = vmatprep.subr.bf16.mxu0 %v800_v43 }
  0x2f   :  { %748 = vmatpush3.bf16.msra.mxu0 %v800_v43 }
  0x32   :  { %750 = vmatmul.mubr.msk.bf16.vlgmr.msra.gmra.mrb[8].mxu0 %vm378_vm0, %v802_v45 }
  0xf5   :  { %v695_v46 = vpop.f32.mrb[0].mxu0 }
  0xf6   :  { %v696_v48 = vpop.f32.mrb[1].mxu0 }
  0xf7   :  { %v697_v49 = vadd.f32 %v696_v48, %v695_v46  ;;  %v698_v50 = vpop.f32.mrb[2].mxu0  ;;  %v723_v51 = vpop.f32.mrb[0].mxu1 }
  0xf8   :  { %v699_v52 = vpop.f32.mrb[3].mxu0  ;;  %v724_v55 = vpop.f32.mrb[1].mxu1 }
  0xf9   :  { %v420_v53 = vadd.f32 %v697_v49, %v611_v47  ;;  %v700_v54 = vadd.f32 %v699_v52, %v698_v50  ;;  %v725_v56 = vadd.f32 %v724_v55, %v723_v51  ;;  %v726_v57 = vpop.f32.mrb[2].mxu1  ;;  %v565_v50 = vlaneseq  ;;  %v560_v52 = vld [vmem:[%s991_s3] sm:$0x1] }
  0xfa   :  { %v727_v59 = vpop.f32.mrb[3].mxu1 }
  0xfb   :  { %v423_v58 = vadd.f32 %v700_v54, %v611_v47  ;;  %v728_v60 = vadd.f32 %v727_v59, %v726_v57  ;;  %v469_v61 = vadd.f32 %v725_v56, %v420_v53  ;;  %v566_v51 = vshrl.u32 %v565_v50, 7  ;;  %v562_v56 = vld [vmem:[%s992_s4] sm:$0x1] }
  0xfd   :  { %v701_v62 = vpop.f32.mrb[4].mxu0  ;;  %v472_v0 = vadd.f32 %v728_v60, %v423_v58  ;;  %v567_v53 = vsub.s32 0, %v566_v51 }
  0xfe   :  { %v702_v63 = vpop.f32.mrb[5].mxu0 }
  0xff   :  { %v703_v1 = vadd.f32 %v702_v63, %v701_v62  ;;  %v704_v2 = vpop.f32.mrb[6].mxu0  ;;  %v729_v3 = vpop.f32.mrb[4].mxu1 }
 0x100   :  { %v705_v4 = vpop.f32.mrb[7].mxu0  ;;  %v730_v7 = vpop.f32.mrb[5].mxu1 }
 0x101   :  { %v428_v5 = vadd.f32 %v703_v1, %v611_v47  ;;  %v706_v6 = vadd.f32 %v705_v4, %v704_v2  ;;  %v731_v8 = vadd.f32 %v730_v7, %v729_v3  ;;  %v732_v9 = vpop.f32.mrb[6].mxu1 }
 0x102   :  { %v733_v11 = vpop.f32.mrb[7].mxu1 }
 0x103   :  { %v431_v10 = vadd.f32 %v706_v6, %v611_v47  ;;  %v734_v12 = vadd.f32 %v733_v11, %v732_v9  ;;  %v477_v13 = vadd.f32 %v731_v8, %v428_v5 }
 0x105   :  { %v751_v14 = vpop.f32.mrb[8].mxu0  ;;  %v480_v15 = vadd.f32 %v734_v12, %v431_v10 }
 0x106   :  { %v526_v16 = vadd.f32 %v751_v14, %v477_v13  ;;  %v517_v17 = vpop.f32.mrb[9].mxu0 }
 0x107   :  { %v518_v18 = vadd.f32 %v517_v17, %v469_v61  ;;  %v752_v19 = vpop.f32.mrb[10].mxu0 }
 0x108   :  { %v529_v20 = vadd.f32 %v752_v19, %v480_v15  ;;  %v520_v21 = vpop.f32.mrb[11].mxu0  ;;  %v543_v26 = vmul.f32 %v526_v16, %v526_v16 }
 0x109   :  { %v521_v22 = vadd.f32 %v520_v21, %v472_v0  ;;  %v541_v23 = vmul.f32 %v518_v18, %v518_v18 }
 0x10a   :  { %v544_v29 = vmul.f32 %v529_v20, %v529_v20 }
 0x10b   :  { %v532_v24 = vadd.f32 %v521_v22, %v518_v18  ;;  %v542_v25 = vmul.f32 %v521_v22, %v521_v22 }
 0x10d   :  { %v533_v27 = vadd.f32 %v532_v24, %v526_v16  ;;  %v545_v28 = vadd.f32 %v542_v25, %v541_v23 }
 0x10f   :  { %v534_v30 = vadd.f32 %v533_v27, %v529_v20  ;;  %v546_v31 = vadd.f32 %v545_v28, %v543_v26 }
 0x111   :  { %v535_v32 = vrot.slane %v534_v30, 4  ;;  %v547_v33 = vadd.f32 %v546_v31, %v544_v29 }
 0x113   :  { %v536_v34 = vadd.f32 %v535_v32, %v534_v30  ;;  %v548_v35 = vrot.slane %v547_v33, 4 }
 0x115   :  { %v537_v36 = vrot.slane %v536_v34, 2  ;;  %v549_v37 = vadd.f32 %v548_v35, %v547_v33 }
 0x117   :  { %v538_v38 = vadd.f32 %v537_v36, %v536_v34  ;;  %v550_v39 = vrot.slane %v549_v37, 2 }
 0x119   :  { %v539_v40 = vrot.slane %v538_v38, 1  ;;  %v551_v41 = vadd.f32 %v550_v39, %v549_v37 }
 0x11b   :  { %v540_v42 = vadd.f32 %v539_v40, %v538_v38  ;;  %v552_v43 = vrot.slane %v551_v41, 1 }
 0x11d   :  { %v553_v44 = vadd.f32 %v552_v43, %v551_v41  ;;  %v554_v45 = vmul.f32 0.03125, %v540_v42 }
 0x11f   :  { %v555_v46 = vmul.f32 0.03125, %v553_v44  ;;  %v556_v47 = vmul.f32 %v554_v45, %v554_v45 }
 0x121   :  { %v557_v48 = vsub.f32 %v555_v46, %v556_v47 }
 0x123   :  { %v558_v49 = vadd.f32 1e-05, %v557_v48 }
 0x125   :  { %803 = vrsqrt.f32 %v558_v49 }
 0x12f   :  { %v804_v54 = vpop.eup %803 }
 0x130   :  { %v561_v55 = vmul.f32 %v804_v54, %v560_v52 }
 0x132   :  { %v563_v57 = vmul.f32 %v561_v55, %v554_v45  ;;  %v568_v58 = vrot.slane %v561_v55, %v567_v53 }
 0x134   :  { %v564_v59 = vsub.f32 %v562_v56, %v563_v57  ;;  %v569_v60 = vmul.f32 %v568_v58, %v518_v18  ;;  %v570_v61 = vmul.f32 %v568_v58, %v521_v22  ;;  %v571_v62 = vmul.f32 %v568_v58, %v526_v16 }
 0x135   :  { %v572_v63 = vmul.f32 %v568_v58, %v529_v20 }
 0x136   :  { %v577_v0 = vrot.slane %v564_v59, %v567_v53 }
 0x138   :  { %v579_v1 = vadd.f32 %v577_v0, %v569_v60  ;;  %v580_v2 = vadd.f32 %v577_v0, %v570_v61  ;;  %v581_v3 = vadd.f32 %v577_v0, %v571_v62  ;;  %v582_v4 = vadd.f32 %v577_v0, %v572_v63 }
 0x13a   :  { %v583_v5 = vmax.f32 %v579_v1, 0.0  ;;  %v584_v6 = vmax.f32 %v580_v2, 0.0  ;;  %v585_v7 = vmax.f32 %v581_v3, 0.0  ;;  %v586_v8 = vmax.f32 %v582_v4, 0.0 }
 0x13c   :  { %v671_v9 = vpack.c.bf16 %v584_v6, %v583_v5  ;;  %v676_v10 = vpack.c.bf16 %v586_v8, %v585_v7 }
 0x13e   :  { %672 = vst [vmem:[%s993_s5] sm:$0xff] %v671_v9   ;;  %678 = vst [vmem:[%s993_s5 + $0x8] sm:$0xff] %v676_v10  }

// kernel: vae_forward.13
= control target key start
LH: loop header
LB: loop body
LE: loop exit
PB: predicated region body
PF: predicated region fallthrough
CT: control target
= control target key end

     0   :  { %s2187_s1 = inlined_call_operand.vmem [shape: bf16[1152,256], index: 1, kind: input, shape index: {}]   ;;  %s2188_s0 = inlined_call_operand.vmem [shape: bf16[8,1152], index: 0, kind: input, shape index: {}]   ;;  %s2189_s2 = inlined_call_operand.vmem [shape: f32[1,256], index: 2, kind: input, shape index: {}]   ;;  %s2190_s3 = inlined_call_operand.vmem [shape: f32[1,256], index: 3, kind: input, shape index: {}]   ;;  %s2191_s4 = inlined_call_operand.vmem [shape: f32[1,256], index: 4, kind: input, shape index: {}]   ;;  %s2192_s5 = inlined_call_operand.vmem [shape: bf16[8,256], index: 5, kind: output, shape index: {}]  }
   0x1   :  { %v1424_v0 = vld [vmem:[%s2187_s1 + $0x4] ss:$8 sps:$4 sm:$0xff]   ;;  %v1428_v2 = vld [vmem:[%s2187_s1] ss:$8 sps:$4 sm:$0xff]   ;;  %v1430_v4 = vld [vmem:[%s2187_s1 + $0x14] ss:$8 sps:$4 sm:$0xff]  }
   0x2   :  { %v1426_v1 = vld [vmem:[%s2187_s1 + $0x204] ss:$8 sps:$4 sm:$0xff]   ;;  %934 = vmatprep.subr.bf16.mxu1 %v1424_v0  ;;  %v1429_v3 = vld [vmem:[%s2187_s1 + $0x200] ss:$8 sps:$4 sm:$0xff]   ;;  %v1432_v5 = vld [vmem:[%s2187_s1 + $0x214] ss:$8 sps:$4 sm:$0xff]  }
   0x3   :  { %1016 = vmatprep.subr.bf16.mxu0 %v1426_v1  ;;  %935 = vmatpush1.bf16.msra.mxu1 %v1428_v2  ;;  %v1434_v6 = vld [vmem:[%s2187_s1 + $0x10] ss:$8 sps:$4 sm:$0xff]   ;;  %v1436_v8 = vld [vmem:[%s2187_s1 + $0x24] ss:$8 sps:$4 sm:$0xff]   ;;  %v1440_v10 = vld [vmem:[%s2187_s1 + $0x20] ss:$8 sps:$4 sm:$0xff]  }
   0x4   :  { %1017 = vmatpush1.bf16.msra.mxu0 %v1429_v3  ;;  %936 = vmatprep.subr.bf16.mxu1 %v1430_v4  ;;  %v1435_v7 = vld [vmem:[%s2187_s1 + $0x210] ss:$8 sps:$4 sm:$0xff]   ;;  %v1438_v9 = vld [vmem:[%s2187_s1 + $0x224] ss:$8 sps:$4 sm:$0xff]   ;;  %v1441_v11 = vld [vmem:[%s2187_s1 + $0x220] ss:$8 sps:$4 sm:$0xff]  }
   0x5   :  { %1018 = vmatprep.subr.bf16.mxu0 %v1432_v5  ;;  %v1442_v12 = vld [vmem:[%s2187_s1 + $0x34] ss:$8 sps:$4 sm:$0xff]   ;;  %v1446_v14 = vld [vmem:[%s2187_s1 + $0x30] ss:$8 sps:$4 sm:$0xff]   ;;  %v1448_v16 = vld [vmem:[%s2187_s1 + $0x44] ss:$8 sps:$4 sm:$0xff]  }
   0x6   :  { %v1444_v13 = vld [vmem:[%s2187_s1 + $0x234] ss:$8 sps:$4 sm:$0xff]   ;;  %v1447_v15 = vld [vmem:[%s2187_s1 + $0x230] ss:$8 sps:$4 sm:$0xff]   ;;  %v1450_v17 = vld [vmem:[%s2187_s1 + $0x244] ss:$8 sps:$4 sm:$0xff]  }
   0x7   :  { %937 = vmatpush1.bf16.msra.mxu1 %v1434_v6  ;;  %v1452_v18 = vld [vmem:[%s2187_s1 + $0x40] ss:$8 sps:$4 sm:$0xff]   ;;  %v1454_v20 = vld [vmem:[%s2187_s1 + $0x54] ss:$8 sps:$4 sm:$0xff]   ;;  %v1458_v22 = vld [vmem:[%s2187_s1 + $0x50] ss:$8 sps:$4 sm:$0xff]  }
   0x8   :  { %1019 = vmatpush1.bf16.msra.mxu0 %v1435_v7  ;;  %938 = vmatprep.subr.bf16.mxu1 %v1436_v8  ;;  %v1453_v19 = vld [vmem:[%s2187_s1 + $0x240] ss:$8 sps:$4 sm:$0xff]   ;;  %v1456_v21 = vld [vmem:[%s2187_s1 + $0x254] ss:$8 sps:$4 sm:$0xff]   ;;  %v1459_v23 = vld [vmem:[%s2187_s1 + $0x250] ss:$8 sps:$4 sm:$0xff]  }
   0x9   :  { %1020 = vmatprep.subr.bf16.mxu0 %v1438_v9  ;;  %v1460_v24 = vld [vmem:[%s2187_s1 + $0x64] ss:$8 sps:$4 sm:$0xff]   ;;  %v1464_v26 = vld [vmem:[%s2187_s1 + $0x60] ss:$8 sps:$4 sm:$0xff]   ;;  %v1466_v28 = vld [vmem:[%s2187_s1 + $0x74] ss:$8 sps:$4 sm:$0xff]  }
   0xa   :  { %v1462_v25 = vld [vmem:[%s2187_s1 + $0x264] ss:$8 sps:$4 sm:$0xff]   ;;  %v1465_v27 = vld [vmem:[%s2187_s1 + $0x260] ss:$8 sps:$4 sm:$0xff]   ;;  %v1468_v29 = vld [vmem:[%s2187_s1 + $0x274] ss:$8 sps:$4 sm:$0xff]  }
   0xb   :  { %939 = vmatpush1.bf16.msra.mxu1 %v1440_v10  ;;  %v1470_v30 = vld [vmem:[%s2187_s1 + $0x70] ss:$8 sps:$4 sm:$0xff]   ;;  %v1472_v32 = vld [vmem:[%s2187_s1 + $0x84] ss:$8 sps:$4 sm:$0xff]   ;;  %v1476_v34 = vld [vmem:[%s2187_s1 + $0x80] ss:$8 sps:$4 sm:$0xff]  }
   0xc   :  { %1021 = vmatpush1.bf16.msra.mxu0 %v1441_v11  ;;  %940 = vmatprep.subr.bf16.mxu1 %v1442_v12  ;;  %v1471_v31 = vld [vmem:[%s2187_s1 + $0x270] ss:$8 sps:$4 sm:$0xff]   ;;  %v1474_v33 = vld [vmem:[%s2187_s1 + $0x284] ss:$8 sps:$4 sm:$0xff]   ;;  %v1477_v35 = vld [vmem:[%s2187_s1 + $0x280] ss:$8 sps:$4 sm:$0xff]  }
   0xd   :  { %1022 = vmatprep.subr.bf16.mxu0 %v1444_v13  ;;  %v1478_v36 = vld [vmem:[%s2187_s1 + $0x94] ss:$8 sps:$4 sm:$0xff]   ;;  %v1482_v38 = vld [vmem:[%s2187_s1 + $0x90] ss:$8 sps:$4 sm:$0xff]   ;;  %v1484_v40 = vld [vmem:[%s2187_s1 + $0xa4] ss:$8 sps:$4 sm:$0xff]  }
   0xe   :  { %v1480_v37 = vld [vmem:[%s2187_s1 + $0x294] ss:$8 sps:$4 sm:$0xff]   ;;  %v1483_v39 = vld [vmem:[%s2187_s1 + $0x290] ss:$8 sps:$4 sm:$0xff]   ;;  %v1486_v41 = vld [vmem:[%s2187_s1 + $0x2a4] ss:$8 sps:$4 sm:$0xff]  }
   0xf   :  { %941 = vmatpush1.bf16.msra.mxu1 %v1446_v14  ;;  %v1488_v42 = vld [vmem:[%s2187_s1 + $0xa0] ss:$8 sps:$4 sm:$0xff]   ;;  %v1490_v44 = vld [vmem:[%s2187_s1 + $0xb4] ss:$8 sps:$4 sm:$0xff]   ;;  %v1494_v47 = vld [vmem:[%s2187_s1 + $0xb0] ss:$8 sps:$4 sm:$0xff]  }
  0x10   :  { %1023 = vmatpush1.bf16.msra.mxu0 %v1447_v15  ;;  %942 = vmatprep.subr.bf16.mxu1 %v1448_v16  ;;  %v1489_v43 = vld [vmem:[%s2187_s1 + $0x2a0] ss:$8 sps:$4 sm:$0xff]   ;;  %v1492_v45 = vld [vmem:[%s2187_s1 + $0x2b4] ss:$8 sps:$4 sm:$0xff]   ;;  %v1495_v49 = vld [vmem:[%s2187_s1 + $0x2b0] ss:$8 sps:$4 sm:$0xff]  }
  0x11   :  { %1024 = vmatprep.subr.bf16.mxu0 %v1450_v17  ;;  %v21_v46 = vld [vmem:[%s2188_s0] sm:$0xff]  ;;  %v23_v50 = vld [vmem:[%s2188_s0 + $0x10] sm:$0xff] }
  0x12   :  { %v1252_v48 = vcombine.high %v21_v46, %v21_v46  ;;  %v1496_v51 = vld [vmem:[%s2187_s1 + $0xc4] ss:$8 sps:$4 sm:$0xff]   ;;  %v1256_v53 = vcombine.high %v23_v50, %v23_v50  ;;  %v1500_v54 = vld [vmem:[%s2187_s1 + $0xc0] ss:$8 sps:$4 sm:$0xff]   ;;  %v1502_v56 = vld [vmem:[%s2187_s1 + $0xd4] ss:$8 sps:$4 sm:$0xff]   ;;  %v1251_v6 = vcombine.low %v21_v46, %v21_v46  ;;  %v1255_v7 = vcombine.low %v23_v50, %v23_v50 }
  0x13   :  { %943 = vmatpush1.bf16.msra.mxu1 %v1452_v18  ;;  %v1498_v52 = vld [vmem:[%s2187_s1 + $0x2c4] ss:$8 sps:$4 sm:$0xff]   ;;  %v1501_v55 = vld [vmem:[%s2187_s1 + $0x2c0] ss:$8 sps:$4 sm:$0xff]   ;;  %v1504_v57 = vld [vmem:[%s2187_s1 + $0x2d4] ss:$8 sps:$4 sm:$0xff]  }
  0x14   :  { %1025 = vmatpush1.bf16.msra.mxu0 %v1453_v19  ;;  %944 = vmatprep.subr.bf16.mxu1 %v1454_v20  ;;  %v1506_v58 = vld [vmem:[%s2187_s1 + $0xd0] ss:$8 sps:$4 sm:$0xff]   ;;  %v1508_v60 = vld [vmem:[%s2187_s1 + $0xe4] ss:$8 sps:$4 sm:$0xff]   ;;  %v1512_v62 = vld [vmem:[%s2187_s1 + $0xe0] ss:$8 sps:$4 sm:$0xff]  }
  0x15   :  { %1026 = vmatprep.subr.bf16.mxu0 %v1456_v21  ;;  %966 = vmatprep.mubr.bf16.mxu1 %v1252_v48  ;;  %v1507_v59 = vld [vmem:[%s2187_s1 + $0x2d0] ss:$8 sps:$4 sm:$0xff]   ;;  %v1510_v61 = vld [vmem:[%s2187_s1 + $0x2e4] ss:$8 sps:$4 sm:$0xff]   ;;  %v1513_v63 = vld [vmem:[%s2187_s1 + $0x2e0] ss:$8 sps:$4 sm:$0xff]  }
  0x16   :  { %1048 = vmatprep.mubr.bf16.mxu0 %v1256_v53  ;;  %v1514_v0 = vld [vmem:[%s2187_s1 + $0xf4] ss:$8 sps:$4 sm:$0xff]   ;;  %v1518_v2 = vld [vmem:[%s2187_s1 + $0xf0] ss:$8 sps:$4 sm:$0xff]   ;;  %v1524_v4 = vld [vmem:[%s2187_s1 + $0x104] ss:$8 sps:$4 sm:$0xff]  }
  0x17   :  { %945 = vmatpush1.bf16.msra.mxu1 %v1458_v22  ;;  %v1516_v1 = vld [vmem:[%s2187_s1 + $0x2f4] ss:$8 sps:$4 sm:$0xff]   ;;  %v1519_v3 = vld [vmem:[%s2187_s1 + $0x2f0] ss:$8 sps:$4 sm:$0xff]   ;;  %v1529_v5 = vld [vmem:[%s2187_s1 + $0x304] ss:$8 sps:$4 sm:$0xff]  }
  0x18   :  { %1027 = vmatpush1.bf16.msra.mxu0 %v1459_v23  ;;  %946 = vmatprep.subr.bf16.mxu1 %v1460_v24  ;;  %v1522_v8 = vld [vmem:[%s2187_s1 + $0x100] ss:$8 sps:$4 sm:$0xff]   ;;  %v1532_v10 = vld [vmem:[%s2187_s1 + $0x114] ss:$8 sps:$4 sm:$0xff]   ;;  %v1530_v12 = vld [vmem:[%s2187_s1 + $0x110] ss:$8 sps:$4 sm:$0xff]  }
  0x19   :  { %1028 = vmatprep.subr.bf16.mxu0 %v1462_v25  ;;  %v1527_v9 = vld [vmem:[%s2187_s1 + $0x300] ss:$8 sps:$4 sm:$0xff]   ;;  %v1535_v11 = vld [vmem:[%s2187_s1 + $0x314] ss:$8 sps:$4 sm:$0xff]   ;;  %v1533_v13 = vld [vmem:[%s2187_s1 + $0x310] ss:$8 sps:$4 sm:$0xff]  }
  0x1a   :  { %v1538_v14 = vld [vmem:[%s2187_s1 + $0x124] ss:$8 sps:$4 sm:$0xff]   ;;  %v1536_v16 = vld [vmem:[%s2187_s1 + $0x120] ss:$8 sps:$4 sm:$0xff]   ;;  %v1544_v18 = vld [vmem:[%s2187_s1 + $0x134] ss:$8 sps:$4 sm:$0xff]  }
  0x1b   :  { %947 = vmatpush1.bf16.msra.mxu1 %v1464_v26  ;;  %v1541_v15 = vld [vmem:[%s2187_s1 + $0x324] ss:$8 sps:$4 sm:$0xff]   ;;  %v1539_v17 = vld [vmem:[%s2187_s1 + $0x320] ss:$8 sps:$4 sm:$0xff]   ;;  %v1547_v19 = vld [vmem:[%s2187_s1 + $0x334] ss:$8 sps:$4 sm:$0xff]  }
  0x1c   :  { %1029 = vmatpush1.bf16.msra.mxu0 %v1465_v27  ;;  %948 = vmatprep.subr.bf16.mxu1 %v1466_v28  ;;  %v1542_v20 = vld [vmem:[%s2187_s1 + $0x130] ss:$8 sps:$4 sm:$0xff]   ;;  %v1550_v22 = vld [vmem:[%s2187_s1 + $0x144] ss:$8 sps:$4 sm:$0xff]   ;;  %v1548_v24 = vld [vmem:[%s2187_s1 + $0x140] ss:$8 sps:$4 sm:$0xff]  }
  0x1d   :  { %1030 = vmatprep.subr.bf16.mxu0 %v1468_v29  ;;  %v1545_v21 = vld [vmem:[%s2187_s1 + $0x330] ss:$8 sps:$4 sm:$0xff]   ;;  %v1553_v23 = vld [vmem:[%s2187_s1 + $0x344] ss:$8 sps:$4 sm:$0xff]   ;;  %v1551_v25 = vld [vmem:[%s2187_s1 + $0x340] ss:$8 sps:$4 sm:$0xff]  }
  0x1e   :  { %v1556_v26 = vld [vmem:[%s2187_s1 + $0x154] ss:$8 sps:$4 sm:$0xff]   ;;  %v1554_v28 = vld [vmem:[%s2187_s1 + $0x150] ss:$8 sps:$4 sm:$0xff]   ;;  %v1586_v50 = vld [vmem:[%s2187_s1 + $0x1a4] ss:$8 sps:$4 sm:$0xff]  }
  0x1f   :  { %949 = vmatpush1.bf16.msra.mxu1 %v1470_v30  ;;  %v1559_v27 = vld [vmem:[%s2187_s1 + $0x354] ss:$8 sps:$4 sm:$0xff]   ;;  %v1557_v29 = vld [vmem:[%s2187_s1 + $0x350] ss:$8 sps:$4 sm:$0xff]   ;;  %v1562_v30 = vld [vmem:[%s2187_s1 + $0x164] ss:$8 sps:$4 sm:$0xff]  }
  0x20   :  { %1031 = vmatpush1.bf16.msra.mxu0 %v1471_v31  ;;  %950 = vmatprep.subr.bf16.mxu1 %v1472_v32  ;;  %v1565_v31 = vld [vmem:[%s2187_s1 + $0x364] ss:$8 sps:$4 sm:$0xff]   ;;  %v1580_v46 = vld [vmem:[%s2187_s1 + $0x194] ss:$8 sps:$4 sm:$0xff]   ;;  %v1578_v48 = vld [vmem:[%s2187_s1 + $0x190] ss:$8 sps:$4 sm:$0xff]  }
  0x21   :  { %1032 = vmatprep.subr.bf16.mxu0 %v1474_v33  ;;  %v1964_v32 = vld [vmem:[%s2188_s0 + $0x8] sm:$0xff]  ;;  %v1969_v33 = vld [vmem:[%s2188_s0 + $0x18] sm:$0xff] }
  0x22   :  { %v1587_v53 = vld [vmem:[%s2187_s1 + $0x3a0] ss:$8 sps:$4 sm:$0xff]  }
  0x23   :  { %951 = vmatpush1.bf16.msra.mxu1 %v1476_v34  ;;  %v1560_v34 = vld [vmem:[%s2187_s1 + $0x160] ss:$8 sps:$4 sm:$0xff]  }
  0x24   :  { %1033 = vmatpush1.bf16.msra.mxu0 %v1477_v35  ;;  %952 = vmatprep.subr.bf16.mxu1 %v1478_v36  ;;  %v1563_v35 = vld [vmem:[%s2187_s1 + $0x360] ss:$8 sps:$4 sm:$0xff]   ;;  %v1254_v36 = vcombine.high %v1964_v32, %v1964_v32 }
  0x25   :  { %1034 = vmatprep.subr.bf16.mxu0 %v1480_v37  ;;  %v1258_v37 = vcombine.high %v1969_v33, %v1969_v33 }
  0x27   :  { %953 = vmatpush1.bf16.msra.mxu1 %v1482_v38  ;;  %v1568_v38 = vld [vmem:[%s2187_s1 + $0x174] ss:$8 sps:$4 sm:$0xff]  }
  0x28   :  { %1035 = vmatpush1.bf16.msra.mxu0 %v1483_v39  ;;  %954 = vmatprep.subr.bf16.mxu1 %v1484_v40  ;;  %v1571_v39 = vld [vmem:[%s2187_s1 + $0x374] ss:$8 sps:$4 sm:$0xff]   ;;  %v1566_v40 = vld [vmem:[%s2187_s1 + $0x170] ss:$8 sps:$4 sm:$0xff]  }
  0x29   :  { %1036 = vmatprep.subr.bf16.mxu0 %v1486_v41  ;;  %v1569_v41 = vld [vmem:[%s2187_s1 + $0x370] ss:$8 sps:$4 sm:$0xff]  }
  0x2b   :  { %955 = vmatpush1.bf16.msra.mxu1 %v1488_v42  ;;  %v1574_v42 = vld [vmem:[%s2187_s1 + $0x184] ss:$8 sps:$4 sm:$0xff]  }
  0x2c   :  { %1037 = vmatpush1.bf16.msra.mxu0 %v1489_v43  ;;  %956 = vmatprep.subr.bf16.mxu1 %v1490_v44  ;;  %v1577_v43 = vld [vmem:[%s2187_s1 + $0x384] ss:$8 sps:$4 sm:$0xff]   ;;  %v1572_v44 = vld [vmem:[%s2187_s1 + $0x180] ss:$8 sps:$4 sm:$0xff]  }
  0x2d   :  { %1038 = vmatprep.subr.bf16.mxu0 %v1492_v45  ;;  %v1575_v45 = vld [vmem:[%s2187_s1 + $0x380] ss:$8 sps:$4 sm:$0xff]  }
  0x2f   :  { %957 = vmatpush1.bf16.msra.mxu1 %v1494_v47  ;;  %v1583_v47 = vld [vmem:[%s2187_s1 + $0x394] ss:$8 sps:$4 sm:$0xff]  }
  0x30   :  { %1039 = vmatpush1.bf16.msra.mxu0 %v1495_v49  ;;  %958 = vmatprep.subr.bf16.mxu1 %v1496_v51  ;;  %v1581_v49 = vld [vmem:[%s2187_s1 + $0x390] ss:$8 sps:$4 sm:$0xff]   ;;  %v1589_v51 = vld [vmem:[%s2187_s1 + $0x3a4] ss:$8 sps:$4 sm:$0xff]  }
  0x31   :  { %1040 = vmatprep.subr.bf16.mxu0 %v1498_v52  ;;  %v1584_v52 = vld [vmem:[%s2187_s1 + $0x1a0] ss:$8 sps:$4 sm:$0xff]  }
  0x33   :  { %959 = vmatpush1.bf16.msra.mxu1 %v1500_v54  ;;  %v1592_v54 = vld [vmem:[%s2187_s1 + $0x1b4] ss:$8 sps:$4 sm:$0xff]  }
  0x34   :  { %1041 = vmatpush1.bf16.msra.mxu0 %v1501_v55  ;;  %960 = vmatprep.subr.bf16.mxu1 %v1502_v56  ;;  %v1595_v55 = vld [vmem:[%s2187_s1 + $0x3b4] ss:$8 sps:$4 sm:$0xff]   ;;  %v1590_v56 = vld [vmem:[%s2187_s1 + $0x1b0] ss:$8 sps:$4 sm:$0xff]  }
  0x35   :  { %1042 = vmatprep.subr.bf16.mxu0 %v1504_v57  ;;  %v1593_v57 = vld [vmem:[%s2187_s1 + $0x3b0] ss:$8 sps:$4 sm:$0xff]  }
  0x37   :  { %961 = vmatpush1.bf16.msra.mxu1 %v1506_v58  ;;  %v1598_v58 = vld [vmem:[%s2187_s1 + $0x1c4] ss:$8 sps:$4 sm:$0xff]  }
  0x38   :  { %1043 = vmatpush1.bf16.msra.mxu0 %v1507_v59  ;;  %962 = vmatprep.subr.bf16.mxu1 %v1508_v60  ;;  %v1601_v59 = vld [vmem:[%s2187_s1 + $0x3c4] ss:$8 sps:$4 sm:$0xff]   ;;  %v1596_v60 = vld [vmem:[%s2187_s1 + $0x1c0] ss:$8 sps:$4 sm:$0xff]  }
  0x39   :  { %1044 = vmatprep.subr.bf16.mxu0 %v1510_v61  ;;  %v1599_v61 = vld [vmem:[%s2187_s1 + $0x3c0] ss:$8 sps:$4 sm:$0xff]  }
  0x3b   :  { %963 = vmatpush1.bf16.msra.mxu1 %v1512_v62  ;;  %v1604_v62 = vld [vmem:[%s2187_s1 + $0x1d4] ss:$8 sps:$4 sm:$0xff]  }
  0x3c   :  { %1045 = vmatpush1.bf16.msra.mxu0 %v1513_v63  ;;  %964 = vmatprep.subr.bf16.mxu1 %v1514_v0  ;;  %v1607_v63 = vld [vmem:[%s2187_s1 + $0x3d4] ss:$8 sps:$4 sm:$0xff]   ;;  %v1602_v0 = vld [vmem:[%s2187_s1 + $0x1d0] ss:$8 sps:$4 sm:$0xff]  }
  0x3d   :  { %1046 = vmatprep.subr.bf16.mxu0 %v1516_v1  ;;  %v1605_v1 = vld [vmem:[%s2187_s1 + $0x3d0] ss:$8 sps:$4 sm:$0xff]  }
  0x3f   :  { %965 = vmatpush1.bf16.msra.mxu1 %v1518_v2  ;;  %v1610_v2 = vld [vmem:[%s2187_s1 + $0x1e4] ss:$8 sps:$4 sm:$0xff]  }
  0x40   :  { %1047 = vmatpush1.bf16.msra.mxu0 %v1519_v3  ;;  %975 = vmatprep.subr.bf16.mxu1 %v1524_v4  ;;  %v1613_v3 = vld [vmem:[%s2187_s1 + $0x3e4] ss:$8 sps:$4 sm:$0xff]   ;;  %v1608_v4 = vld [vmem:[%s2187_s1 + $0x1e0] ss:$8 sps:$4 sm:$0xff]  }
  0x41   :  { %1057 = vmatprep.subr.bf16.mxu0 %v1529_v5  ;;  %v1611_v5 = vld [vmem:[%s2187_s1 + $0x3e0] ss:$8 sps:$4 sm:$0xff]  }
  0x42   :  { %967 = vmatmul.mubr.bf16.vlgmr.msra.gmra.mrb[0].mxu1 %v1251_v6  ;;  %v1616_v6 = vld [vmem:[%s2187_s1 + $0x1f4] ss:$8 sps:$4 sm:$0xff]  }
  0x43   :  { %1049 = vmatmul.mubr.bf16.vlgmr.msra.gmra.mrb[0].mxu0 %v1255_v7  ;;  %976 = vmatpush1.bf16.msra.mxu1 %v1522_v8  ;;  %v1619_v7 = vld [vmem:[%s2187_s1 + $0x3f4] ss:$8 sps:$4 sm:$0xff]   ;;  %v1614_v8 = vld [vmem:[%s2187_s1 + $0x1f0] ss:$8 sps:$4 sm:$0xff]  }
  0x44   :  { %1058 = vmatpush1.bf16.msra.mxu0 %v1527_v9  ;;  %977 = vmatprep.subr.bf16.mxu1 %v1532_v10  ;;  %v1617_v9 = vld [vmem:[%s2187_s1 + $0x3f0] ss:$8 sps:$4 sm:$0xff]   ;;  %v1626_v10 = vld [vmem:[%s2187_s1 + $0x404] ss:$8 sps:$4 sm:$0xff]  }
  0x45   :  { %1059 = vmatprep.subr.bf16.mxu0 %v1535_v11  ;;  %1007 = vmatprep.mubr.bf16.mxu1 %v1254_v36  ;;  %v1253_v11 = vcombine.low %v1964_v32, %v1964_v32 }
  0x46   :  { %1089 = vmatprep.mubr.bf16.mxu0 %v1258_v37  ;;  %v170_v37 = vld [vmem:[%s2189_s2] sm:$0x3] }
  0x47   :  { %978 = vmatpush1.bf16.msra.mxu1 %v1530_v12  ;;  %v1257_v12 = vcombine.low %v1969_v33, %v1969_v33 }
  0x48   :  { %1060 = vmatpush1.bf16.msra.mxu0 %v1533_v13  ;;  %979 = vmatprep.subr.bf16.mxu1 %v1538_v14  ;;  %v1624_v13 = vld [vmem:[%s2187_s1 + $0x400] ss:$8 sps:$4 sm:$0xff]   ;;  %v1629_v14 = vld [vmem:[%s2187_s1 + $0x414] ss:$8 sps:$4 sm:$0xff]  }
  0x49   :  { %1061 = vmatprep.subr.bf16.mxu0 %v1541_v15  ;;  %v1627_v15 = vld [vmem:[%s2187_s1 + $0x410] ss:$8 sps:$4 sm:$0xff]  }
  0x4b   :  { %980 = vmatpush1.bf16.msra.mxu1 %v1536_v16  ;;  %v1653_v16 = vmov 0  }
  0x4c   :  { %1062 = vmatpush1.bf16.msra.mxu0 %v1539_v17  ;;  %981 = vmatprep.subr.bf16.mxu1 %v1544_v18  ;;  %v1632_v17 = vld [vmem:[%s2187_s1 + $0x424] ss:$8 sps:$4 sm:$0xff]   ;;  %v1630_v18 = vld [vmem:[%s2187_s1 + $0x420] ss:$8 sps:$4 sm:$0xff]  }
  0x4d   :  { %1063 = vmatprep.subr.bf16.mxu0 %v1547_v19  ;;  %v1635_v19 = vld [vmem:[%s2187_s1 + $0x434] ss:$8 sps:$4 sm:$0xff]  }
  0x4f   :  { %982 = vmatpush1.bf16.msra.mxu1 %v1542_v20  ;;  %v1633_v20 = vld [vmem:[%s2187_s1 + $0x430] ss:$8 sps:$4 sm:$0xff]  }
  0x50   :  { %1064 = vmatpush1.bf16.msra.mxu0 %v1545_v21  ;;  %983 = vmatprep.subr.bf16.mxu1 %v1550_v22  ;;  %v1638_v21 = vld [vmem:[%s2187_s1 + $0x444] ss:$8 sps:$4 sm:$0xff]   ;;  %v1636_v22 = vld [vmem:[%s2187_s1 + $0x440] ss:$8 sps:$4 sm:$0xff]  }
  0x51   :  { %1065 = vmatprep.subr.bf16.mxu0 %v1553_v23  ;;  %v1641_v23 = vld [vmem:[%s2187_s1 + $0x454] ss:$8 sps:$4 sm:$0xff]  }
  0x53   :  { %984 = vmatpush1.bf16.msra.mxu1 %v1548_v24  ;;  %v1639_v24 = vld [vmem:[%s2187_s1 + $0x450] ss:$8 sps:$4 sm:$0xff]  }
  0x54   :  { %1066 = vmatpush1.bf16.msra.mxu0 %v1551_v25  ;;  %985 = vmatprep.subr.bf16.mxu1 %v1556_v26  ;;  %v1644_v25 = vld [vmem:[%s2187_s1 + $0x464] ss:$8 sps:$4 sm:$0xff]   ;;  %v1642_v26 = vld [vmem:[%s2187_s1 + $0x460] ss:$8 sps:$4 sm:$0xff]  }
  0x55   :  { %1067 = vmatprep.subr.bf16.mxu0 %v1559_v27  ;;  %v1647_v27 = vld [vmem:[%s2187_s1 + $0x474] ss:$8 sps:$4 sm:$0xff]  }
  0x57   :  { %986 = vmatpush1.bf16.msra.mxu1 %v1554_v28  ;;  %v1645_v28 = vld [vmem:[%s2187_s1 + $0x470] ss:$8 sps:$4 sm:$0xff]  }
  0x58   :  { %1068 = vmatpush1.bf16.msra.mxu0 %v1557_v29  ;;  %987 = vmatprep.subr.bf16.mxu1 %v1562_v30  ;;  %v1648_v29 = vld [vmem:[%s2188_s0 + $0x20] ss:$0 sps:$4 sm:$0xff]  }
  0x59   :  { %1069 = vmatprep.subr.bf16.mxu0 %v1565_v31 }
  0x5b   :  { %988 = vmatpush1.bf16.msra.mxu1 %v1560_v34  ;;  %v172_v34 = vlaneseq }
  0x5c   :  { %1070 = vmatpush1.bf16.msra.mxu0 %v1563_v35  ;;  %989 = vmatprep.subr.bf16.mxu1 %v1568_v38 }
  0x5d   :  { %1071 = vmatprep.subr.bf16.mxu0 %v1571_v39  ;;  %v2144_v35 = vshrl.u32 %v172_v34, 7 }
  0x5f   :  { %990 = vmatpush1.bf16.msra.mxu1 %v1566_v40  ;;  %v2147_v36 = vsub.s32 0, %v2144_v35  ;;  %v2153_v38 = vsub.s32 1, %v2144_v35 }
  0x60   :  { %1072 = vmatpush1.bf16.msra.mxu0 %v1569_v41  ;;  %991 = vmatprep.subr.bf16.mxu1 %v1574_v42 }
  0x61   :  { %1073 = vmatprep.subr.bf16.mxu0 %v1577_v43  ;;  %v175_v39 = vrot.slane %v170_v37, %v2147_v36  ;;  %v179_v40 = vrot.slane %v170_v37, %v2153_v38 }
  0x63   :  { %992 = vmatpush1.bf16.msra.mxu1 %v1572_v44 }
  0x64   :  { %1074 = vmatpush1.bf16.msra.mxu0 %v1575_v45  ;;  %993 = vmatprep.subr.bf16.mxu1 %v1580_v46 }
  0x65   :  { %1075 = vmatprep.subr.bf16.mxu0 %v1583_v47 }
  0x67   :  { %994 = vmatpush1.bf16.msra.mxu1 %v1578_v48 }
  0x68   :  { %1076 = vmatpush1.bf16.msra.mxu0 %v1581_v49  ;;  %995 = vmatprep.subr.bf16.mxu1 %v1586_v50 }
  0x69   :  { %1077 = vmatprep.subr.bf16.mxu0 %v1589_v51 }
  0x6b   :  { %996 = vmatpush1.bf16.msra.mxu1 %v1584_v52 }
  0x6c   :  { %1078 = vmatpush1.bf16.msra.mxu0 %v1587_v53  ;;  %997 = vmatprep.subr.bf16.mxu1 %v1592_v54 }
  0x6d   :  { %1079 = vmatprep.subr.bf16.mxu0 %v1595_v55 }
  0x6f   :  { %998 = vmatpush1.bf16.msra.mxu1 %v1590_v56 }
  0x70   :  { %1080 = vmatpush1.bf16.msra.mxu0 %v1593_v57  ;;  %999 = vmatprep.subr.bf16.mxu1 %v1598_v58 }
  0x71   :  { %1081 = vmatprep.subr.bf16.mxu0 %v1601_v59 }
  0x73   :  { %1000 = vmatpush1.bf16.msra.mxu1 %v1596_v60 }
  0x74   :  { %1082 = vmatpush1.bf16.msra.mxu0 %v1599_v61  ;;  %1001 = vmatprep.subr.bf16.mxu1 %v1604_v62 }
  0x75   :  { %1083 = vmatprep.subr.bf16.mxu0 %v1607_v63 }
  0x77   :  { %1002 = vmatpush1.bf16.msra.mxu1 %v1602_v0 }
  0x78   :  { %1084 = vmatpush1.bf16.msra.mxu0 %v1605_v1  ;;  %1003 = vmatprep.subr.bf16.mxu1 %v1610_v2 }
  0x79   :  { %1085 = vmatprep.subr.bf16.mxu0 %v1613_v3 }
  0x7b   :  { %1004 = vmatpush1.bf16.msra.mxu1 %v1608_v4 }
  0x7c   :  { %1086 = vmatpush1.bf16.msra.mxu0 %v1611_v5  ;;  %1005 = vmatprep.subr.bf16.mxu1 %v1616_v6 }
  0x7d   :  { %1087 = vmatprep.subr.bf16.mxu0 %v1619_v7 }
  0x7f   :  { %1006 = vmatpush1.bf16.msra.mxu1 %v1614_v8 }
  0x80   :  { %1088 = vmatpush1.bf16.msra.mxu0 %v1617_v9 }
  0x81   :  { %1098 = vmatprep.subr.bf16.mxu0 %v1626_v10 }
  0x82   :  { %1008 = vmatmul.mubr.bf16.vlgmr.msra.gmra.mrb[0].mxu1 %v1253_v11 }
  0x83   :  { %1090 = vmatmul.mubr.bf16.vlgmr.msra.gmra.mrb[0].mxu0 %v1257_v12 }
  0x84   :  { %1099 = vmatpush1.bf16.msra.mxu0 %v1624_v13  ;;  %1130 = vmatprep.mubr.bf16.mxu0 %v1653_v16 }
  0x85   :  { %1100 = vmatprep.subr.bf16.mxu0 %v1629_v14 }
  0x88   :  { %1101 = vmatpush1.bf16.msra.mxu0 %v1627_v15 }
  0x89   :  { %1102 = vmatprep.subr.bf16.mxu0 %v1632_v17 }
  0x8c   :  { %1103 = vmatpush1.bf16.msra.mxu0 %v1630_v18 }
  0x8d   :  { %1104 = vmatprep.subr.bf16.mxu0 %v1635_v19 }
  0x90   :  { %1105 = vmatpush1.bf16.msra.mxu0 %v1633_v20 }
  0x91   :  { %1106 = vmatprep.subr.bf16.mxu0 %v1638_v21  ;;  %v1177_v21 = vld [vmem:[%s2190_s3] sm:$0x3] }
  0x94   :  { %1107 = vmatpush1.bf16.msra.mxu0 %v1636_v22  ;;  %v1654_v22 = vmov 1966171168  }
  0x95   :  { %1108 = vmatprep.subr.bf16.mxu0 %v1641_v23  ;;  %v1198_v23 = vunpack.c.l.s4 %v1654_v22 }
  0x98   :  { %1109 = vmatpush1.bf16.msra.mxu0 %v1639_v24  ;;  %v1182_v24 = vrot.slane %v1177_v21, %v2147_v36 }
  0x99   :  { %1110 = vmatprep.subr.bf16.mxu0 %v1644_v25  ;;  %v1186_v25 = vrot.slane %v1177_v21, %v2153_v38 }
  0x9c   :  { %1111 = vmatpush1.bf16.msra.mxu0 %v1642_v26 }
  0x9d   :  { %1112 = vmatprep.subr.bf16.mxu0 %v1647_v27  ;;  %v1199_v27 = vunpack.c.0.s8 %v1198_v23 }
  0xa0   :  { %1113 = vmatpush1.bf16.msra.mxu0 %v1645_v28 }
  0xa3   :  { %1131 = vmatmul.mubr.bf16.vlgmr.msra.gmra.mrb[0].mxu0 %v1648_v29 }
 0x155   :  { %v1009_v30 = vpop.f32.mrb[0].mxu1 }
 0x156   :  { %v1011_v31 = vpop.f32.mrb[1].mxu1  ;;  %v1406_v41 = vadd.f32 %v1009_v30, %v175_v39  ;;  %v1191_v39 = vld [vmem:[%s2191_s4] sm:$0x3] }
 0x157   :  { %v1013_v32 = vpop.f32.mrb[2].mxu1  ;;  %v1408_v42 = vadd.f32 %v1011_v31, %v179_v40 }
 0x158   :  { %v1014_v33 = vpop.f32.mrb[3].mxu1 }
 0x159   :  { %v1202_v33 = vsub.s32 %v1199_v27, %v2144_v35 }
 0x176   :  { %v1132_v43 = vpop.f32.mrb[0].mxu0 }
 0x177   :  { %v2157_v44 = vadd.f32 %v1406_v41, %v1132_v43  ;;  %v1134_v45 = vpop.f32.mrb[1].mxu0 }
 0x178   :  { %v2159_v46 = vadd.f32 %v1408_v42, %v1134_v45  ;;  %v1136_v47 = vpop.f32.mrb[2].mxu0 }
 0x179   :  { %v1139_v48 = vrot.slane %v2157_v44, 4  ;;  %v1151_v49 = vmul.f32 %v2157_v44, %v2157_v44  ;;  %v1137_v50 = vpop.f32.mrb[3].mxu0 }
 0x17a   :  { %v1145_v51 = vrot.slane %v2159_v46, 4  ;;  %v1152_v52 = vmul.f32 %v2159_v46, %v2159_v46 }
 0x17b   :  { %v1140_v53 = vadd.f32 %v2157_v44, %v1139_v48  ;;  %v1153_v54 = vrot.slane %v1151_v49, 4 }
 0x17c   :  { %v1146_v55 = vadd.f32 %v2159_v46, %v1145_v51  ;;  %v1159_v56 = vrot.slane %v1152_v52, 4 }
 0x17d   :  { %v1141_v57 = vrot.slane %v1140_v53, 2  ;;  %v1154_v58 = vadd.f32 %v1153_v54, %v1151_v49 }
 0x17e   :  { %v1147_v59 = vrot.slane %v1146_v55, 2  ;;  %v1160_v60 = vadd.f32 %v1159_v56, %v1152_v52 }
 0x17f   :  { %v1142_v61 = vadd.f32 %v1141_v57, %v1140_v53  ;;  %v1155_v62 = vrot.slane %v1154_v58, 2 }
 0x180   :  { %v1148_v63 = vadd.f32 %v1147_v59, %v1146_v55  ;;  %v1161_v0 = vrot.slane %v1160_v60, 2 }
 0x181   :  { %v1143_v1 = vrot.slane %v1142_v61, 1  ;;  %v1156_v2 = vadd.f32 %v1155_v62, %v1154_v58 }
 0x182   :  { %v1149_v3 = vrot.slane %v1148_v63, 1  ;;  %v1162_v4 = vadd.f32 %v1161_v0, %v1160_v60 }
 0x183   :  { %v1144_v5 = vadd.f32 %v1143_v1, %v1142_v61  ;;  %v1157_v6 = vrot.slane %v1156_v2, 1 }
 0x184   :  { %v1150_v7 = vadd.f32 %v1149_v3, %v1148_v63  ;;  %v1163_v8 = vrot.slane %v1162_v4, 1 }
 0x185   :  { %v1158_v9 = vadd.f32 %v1157_v6, %v1156_v2  ;;  %v1165_v10 = vmul.f32 0.125, %v1144_v5 }
 0x186   :  { %v1164_v11 = vadd.f32 %v1163_v8, %v1162_v4  ;;  %v1166_v12 = vmul.f32 0.125, %v1150_v7 }
 0x187   :  { %v1167_v13 = vmul.f32 0.125, %v1158_v9  ;;  %v1169_v14 = vmul.f32 %v1165_v10, %v1165_v10 }
 0x188   :  { %v1168_v15 = vmul.f32 0.125, %v1164_v11  ;;  %v1170_v16 = vmul.f32 %v1166_v12, %v1166_v12 }
 0x189   :  { %v1171_v17 = vsub.f32 %v1167_v13, %v1169_v14 }
 0x18a   :  { %v1172_v18 = vsub.f32 %v1168_v15, %v1170_v16 }
 0x18b   :  { %v1173_v19 = vadd.f32 1e-05, %v1171_v17 }
 0x18c   :  { %v1174_v20 = vadd.f32 1e-05, %v1172_v18 }
 0x18d   :  { %1649 = vrsqrt.f32 %v1173_v19 }
 0x18e   :  { %1651 = vrsqrt.f32 %v1174_v20 }
 0x197   :  { %v1650_v26 = vpop.eup %1649 }
 0x198   :  { %v1652_v28 = vpop.eup %1651  ;;  %v1189_v29 = vmul.f32 %v1650_v26, %v1182_v24 }
 0x199   :  { %v1190_v30 = vmul.f32 %v1652_v28, %v1186_v25 }
 0x19a   :  { %v1192_v31 = vmul.f32 %v1189_v29, %v1165_v10  ;;  %v1216_v40 = vrot.slane %v1189_v29, %v2147_v36 }
 0x19b   :  { %v1193_v32 = vmul.f32 %v1190_v30, %v1166_v12  ;;  %v1220_v42 = vrot.slane %v1190_v30, %v2147_v36 }
 0x19c   :  { %v1221_v45 = vmul.f32 %v2157_v44, %v1216_v40 }
 0x19d   :  { %v1196_v34 = vcombine.low %v1192_v31, %v1193_v32  ;;  %v1222_v47 = vmul.f32 %v2159_v46, %v1220_v42 }
 0x19f   :  { %v1203_v37 = vrot.slane %v1196_v34, %v1202_v33 }
 0x1a1   :  { %v1210_v41 = vrot.slane %v1203_v37, %v1202_v33 }
 0x1a3   :  { %v1212_v43 = vsub.f32 %v1191_v39, %v1210_v41 }
 0x1a5   :  { %v1227_v48 = vrot.slane %v1212_v43, %v2147_v36  ;;  %v1231_v35 = vrot.slane %v1212_v43, %v2153_v38 }
 0x1a7   :  { %v1234_v49 = vadd.f32 %v1227_v48, %v1221_v45  ;;  %v1235_v50 = vadd.f32 %v1231_v35, %v1222_v47 }
 0x1a9   :  { %v1236_v51 = vmax.f32 %v1234_v49, 0.0  ;;  %v1237_v52 = vmax.f32 %v1235_v50, 0.0 }
 0x1ab   :  { %v1405_v53 = vpack.c.bf16 %v1237_v52, %v1236_v51 }
 0x1ad   :  { %1246 = vst [vmem:[%s2192_s5] sm:$0xff] %v1405_v53 }

// kernel: vae_forward.15
= control target key start
LH: loop header
LB: loop body
LE: loop exit
PB: predicated region body
PF: predicated region fallthrough
CT: control target
= control target key end

     0   :  { %s3615_s1 = inlined_call_operand.vmem [shape: bf16[1024,512], index: 1, kind: input, shape index: {}]   ;;  %s3616_s0 = inlined_call_operand.vmem [shape: bf16[8,1024], index: 0, kind: input, shape index: {}]   ;;  %s3617_s2 = inlined_call_operand.vmem [shape: f32[1,512], index: 2, kind: input, shape index: {}]   ;;  %s3618_s3 = inlined_call_operand.vmem [shape: f32[1,128], index: 3, kind: input, shape index: {}]   ;;  %s3619_s4 = inlined_call_operand.vmem [shape: f32[1,128], index: 4, kind: input, shape index: {}]   ;;  %s3620_s5 = inlined_call_operand.vmem [shape: bf16[8,512], index: 5, kind: output, shape index: {}]  }
   0x1   :  { %v2345_v0 = vld [vmem:[%s3615_s1 + $0x4] ss:$16 sps:$4 sm:$0xff]   ;;  %v2347_v1 = vld [vmem:[%s3615_s1 + $0xc] ss:$16 sps:$4 sm:$0xff]   ;;  %v2349_v2 = vld [vmem:[%s3615_s1] ss:$16 sps:$4 sm:$0xff]  }
   0x2   :  { %1610 = vmatprep.subr.bf16.mxu0 %v2345_v0  ;;  %v2350_v3 = vld [vmem:[%s3615_s1 + $0x8] ss:$16 sps:$4 sm:$0xff]   ;;  %1774 = vmatprep.subr.bf16.mxu1 %v2347_v1  ;;  %v2351_v4 = vld [vmem:[%s3615_s1 + $0x24] ss:$16 sps:$4 sm:$0xff]   ;;  %v2353_v5 = vld [vmem:[%s3615_s1 + $0x2c] ss:$16 sps:$4 sm:$0xff]  }
   0x3   :  { %1611 = vmatpush1.bf16.msra.mxu0 %v2349_v2  ;;  %1775 = vmatpush1.bf16.msra.mxu1 %v2350_v3  ;;  %v2355_v6 = vld [vmem:[%s3615_s1 + $0x20] ss:$16 sps:$4 sm:$0xff]   ;;  %v2356_v7 = vld [vmem:[%s3615_s1 + $0x28] ss:$16 sps:$4 sm:$0xff]   ;;  %v2357_v8 = vld [vmem:[%s3615_s1 + $0x44] ss:$16 sps:$4 sm:$0xff]  }
   0x4   :  { %1612 = vmatprep.subr.bf16.mxu0 %v2351_v4  ;;  %1776 = vmatprep.subr.bf16.mxu1 %v2353_v5  ;;  %v2359_v9 = vld [vmem:[%s3615_s1 + $0x4c] ss:$16 sps:$4 sm:$0xff]   ;;  %v2361_v10 = vld [vmem:[%s3615_s1 + $0x40] ss:$16 sps:$4 sm:$0xff]   ;;  %v2362_v11 = vld [vmem:[%s3615_s1 + $0x48] ss:$16 sps:$4 sm:$0xff]  }
   0x5   :  { %v2363_v12 = vld [vmem:[%s3615_s1 + $0x64] ss:$16 sps:$4 sm:$0xff]   ;;  %v2365_v13 = vld [vmem:[%s3615_s1 + $0x6c] ss:$16 sps:$4 sm:$0xff]   ;;  %v2367_v14 = vld [vmem:[%s3615_s1 + $0x60] ss:$16 sps:$4 sm:$0xff]  }
   0x6   :  { %v2368_v15 = vld [vmem:[%s3615_s1 + $0x68] ss:$16 sps:$4 sm:$0xff]   ;;  %v2369_v16 = vld [vmem:[%s3615_s1 + $0x84] ss:$16 sps:$4 sm:$0xff]   ;;  %v2371_v17 = vld [vmem:[%s3615_s1 + $0x8c] ss:$16 sps:$4 sm:$0xff]  }
   0x7   :  { %1613 = vmatpush1.bf16.msra.mxu0 %v2355_v6  ;;  %1777 = vmatpush1.bf16.msra.mxu1 %v2356_v7  ;;  %v2373_v18 = vld [vmem:[%s3615_s1 + $0x80] ss:$16 sps:$4 sm:$0xff]   ;;  %v2374_v19 = vld [vmem:[%s3615_s1 + $0x88] ss:$16 sps:$4 sm:$0xff]   ;;  %v2375_v20 = vld [vmem:[%s3615_s1 + $0xa4] ss:$16 sps:$4 sm:$0xff]  }
   0x8   :  { %1614 = vmatprep.subr.bf16.mxu0 %v2357_v8  ;;  %1778 = vmatprep.subr.bf16.mxu1 %v2359_v9  ;;  %v2377_v21 = vld [vmem:[%s3615_s1 + $0xac] ss:$16 sps:$4 sm:$0xff]   ;;  %v2379_v22 = vld [vmem:[%s3615_s1 + $0xa0] ss:$16 sps:$4 sm:$0xff]   ;;  %v2380_v23 = vld [vmem:[%s3615_s1 + $0xa8] ss:$16 sps:$4 sm:$0xff]  }
   0x9   :  { %v2381_v24 = vld [vmem:[%s3615_s1 + $0xc4] ss:$16 sps:$4 sm:$0xff]   ;;  %v2383_v25 = vld [vmem:[%s3615_s1 + $0xcc] ss:$16 sps:$4 sm:$0xff]   ;;  %v2385_v26 = vld [vmem:[%s3615_s1 + $0xc0] ss:$16 sps:$4 sm:$0xff]  }
   0xa   :  { %v2386_v27 = vld [vmem:[%s3615_s1 + $0xc8] ss:$16 sps:$4 sm:$0xff]   ;;  %v2387_v28 = vld [vmem:[%s3615_s1 + $0xe4] ss:$16 sps:$4 sm:$0xff]   ;;  %v2389_v29 = vld [vmem:[%s3615_s1 + $0xec] ss:$16 sps:$4 sm:$0xff]  }
   0xb   :  { %1615 = vmatpush1.bf16.msra.mxu0 %v2361_v10  ;;  %1779 = vmatpush1.bf16.msra.mxu1 %v2362_v11  ;;  %v2391_v30 = vld [vmem:[%s3615_s1 + $0xe0] ss:$16 sps:$4 sm:$0xff]   ;;  %v2392_v31 = vld [vmem:[%s3615_s1 + $0xe8] ss:$16 sps:$4 sm:$0xff]   ;;  %v2393_v32 = vld [vmem:[%s3615_s1 + $0x104] ss:$16 sps:$4 sm:$0xff]  }
   0xc   :  { %1616 = vmatprep.subr.bf16.mxu0 %v2363_v12  ;;  %1780 = vmatprep.subr.bf16.mxu1 %v2365_v13  ;;  %v2395_v33 = vld [vmem:[%s3615_s1 + $0x10c] ss:$16 sps:$4 sm:$0xff]   ;;  %v2397_v34 = vld [vmem:[%s3615_s1 + $0x100] ss:$16 sps:$4 sm:$0xff]   ;;  %v2398_v35 = vld [vmem:[%s3615_s1 + $0x108] ss:$16 sps:$4 sm:$0xff]  }
   0xd   :  { %v2399_v36 = vld [vmem:[%s3615_s1 + $0x124] ss:$16 sps:$4 sm:$0xff]   ;;  %v2401_v37 = vld [vmem:[%s3615_s1 + $0x12c] ss:$16 sps:$4 sm:$0xff]   ;;  %v2403_v38 = vld [vmem:[%s3615_s1 + $0x120] ss:$16 sps:$4 sm:$0xff]  }
   0xe   :  { %v2404_v39 = vld [vmem:[%s3615_s1 + $0x128] ss:$16 sps:$4 sm:$0xff]   ;;  %v2405_v40 = vld [vmem:[%s3615_s1 + $0x144] ss:$16 sps:$4 sm:$0xff]   ;;  %v2407_v41 = vld [vmem:[%s3615_s1 + $0x14c] ss:$16 sps:$4 sm:$0xff]  }
   0xf   :  { %1617 = vmatpush1.bf16.msra.mxu0 %v2367_v14  ;;  %1781 = vmatpush1.bf16.msra.mxu1 %v2368_v15  ;;  %v2409_v42 = vld [vmem:[%s3615_s1 + $0x140] ss:$16 sps:$4 sm:$0xff]   ;;  %v2410_v43 = vld [vmem:[%s3615_s1 + $0x148] ss:$16 sps:$4 sm:$0xff]   ;;  %v2411_v44 = vld [vmem:[%s3615_s1 + $0x164] ss:$16 sps:$4 sm:$0xff]  }
  0x10   :  { %1618 = vmatprep.subr.bf16.mxu0 %v2369_v16  ;;  %1782 = vmatprep.subr.bf16.mxu1 %v2371_v17  ;;  %v2413_v45 = vld [vmem:[%s3615_s1 + $0x16c] ss:$16 sps:$4 sm:$0xff]   ;;  %v20_v46 = vld [vmem:[%s3616_s0] sm:$0xff]  ;;  %v2416_v49 = vld [vmem:[%s3615_s1 + $0x168] ss:$16 sps:$4 sm:$0xff]  }
  0x11   :  { %v2415_v47 = vld [vmem:[%s3615_s1 + $0x160] ss:$16 sps:$4 sm:$0xff]   ;;  %v2050_v48 = vcombine.high %v20_v46, %v20_v46  ;;  %v2417_v50 = vld [vmem:[%s3615_s1 + $0x184] ss:$16 sps:$4 sm:$0xff]   ;;  %v2419_v51 = vld [vmem:[%s3615_s1 + $0x18c] ss:$16 sps:$4 sm:$0xff]   ;;  %v2049_v4 = vcombine.low %v20_v46, %v20_v46 }
  0x12   :  { %v2421_v52 = vld [vmem:[%s3615_s1 + $0x180] ss:$16 sps:$4 sm:$0xff]   ;;  %v2422_v53 = vld [vmem:[%s3615_s1 + $0x188] ss:$16 sps:$4 sm:$0xff]   ;;  %v2423_v54 = vld [vmem:[%s3615_s1 + $0x1a4] ss:$16 sps:$4 sm:$0xff]  }
  0x13   :  { %1619 = vmatpush1.bf16.msra.mxu0 %v2373_v18  ;;  %1783 = vmatpush1.bf16.msra.mxu1 %v2374_v19  ;;  %v2425_v55 = vld [vmem:[%s3615_s1 + $0x1ac] ss:$16 sps:$4 sm:$0xff]   ;;  %v2427_v56 = vld [vmem:[%s3615_s1 + $0x1a0] ss:$16 sps:$4 sm:$0xff]   ;;  %v2428_v57 = vld [vmem:[%s3615_s1 + $0x1a8] ss:$16 sps:$4 sm:$0xff]  }
  0x14   :  { %1620 = vmatprep.subr.bf16.mxu0 %v2375_v20  ;;  %1784 = vmatprep.subr.bf16.mxu1 %v2377_v21  ;;  %v2429_v58 = vld [vmem:[%s3615_s1 + $0x1c4] ss:$16 sps:$4 sm:$0xff]   ;;  %v2431_v59 = vld [vmem:[%s3615_s1 + $0x1cc] ss:$16 sps:$4 sm:$0xff]   ;;  %v2433_v60 = vld [vmem:[%s3615_s1 + $0x1c0] ss:$16 sps:$4 sm:$0xff]  }
  0x15   :  { %1642 = vmatprep.mubr.bf16.mxu0 %v2050_v48  ;;  %1806 = vmatprep.mubr.bf16.mxu1 %v2050_v48  ;;  %v2434_v61 = vld [vmem:[%s3615_s1 + $0x1c8] ss:$16 sps:$4 sm:$0xff]   ;;  %v2435_v62 = vld [vmem:[%s3615_s1 + $0x1e4] ss:$16 sps:$4 sm:$0xff]   ;;  %v2437_v63 = vld [vmem:[%s3615_s1 + $0x1ec] ss:$16 sps:$4 sm:$0xff]  }
  0x16   :  { %v2439_v0 = vld [vmem:[%s3615_s1 + $0x1e0] ss:$16 sps:$4 sm:$0xff]   ;;  %v2440_v1 = vld [vmem:[%s3615_s1 + $0x1e8] ss:$16 sps:$4 sm:$0xff]   ;;  %v2445_v2 = vld [vmem:[%s3615_s1 + $0x204] ss:$16 sps:$4 sm:$0xff]  }
  0x17   :  { %1621 = vmatpush1.bf16.msra.mxu0 %v2379_v22  ;;  %1785 = vmatpush1.bf16.msra.mxu1 %v2380_v23  ;;  %v2448_v3 = vld [vmem:[%s3615_s1 + $0x20c] ss:$16 sps:$4 sm:$0xff]   ;;  %v2443_v5 = vld [vmem:[%s3615_s1 + $0x200] ss:$16 sps:$4 sm:$0xff]   ;;  %v2446_v6 = vld [vmem:[%s3615_s1 + $0x208] ss:$16 sps:$4 sm:$0xff]  }
  0x18   :  { %1622 = vmatprep.subr.bf16.mxu0 %v2381_v24  ;;  %1786 = vmatprep.subr.bf16.mxu1 %v2383_v25  ;;  %v2451_v7 = vld [vmem:[%s3615_s1 + $0x224] ss:$16 sps:$4 sm:$0xff]   ;;  %v2454_v8 = vld [vmem:[%s3615_s1 + $0x22c] ss:$16 sps:$4 sm:$0xff]   ;;  %v2449_v9 = vld [vmem:[%s3615_s1 + $0x220] ss:$16 sps:$4 sm:$0xff]  }
  0x19   :  { %v2452_v10 = vld [vmem:[%s3615_s1 + $0x228] ss:$16 sps:$4 sm:$0xff]   ;;  %v2457_v11 = vld [vmem:[%s3615_s1 + $0x244] ss:$16 sps:$4 sm:$0xff]   ;;  %v2460_v12 = vld [vmem:[%s3615_s1 + $0x24c] ss:$16 sps:$4 sm:$0xff]  }
  0x1a   :  { %v2455_v13 = vld [vmem:[%s3615_s1 + $0x240] ss:$16 sps:$4 sm:$0xff]   ;;  %v2458_v14 = vld [vmem:[%s3615_s1 + $0x248] ss:$16 sps:$4 sm:$0xff]   ;;  %v2463_v15 = vld [vmem:[%s3615_s1 + $0x264] ss:$16 sps:$4 sm:$0xff]  }
  0x1b   :  { %1623 = vmatpush1.bf16.msra.mxu0 %v2385_v26  ;;  %1787 = vmatpush1.bf16.msra.mxu1 %v2386_v27  ;;  %v2466_v16 = vld [vmem:[%s3615_s1 + $0x26c] ss:$16 sps:$4 sm:$0xff]   ;;  %v2461_v17 = vld [vmem:[%s3615_s1 + $0x260] ss:$16 sps:$4 sm:$0xff]   ;;  %v2464_v18 = vld [vmem:[%s3615_s1 + $0x268] ss:$16 sps:$4 sm:$0xff]  }
  0x1c   :  { %1624 = vmatprep.subr.bf16.mxu0 %v2387_v28  ;;  %1788 = vmatprep.subr.bf16.mxu1 %v2389_v29  ;;  %v2469_v19 = vld [vmem:[%s3615_s1 + $0x284] ss:$16 sps:$4 sm:$0xff]   ;;  %v2472_v20 = vld [vmem:[%s3615_s1 + $0x28c] ss:$16 sps:$4 sm:$0xff]   ;;  %v2467_v21 = vld [vmem:[%s3615_s1 + $0x280] ss:$16 sps:$4 sm:$0xff]  }
  0x1d   :  { %v2470_v22 = vld [vmem:[%s3615_s1 + $0x288] ss:$16 sps:$4 sm:$0xff]   ;;  %v2475_v23 = vld [vmem:[%s3615_s1 + $0x2a4] ss:$16 sps:$4 sm:$0xff]   ;;  %v2478_v24 = vld [vmem:[%s3615_s1 + $0x2ac] ss:$16 sps:$4 sm:$0xff]  }
  0x1e   :  { %v2473_v25 = vld [vmem:[%s3615_s1 + $0x2a0] ss:$16 sps:$4 sm:$0xff]   ;;  %v2476_v26 = vld [vmem:[%s3615_s1 + $0x2a8] ss:$16 sps:$4 sm:$0xff]   ;;  %v2481_v27 = vld [vmem:[%s3615_s1 + $0x2c4] ss:$16 sps:$4 sm:$0xff]  }
  0x1f   :  { %1625 = vmatpush1.bf16.msra.mxu0 %v2391_v30  ;;  %1789 = vmatpush1.bf16.msra.mxu1 %v2392_v31  ;;  %v2484_v28 = vld [vmem:[%s3615_s1 + $0x2cc] ss:$16 sps:$4 sm:$0xff]   ;;  %v2479_v31 = vld [vmem:[%s3615_s1 + $0x2c0] ss:$16 sps:$4 sm:$0xff]   ;;  %v2506_v48 = vld [vmem:[%s3615_s1 + $0x348] ss:$16 sps:$4 sm:$0xff]  }
  0x20   :  { %1626 = vmatprep.subr.bf16.mxu0 %v2393_v32  ;;  %1790 = vmatprep.subr.bf16.mxu1 %v2395_v33  ;;  %v3045_v29 = vld [vmem:[%s3616_s0 + $0x8] sm:$0xff]  ;;  %v2487_v33 = vld [vmem:[%s3615_s1 + $0x2e4] ss:$16 sps:$4 sm:$0xff]  }
  0x21   :  { %v2052_v30 = vcombine.high %v3045_v29, %v3045_v29  ;;  %v2482_v32 = vld [vmem:[%s3615_s1 + $0x2c8] ss:$16 sps:$4 sm:$0xff]   ;;  %v2508_v46 = vld [vmem:[%s3615_s1 + $0x34c] ss:$16 sps:$4 sm:$0xff]  }
  0x23   :  { %1627 = vmatpush1.bf16.msra.mxu0 %v2397_v34  ;;  %1791 = vmatpush1.bf16.msra.mxu1 %v2398_v35  ;;  %v2490_v34 = vld [vmem:[%s3615_s1 + $0x2ec] ss:$16 sps:$4 sm:$0xff]   ;;  %v2485_v35 = vld [vmem:[%s3615_s1 + $0x2e0] ss:$16 sps:$4 sm:$0xff]  }
  0x24   :  { %1628 = vmatprep.subr.bf16.mxu0 %v2399_v36  ;;  %1792 = vmatprep.subr.bf16.mxu1 %v2401_v37  ;;  %v2488_v36 = vld [vmem:[%s3615_s1 + $0x2e8] ss:$16 sps:$4 sm:$0xff]   ;;  %v2493_v37 = vld [vmem:[%s3615_s1 + $0x304] ss:$16 sps:$4 sm:$0xff]  }
  0x27   :  { %1629 = vmatpush1.bf16.msra.mxu0 %v2403_v38  ;;  %1793 = vmatpush1.bf16.msra.mxu1 %v2404_v39  ;;  %v2496_v38 = vld [vmem:[%s3615_s1 + $0x30c] ss:$16 sps:$4 sm:$0xff]   ;;  %v2491_v39 = vld [vmem:[%s3615_s1 + $0x300] ss:$16 sps:$4 sm:$0xff]  }
  0x28   :  { %1630 = vmatprep.subr.bf16.mxu0 %v2405_v40  ;;  %1794 = vmatprep.subr.bf16.mxu1 %v2407_v41  ;;  %v2494_v40 = vld [vmem:[%s3615_s1 + $0x308] ss:$16 sps:$4 sm:$0xff]   ;;  %v2499_v41 = vld [vmem:[%s3615_s1 + $0x324] ss:$16 sps:$4 sm:$0xff]  }
  0x2b   :  { %1631 = vmatpush1.bf16.msra.mxu0 %v2409_v42  ;;  %1795 = vmatpush1.bf16.msra.mxu1 %v2410_v43  ;;  %v2502_v42 = vld [vmem:[%s3615_s1 + $0x32c] ss:$16 sps:$4 sm:$0xff]   ;;  %v2497_v43 = vld [vmem:[%s3615_s1 + $0x320] ss:$16 sps:$4 sm:$0xff]  }
  0x2c   :  { %1632 = vmatprep.subr.bf16.mxu0 %v2411_v44  ;;  %1796 = vmatprep.subr.bf16.mxu1 %v2413_v45  ;;  %v2500_v44 = vld [vmem:[%s3615_s1 + $0x328] ss:$16 sps:$4 sm:$0xff]   ;;  %v2505_v45 = vld [vmem:[%s3615_s1 + $0x344] ss:$16 sps:$4 sm:$0xff]  }
  0x2f   :  { %1633 = vmatpush1.bf16.msra.mxu0 %v2415_v47  ;;  %1797 = vmatpush1.bf16.msra.mxu1 %v2416_v49  ;;  %v2503_v47 = vld [vmem:[%s3615_s1 + $0x340] ss:$16 sps:$4 sm:$0xff]   ;;  %v2511_v49 = vld [vmem:[%s3615_s1 + $0x364] ss:$16 sps:$4 sm:$0xff]  }
  0x30   :  { %1634 = vmatprep.subr.bf16.mxu0 %v2417_v50  ;;  %1798 = vmatprep.subr.bf16.mxu1 %v2419_v51  ;;  %v2514_v50 = vld [vmem:[%s3615_s1 + $0x36c] ss:$16 sps:$4 sm:$0xff]   ;;  %v2509_v51 = vld [vmem:[%s3615_s1 + $0x360] ss:$16 sps:$4 sm:$0xff]  }
  0x33   :  { %1635 = vmatpush1.bf16.msra.mxu0 %v2421_v52  ;;  %1799 = vmatpush1.bf16.msra.mxu1 %v2422_v53  ;;  %v2512_v52 = vld [vmem:[%s3615_s1 + $0x368] ss:$16 sps:$4 sm:$0xff]   ;;  %v2517_v53 = vld [vmem:[%s3615_s1 + $0x384] ss:$16 sps:$4 sm:$0xff]  }
  0x34   :  { %1636 = vmatprep.subr.bf16.mxu0 %v2423_v54  ;;  %1800 = vmatprep.subr.bf16.mxu1 %v2425_v55  ;;  %v2520_v54 = vld [vmem:[%s3615_s1 + $0x38c] ss:$16 sps:$4 sm:$0xff]   ;;  %v2515_v55 = vld [vmem:[%s3615_s1 + $0x380] ss:$16 sps:$4 sm:$0xff]  }
  0x37   :  { %1637 = vmatpush1.bf16.msra.mxu0 %v2427_v56  ;;  %1801 = vmatpush1.bf16.msra.mxu1 %v2428_v57  ;;  %v2518_v56 = vld [vmem:[%s3615_s1 + $0x388] ss:$16 sps:$4 sm:$0xff]   ;;  %v2523_v57 = vld [vmem:[%s3615_s1 + $0x3a4] ss:$16 sps:$4 sm:$0xff]  }
  0x38   :  { %1638 = vmatprep.subr.bf16.mxu0 %v2429_v58  ;;  %1802 = vmatprep.subr.bf16.mxu1 %v2431_v59  ;;  %v2526_v58 = vld [vmem:[%s3615_s1 + $0x3ac] ss:$16 sps:$4 sm:$0xff]   ;;  %v2521_v59 = vld [vmem:[%s3615_s1 + $0x3a0] ss:$16 sps:$4 sm:$0xff]  }
  0x3b   :  { %1639 = vmatpush1.bf16.msra.mxu0 %v2433_v60  ;;  %1803 = vmatpush1.bf16.msra.mxu1 %v2434_v61  ;;  %v2524_v60 = vld [vmem:[%s3615_s1 + $0x3a8] ss:$16 sps:$4 sm:$0xff]   ;;  %v2529_v61 = vld [vmem:[%s3615_s1 + $0x3c4] ss:$16 sps:$4 sm:$0xff]  }
  0x3c   :  { %1640 = vmatprep.subr.bf16.mxu0 %v2435_v62  ;;  %1804 = vmatprep.subr.bf16.mxu1 %v2437_v63  ;;  %v2532_v62 = vld [vmem:[%s3615_s1 + $0x3cc] ss:$16 sps:$4 sm:$0xff]   ;;  %v2527_v63 = vld [vmem:[%s3615_s1 + $0x3c0] ss:$16 sps:$4 sm:$0xff]  }
  0x3f   :  { %1641 = vmatpush1.bf16.msra.mxu0 %v2439_v0  ;;  %1805 = vmatpush1.bf16.msra.mxu1 %v2440_v1  ;;  %v2530_v0 = vld [vmem:[%s3615_s1 + $0x3c8] ss:$16 sps:$4 sm:$0xff]   ;;  %v2535_v1 = vld [vmem:[%s3615_s1 + $0x3e4] ss:$16 sps:$4 sm:$0xff]  }
  0x40   :  { %1651 = vmatprep.subr.bf16.mxu0 %v2445_v2  ;;  %1815 = vmatprep.subr.bf16.mxu1 %v2448_v3  ;;  %v2538_v2 = vld [vmem:[%s3615_s1 + $0x3ec] ss:$16 sps:$4 sm:$0xff]   ;;  %v2533_v3 = vld [vmem:[%s3615_s1 + $0x3e0] ss:$16 sps:$4 sm:$0xff]  }
  0x42   :  { %1643 = vmatmul.mubr.bf16.vlgmr.msra.gmra.mrb[0].mxu0 %v2049_v4  ;;  %1807 = vmatmul.mubr.bf16.vlgmr.msra.gmra.mrb[0].mxu1 %v2049_v4  ;;  %v2536_v4 = vld [vmem:[%s3615_s1 + $0x3e8] ss:$16 sps:$4 sm:$0xff]  }
  0x43   :  { %1652 = vmatpush1.bf16.msra.mxu0 %v2443_v5  ;;  %1816 = vmatpush1.bf16.msra.mxu1 %v2446_v6  ;;  %v2543_v5 = vld [vmem:[%s3615_s1 + $0x404] ss:$16 sps:$4 sm:$0xff]   ;;  %v2546_v6 = vld [vmem:[%s3615_s1 + $0x40c] ss:$16 sps:$4 sm:$0xff]  }
  0x44   :  { %1653 = vmatprep.subr.bf16.mxu0 %v2451_v7  ;;  %1817 = vmatprep.subr.bf16.mxu1 %v2454_v8  ;;  %v2051_v7 = vcombine.low %v3045_v29, %v3045_v29  ;;  %v2541_v8 = vld [vmem:[%s3615_s1 + $0x400] ss:$16 sps:$4 sm:$0xff]   ;;  %v2576_v29 = vld [vmem:[%s3615_s1 + $0x4ac] ss:$16 sps:$4 sm:$0xff]  }
  0x45   :  { %1683 = vmatprep.mubr.bf16.mxu0 %v2052_v30  ;;  %1847 = vmatprep.mubr.bf16.mxu1 %v2052_v30  ;;  %v2571_v30 = vld [vmem:[%s3615_s1 + $0x4a0] ss:$16 sps:$4 sm:$0xff]  }
  0x47   :  { %1654 = vmatpush1.bf16.msra.mxu0 %v2449_v9  ;;  %1818 = vmatpush1.bf16.msra.mxu1 %v2452_v10  ;;  %v2544_v9 = vld [vmem:[%s3615_s1 + $0x408] ss:$16 sps:$4 sm:$0xff]   ;;  %v2549_v10 = vld [vmem:[%s3615_s1 + $0x424] ss:$16 sps:$4 sm:$0xff]  }
  0x48   :  { %1655 = vmatprep.subr.bf16.mxu0 %v2457_v11  ;;  %1819 = vmatprep.subr.bf16.mxu1 %v2460_v12  ;;  %v3183_v11 = vld [vmem:[%s3616_s0 + $0x10] sm:$0xff]  ;;  %v2552_v12 = vld [vmem:[%s3615_s1 + $0x42c] ss:$16 sps:$4 sm:$0xff]  }
  0x4b   :  { %1656 = vmatpush1.bf16.msra.mxu0 %v2455_v13  ;;  %1820 = vmatpush1.bf16.msra.mxu1 %v2458_v14  ;;  %v2054_v13 = vcombine.high %v3183_v11, %v3183_v11  ;;  %v2547_v14 = vld [vmem:[%s3615_s1 + $0x420] ss:$16 sps:$4 sm:$0xff]  }
  0x4c   :  { %1657 = vmatprep.subr.bf16.mxu0 %v2463_v15  ;;  %1821 = vmatprep.subr.bf16.mxu1 %v2466_v16  ;;  %v2550_v15 = vld [vmem:[%s3615_s1 + $0x428] ss:$16 sps:$4 sm:$0xff]   ;;  %v2555_v16 = vld [vmem:[%s3615_s1 + $0x444] ss:$16 sps:$4 sm:$0xff]  }
  0x4f   :  { %1658 = vmatpush1.bf16.msra.mxu0 %v2461_v17  ;;  %1822 = vmatpush1.bf16.msra.mxu1 %v2464_v18  ;;  %v2558_v17 = vld [vmem:[%s3615_s1 + $0x44c] ss:$16 sps:$4 sm:$0xff]   ;;  %v2553_v18 = vld [vmem:[%s3615_s1 + $0x440] ss:$16 sps:$4 sm:$0xff]  }
  0x50   :  { %1659 = vmatprep.subr.bf16.mxu0 %v2469_v19  ;;  %1823 = vmatprep.subr.bf16.mxu1 %v2472_v20  ;;  %v2556_v19 = vld [vmem:[%s3615_s1 + $0x448] ss:$16 sps:$4 sm:$0xff]   ;;  %v2561_v20 = vld [vmem:[%s3615_s1 + $0x464] ss:$16 sps:$4 sm:$0xff]  }
  0x53   :  { %1660 = vmatpush1.bf16.msra.mxu0 %v2467_v21  ;;  %1824 = vmatpush1.bf16.msra.mxu1 %v2470_v22  ;;  %v2564_v21 = vld [vmem:[%s3615_s1 + $0x46c] ss:$16 sps:$4 sm:$0xff]   ;;  %v2559_v22 = vld [vmem:[%s3615_s1 + $0x460] ss:$16 sps:$4 sm:$0xff]  }
  0x54   :  { %1661 = vmatprep.subr.bf16.mxu0 %v2475_v23  ;;  %1825 = vmatprep.subr.bf16.mxu1 %v2478_v24  ;;  %v2562_v23 = vld [vmem:[%s3615_s1 + $0x468] ss:$16 sps:$4 sm:$0xff]   ;;  %v2567_v24 = vld [vmem:[%s3615_s1 + $0x484] ss:$16 sps:$4 sm:$0xff]  }
  0x57   :  { %1662 = vmatpush1.bf16.msra.mxu0 %v2473_v25  ;;  %1826 = vmatpush1.bf16.msra.mxu1 %v2476_v26  ;;  %v2570_v25 = vld [vmem:[%s3615_s1 + $0x48c] ss:$16 sps:$4 sm:$0xff]   ;;  %v2565_v26 = vld [vmem:[%s3615_s1 + $0x480] ss:$16 sps:$4 sm:$0xff]  }
  0x58   :  { %1663 = vmatprep.subr.bf16.mxu0 %v2481_v27  ;;  %1827 = vmatprep.subr.bf16.mxu1 %v2484_v28  ;;  %v2568_v27 = vld [vmem:[%s3615_s1 + $0x488] ss:$16 sps:$4 sm:$0xff]   ;;  %v2573_v28 = vld [vmem:[%s3615_s1 + $0x4a4] ss:$16 sps:$4 sm:$0xff]  }
  0x5b   :  { %1664 = vmatpush1.bf16.msra.mxu0 %v2479_v31  ;;  %1828 = vmatpush1.bf16.msra.mxu1 %v2482_v32  ;;  %v2574_v31 = vld [vmem:[%s3615_s1 + $0x4a8] ss:$16 sps:$4 sm:$0xff]   ;;  %v2579_v32 = vld [vmem:[%s3615_s1 + $0x4c4] ss:$16 sps:$4 sm:$0xff]  }
  0x5c   :  { %1665 = vmatprep.subr.bf16.mxu0 %v2487_v33  ;;  %1829 = vmatprep.subr.bf16.mxu1 %v2490_v34  ;;  %v2582_v33 = vld [vmem:[%s3615_s1 + $0x4cc] ss:$16 sps:$4 sm:$0xff]   ;;  %v2577_v34 = vld [vmem:[%s3615_s1 + $0x4c0] ss:$16 sps:$4 sm:$0xff]  }
  0x5f   :  { %1666 = vmatpush1.bf16.msra.mxu0 %v2485_v35  ;;  %1830 = vmatpush1.bf16.msra.mxu1 %v2488_v36  ;;  %v2580_v35 = vld [vmem:[%s3615_s1 + $0x4c8] ss:$16 sps:$4 sm:$0xff]   ;;  %v2585_v36 = vld [vmem:[%s3615_s1 + $0x4e4] ss:$16 sps:$4 sm:$0xff]  }
  0x60   :  { %1667 = vmatprep.subr.bf16.mxu0 %v2493_v37  ;;  %1831 = vmatprep.subr.bf16.mxu1 %v2496_v38  ;;  %v2588_v37 = vld [vmem:[%s3615_s1 + $0x4ec] ss:$16 sps:$4 sm:$0xff]   ;;  %v2583_v38 = vld [vmem:[%s3615_s1 + $0x4e0] ss:$16 sps:$4 sm:$0xff]  }
  0x63   :  { %1668 = vmatpush1.bf16.msra.mxu0 %v2491_v39  ;;  %1832 = vmatpush1.bf16.msra.mxu1 %v2494_v40  ;;  %v2586_v39 = vld [vmem:[%s3615_s1 + $0x4e8] ss:$16 sps:$4 sm:$0xff]   ;;  %v2591_v40 = vld [vmem:[%s3615_s1 + $0x504] ss:$16 sps:$4 sm:$0xff]  }
  0x64   :  { %1669 = vmatprep.subr.bf16.mxu0 %v2499_v41  ;;  %1833 = vmatprep.subr.bf16.mxu1 %v2502_v42  ;;  %v2594_v41 = vld [vmem:[%s3615_s1 + $0x50c] ss:$16 sps:$4 sm:$0xff]   ;;  %v2589_v42 = vld [vmem:[%s3615_s1 + $0x500] ss:$16 sps:$4 sm:$0xff]  }
  0x67   :  { %1670 = vmatpush1.bf16.msra.mxu0 %v2497_v43  ;;  %1834 = vmatpush1.bf16.msra.mxu1 %v2500_v44  ;;  %v2592_v43 = vld [vmem:[%s3615_s1 + $0x508] ss:$16 sps:$4 sm:$0xff]   ;;  %v2597_v44 = vld [vmem:[%s3615_s1 + $0x524] ss:$16 sps:$4 sm:$0xff]  }
  0x68   :  { %1671 = vmatprep.subr.bf16.mxu0 %v2505_v45  ;;  %1835 = vmatprep.subr.bf16.mxu1 %v2508_v46  ;;  %v2600_v45 = vld [vmem:[%s3615_s1 + $0x52c] ss:$16 sps:$4 sm:$0xff]   ;;  %v2595_v46 = vld [vmem:[%s3615_s1 + $0x520] ss:$16 sps:$4 sm:$0xff]  }
  0x6b   :  { %1672 = vmatpush1.bf16.msra.mxu0 %v2503_v47  ;;  %1836 = vmatpush1.bf16.msra.mxu1 %v2506_v48  ;;  %v2598_v47 = vld [vmem:[%s3615_s1 + $0x528] ss:$16 sps:$4 sm:$0xff]   ;;  %v2603_v48 = vld [vmem:[%s3615_s1 + $0x544] ss:$16 sps:$4 sm:$0xff]  }
  0x6c   :  { %1673 = vmatprep.subr.bf16.mxu0 %v2511_v49  ;;  %1837 = vmatprep.subr.bf16.mxu1 %v2514_v50  ;;  %v2606_v49 = vld [vmem:[%s3615_s1 + $0x54c] ss:$16 sps:$4 sm:$0xff]   ;;  %v2601_v50 = vld [vmem:[%s3615_s1 + $0x540] ss:$16 sps:$4 sm:$0xff]  }
  0x6f   :  { %1674 = vmatpush1.bf16.msra.mxu0 %v2509_v51  ;;  %1838 = vmatpush1.bf16.msra.mxu1 %v2512_v52  ;;  %v2604_v51 = vld [vmem:[%s3615_s1 + $0x548] ss:$16 sps:$4 sm:$0xff]   ;;  %v2609_v52 = vld [vmem:[%s3615_s1 + $0x564] ss:$16 sps:$4 sm:$0xff]  }
  0x70   :  { %1675 = vmatprep.subr.bf16.mxu0 %v2517_v53  ;;  %1839 = vmatprep.subr.bf16.mxu1 %v2520_v54  ;;  %v2612_v53 = vld [vmem:[%s3615_s1 + $0x56c] ss:$16 sps:$4 sm:$0xff]   ;;  %v2607_v54 = vld [vmem:[%s3615_s1 + $0x560] ss:$16 sps:$4 sm:$0xff]  }
  0x73   :  { %1676 = vmatpush1.bf16.msra.mxu0 %v2515_v55  ;;  %1840 = vmatpush1.bf16.msra.mxu1 %v2518_v56  ;;  %v2610_v55 = vld [vmem:[%s3615_s1 + $0x568] ss:$16 sps:$4 sm:$0xff]   ;;  %v2615_v56 = vld [vmem:[%s3615_s1 + $0x584] ss:$16 sps:$4 sm:$0xff]  }
  0x74   :  { %1677 = vmatprep.subr.bf16.mxu0 %v2523_v57  ;;  %1841 = vmatprep.subr.bf16.mxu1 %v2526_v58  ;;  %v2618_v57 = vld [vmem:[%s3615_s1 + $0x58c] ss:$16 sps:$4 sm:$0xff]   ;;  %v2613_v58 = vld [vmem:[%s3615_s1 + $0x580] ss:$16 sps:$4 sm:$0xff]  }
  0x77   :  { %1678 = vmatpush1.bf16.msra.mxu0 %v2521_v59  ;;  %1842 = vmatpush1.bf16.msra.mxu1 %v2524_v60  ;;  %v2616_v59 = vld [vmem:[%s3615_s1 + $0x588] ss:$16 sps:$4 sm:$0xff]   ;;  %v2621_v60 = vld [vmem:[%s3615_s1 + $0x5a4] ss:$16 sps:$4 sm:$0xff]  }
  0x78   :  { %1679 = vmatprep.subr.bf16.mxu0 %v2529_v61  ;;  %1843 = vmatprep.subr.bf16.mxu1 %v2532_v62  ;;  %v2624_v61 = vld [vmem:[%s3615_s1 + $0x5ac] ss:$16 sps:$4 sm:$0xff]   ;;  %v2619_v62 = vld [vmem:[%s3615_s1 + $0x5a0] ss:$16 sps:$4 sm:$0xff]  }
  0x7b   :  { %1680 = vmatpush1.bf16.msra.mxu0 %v2527_v63  ;;  %1844 = vmatpush1.bf16.msra.mxu1 %v2530_v0  ;;  %v2622_v63 = vld [vmem:[%s3615_s1 + $0x5a8] ss:$16 sps:$4 sm:$0xff]   ;;  %v2627_v0 = vld [vmem:[%s3615_s1 + $0x5c4] ss:$16 sps:$4 sm:$0xff]  }
  0x7c   :  { %1681 = vmatprep.subr.bf16.mxu0 %v2535_v1  ;;  %1845 = vmatprep.subr.bf16.mxu1 %v2538_v2  ;;  %v2630_v1 = vld [vmem:[%s3615_s1 + $0x5cc] ss:$16 sps:$4 sm:$0xff]   ;;  %v2625_v2 = vld [vmem:[%s3615_s1 + $0x5c0] ss:$16 sps:$4 sm:$0xff]  }
  0x7f   :  { %1682 = vmatpush1.bf16.msra.mxu0 %v2533_v3  ;;  %1846 = vmatpush1.bf16.msra.mxu1 %v2536_v4  ;;  %v2628_v3 = vld [vmem:[%s3615_s1 + $0x5c8] ss:$16 sps:$4 sm:$0xff]   ;;  %v2633_v4 = vld [vmem:[%s3615_s1 + $0x5e4] ss:$16 sps:$4 sm:$0xff]  }
  0x80   :  { %1692 = vmatprep.subr.bf16.mxu0 %v2543_v5  ;;  %1856 = vmatprep.subr.bf16.mxu1 %v2546_v6  ;;  %v2636_v5 = vld [vmem:[%s3615_s1 + $0x5ec] ss:$16 sps:$4 sm:$0xff]   ;;  %v2631_v6 = vld [vmem:[%s3615_s1 + $0x5e0] ss:$16 sps:$4 sm:$0xff]  }
  0x82   :  { %1684 = vmatmul.mubr.bf16.vlgmr.msra.gmra.mrb[0].mxu0 %v2051_v7  ;;  %1848 = vmatmul.mubr.bf16.vlgmr.msra.gmra.mrb[0].mxu1 %v2051_v7  ;;  %v2634_v7 = vld [vmem:[%s3615_s1 + $0x5e8] ss:$16 sps:$4 sm:$0xff]  }
  0x83   :  { %1693 = vmatpush1.bf16.msra.mxu0 %v2541_v8  ;;  %1857 = vmatpush1.bf16.msra.mxu1 %v2544_v9  ;;  %v2641_v8 = vld [vmem:[%s3615_s1 + $0x604] ss:$16 sps:$4 sm:$0xff]   ;;  %v2644_v9 = vld [vmem:[%s3615_s1 + $0x60c] ss:$16 sps:$4 sm:$0xff]  }
  0x84   :  { %1694 = vmatprep.subr.bf16.mxu0 %v2549_v10  ;;  %1858 = vmatprep.subr.bf16.mxu1 %v2552_v12  ;;  %v2053_v10 = vcombine.low %v3183_v11, %v3183_v11  ;;  %v3375_v12 = vld [vmem:[%s3616_s0 + $0x18] sm:$0xff]  ;;  %v2647_v11 = vld [vmem:[%s3615_s1 + $0x624] ss:$16 sps:$4 sm:$0xff]  }
  0x85   :  { %1724 = vmatprep.mubr.bf16.mxu0 %v2054_v13  ;;  %1888 = vmatprep.mubr.bf16.mxu1 %v2054_v13  ;;  %v2639_v13 = vld [vmem:[%s3615_s1 + $0x600] ss:$16 sps:$4 sm:$0xff]  }
  0x87   :  { %1695 = vmatpush1.bf16.msra.mxu0 %v2547_v14  ;;  %1859 = vmatpush1.bf16.msra.mxu1 %v2550_v15  ;;  %v2642_v14 = vld [vmem:[%s3615_s1 + $0x608] ss:$16 sps:$4 sm:$0xff]   ;;  %v2650_v15 = vld [vmem:[%s3615_s1 + $0x62c] ss:$16 sps:$4 sm:$0xff]  }
  0x88   :  { %1696 = vmatprep.subr.bf16.mxu0 %v2555_v16  ;;  %1860 = vmatprep.subr.bf16.mxu1 %v2558_v17  ;;  %v2056_v16 = vcombine.high %v3375_v12, %v3375_v12  ;;  %v2645_v17 = vld [vmem:[%s3615_s1 + $0x620] ss:$16 sps:$4 sm:$0xff]  }
  0x8b   :  { %1697 = vmatpush1.bf16.msra.mxu0 %v2553_v18  ;;  %1861 = vmatpush1.bf16.msra.mxu1 %v2556_v19  ;;  %v2648_v18 = vld [vmem:[%s3615_s1 + $0x628] ss:$16 sps:$4 sm:$0xff]   ;;  %v2653_v19 = vld [vmem:[%s3615_s1 + $0x644] ss:$16 sps:$4 sm:$0xff]  }
  0x8c   :  { %1698 = vmatprep.subr.bf16.mxu0 %v2561_v20  ;;  %1862 = vmatprep.subr.bf16.mxu1 %v2564_v21  ;;  %v2656_v20 = vld [vmem:[%s3615_s1 + $0x64c] ss:$16 sps:$4 sm:$0xff]   ;;  %v2651_v21 = vld [vmem:[%s3615_s1 + $0x640] ss:$16 sps:$4 sm:$0xff]  }
  0x8f   :  { %1699 = vmatpush1.bf16.msra.mxu0 %v2559_v22  ;;  %1863 = vmatpush1.bf16.msra.mxu1 %v2562_v23  ;;  %v2654_v22 = vld [vmem:[%s3615_s1 + $0x648] ss:$16 sps:$4 sm:$0xff]   ;;  %v2659_v23 = vld [vmem:[%s3615_s1 + $0x664] ss:$16 sps:$4 sm:$0xff]  }
  0x90   :  { %1700 = vmatprep.subr.bf16.mxu0 %v2567_v24  ;;  %1864 = vmatprep.subr.bf16.mxu1 %v2570_v25  ;;  %v2662_v24 = vld [vmem:[%s3615_s1 + $0x66c] ss:$16 sps:$4 sm:$0xff]   ;;  %v2657_v25 = vld [vmem:[%s3615_s1 + $0x660] ss:$16 sps:$4 sm:$0xff]  }
  0x93   :  { %1701 = vmatpush1.bf16.msra.mxu0 %v2565_v26  ;;  %1865 = vmatpush1.bf16.msra.mxu1 %v2568_v27  ;;  %v2660_v26 = vld [vmem:[%s3615_s1 + $0x668] ss:$16 sps:$4 sm:$0xff]   ;;  %v2665_v27 = vld [vmem:[%s3615_s1 + $0x684] ss:$16 sps:$4 sm:$0xff]  }
  0x94   :  { %1702 = vmatprep.subr.bf16.mxu0 %v2573_v28  ;;  %1866 = vmatprep.subr.bf16.mxu1 %v2576_v29  ;;  %v2668_v28 = vld [vmem:[%s3615_s1 + $0x68c] ss:$16 sps:$4 sm:$0xff]   ;;  %v2663_v29 = vld [vmem:[%s3615_s1 + $0x680] ss:$16 sps:$4 sm:$0xff]  }
  0x97   :  { %1703 = vmatpush1.bf16.msra.mxu0 %v2571_v30  ;;  %1867 = vmatpush1.bf16.msra.mxu1 %v2574_v31  ;;  %v2666_v30 = vld [vmem:[%s3615_s1 + $0x688] ss:$16 sps:$4 sm:$0xff]   ;;  %v2671_v31 = vld [vmem:[%s3615_s1 + $0x6a4] ss:$16 sps:$4 sm:$0xff]  }
  0x98   :  { %1704 = vmatprep.subr.bf16.mxu0 %v2579_v32  ;;  %1868 = vmatprep.subr.bf16.mxu1 %v2582_v33  ;;  %v2674_v32 = vld [vmem:[%s3615_s1 + $0x6ac] ss:$16 sps:$4 sm:$0xff]   ;;  %v2669_v33 = vld [vmem:[%s3615_s1 + $0x6a0] ss:$16 sps:$4 sm:$0xff]  }
  0x9b   :  { %1705 = vmatpush1.bf16.msra.mxu0 %v2577_v34  ;;  %1869 = vmatpush1.bf16.msra.mxu1 %v2580_v35  ;;  %v2672_v34 = vld [vmem:[%s3615_s1 + $0x6a8] ss:$16 sps:$4 sm:$0xff]   ;;  %v2677_v35 = vld [vmem:[%s3615_s1 + $0x6c4] ss:$16 sps:$4 sm:$0xff]  }
  0x9c   :  { %1706 = vmatprep.subr.bf16.mxu0 %v2585_v36  ;;  %1870 = vmatprep.subr.bf16.mxu1 %v2588_v37  ;;  %v2680_v36 = vld [vmem:[%s3615_s1 + $0x6cc] ss:$16 sps:$4 sm:$0xff]   ;;  %v2675_v37 = vld [vmem:[%s3615_s1 + $0x6c0] ss:$16 sps:$4 sm:$0xff]  }
  0x9f   :  { %1707 = vmatpush1.bf16.msra.mxu0 %v2583_v38  ;;  %1871 = vmatpush1.bf16.msra.mxu1 %v2586_v39  ;;  %v2678_v38 = vld [vmem:[%s3615_s1 + $0x6c8] ss:$16 sps:$4 sm:$0xff]   ;;  %v2683_v39 = vld [vmem:[%s3615_s1 + $0x6e4] ss:$16 sps:$4 sm:$0xff]  }
  0xa0   :  { %1708 = vmatprep.subr.bf16.mxu0 %v2591_v40  ;;  %1872 = vmatprep.subr.bf16.mxu1 %v2594_v41  ;;  %v2686_v40 = vld [vmem:[%s3615_s1 + $0x6ec] ss:$16 sps:$4 sm:$0xff]   ;;  %v2681_v41 = vld [vmem:[%s3615_s1 + $0x6e0] ss:$16 sps:$4 sm:$0xff]  }
  0xa3   :  { %1709 = vmatpush1.bf16.msra.mxu0 %v2589_v42  ;;  %1873 = vmatpush1.bf16.msra.mxu1 %v2592_v43  ;;  %v2684_v42 = vld [vmem:[%s3615_s1 + $0x6e8] ss:$16 sps:$4 sm:$0xff]   ;;  %v2689_v43 = vld [vmem:[%s3615_s1 + $0x704] ss:$16 sps:$4 sm:$0xff]  }
  0xa4   :  { %1710 = vmatprep.subr.bf16.mxu0 %v2597_v44  ;;  %1874 = vmatprep.subr.bf16.mxu1 %v2600_v45  ;;  %v2692_v44 = vld [vmem:[%s3615_s1 + $0x70c] ss:$16 sps:$4 sm:$0xff]   ;;  %v2687_v45 = vld [vmem:[%s3615_s1 + $0x700] ss:$16 sps:$4 sm:$0xff]  }
  0xa7   :  { %1711 = vmatpush1.bf16.msra.mxu0 %v2595_v46  ;;  %1875 = vmatpush1.bf16.msra.mxu1 %v2598_v47  ;;  %v2690_v46 = vld [vmem:[%s3615_s1 + $0x708] ss:$16 sps:$4 sm:$0xff]   ;;  %v2695_v47 = vld [vmem:[%s3615_s1 + $0x724] ss:$16 sps:$4 sm:$0xff]  }
  0xa8   :  { %1712 = vmatprep.subr.bf16.mxu0 %v2603_v48  ;;  %1876 = vmatprep.subr.bf16.mxu1 %v2606_v49  ;;  %v2698_v48 = vld [vmem:[%s3615_s1 + $0x72c] ss:$16 sps:$4 sm:$0xff]   ;;  %v2693_v49 = vld [vmem:[%s3615_s1 + $0x720] ss:$16 sps:$4 sm:$0xff]  }
  0xab   :  { %1713 = vmatpush1.bf16.msra.mxu0 %v2601_v50  ;;  %1877 = vmatpush1.bf16.msra.mxu1 %v2604_v51  ;;  %v2696_v50 = vld [vmem:[%s3615_s1 + $0x728] ss:$16 sps:$4 sm:$0xff]   ;;  %v2701_v51 = vld [vmem:[%s3615_s1 + $0x744] ss:$16 sps:$4 sm:$0xff]  }
  0xac   :  { %1714 = vmatprep.subr.bf16.mxu0 %v2609_v52  ;;  %1878 = vmatprep.subr.bf16.mxu1 %v2612_v53  ;;  %v2704_v52 = vld [vmem:[%s3615_s1 + $0x74c] ss:$16 sps:$4 sm:$0xff]   ;;  %v2699_v53 = vld [vmem:[%s3615_s1 + $0x740] ss:$16 sps:$4 sm:$0xff]  }
  0xaf   :  { %1715 = vmatpush1.bf16.msra.mxu0 %v2607_v54  ;;  %1879 = vmatpush1.bf16.msra.mxu1 %v2610_v55  ;;  %v2702_v54 = vld [vmem:[%s3615_s1 + $0x748] ss:$16 sps:$4 sm:$0xff]   ;;  %v2707_v55 = vld [vmem:[%s3615_s1 + $0x764] ss:$16 sps:$4 sm:$0xff]  }
  0xb0   :  { %1716 = vmatprep.subr.bf16.mxu0 %v2615_v56  ;;  %1880 = vmatprep.subr.bf16.mxu1 %v2618_v57  ;;  %v2710_v56 = vld [vmem:[%s3615_s1 + $0x76c] ss:$16 sps:$4 sm:$0xff]   ;;  %v2705_v57 = vld [vmem:[%s3615_s1 + $0x760] ss:$16 sps:$4 sm:$0xff]  }
  0xb3   :  { %1717 = vmatpush1.bf16.msra.mxu0 %v2613_v58  ;;  %1881 = vmatpush1.bf16.msra.mxu1 %v2616_v59  ;;  %v2708_v58 = vld [vmem:[%s3615_s1 + $0x768] ss:$16 sps:$4 sm:$0xff]   ;;  %v2713_v59 = vld [vmem:[%s3615_s1 + $0x784] ss:$16 sps:$4 sm:$0xff]  }
  0xb4   :  { %1718 = vmatprep.subr.bf16.mxu0 %v2621_v60  ;;  %1882 = vmatprep.subr.bf16.mxu1 %v2624_v61  ;;  %v2716_v60 = vld [vmem:[%s3615_s1 + $0x78c] ss:$16 sps:$4 sm:$0xff]   ;;  %v2711_v61 = vld [vmem:[%s3615_s1 + $0x780] ss:$16 sps:$4 sm:$0xff]  }
  0xb7   :  { %1719 = vmatpush1.bf16.msra.mxu0 %v2619_v62  ;;  %1883 = vmatpush1.bf16.msra.mxu1 %v2622_v63  ;;  %v2714_v62 = vld [vmem:[%s3615_s1 + $0x788] ss:$16 sps:$4 sm:$0xff]   ;;  %v2719_v63 = vld [vmem:[%s3615_s1 + $0x7a4] ss:$16 sps:$4 sm:$0xff]  }
  0xb8   :  { %1720 = vmatprep.subr.bf16.mxu0 %v2627_v0  ;;  %1884 = vmatprep.subr.bf16.mxu1 %v2630_v1  ;;  %v2722_v0 = vld [vmem:[%s3615_s1 + $0x7ac] ss:$16 sps:$4 sm:$0xff]   ;;  %v2717_v1 = vld [vmem:[%s3615_s1 + $0x7a0] ss:$16 sps:$4 sm:$0xff]  }
  0xbb   :  { %1721 = vmatpush1.bf16.msra.mxu0 %v2625_v2  ;;  %1885 = vmatpush1.bf16.msra.mxu1 %v2628_v3  ;;  %v2720_v2 = vld [vmem:[%s3615_s1 + $0x7a8] ss:$16 sps:$4 sm:$0xff]   ;;  %v2725_v3 = vld [vmem:[%s3615_s1 + $0x7c4] ss:$16 sps:$4 sm:$0xff]  }
  0xbc   :  { %1722 = vmatprep.subr.bf16.mxu0 %v2633_v4  ;;  %1886 = vmatprep.subr.bf16.mxu1 %v2636_v5  ;;  %v2728_v4 = vld [vmem:[%s3615_s1 + $0x7cc] ss:$16 sps:$4 sm:$0xff]   ;;  %v2723_v5 = vld [vmem:[%s3615_s1 + $0x7c0] ss:$16 sps:$4 sm:$0xff]  }
  0xbf   :  { %1723 = vmatpush1.bf16.msra.mxu0 %v2631_v6  ;;  %1887 = vmatpush1.bf16.msra.mxu1 %v2634_v7  ;;  %v2726_v6 = vld [vmem:[%s3615_s1 + $0x7c8] ss:$16 sps:$4 sm:$0xff]   ;;  %v2731_v7 = vld [vmem:[%s3615_s1 + $0x7e4] ss:$16 sps:$4 sm:$0xff]  }
  0xc0   :  { %1733 = vmatprep.subr.bf16.mxu0 %v2641_v8  ;;  %1897 = vmatprep.subr.bf16.mxu1 %v2644_v9  ;;  %v2734_v8 = vld [vmem:[%s3615_s1 + $0x7ec] ss:$16 sps:$4 sm:$0xff]   ;;  %v2729_v9 = vld [vmem:[%s3615_s1 + $0x7e0] ss:$16 sps:$4 sm:$0xff]  }
  0xc2   :  { %1725 = vmatmul.mubr.bf16.vlgmr.msra.gmra.mrb[0].mxu0 %v2053_v10  ;;  %1889 = vmatmul.mubr.bf16.vlgmr.msra.gmra.mrb[0].mxu1 %v2053_v10  ;;  %v2732_v10 = vld [vmem:[%s3615_s1 + $0x7e8] ss:$16 sps:$4 sm:$0xff]  }
  0xc3   :  { %1734 = vmatpush1.bf16.msra.mxu0 %v2639_v13  ;;  %1898 = vmatpush1.bf16.msra.mxu1 %v2642_v14  ;;  %v2055_v13 = vcombine.low %v3375_v12, %v3375_v12  ;;  %v282_v14 = vlaneseq }
  0xc4   :  { %1735 = vmatprep.subr.bf16.mxu0 %v2647_v11  ;;  %1899 = vmatprep.subr.bf16.mxu1 %v2650_v15 }
  0xc5   :  { %1765 = vmatprep.mubr.bf16.mxu0 %v2056_v16  ;;  %1929 = vmatprep.mubr.bf16.mxu1 %v2056_v16  ;;  %v283_v11 = vshrl.u32 %v282_v14, 7 }
  0xc7   :  { %1736 = vmatpush1.bf16.msra.mxu0 %v2645_v17  ;;  %1900 = vmatpush1.bf16.msra.mxu1 %v2648_v18  ;;  %v3567_v15 = vsub.s32 0, %v283_v11  ;;  %v292_v16 = vsub.s32 2, %v283_v11  ;;  %v280_v17 = vld [vmem:[%s3617_s2] sm:$0xf]  ;;  %v288_v18 = vsub.s32 1, %v283_v11 }
  0xc8   :  { %1737 = vmatprep.subr.bf16.mxu0 %v2653_v19  ;;  %1901 = vmatprep.subr.bf16.mxu1 %v2656_v20  ;;  %v296_v19 = vsub.s32 3, %v283_v11 }
  0xc9   :  { %v285_v20 = vrot.slane %v280_v17, %v3567_v15 }
  0xca   :  { %v297_v12 = vrot.slane %v280_v17, %v296_v19 }
  0xcb   :  { %1738 = vmatpush1.bf16.msra.mxu0 %v2651_v21  ;;  %1902 = vmatpush1.bf16.msra.mxu1 %v2654_v22  ;;  %v293_v21 = vrot.slane %v280_v17, %v292_v16  ;;  %v289_v22 = vrot.slane %v280_v17, %v288_v18 }
  0xcc   :  { %1739 = vmatprep.subr.bf16.mxu0 %v2659_v23  ;;  %1903 = vmatprep.subr.bf16.mxu1 %v2662_v24 }
  0xcf   :  { %1740 = vmatpush1.bf16.msra.mxu0 %v2657_v25  ;;  %1904 = vmatpush1.bf16.msra.mxu1 %v2660_v26 }
  0xd0   :  { %1741 = vmatprep.subr.bf16.mxu0 %v2665_v27  ;;  %1905 = vmatprep.subr.bf16.mxu1 %v2668_v28 }
  0xd3   :  { %1742 = vmatpush1.bf16.msra.mxu0 %v2663_v29  ;;  %1906 = vmatpush1.bf16.msra.mxu1 %v2666_v30 }
  0xd4   :  { %1743 = vmatprep.subr.bf16.mxu0 %v2671_v31  ;;  %1907 = vmatprep.subr.bf16.mxu1 %v2674_v32 }
  0xd7   :  { %1744 = vmatpush1.bf16.msra.mxu0 %v2669_v33  ;;  %1908 = vmatpush1.bf16.msra.mxu1 %v2672_v34 }
  0xd8   :  { %1745 = vmatprep.subr.bf16.mxu0 %v2677_v35  ;;  %1909 = vmatprep.subr.bf16.mxu1 %v2680_v36 }
  0xdb   :  { %1746 = vmatpush1.bf16.msra.mxu0 %v2675_v37  ;;  %1910 = vmatpush1.bf16.msra.mxu1 %v2678_v38 }
  0xdc   :  { %1747 = vmatprep.subr.bf16.mxu0 %v2683_v39  ;;  %1911 = vmatprep.subr.bf16.mxu1 %v2686_v40 }
  0xdf   :  { %1748 = vmatpush1.bf16.msra.mxu0 %v2681_v41  ;;  %1912 = vmatpush1.bf16.msra.mxu1 %v2684_v42 }
  0xe0   :  { %1749 = vmatprep.subr.bf16.mxu0 %v2689_v43  ;;  %1913 = vmatprep.subr.bf16.mxu1 %v2692_v44 }
  0xe3   :  { %1750 = vmatpush1.bf16.msra.mxu0 %v2687_v45  ;;  %1914 = vmatpush1.bf16.msra.mxu1 %v2690_v46 }
  0xe4   :  { %1751 = vmatprep.subr.bf16.mxu0 %v2695_v47  ;;  %1915 = vmatprep.subr.bf16.mxu1 %v2698_v48 }
  0xe7   :  { %1752 = vmatpush1.bf16.msra.mxu0 %v2693_v49  ;;  %1916 = vmatpush1.bf16.msra.mxu1 %v2696_v50 }
  0xe8   :  { %1753 = vmatprep.subr.bf16.mxu0 %v2701_v51  ;;  %1917 = vmatprep.subr.bf16.mxu1 %v2704_v52 }
  0xeb   :  { %1754 = vmatpush1.bf16.msra.mxu0 %v2699_v53  ;;  %1918 = vmatpush1.bf16.msra.mxu1 %v2702_v54 }
  0xec   :  { %1755 = vmatprep.subr.bf16.mxu0 %v2707_v55  ;;  %1919 = vmatprep.subr.bf16.mxu1 %v2710_v56 }
  0xef   :  { %1756 = vmatpush1.bf16.msra.mxu0 %v2705_v57  ;;  %1920 = vmatpush1.bf16.msra.mxu1 %v2708_v58 }
  0xf0   :  { %1757 = vmatprep.subr.bf16.mxu0 %v2713_v59  ;;  %1921 = vmatprep.subr.bf16.mxu1 %v2716_v60 }
  0xf3   :  { %1758 = vmatpush1.bf16.msra.mxu0 %v2711_v61  ;;  %1922 = vmatpush1.bf16.msra.mxu1 %v2714_v62 }
  0xf4   :  { %1759 = vmatprep.subr.bf16.mxu0 %v2719_v63  ;;  %1923 = vmatprep.subr.bf16.mxu1 %v2722_v0 }
  0xf7   :  { %1760 = vmatpush1.bf16.msra.mxu0 %v2717_v1  ;;  %1924 = vmatpush1.bf16.msra.mxu1 %v2720_v2 }
  0xf8   :  { %1761 = vmatprep.subr.bf16.mxu0 %v2725_v3  ;;  %1925 = vmatprep.subr.bf16.mxu1 %v2728_v4 }
  0xfb   :  { %1762 = vmatpush1.bf16.msra.mxu0 %v2723_v5  ;;  %1926 = vmatpush1.bf16.msra.mxu1 %v2726_v6 }
  0xfc   :  { %1763 = vmatprep.subr.bf16.mxu0 %v2731_v7  ;;  %1927 = vmatprep.subr.bf16.mxu1 %v2734_v8 }
  0xff   :  { %1764 = vmatpush1.bf16.msra.mxu0 %v2729_v9  ;;  %1928 = vmatpush1.bf16.msra.mxu1 %v2732_v10 }
 0x102   :  { %1766 = vmatmul.mubr.bf16.vlgmr.msra.gmra.mrb[0].mxu0 %v2055_v13  ;;  %1930 = vmatmul.mubr.bf16.vlgmr.msra.gmra.mrb[0].mxu1 %v2055_v13 }
 0x1d5   :  { %v1767_v23 = vpop.f32.mrb[0].mxu0  ;;  %v1931_v24 = vpop.f32.mrb[0].mxu1 }
 0x1d6   :  { %v3573_v25 = vadd.f32 %v1767_v23, %v285_v20  ;;  %v3575_v26 = vadd.f32 %v1931_v24, %v293_v21  ;;  %v1769_v27 = vpop.f32.mrb[1].mxu0  ;;  %v1933_v28 = vpop.f32.mrb[1].mxu1 }
 0x1d7   :  { %v3577_v29 = vadd.f32 %v1769_v27, %v289_v22  ;;  %v3579_v30 = vadd.f32 %v1933_v28, %v297_v12  ;;  %v1771_v31 = vpop.f32.mrb[2].mxu0  ;;  %v1935_v32 = vpop.f32.mrb[2].mxu1 }
 0x1d8   :  { %v1938_v33 = vrot.slane %v3573_v25, 4  ;;  %v1962_v34 = vmul.f32 %v3573_v25, %v3573_v25  ;;  %v1950_v35 = vrot.slane %v3575_v26, 4  ;;  %v1964_v36 = vmul.f32 %v3575_v26, %v3575_v26  ;;  %v1772_v37 = vpop.f32.mrb[3].mxu0  ;;  %v1936_v38 = vpop.f32.mrb[3].mxu1 }
 0x1d9   :  { %v1944_v39 = vrot.slane %v3577_v29, 4  ;;  %v1963_v40 = vmul.f32 %v3577_v29, %v3577_v29  ;;  %v1956_v41 = vrot.slane %v3579_v30, 4  ;;  %v1965_v42 = vmul.f32 %v3579_v30, %v3579_v30 }
 0x1da   :  { %v1939_v43 = vadd.f32 %v3573_v25, %v1938_v33  ;;  %v1966_v44 = vrot.slane %v1962_v34, 4  ;;  %v1951_v45 = vadd.f32 %v3575_v26, %v1950_v35  ;;  %v1978_v46 = vrot.slane %v1964_v36, 4 }
 0x1db   :  { %v1945_v47 = vadd.f32 %v3577_v29, %v1944_v39  ;;  %v1972_v48 = vrot.slane %v1963_v40, 4  ;;  %v1957_v49 = vadd.f32 %v3579_v30, %v1956_v41  ;;  %v1984_v50 = vrot.slane %v1965_v42, 4  ;;  %v2002_v39 = vld [vmem:[%s3618_s3] sm:$0x1] }
 0x1dc   :  { %v1940_v51 = vrot.slane %v1939_v43, 2  ;;  %v1967_v52 = vadd.f32 %v1966_v44, %v1962_v34  ;;  %v1952_v53 = vrot.slane %v1951_v45, 2  ;;  %v1979_v54 = vadd.f32 %v1978_v46, %v1964_v36 }
 0x1dd   :  { %v1946_v55 = vrot.slane %v1945_v47, 2  ;;  %v1973_v56 = vadd.f32 %v1972_v48, %v1963_v40  ;;  %v1958_v57 = vrot.slane %v1957_v49, 2  ;;  %v1985_v58 = vadd.f32 %v1984_v50, %v1965_v42  ;;  %v2004_v42 = vld [vmem:[%s3619_s4] sm:$0x1] }
 0x1de   :  { %v1941_v59 = vadd.f32 %v1940_v51, %v1939_v43  ;;  %v1968_v60 = vrot.slane %v1967_v52, 2  ;;  %v1953_v61 = vadd.f32 %v1952_v53, %v1951_v45  ;;  %v1980_v62 = vrot.slane %v1979_v54, 2 }
 0x1df   :  { %v1947_v63 = vadd.f32 %v1946_v55, %v1945_v47  ;;  %v1974_v0 = vrot.slane %v1973_v56, 2  ;;  %v1959_v1 = vadd.f32 %v1958_v57, %v1957_v49  ;;  %v1986_v2 = vrot.slane %v1985_v58, 2 }
 0x1e0   :  { %v1942_v3 = vrot.slane %v1941_v59, 1  ;;  %v1969_v4 = vadd.f32 %v1968_v60, %v1967_v52  ;;  %v1981_v5 = vadd.f32 %v1980_v62, %v1979_v54  ;;  %v1954_v6 = vrot.slane %v1953_v61, 1 }
 0x1e1   :  { %v1948_v7 = vrot.slane %v1947_v63, 1  ;;  %v1975_v8 = vadd.f32 %v1974_v0, %v1973_v56  ;;  %v1987_v9 = vadd.f32 %v1986_v2, %v1985_v58  ;;  %v1960_v17 = vrot.slane %v1959_v1, 1 }
 0x1e2   :  { %v1943_v10 = vadd.f32 %v1942_v3, %v1941_v59  ;;  %v1970_v13 = vrot.slane %v1969_v4, 1  ;;  %v1982_v14 = vrot.slane %v1981_v5, 1  ;;  %v1955_v19 = vadd.f32 %v1954_v6, %v1953_v61 }
 0x1e3   :  { %v1949_v11 = vadd.f32 %v1948_v7, %v1947_v63  ;;  %v1976_v16 = vrot.slane %v1975_v8, 1  ;;  %v1988_v22 = vrot.slane %v1987_v9, 1  ;;  %v1961_v24 = vadd.f32 %v1960_v17, %v1959_v1 }
 0x1e4   :  { %v1971_v18 = vadd.f32 %v1970_v13, %v1969_v4  ;;  %v1983_v12 = vadd.f32 %v1982_v14, %v1981_v5 }
 0x1e5   :  { %v1977_v20 = vadd.f32 %v1976_v16, %v1975_v8  ;;  %v1990_v21 = vadd.f32 %v1949_v11, %v1943_v10  ;;  %v1989_v28 = vadd.f32 %v1988_v22, %v1987_v9 }
 0x1e7   :  { %v1991_v23 = vadd.f32 %v1977_v20, %v1971_v18  ;;  %v1992_v27 = vadd.f32 %v1990_v21, %v1955_v19 }
 0x1e9   :  { %v1993_v31 = vadd.f32 %v1991_v23, %v1983_v12  ;;  %v1994_v32 = vadd.f32 %v1992_v27, %v1961_v24 }
 0x1eb   :  { %v1995_v33 = vadd.f32 %v1993_v31, %v1989_v28  ;;  %v1996_v34 = vmul.f32 0.03125, %v1994_v32 }
 0x1ed   :  { %v1997_v35 = vmul.f32 0.03125, %v1995_v33  ;;  %v1998_v36 = vmul.f32 %v1996_v34, %v1996_v34 }
 0x1ef   :  { %v1999_v37 = vsub.f32 %v1997_v35, %v1998_v36 }
 0x1f1   :  { %v2000_v38 = vadd.f32 1e-05, %v1999_v37 }
 0x1f3   :  { %2737 = vrsqrt.f32 %v2000_v38 }
 0x1fd   :  { %v2738_v40 = vpop.eup %2737 }
 0x1fe   :  { %v2003_v41 = vmul.f32 %v2738_v40, %v2002_v39 }
 0x200   :  { %v2005_v43 = vmul.f32 %v2003_v41, %v1996_v34  ;;  %v2010_v44 = vrot.slane %v2003_v41, %v3567_v15 }
 0x202   :  { %v2006_v45 = vsub.f32 %v2004_v42, %v2005_v43  ;;  %v2011_v46 = vmul.f32 %v3573_v25, %v2010_v44  ;;  %v2012_v47 = vmul.f32 %v3577_v29, %v2010_v44  ;;  %v2013_v48 = vmul.f32 %v3575_v26, %v2010_v44 }
 0x203   :  { %v2014_v49 = vmul.f32 %v3579_v30, %v2010_v44 }
 0x204   :  { %v2018_v50 = vrot.slane %v2006_v45, %v3567_v15 }
 0x206   :  { %v2019_v51 = vadd.f32 %v2018_v50, %v2011_v46  ;;  %v2020_v52 = vadd.f32 %v2018_v50, %v2012_v47  ;;  %v2021_v53 = vadd.f32 %v2018_v50, %v2013_v48  ;;  %v2022_v54 = vadd.f32 %v2018_v50, %v2014_v49 }
 0x208   :  { %v2023_v55 = vmax.f32 %v2019_v51, 0.0  ;;  %v2024_v56 = vmax.f32 %v2020_v52, 0.0  ;;  %v2025_v57 = vmax.f32 %v2021_v53, 0.0  ;;  %v2026_v58 = vmax.f32 %v2022_v54, 0.0 }
 0x20a   :  { %v2315_v59 = vpack.c.bf16 %v2024_v56, %v2023_v55  ;;  %v2316_v60 = vpack.c.bf16 %v2026_v58, %v2025_v57 }
 0x20c   :  { %2043 = vst [vmem:[%s3620_s5] sm:$0xff] %v2315_v59  ;;  %2044 = vst [vmem:[%s3620_s5 + $0x8] sm:$0xff] %v2316_v60 }

// kernel: vae_forward.16
= control target key start
LH: loop header
LB: loop body
LE: loop exit
PB: predicated region body
PF: predicated region fallthrough
CT: control target
= control target key end

     0   :  { %vm651_vm0 = vcmask 523264   ;;  %s1261_s1 = inlined_call_operand.vmem [shape: bf16[512,256], index: 1, kind: input, shape index: {}]   ;;  %s1262_s0 = inlined_call_operand.vmem [shape: bf16[32,512], index: 0, kind: input, shape index: {}]   ;;  %s1263_s2 = inlined_call_operand.vmem [shape: f32[1,256], index: 2, kind: input, shape index: {}]   ;;  %s1264_s3 = inlined_call_operand.vmem [shape: f32[1,64], index: 3, kind: input, shape index: {}]   ;;  %s1265_s4 = inlined_call_operand.vmem [shape: f32[1,64], index: 4, kind: input, shape index: {}]   ;;  %s1266_s5 = inlined_call_operand.vmem [shape: bf16[32,256], index: 5, kind: output, shape index: {}]  }
   0x1   :  { %v823_v0 = vld [vmem:[%s1261_s1 + $0x4] ss:$8 sps:$4 sm:$0xff]   ;;  %v827_v2 = vld [vmem:[%s1261_s1] ss:$8 sps:$4 sm:$0xff]   ;;  %v829_v4 = vld [vmem:[%s1261_s1 + $0x14] ss:$8 sps:$4 sm:$0xff]  }
   0x2   :  { %v825_v1 = vld [vmem:[%s1261_s1 + $0x104] ss:$8 sps:$4 sm:$0xff]   ;;  %464 = vmatprep.subr.bf16.mxu1 %v823_v0  ;;  %v828_v3 = vld [vmem:[%s1261_s1 + $0x100] ss:$8 sps:$4 sm:$0xff]   ;;  %v831_v5 = vld [vmem:[%s1261_s1 + $0x114] ss:$8 sps:$4 sm:$0xff]  }
   0x3   :  { %517 = vmatprep.subr.bf16.mxu0 %v825_v1  ;;  %465 = vmatpush1.bf16.msra.mxu1 %v827_v2  ;;  %v833_v6 = vld [vmem:[%s1261_s1 + $0x10] ss:$8 sps:$4 sm:$0xff]   ;;  %v835_v8 = vld [vmem:[%s1261_s1 + $0x24] ss:$8 sps:$4 sm:$0xff]   ;;  %v839_v10 = vld [vmem:[%s1261_s1 + $0x20] ss:$8 sps:$4 sm:$0xff]  }
   0x4   :  { %518 = vmatpush1.bf16.msra.mxu0 %v828_v3  ;;  %466 = vmatprep.subr.bf16.mxu1 %v829_v4  ;;  %v834_v7 = vld [vmem:[%s1261_s1 + $0x110] ss:$8 sps:$4 sm:$0xff]   ;;  %v837_v9 = vld [vmem:[%s1261_s1 + $0x124] ss:$8 sps:$4 sm:$0xff]   ;;  %v840_v11 = vld [vmem:[%s1261_s1 + $0x120] ss:$8 sps:$4 sm:$0xff]  }
   0x5   :  { %519 = vmatprep.subr.bf16.mxu0 %v831_v5  ;;  %v841_v12 = vld [vmem:[%s1261_s1 + $0x34] ss:$8 sps:$4 sm:$0xff]   ;;  %v845_v14 = vld [vmem:[%s1261_s1 + $0x30] ss:$8 sps:$4 sm:$0xff]   ;;  %v847_v16 = vld [vmem:[%s1261_s1 + $0x44] ss:$8 sps:$4 sm:$0xff]  }
   0x6   :  { %v843_v13 = vld [vmem:[%s1261_s1 + $0x134] ss:$8 sps:$4 sm:$0xff]   ;;  %v846_v15 = vld [vmem:[%s1261_s1 + $0x130] ss:$8 sps:$4 sm:$0xff]   ;;  %v849_v17 = vld [vmem:[%s1261_s1 + $0x144] ss:$8 sps:$4 sm:$0xff]  }
   0x7   :  { %467 = vmatpush1.bf16.msra.mxu1 %v833_v6  ;;  %v851_v18 = vld [vmem:[%s1261_s1 + $0x40] ss:$8 sps:$4 sm:$0xff]   ;;  %v853_v20 = vld [vmem:[%s1261_s1 + $0x54] ss:$8 sps:$4 sm:$0xff]   ;;  %v857_v22 = vld [vmem:[%s1261_s1 + $0x50] ss:$8 sps:$4 sm:$0xff]  }
   0x8   :  { %520 = vmatpush1.bf16.msra.mxu0 %v834_v7  ;;  %468 = vmatprep.subr.bf16.mxu1 %v835_v8  ;;  %v852_v19 = vld [vmem:[%s1261_s1 + $0x140] ss:$8 sps:$4 sm:$0xff]   ;;  %v855_v21 = vld [vmem:[%s1261_s1 + $0x154] ss:$8 sps:$4 sm:$0xff]   ;;  %v858_v23 = vld [vmem:[%s1261_s1 + $0x150] ss:$8 sps:$4 sm:$0xff]   ;;  %v94_v8 = vlaneseq }
   0x9   :  { %521 = vmatprep.subr.bf16.mxu0 %v837_v9  ;;  %v859_v24 = vld [vmem:[%s1261_s1 + $0x64] ss:$8 sps:$4 sm:$0xff]   ;;  %v863_v26 = vld [vmem:[%s1261_s1 + $0x60] ss:$8 sps:$4 sm:$0xff]   ;;  %v865_v28 = vld [vmem:[%s1261_s1 + $0x74] ss:$8 sps:$4 sm:$0xff]  }
   0xa   :  { %v861_v25 = vld [vmem:[%s1261_s1 + $0x164] ss:$8 sps:$4 sm:$0xff]   ;;  %v864_v27 = vld [vmem:[%s1261_s1 + $0x160] ss:$8 sps:$4 sm:$0xff]   ;;  %v867_v29 = vld [vmem:[%s1261_s1 + $0x174] ss:$8 sps:$4 sm:$0xff]  }
   0xb   :  { %469 = vmatpush1.bf16.msra.mxu1 %v839_v10  ;;  %v869_v30 = vld [vmem:[%s1261_s1 + $0x70] ss:$8 sps:$4 sm:$0xff]   ;;  %v871_v32 = vld [vmem:[%s1261_s1 + $0x84] ss:$8 sps:$4 sm:$0xff]   ;;  %v875_v34 = vld [vmem:[%s1261_s1 + $0x80] ss:$8 sps:$4 sm:$0xff]  }
   0xc   :  { %522 = vmatpush1.bf16.msra.mxu0 %v840_v11  ;;  %470 = vmatprep.subr.bf16.mxu1 %v841_v12  ;;  %v870_v31 = vld [vmem:[%s1261_s1 + $0x170] ss:$8 sps:$4 sm:$0xff]   ;;  %v873_v33 = vld [vmem:[%s1261_s1 + $0x184] ss:$8 sps:$4 sm:$0xff]   ;;  %v876_v35 = vld [vmem:[%s1261_s1 + $0x180] ss:$8 sps:$4 sm:$0xff]  }
   0xd   :  { %523 = vmatprep.subr.bf16.mxu0 %v843_v13  ;;  %v877_v36 = vld [vmem:[%s1261_s1 + $0x94] ss:$8 sps:$4 sm:$0xff]   ;;  %v881_v38 = vld [vmem:[%s1261_s1 + $0x90] ss:$8 sps:$4 sm:$0xff]   ;;  %v883_v40 = vld [vmem:[%s1261_s1 + $0xa4] ss:$8 sps:$4 sm:$0xff]  }
   0xe   :  { %v879_v37 = vld [vmem:[%s1261_s1 + $0x194] ss:$8 sps:$4 sm:$0xff]   ;;  %v882_v39 = vld [vmem:[%s1261_s1 + $0x190] ss:$8 sps:$4 sm:$0xff]   ;;  %v885_v41 = vld [vmem:[%s1261_s1 + $0x1a4] ss:$8 sps:$4 sm:$0xff]  }
   0xf   :  { %471 = vmatpush1.bf16.msra.mxu1 %v845_v14  ;;  %v887_v42 = vld [vmem:[%s1261_s1 + $0xa0] ss:$8 sps:$4 sm:$0xff]   ;;  %v889_v44 = vld [vmem:[%s1261_s1 + $0xb4] ss:$8 sps:$4 sm:$0xff]   ;;  %v893_v46 = vld [vmem:[%s1261_s1 + $0xb0] ss:$8 sps:$4 sm:$0xff]  }
  0x10   :  { %524 = vmatpush1.bf16.msra.mxu0 %v846_v15  ;;  %472 = vmatprep.subr.bf16.mxu1 %v847_v16  ;;  %v888_v43 = vld [vmem:[%s1261_s1 + $0x1a0] ss:$8 sps:$4 sm:$0xff]   ;;  %v891_v45 = vld [vmem:[%s1261_s1 + $0x1b4] ss:$8 sps:$4 sm:$0xff]   ;;  %v894_v47 = vld [vmem:[%s1261_s1 + $0x1b0] ss:$8 sps:$4 sm:$0xff]  }
  0x11   :  { %525 = vmatprep.subr.bf16.mxu0 %v849_v17  ;;  %v895_v48 = vld [vmem:[%s1261_s1 + $0xc4] ss:$8 sps:$4 sm:$0xff]   ;;  %v899_v52 = vld [vmem:[%s1261_s1 + $0xc0] ss:$8 sps:$4 sm:$0xff]   ;;  %v901_v54 = vld [vmem:[%s1261_s1 + $0xd4] ss:$8 sps:$4 sm:$0xff]  }
  0x12   :  { %v921_v49 = vld [vmem:[%s1262_s0 + $0x4] ss:$16 sps:$4 sm:$0xff]   ;;  %v924_v51 = vld [vmem:[%s1262_s0 + $0xc] ss:$16 sps:$4 sm:$0xff]   ;;  %v900_v53 = vld [vmem:[%s1261_s1 + $0x1c0] ss:$8 sps:$4 sm:$0xff]  }
  0x13   :  { %473 = vmatpush1.bf16.msra.mxu1 %v851_v18  ;;  %v897_v50 = vld [vmem:[%s1261_s1 + $0x1c4] ss:$8 sps:$4 sm:$0xff]   ;;  %496 = vmatprep.mubr.bf16.mxu1 %v921_v49  ;;  %v903_v55 = vld [vmem:[%s1261_s1 + $0x1d4] ss:$8 sps:$4 sm:$0xff]   ;;  %v905_v56 = vld [vmem:[%s1261_s1 + $0xd0] ss:$8 sps:$4 sm:$0xff]  }
  0x14   :  { %526 = vmatpush1.bf16.msra.mxu0 %v852_v19  ;;  %474 = vmatprep.subr.bf16.mxu1 %v853_v20  ;;  %v906_v57 = vld [vmem:[%s1261_s1 + $0x1d0] ss:$8 sps:$4 sm:$0xff]   ;;  %v907_v58 = vld [vmem:[%s1261_s1 + $0xe4] ss:$8 sps:$4 sm:$0xff]   ;;  %v911_v60 = vld [vmem:[%s1261_s1 + $0xe0] ss:$8 sps:$4 sm:$0xff]  }
  0x15   :  { %527 = vmatprep.subr.bf16.mxu0 %v855_v21  ;;  %549 = vmatprep.mubr.bf16.mxu0 %v924_v51  ;;  %v909_v59 = vld [vmem:[%s1261_s1 + $0x1e4] ss:$8 sps:$4 sm:$0xff]   ;;  %v912_v61 = vld [vmem:[%s1261_s1 + $0x1e0] ss:$8 sps:$4 sm:$0xff]   ;;  %v913_v62 = vld [vmem:[%s1261_s1 + $0xf4] ss:$8 sps:$4 sm:$0xff]  }
  0x16   :  { %v915_v63 = vld [vmem:[%s1261_s1 + $0x1f4] ss:$8 sps:$4 sm:$0xff]   ;;  %v917_v0 = vld [vmem:[%s1261_s1 + $0xf0] ss:$8 sps:$4 sm:$0xff]   ;;  %v95_v9 = vshrl.u32 %v94_v8, 7 }
  0x17   :  { %475 = vmatpush1.bf16.msra.mxu1 %v857_v22  ;;  %v918_v1 = vld [vmem:[%s1261_s1 + $0x1f0] ss:$8 sps:$4 sm:$0xff]   ;;  %v925_v4 = vld [vmem:[%s1262_s0 + $0x24] ss:$16 sps:$4 sm:$0xff]   ;;  %v927_v5 = vld [vmem:[%s1262_s0 + $0x2c] ss:$16 sps:$4 sm:$0xff]  }
  0x18   :  { %528 = vmatpush1.bf16.msra.mxu0 %v858_v23  ;;  %476 = vmatprep.subr.bf16.mxu1 %v859_v24  ;;  %v919_v2 = vld [vmem:[%s1262_s0] ss:$16 sps:$4 sm:$0xff]   ;;  %v922_v3 = vld [vmem:[%s1262_s0 + $0x8] ss:$16 sps:$4 sm:$0xff]   ;;  %v1180_v10 = vsub.s32 0, %v95_v9  ;;  %v100_v12 = vsub.s32 1, %v95_v9 }
  0x19   :  { %529 = vmatprep.subr.bf16.mxu0 %v861_v25  ;;  %v929_v6 = vld [vmem:[%s1262_s0 + $0x20] ss:$16 sps:$4 sm:$0xff]   ;;  %v930_v7 = vld [vmem:[%s1262_s0 + $0x28] ss:$16 sps:$4 sm:$0xff]   ;;  %s933_s0 = smov 64  }
  0x1a   :  { %v92_v11 = vld [vmem:[%s1263_s2] sm:$0x3] }
  0x1b   :  { %477 = vmatpush1.bf16.msra.mxu1 %v863_v26  ;;  %v97_v13 = vrot.slane %v92_v11, %v1180_v10  ;;  %v101_v14 = vrot.slane %v92_v11, %v100_v12 }
  0x1c   :  { %530 = vmatpush1.bf16.msra.mxu0 %v864_v27  ;;  %478 = vmatprep.subr.bf16.mxu1 %v865_v28 }
  0x1d   :  { %531 = vmatprep.subr.bf16.mxu0 %v867_v29 }
  0x1f   :  { %479 = vmatpush1.bf16.msra.mxu1 %v869_v30 }
  0x20   :  { %532 = vmatpush1.bf16.msra.mxu0 %v870_v31  ;;  %480 = vmatprep.subr.bf16.mxu1 %v871_v32 }
  0x21   :  { %533 = vmatprep.subr.bf16.mxu0 %v873_v33 }
  0x23   :  { %481 = vmatpush1.bf16.msra.mxu1 %v875_v34 }
  0x24   :  { %534 = vmatpush1.bf16.msra.mxu0 %v876_v35  ;;  %482 = vmatprep.subr.bf16.mxu1 %v877_v36 }
  0x25   :  { %535 = vmatprep.subr.bf16.mxu0 %v879_v37 }
  0x27   :  { %483 = vmatpush1.bf16.msra.mxu1 %v881_v38 }
  0x28   :  { %536 = vmatpush1.bf16.msra.mxu0 %v882_v39  ;;  %484 = vmatprep.subr.bf16.mxu1 %v883_v40 }
  0x29   :  { %537 = vmatprep.subr.bf16.mxu0 %v885_v41 }
  0x2b   :  { %485 = vmatpush1.bf16.msra.mxu1 %v887_v42 }
  0x2c   :  { %538 = vmatpush1.bf16.msra.mxu0 %v888_v43  ;;  %486 = vmatprep.subr.bf16.mxu1 %v889_v44 }
  0x2d   :  { %539 = vmatprep.subr.bf16.mxu0 %v891_v45 }
  0x2f   :  { %487 = vmatpush1.bf16.msra.mxu1 %v893_v46 }
  0x30   :  { %540 = vmatpush1.bf16.msra.mxu0 %v894_v47  ;;  %488 = vmatprep.subr.bf16.mxu1 %v895_v48 }
  0x31   :  { %541 = vmatprep.subr.bf16.mxu0 %v897_v50 }
  0x33   :  { %489 = vmatpush1.bf16.msra.mxu1 %v899_v52 }
  0x34   :  { %542 = vmatpush1.bf16.msra.mxu0 %v900_v53  ;;  %490 = vmatprep.subr.bf16.mxu1 %v901_v54 }
  0x35   :  { %543 = vmatprep.subr.bf16.mxu0 %v903_v55 }
  0x37   :  { %491 = vmatpush1.bf16.msra.mxu1 %v905_v56 }
  0x38   :  { %544 = vmatpush1.bf16.msra.mxu0 %v906_v57  ;;  %492 = vmatprep.subr.bf16.mxu1 %v907_v58 }
  0x39   :  { %545 = vmatprep.subr.bf16.mxu0 %v909_v59 }
  0x3b   :  { %493 = vmatpush1.bf16.msra.mxu1 %v911_v60 }
  0x3c   :  { %546 = vmatpush1.bf16.msra.mxu0 %v912_v61  ;;  %494 = vmatprep.subr.bf16.mxu1 %v913_v62 }
  0x3d   :  { %547 = vmatprep.subr.bf16.mxu0 %v915_v63 }
  0x3f   :  { %495 = vmatpush1.bf16.msra.mxu1 %v917_v0 }
  0x40   :  { %548 = vmatpush1.bf16.msra.mxu0 %v918_v1 }
  0x42   :  { %497 = vmatmul.mubr.bf16.vlgmr.msra.gmra.mrb[0].mxu1 %v919_v2 }
  0x43   :  { %550 = vmatmul.mubr.bf16.vlgmr.msra.gmra.mrb[0].mxu0 %v922_v3  ;;  %506 = vmatprep.mubr.bf16.mxu1 %v925_v4 }
  0x44   :  { %559 = vmatprep.mubr.bf16.mxu0 %v927_v5 }
  0x4a   :  { %507 = vmatmul.mubr.bf16.gmra.mrb[4].mxu1 %v929_v6 }
  0x4b   :  { %560 = vmatmul.mubr.bf16.gmra.mrb[4].mxu0 %v930_v7 }
 0x115   :  { %v498_v15 = vpop.f32.mrb[0].mxu1 }
 0x116   :  { %v551_v16 = vpop.f32.mrb[0].mxu0  ;;  %v499_v17 = vadd.f32 %v498_v15, %v97_v13  ;;  %v500_v18 = vpop.f32.mrb[1].mxu1 }
 0x117   :  { %v553_v19 = vpop.f32.mrb[1].mxu0  ;;  %v501_v20 = vadd.f32 %v500_v18, %v101_v14  ;;  %v502_v21 = vpop.f32.mrb[2].mxu1 }
 0x118   :  { %v555_v22 = vpop.f32.mrb[2].mxu0  ;;  %v1186_v23 = vadd.f32 %v551_v16, %v499_v17  ;;  %v503_v24 = vadd.f32 %v502_v21, %v97_v13  ;;  %v504_v25 = vpop.f32.mrb[3].mxu1 }
 0x119   :  { %v557_v26 = vpop.f32.mrb[3].mxu0  ;;  %v1188_v27 = vadd.f32 %v553_v19, %v501_v20  ;;  %v505_v28 = vadd.f32 %v504_v25, %v101_v14 }
 0x11a   :  { %v1190_v29 = vadd.f32 %v555_v22, %v503_v24  ;;  %v588_v41 = vmul.f32 %v1186_v23, %v1186_v23 }
 0x11b   :  { %v1192_v30 = vadd.f32 %v557_v26, %v505_v28  ;;  %v589_v47 = vmul.f32 %v1188_v27, %v1188_v27 }
 0x11c   :  { %v590_v33 = vmul.f32 %v1190_v29, %v1190_v29  ;;  %v570_v42 = vadd.f32 %v1190_v29, %v1186_v23 }
 0x11d   :  { %v508_v31 = vpop.f32.mrb[4].mxu1  ;;  %v591_v37 = vmul.f32 %v1192_v30, %v1192_v30  ;;  %v579_v48 = vadd.f32 %v1192_v30, %v1188_v27 }
 0x11e   :  { %v561_v32 = vpop.f32.mrb[4].mxu0  ;;  %v509_v34 = vadd.f32 %v508_v31, %v97_v13  ;;  %v510_v35 = vpop.f32.mrb[5].mxu1  ;;  %v596_v51 = vadd.f32 %v590_v33, %v588_v41 }
 0x11f   :  { %v563_v36 = vpop.f32.mrb[5].mxu0  ;;  %v511_v38 = vadd.f32 %v510_v35, %v101_v14  ;;  %v512_v39 = vpop.f32.mrb[6].mxu1  ;;  %v605_v55 = vadd.f32 %v591_v37, %v589_v47 }
 0x120   :  { %v565_v40 = vpop.f32.mrb[6].mxu0  ;;  %v1202_v43 = vadd.f32 %v561_v32, %v509_v34  ;;  %v513_v44 = vadd.f32 %v512_v39, %v97_v13  ;;  %v514_v45 = vpop.f32.mrb[7].mxu1 }
 0x121   :  { %v567_v46 = vpop.f32.mrb[7].mxu0  ;;  %v1208_v49 = vadd.f32 %v563_v36, %v511_v38  ;;  %v515_v50 = vadd.f32 %v514_v45, %v101_v14 }
 0x122   :  { %v571_v52 = vadd.f32 %v570_v42, %v1202_v43  ;;  %v592_v53 = vmul.f32 %v1202_v43, %v1202_v43  ;;  %v1213_v54 = vadd.f32 %v565_v40, %v513_v44 }
 0x123   :  { %v580_v56 = vadd.f32 %v579_v48, %v1208_v49  ;;  %v593_v57 = vmul.f32 %v1208_v49, %v1208_v49  ;;  %v1218_v58 = vadd.f32 %v567_v46, %v515_v50  ;;  %v642_v48 = vld [vmem:[%s1264_s3] sm:$0x1] }
 0x124   :  { %v597_v59 = vadd.f32 %v596_v51, %v592_v53  ;;  %v572_v60 = vadd.f32 %v571_v52, %v1213_v54  ;;  %v594_v61 = vmul.f32 %v1213_v54, %v1213_v54  ;;  %v644_v52 = vld [vmem:[%s1265_s4] sm:$0x1] }
 0x125   :  { %v606_v62 = vadd.f32 %v605_v55, %v593_v57  ;;  %v581_v63 = vadd.f32 %v580_v56, %v1218_v58  ;;  %v595_v0 = vmul.f32 %v1218_v58, %v1218_v58 }
 0x126   :  { %v573_v1 = vrot.slane %v572_v60, 4  ;;  %v598_v2 = vadd.f32 %v597_v59, %v594_v61 }
 0x127   :  { %v582_v3 = vrot.slane %v581_v63, 4  ;;  %v607_v4 = vadd.f32 %v606_v62, %v595_v0 }
 0x128   :  { %v599_v5 = vrot.slane %v598_v2, 4  ;;  %v574_v6 = vadd.f32 %v573_v1, %v572_v60 }
 0x129   :  { %v608_v7 = vrot.slane %v607_v4, 4  ;;  %v583_v8 = vadd.f32 %v582_v3, %v581_v63 }
 0x12a   :  { %v575_v9 = vrot.slane %v574_v6, 2  ;;  %v600_v11 = vadd.f32 %v599_v5, %v598_v2 }
 0x12b   :  { %v584_v12 = vrot.slane %v583_v8, 2  ;;  %v609_v13 = vadd.f32 %v608_v7, %v607_v4 }
 0x12c   :  { %v576_v14 = vadd.f32 %v575_v9, %v574_v6  ;;  %v601_v15 = vrot.slane %v600_v11, 2 }
 0x12d   :  { %v585_v16 = vadd.f32 %v584_v12, %v583_v8  ;;  %v610_v17 = vrot.slane %v609_v13, 2 }
 0x12e   :  { %v577_v18 = vrot.slane %v576_v14, 1  ;;  %v602_v19 = vadd.f32 %v601_v15, %v600_v11 }
 0x12f   :  { %v586_v20 = vrot.slane %v585_v16, 1  ;;  %v611_v21 = vadd.f32 %v610_v17, %v609_v13 }
 0x130   :  { %v578_v22 = vadd.f32 %v577_v18, %v576_v14  ;;  %v603_v24 = vrot.slane %v602_v19, 1 }
 0x131   :  { %v587_v25 = vadd.f32 %v586_v20, %v585_v16  ;;  %v612_v26 = vrot.slane %v611_v21, 1 }
 0x132   :  { %615 = vrot.lane.b32.xlu0 %v578_v22, %s933_s0  ;;  %v604_v28 = vadd.f32 %v603_v24, %v602_v19 }
 0x133   :  { %627 = vrot.lane.b32.xlu1 %v587_v25, %s933_s0  ;;  %v613_v31 = vadd.f32 %v612_v26, %v611_v21 }
 0x136   :  { %620 = vrot.lane.b32.xlu0 %v604_v28, %s933_s0 }
 0x137   :  { %632 = vrot.lane.b32.xlu1 %v613_v31, %s933_s0 }
 0x1a4   :  { %v616_v32 = vpop.permute.xlu0 %615 }
 0x1a5   :  { %v618_v33 = vadd.f32 %v616_v32, %v578_v22  ;;  %v628_v34 = vpop.permute.xlu1 %627 }
 0x1a7   :  { %v624_v35 = vadd.f32 %v618_v33, %v587_v25 }
 0x1a8   :  { %v621_v36 = vpop.permute.xlu0 %620 }
 0x1a9   :  { %v630_v37 = vadd.f32 %v628_v34, %v624_v35  ;;  %v623_v38 = vadd.f32 %v621_v36, %v604_v28  ;;  %v633_v41 = vpop.permute.xlu1 %632 }
 0x1ab   :  { %v636_v39 = vmul.f32 0.0078125, %v630_v37  ;;  %v625_v40 = vadd.f32 %v623_v38, %v613_v31 }
 0x1ad   :  { %v635_v42 = vadd.f32 %v633_v41, %v625_v40  ;;  %v638_v44 = vmul.f32 %v636_v39, %v636_v39 }
 0x1af   :  { %v637_v45 = vmul.f32 0.0078125, %v635_v42 }
 0x1b1   :  { %v639_v46 = vsub.f32 %v637_v45, %v638_v44 }
 0x1b3   :  { %v640_v47 = vadd.f32 1e-05, %v639_v46 }
 0x1b5   :  { %931 = vrsqrt.f32 %v640_v47 }
 0x1bf   :  { %v932_v50 = vpop.eup %931 }
 0x1c0   :  { %v643_v51 = vmul.f32 %v932_v50, %v642_v48 }
 0x1c2   :  { %648 = vrot.lane.b32.xlu0 %v643_v51, %s933_s0  ;;  %v645_v53 = vmul.f32 %v643_v51, %v636_v39 }
 0x1c4   :  { %v646_v55 = vsub.f32 %v644_v52, %v645_v53 }
 0x1c6   :  { %v657_v56 = vrot.slane %v646_v55, %v1180_v10 }
 0x1c8   :  { %658 = vrot.lane.b32.xlu1 %v657_v56, %s933_s0 }
 0x234   :  { %v649_v57 = vpop.permute.xlu0 %648 }
 0x235   :  { %v652_v59 = vsel %vm651_vm0, %v643_v51, %v649_v57 }
 0x236   :  { %v665_v60 = vrot.slane %v652_v59, %v1180_v10 }
 0x238   :  { %v666_v62 = vmul.f32 %v665_v60, %v1186_v23  ;;  %v667_v0 = vmul.f32 %v665_v60, %v1188_v27  ;;  %v668_v1 = vmul.f32 %v665_v60, %v1190_v29  ;;  %v669_v2 = vmul.f32 %v665_v60, %v1192_v30 }
 0x239   :  { %v670_v4 = vmul.f32 %v665_v60, %v1202_v43  ;;  %v671_v5 = vmul.f32 %v665_v60, %v1208_v49  ;;  %v672_v6 = vmul.f32 %v665_v60, %v1213_v54  ;;  %v673_v7 = vmul.f32 %v665_v60, %v1218_v58 }
 0x23a   :  { %v659_v61 = vpop.permute.xlu1 %658 }
 0x23b   :  { %v661_v63 = vsel %vm651_vm0, %v646_v55, %v659_v61 }
 0x23c   :  { %v677_v3 = vrot.slane %v661_v63, %v1180_v10 }
 0x23e   :  { %v678_v8 = vadd.f32 %v677_v3, %v666_v62  ;;  %v679_v9 = vadd.f32 %v677_v3, %v667_v0  ;;  %v680_v23 = vadd.f32 %v677_v3, %v668_v1  ;;  %v681_v11 = vadd.f32 %v677_v3, %v669_v2 }
 0x23f   :  { %v682_v12 = vadd.f32 %v677_v3, %v670_v4  ;;  %v683_v27 = vadd.f32 %v677_v3, %v671_v5  ;;  %v684_v13 = vadd.f32 %v677_v3, %v672_v6  ;;  %v685_v29 = vadd.f32 %v677_v3, %v673_v7 }
 0x240   :  { %v686_v14 = vmax.f32 %v678_v8, 0.0  ;;  %v687_v30 = vmax.f32 %v679_v9, 0.0  ;;  %v688_v15 = vmax.f32 %v680_v23, 0.0  ;;  %v689_v10 = vmax.f32 %v681_v11, 0.0 }
 0x241   :  { %v690_v16 = vmax.f32 %v682_v12, 0.0  ;;  %v691_v43 = vmax.f32 %v683_v27, 0.0  ;;  %v692_v17 = vmax.f32 %v684_v13, 0.0  ;;  %v693_v49 = vmax.f32 %v685_v29, 0.0 }
 0x242   :  { %v802_v18 = vpack.c.bf16 %v687_v30, %v686_v14  ;;  %v803_v54 = vpack.c.bf16 %v689_v10, %v688_v15 }
 0x243   :  { %v804_v19 = vpack.c.bf16 %v691_v43, %v690_v16  ;;  %v805_v58 = vpack.c.bf16 %v693_v49, %v692_v17 }
 0x244   :  { %718 = vst [vmem:[%s1266_s5] sm:$0xff] %v802_v18  ;;  %719 = vst [vmem:[%s1266_s5 + $0x8] sm:$0xff] %v803_v54 }
 0x245   :  { %720 = vst [vmem:[%s1266_s5 + $0x10] sm:$0xff] %v804_v19  ;;  %721 = vst [vmem:[%s1266_s5 + $0x18] sm:$0xff] %v805_v58 }

// kernel: vae_forward.14
= control target key start
LH: loop header
LB: loop body
LE: loop exit
PB: predicated region body
PF: predicated region fallthrough
CT: control target
= control target key end

     0   :  { %v158_v7 = vlaneseq  ;;  %v2113_v8 = vmov 1966171168   ;;  %s2820_s1 = inlined_call_operand.vmem [shape: bf16[1024,256], index: 1, kind: input, shape index: {}]   ;;  %s2821_s0 = inlined_call_operand.vmem [shape: bf16[2,1024], index: 0, kind: input, shape index: {}]   ;;  %s2822_s4 = inlined_call_operand.vmem [shape: bf16[128,1024], index: 4, kind: input, shape index: {}]   ;;  %s2823_s2 = inlined_call_operand.vmem [shape: f32[1,256], index: 2, kind: input, shape index: {}]   ;;  %s2824_s6 = inlined_call_operand.vmem [shape: f32[2,128], index: 6, kind: output, shape index: {0}]   ;;  %s2825_s7 = inlined_call_operand.vmem [shape: f32[2,128], index: 7, kind: output, shape index: {1}]   ;;  %s2826_s3 = inlined_call_operand.vmem [shape: f32[2,128], index: 3, kind: input, shape index: {}]   ;;  %s2827_s5 = inlined_call_operand.vmem [shape: f32[1,1024], index: 5, kind: input, shape index: {}]   ;;  %s2828_s8 = inlined_call_operand.vmem [shape: bf16[2,1024], index: 8, kind: output, shape index: {2}]  }
   0x1   :  { %v1918_v0 = vld [vmem:[%s2820_s1 + $0x104] ss:$8 sps:$4 sm:$0xff]   ;;  %v1920_v1 = vld [vmem:[%s2820_s1 + $0x100] ss:$8 sps:$4 sm:$0xff]   ;;  %v1921_v2 = vld [vmem:[%s2820_s1 + $0x114] ss:$8 sps:$4 sm:$0xff]   ;;  %v171_v9 = vunpack.c.l.s4 %v2113_v8 }
   0x2   :  { %907 = vmatprep.subr.bf16.mxu0 %v1918_v0  ;;  %v1923_v3 = vld [vmem:[%s2820_s1 + $0x110] ss:$8 sps:$4 sm:$0xff]   ;;  %v1924_v4 = vld [vmem:[%s2820_s1 + $0x124] ss:$8 sps:$4 sm:$0xff]   ;;  %v1926_v5 = vld [vmem:[%s2820_s1 + $0x120] ss:$8 sps:$4 sm:$0xff]  }
   0x3   :  { %908 = vmatpush1.bf16.msra.mxu0 %v1920_v1  ;;  %v1927_v6 = vld [vmem:[%s2820_s1 + $0x134] ss:$8 sps:$4 sm:$0xff]   ;;  %v1929_v10 = vld [vmem:[%s2820_s1 + $0x130] ss:$8 sps:$4 sm:$0xff]   ;;  %v1930_v11 = vld [vmem:[%s2820_s1 + $0x144] ss:$8 sps:$4 sm:$0xff]   ;;  %v172_v13 = vunpack.c.0.s8 %v171_v9 }
   0x4   :  { %909 = vmatprep.subr.bf16.mxu0 %v1921_v2  ;;  %v2187_v12 = vshrl.u32 %v158_v7, 7  ;;  %v1932_v14 = vld [vmem:[%s2820_s1 + $0x140] ss:$8 sps:$4 sm:$0xff]   ;;  %v1933_v15 = vld [vmem:[%s2820_s1 + $0x154] ss:$8 sps:$4 sm:$0xff]  }
   0x5   :  { %v1935_v17 = vld [vmem:[%s2820_s1 + $0x150] ss:$8 sps:$4 sm:$0xff]   ;;  %v1936_v18 = vld [vmem:[%s2820_s1 + $0x164] ss:$8 sps:$4 sm:$0xff]   ;;  %v1938_v21 = vld [vmem:[%s2820_s1 + $0x160] ss:$8 sps:$4 sm:$0xff]  }
   0x6   :  { %v2196_v16 = vsub.s32 %v172_v13, %v2187_v12  ;;  %v27_v19 = vld [vmem:[%s2821_s0] sm:$0xff]  ;;  %v1939_v22 = vld [vmem:[%s2820_s1 + $0x174] ss:$8 sps:$4 sm:$0xff]   ;;  %v1941_v25 = vld [vmem:[%s2820_s1 + $0x170] ss:$8 sps:$4 sm:$0xff]  }
   0x7   :  { %910 = vmatpush1.bf16.msra.mxu0 %v1923_v3  ;;  %v1942_v26 = vld [vmem:[%s2820_s1 + $0x184] ss:$8 sps:$4 sm:$0xff]   ;;  %v1944_v28 = vld [vmem:[%s2820_s1 + $0x180] ss:$8 sps:$4 sm:$0xff]   ;;  %v1945_v29 = vld [vmem:[%s2820_s1 + $0x194] ss:$8 sps:$4 sm:$0xff]   ;;  %v169_v46 = vcombine.high %v27_v19, %v27_v19 }
   0x8   :  { %911 = vmatprep.subr.bf16.mxu0 %v1924_v4  ;;  %v176_v20 = vrot.slane %v27_v19, %v2196_v16  ;;  %v1947_v30 = vld [vmem:[%s2820_s1 + $0x190] ss:$8 sps:$4 sm:$0xff]   ;;  %v1948_v31 = vld [vmem:[%s2820_s1 + $0x1a4] ss:$8 sps:$4 sm:$0xff]   ;;  %v1950_v32 = vld [vmem:[%s2820_s1 + $0x1a0] ss:$8 sps:$4 sm:$0xff]  }
   0x9   :  { %v1951_v33 = vld [vmem:[%s2820_s1 + $0x1b4] ss:$8 sps:$4 sm:$0xff]   ;;  %v2012_v34 = vld [vmem:[%s2820_s1 + $0x4] ss:$8 sps:$4 sm:$0xff]   ;;  %v2014_v35 = vld [vmem:[%s2820_s1] ss:$8 sps:$4 sm:$0xff]   ;;  %v2288_v51 = vrot.slane %v169_v46, %v2196_v16 }
   0xa   :  { %v184_v23 = vcombine.high %v176_v20, %v176_v20  ;;  %v1953_v36 = vld [vmem:[%s2820_s1 + $0x1b0] ss:$8 sps:$4 sm:$0xff]   ;;  %v1954_v37 = vld [vmem:[%s2820_s1 + $0x1c4] ss:$8 sps:$4 sm:$0xff]   ;;  %866 = vmatprep.subr.bf16.mxu1 %v2012_v34  ;;  %v2018_v38 = vld [vmem:[%s2820_s1 + $0x14] ss:$8 sps:$4 sm:$0xff]   ;;  %v2297_v54 = vrot.slane %v176_v20, %v2196_v16 }
   0xb   :  { %912 = vmatpush1.bf16.msra.mxu0 %v1926_v5  ;;  %867 = vmatpush1.bf16.msra.mxu1 %v2014_v35  ;;  %v2020_v39 = vld [vmem:[%s2820_s1 + $0x10] ss:$8 sps:$4 sm:$0xff]   ;;  %v1956_v40 = vld [vmem:[%s2820_s1 + $0x1c0] ss:$8 sps:$4 sm:$0xff]   ;;  %v2024_v41 = vld [vmem:[%s2820_s1 + $0x24] ss:$8 sps:$4 sm:$0xff]   ;;  %v185_v57 = vcombine.high %v2288_v51, %v2288_v51 }
   0xc   :  { %913 = vmatprep.subr.bf16.mxu0 %v1927_v6  ;;  %v206_v24 = vrot.slane %v184_v23, %v2196_v16  ;;  %868 = vmatprep.subr.bf16.mxu1 %v2018_v38  ;;  %v1957_v42 = vld [vmem:[%s2820_s1 + $0x1d4] ss:$8 sps:$4 sm:$0xff]   ;;  %v2026_v43 = vld [vmem:[%s2820_s1 + $0x20] ss:$8 sps:$4 sm:$0xff]   ;;  %v1959_v45 = vld [vmem:[%s2820_s1 + $0x1d0] ss:$8 sps:$4 sm:$0xff]   ;;  %v214_v60 = vcombine.high %v2297_v54, %v2297_v54 }
   0xd   :  { %v2030_v44 = vld [vmem:[%s2820_s1 + $0x34] ss:$8 sps:$4 sm:$0xff]   ;;  %v1960_v47 = vld [vmem:[%s2820_s1 + $0x1e4] ss:$8 sps:$4 sm:$0xff]   ;;  %v2032_v48 = vld [vmem:[%s2820_s1 + $0x30] ss:$8 sps:$4 sm:$0xff]   ;;  %v2322_v63 = vrot.slane %v185_v57, %v2196_v16  ;;  %v2484_v57 = vrot.slane %v2288_v51, %v2196_v16 }
   0xe   :  { %v216_v27 = vcombine.high %v206_v24, %v206_v24  ;;  %898 = vmatprep.mubr.bf16.mxu1 %v206_v24  ;;  %v2036_v49 = vld [vmem:[%s2820_s1 + $0x44] ss:$8 sps:$4 sm:$0xff]   ;;  %v1962_v50 = vld [vmem:[%s2820_s1 + $0x1e0] ss:$8 sps:$4 sm:$0xff]   ;;  %v1963_v52 = vld [vmem:[%s2820_s1 + $0x1f4] ss:$8 sps:$4 sm:$0xff]  }
   0xf   :  { %914 = vmatpush1.bf16.msra.mxu0 %v1929_v10  ;;  %869 = vmatpush1.bf16.msra.mxu1 %v2020_v39  ;;  %v2038_v53 = vld [vmem:[%s2820_s1 + $0x40] ss:$8 sps:$4 sm:$0xff]   ;;  %v2042_v55 = vld [vmem:[%s2820_s1 + $0x54] ss:$8 sps:$4 sm:$0xff]   ;;  %v1965_v56 = vld [vmem:[%s2820_s1 + $0x1f0] ss:$8 sps:$4 sm:$0xff]  }
  0x10   :  { %915 = vmatprep.subr.bf16.mxu0 %v1930_v11  ;;  %939 = vmatprep.mubr.bf16.mxu0 %v216_v27  ;;  %v1969_v58 = vld [vmem:[%s2820_s1 + $0x204] ss:$8 sps:$4 sm:$0xff]   ;;  %v2044_v59 = vld [vmem:[%s2820_s1 + $0x50] ss:$8 sps:$4 sm:$0xff]   ;;  %v1967_v62 = vld [vmem:[%s2820_s1 + $0x200] ss:$8 sps:$4 sm:$0xff]  }
  0x11   :  { %870 = vmatprep.subr.bf16.mxu1 %v2024_v41  ;;  %v2048_v61 = vld [vmem:[%s2820_s1 + $0x64] ss:$8 sps:$4 sm:$0xff]   ;;  %v1972_v0 = vld [vmem:[%s2820_s1 + $0x214] ss:$8 sps:$4 sm:$0xff]   ;;  %v2050_v1 = vld [vmem:[%s2820_s1 + $0x60] ss:$8 sps:$4 sm:$0xff]  }
  0x12   :  { %v2054_v2 = vld [vmem:[%s2820_s1 + $0x74] ss:$8 sps:$4 sm:$0xff]   ;;  %v1970_v3 = vld [vmem:[%s2820_s1 + $0x210] ss:$8 sps:$4 sm:$0xff]   ;;  %v1975_v4 = vld [vmem:[%s2820_s1 + $0x224] ss:$8 sps:$4 sm:$0xff]  }
  0x13   :  { %916 = vmatpush1.bf16.msra.mxu0 %v1932_v14  ;;  %871 = vmatpush1.bf16.msra.mxu1 %v2026_v43  ;;  %v2056_v5 = vld [vmem:[%s2820_s1 + $0x70] ss:$8 sps:$4 sm:$0xff]   ;;  %v2060_v6 = vld [vmem:[%s2820_s1 + $0x84] ss:$8 sps:$4 sm:$0xff]   ;;  %v1973_v7 = vld [vmem:[%s2820_s1 + $0x220] ss:$8 sps:$4 sm:$0xff]  }
  0x14   :  { %917 = vmatprep.subr.bf16.mxu0 %v1933_v15  ;;  %872 = vmatprep.subr.bf16.mxu1 %v2030_v44  ;;  %v1978_v8 = vld [vmem:[%s2820_s1 + $0x234] ss:$8 sps:$4 sm:$0xff]   ;;  %v2062_v9 = vld [vmem:[%s2820_s1 + $0x80] ss:$8 sps:$4 sm:$0xff]   ;;  %v1976_v11 = vld [vmem:[%s2820_s1 + $0x230] ss:$8 sps:$4 sm:$0xff]  }
  0x15   :  { %v2066_v10 = vld [vmem:[%s2820_s1 + $0x94] ss:$8 sps:$4 sm:$0xff]   ;;  %v1981_v13 = vld [vmem:[%s2820_s1 + $0x244] ss:$8 sps:$4 sm:$0xff]   ;;  %v2068_v14 = vld [vmem:[%s2820_s1 + $0x90] ss:$8 sps:$4 sm:$0xff]  }
  0x16   :  { %v2072_v15 = vld [vmem:[%s2820_s1 + $0xa4] ss:$8 sps:$4 sm:$0xff]   ;;  %v2074_v19 = vld [vmem:[%s2820_s1 + $0xa0] ss:$8 sps:$4 sm:$0xff]   ;;  %v2078_v20 = vld [vmem:[%s2820_s1 + $0xb4] ss:$8 sps:$4 sm:$0xff]  }
  0x17   :  { %918 = vmatpush1.bf16.msra.mxu0 %v1935_v17  ;;  %873 = vmatpush1.bf16.msra.mxu1 %v2032_v48  ;;  %v1979_v17 = vld [vmem:[%s2820_s1 + $0x240] ss:$8 sps:$4 sm:$0xff]   ;;  %v2080_v23 = vld [vmem:[%s2820_s1 + $0xb0] ss:$8 sps:$4 sm:$0xff]   ;;  %v2084_v24 = vld [vmem:[%s2820_s1 + $0xc4] ss:$8 sps:$4 sm:$0xff]  }
  0x18   :  { %919 = vmatprep.subr.bf16.mxu0 %v1936_v18  ;;  %874 = vmatprep.subr.bf16.mxu1 %v2036_v49  ;;  %v1984_v18 = vld [vmem:[%s2820_s1 + $0x254] ss:$8 sps:$4 sm:$0xff]   ;;  %v2086_v27 = vld [vmem:[%s2820_s1 + $0xc0] ss:$8 sps:$4 sm:$0xff]   ;;  %v2104_v41 = vld [vmem:[%s2820_s1 + $0xf0] ss:$8 sps:$4 sm:$0xff]  }
  0x19   :  { %v1996_v34 = vld [vmem:[%s2820_s1 + $0x294] ss:$8 sps:$4 sm:$0xff]   ;;  %v2098_v35 = vld [vmem:[%s2820_s1 + $0xe0] ss:$8 sps:$4 sm:$0xff]   ;;  %v2000_v46 = vld [vmem:[%s2820_s1 + $0x2b0] ss:$8 sps:$4 sm:$0xff]  }
  0x1a   :  { %v1037_v38 = vld [vmem:[%s2822_s4] sm:$0xff]  ;;  %v2002_v44 = vld [vmem:[%s2820_s1 + $0x2b4] ss:$8 sps:$4 sm:$0xff]   ;;  %v2027_v51 = vld [vmem:[%s2820_s1 + $0x310] ss:$8 sps:$4 sm:$0xff]  }
  0x1b   :  { %920 = vmatpush1.bf16.msra.mxu0 %v1938_v21  ;;  %875 = vmatpush1.bf16.msra.mxu1 %v2038_v53  ;;  %v1982_v21 = vld [vmem:[%s2820_s1 + $0x250] ss:$8 sps:$4 sm:$0xff]   ;;  %v1041_v39 = vld [vmem:[%s2822_s4 + $0x20] sm:$0xff]  ;;  %v2008_v49 = vld [vmem:[%s2820_s1 + $0x2d4] ss:$8 sps:$4 sm:$0xff]  }
  0x1c   :  { %921 = vmatprep.subr.bf16.mxu0 %v1939_v22  ;;  %876 = vmatprep.subr.bf16.mxu1 %v2042_v55  ;;  %v1987_v22 = vld [vmem:[%s2820_s1 + $0x264] ss:$8 sps:$4 sm:$0xff]   ;;  %v1997_v43 = vld [vmem:[%s2820_s1 + $0x2a0] ss:$8 sps:$4 sm:$0xff]   ;;  %v2015_v55 = vld [vmem:[%s2820_s1 + $0x2f0] ss:$8 sps:$4 sm:$0xff]  }
  0x1d   :  { %v2003_v48 = vld [vmem:[%s2820_s1 + $0x2c0] ss:$8 sps:$4 sm:$0xff]  }
  0x1e   :  { %v2009_v53 = vld [vmem:[%s2820_s1 + $0x2e0] ss:$8 sps:$4 sm:$0xff]  }
  0x1f   :  { %922 = vmatpush1.bf16.msra.mxu0 %v1941_v25  ;;  %877 = vmatpush1.bf16.msra.mxu1 %v2044_v59  ;;  %v1985_v25 = vld [vmem:[%s2820_s1 + $0x260] ss:$8 sps:$4 sm:$0xff]   ;;  %v217_v59 = vcombine.high %v2322_v63, %v2322_v63 }
  0x20   :  { %923 = vmatprep.subr.bf16.mxu0 %v1942_v26  ;;  %878 = vmatprep.subr.bf16.mxu1 %v2048_v61  ;;  %v1990_v26 = vld [vmem:[%s2820_s1 + $0x274] ss:$8 sps:$4 sm:$0xff]   ;;  %v2035_v61 = vld [vmem:[%s2820_s1 + $0x324] ss:$8 sps:$4 sm:$0xff]  }
  0x23   :  { %924 = vmatpush1.bf16.msra.mxu0 %v1944_v28  ;;  %879 = vmatpush1.bf16.msra.mxu1 %v2050_v1  ;;  %v2090_v28 = vld [vmem:[%s2820_s1 + $0xd4] ss:$8 sps:$4 sm:$0xff]   ;;  %v2047_v1 = vld [vmem:[%s2820_s1 + $0x344] ss:$8 sps:$4 sm:$0xff]  }
  0x24   :  { %925 = vmatprep.subr.bf16.mxu0 %v1945_v29  ;;  %880 = vmatprep.subr.bf16.mxu1 %v2054_v2  ;;  %v1988_v29 = vld [vmem:[%s2820_s1 + $0x270] ss:$8 sps:$4 sm:$0xff]   ;;  %v2045_v2 = vld [vmem:[%s2820_s1 + $0x340] ss:$8 sps:$4 sm:$0xff]  }
  0x27   :  { %926 = vmatpush1.bf16.msra.mxu0 %v1947_v30  ;;  %881 = vmatpush1.bf16.msra.mxu1 %v2056_v5  ;;  %v1993_v30 = vld [vmem:[%s2820_s1 + $0x284] ss:$8 sps:$4 sm:$0xff]  }
  0x28   :  { %927 = vmatprep.subr.bf16.mxu0 %v1948_v31  ;;  %882 = vmatprep.subr.bf16.mxu1 %v2060_v6  ;;  %v2092_v31 = vld [vmem:[%s2820_s1 + $0xd0] ss:$8 sps:$4 sm:$0xff]   ;;  %v2059_v5 = vld [vmem:[%s2820_s1 + $0x364] ss:$8 sps:$4 sm:$0xff]   ;;  %v2057_v6 = vld [vmem:[%s2820_s1 + $0x360] ss:$8 sps:$4 sm:$0xff]  }
  0x2b   :  { %928 = vmatpush1.bf16.msra.mxu0 %v1950_v32  ;;  %883 = vmatpush1.bf16.msra.mxu1 %v2062_v9  ;;  %v2096_v32 = vld [vmem:[%s2820_s1 + $0xe4] ss:$8 sps:$4 sm:$0xff]  }
  0x2c   :  { %929 = vmatprep.subr.bf16.mxu0 %v1951_v33  ;;  %884 = vmatprep.subr.bf16.mxu1 %v2066_v10  ;;  %v1991_v33 = vld [vmem:[%s2820_s1 + $0x280] ss:$8 sps:$4 sm:$0xff]   ;;  %v2071_v9 = vld [vmem:[%s2820_s1 + $0x384] ss:$8 sps:$4 sm:$0xff]  }
  0x2d   :  { %v2069_v10 = vld [vmem:[%s2820_s1 + $0x380] ss:$8 sps:$4 sm:$0xff]  }
  0x2f   :  { %930 = vmatpush1.bf16.msra.mxu0 %v1953_v36  ;;  %885 = vmatpush1.bf16.msra.mxu1 %v2068_v14  ;;  %v2102_v36 = vld [vmem:[%s2820_s1 + $0xf4] ss:$8 sps:$4 sm:$0xff]   ;;  %v2083_v14 = vld [vmem:[%s2820_s1 + $0x3a4] ss:$8 sps:$4 sm:$0xff]  }
  0x30   :  { %931 = vmatprep.subr.bf16.mxu0 %v1954_v37  ;;  %886 = vmatprep.subr.bf16.mxu1 %v2072_v15  ;;  %v1994_v37 = vld [vmem:[%s2820_s1 + $0x290] ss:$8 sps:$4 sm:$0xff]   ;;  %v2081_v15 = vld [vmem:[%s2820_s1 + $0x3a0] ss:$8 sps:$4 sm:$0xff]  }
  0x33   :  { %932 = vmatpush1.bf16.msra.mxu0 %v1956_v40  ;;  %887 = vmatpush1.bf16.msra.mxu1 %v2074_v19  ;;  %v1999_v40 = vld [vmem:[%s2820_s1 + $0x2a4] ss:$8 sps:$4 sm:$0xff]  }
  0x34   :  { %933 = vmatprep.subr.bf16.mxu0 %v1957_v42  ;;  %888 = vmatprep.subr.bf16.mxu1 %v2078_v20  ;;  %v1837_v42 = vcombine.high %v1037_v38, %v1041_v39  ;;  %v2095_v19 = vld [vmem:[%s2820_s1 + $0x3c4] ss:$8 sps:$4 sm:$0xff]   ;;  %v2093_v20 = vld [vmem:[%s2820_s1 + $0x3c0] ss:$8 sps:$4 sm:$0xff]  }
  0x37   :  { %934 = vmatpush1.bf16.msra.mxu0 %v1959_v45  ;;  %889 = vmatpush1.bf16.msra.mxu1 %v2080_v23  ;;  %v1836_v45 = vcombine.low %v1037_v38, %v1041_v39  ;;  %v2107_v23 = vld [vmem:[%s2820_s1 + $0x3e4] ss:$8 sps:$4 sm:$0xff]  }
  0x38   :  { %935 = vmatprep.subr.bf16.mxu0 %v1960_v47  ;;  %890 = vmatprep.subr.bf16.mxu1 %v2084_v24  ;;  %v2005_v47 = vld [vmem:[%s2820_s1 + $0x2c4] ss:$8 sps:$4 sm:$0xff]   ;;  %v2105_v24 = vld [vmem:[%s2820_s1 + $0x3e0] ss:$8 sps:$4 sm:$0xff]  }
  0x3b   :  { %936 = vmatpush1.bf16.msra.mxu0 %v1962_v50  ;;  %891 = vmatpush1.bf16.msra.mxu1 %v2086_v27  ;;  %v2006_v50 = vld [vmem:[%s2820_s1 + $0x2d0] ss:$8 sps:$4 sm:$0xff]   ;;  %v215_v27 = vcombine.high %v2484_v57, %v2484_v57 }
  0x3c   :  { %937 = vmatprep.subr.bf16.mxu0 %v1963_v52  ;;  %892 = vmatprep.subr.bf16.mxu1 %v2090_v28  ;;  %v2011_v52 = vld [vmem:[%s2820_s1 + $0x2e4] ss:$8 sps:$4 sm:$0xff]  }
  0x3d   :  { %v1045_v28 = vld [vmem:[%s2822_s4 + $0x40] sm:$0xff] }
  0x3f   :  { %938 = vmatpush1.bf16.msra.mxu0 %v1965_v56  ;;  %893 = vmatpush1.bf16.msra.mxu1 %v2092_v31  ;;  %v2023_v56 = vld [vmem:[%s2820_s1 + $0x304] ss:$8 sps:$4 sm:$0xff]  }
  0x40   :  { %948 = vmatprep.subr.bf16.mxu0 %v1969_v58  ;;  %894 = vmatprep.subr.bf16.mxu1 %v2096_v32  ;;  %v2021_v58 = vld [vmem:[%s2820_s1 + $0x300] ss:$8 sps:$4 sm:$0xff]  }
  0x41   :  { %v1053_v32 = vld [vmem:[%s2822_s4 + $0x80] sm:$0xff] }
  0x42   :  { %940 = vmatmul.mubr.bf16.vlgmr.msra.gmra.mrb[0].mxu0 %v214_v60  ;;  %v2029_v60 = vld [vmem:[%s2820_s1 + $0x314] ss:$8 sps:$4 sm:$0xff]  }
  0x43   :  { %949 = vmatpush1.bf16.msra.mxu0 %v1967_v62  ;;  %980 = vmatprep.mubr.bf16.mxu0 %v2322_v63  ;;  %v2033_v62 = vld [vmem:[%s2820_s1 + $0x320] ss:$8 sps:$4 sm:$0xff]   ;;  %v2041_v63 = vld [vmem:[%s2820_s1 + $0x334] ss:$8 sps:$4 sm:$0xff]  }
  0x44   :  { %950 = vmatprep.subr.bf16.mxu0 %v1972_v0  ;;  %895 = vmatpush1.bf16.msra.mxu1 %v2098_v35  ;;  %v2039_v0 = vld [vmem:[%s2820_s1 + $0x330] ss:$8 sps:$4 sm:$0xff]  }
  0x45   :  { %896 = vmatprep.subr.bf16.mxu1 %v2102_v36  ;;  %v1061_v36 = vld [vmem:[%s2822_s4 + $0xc0] sm:$0xff] }
  0x47   :  { %951 = vmatpush1.bf16.msra.mxu0 %v1970_v3  ;;  %v2053_v3 = vld [vmem:[%s2820_s1 + $0x354] ss:$8 sps:$4 sm:$0xff]  }
  0x48   :  { %952 = vmatprep.subr.bf16.mxu0 %v1975_v4  ;;  %897 = vmatpush1.bf16.msra.mxu1 %v2104_v41  ;;  %v2051_v4 = vld [vmem:[%s2820_s1 + $0x350] ss:$8 sps:$4 sm:$0xff]   ;;  %v1073_v41 = vld [vmem:[%s2822_s4 + $0x120] sm:$0xff] }
  0x49   :  { %1463 = vmatprep.subr.bf16.mxu1 %v1837_v42 }
  0x4b   :  { %953 = vmatpush1.bf16.msra.mxu0 %v1973_v7  ;;  %899 = vmatmul.mubr.bf16.vlgmr.msra.gmra.mrb[0].mxu1 %v2297_v54  ;;  %v2017_v54 = vld [vmem:[%s2820_s1 + $0x2f4] ss:$8 sps:$4 sm:$0xff]  }
  0x4c   :  { %954 = vmatprep.subr.bf16.mxu0 %v1978_v8  ;;  %1464 = vmatpush1.bf16.msra.mxu1 %v1836_v45  ;;  %v2065_v7 = vld [vmem:[%s2820_s1 + $0x374] ss:$8 sps:$4 sm:$0xff]   ;;  %v2063_v8 = vld [vmem:[%s2820_s1 + $0x370] ss:$8 sps:$4 sm:$0xff]   ;;  %v1081_v45 = vld [vmem:[%s2822_s4 + $0x160] sm:$0xff] }
  0x4f   :  { %955 = vmatpush1.bf16.msra.mxu0 %v1976_v11  ;;  %v2077_v11 = vld [vmem:[%s2820_s1 + $0x394] ss:$8 sps:$4 sm:$0xff]  }
  0x50   :  { %956 = vmatprep.subr.bf16.mxu0 %v1981_v13  ;;  %v2075_v13 = vld [vmem:[%s2820_s1 + $0x390] ss:$8 sps:$4 sm:$0xff]  }
  0x53   :  { %957 = vmatpush1.bf16.msra.mxu0 %v1979_v17  ;;  %v2089_v17 = vld [vmem:[%s2820_s1 + $0x3b4] ss:$8 sps:$4 sm:$0xff]  }
  0x54   :  { %958 = vmatprep.subr.bf16.mxu0 %v1984_v18  ;;  %v2087_v18 = vld [vmem:[%s2820_s1 + $0x3b0] ss:$8 sps:$4 sm:$0xff]  }
  0x57   :  { %959 = vmatpush1.bf16.msra.mxu0 %v1982_v21  ;;  %v2101_v21 = vld [vmem:[%s2820_s1 + $0x3d4] ss:$8 sps:$4 sm:$0xff]  }
  0x58   :  { %960 = vmatprep.subr.bf16.mxu0 %v1987_v22  ;;  %v2099_v22 = vld [vmem:[%s2820_s1 + $0x3d0] ss:$8 sps:$4 sm:$0xff]  }
  0x5b   :  { %961 = vmatpush1.bf16.msra.mxu0 %v1985_v25  ;;  %v2110_v25 = vld [vmem:[%s2820_s1 + $0x3f4] ss:$8 sps:$4 sm:$0xff]  }
  0x5c   :  { %962 = vmatprep.subr.bf16.mxu0 %v1990_v26  ;;  %v2108_v26 = vld [vmem:[%s2820_s1 + $0x3f0] ss:$8 sps:$4 sm:$0xff]  }
  0x5f   :  { %963 = vmatpush1.bf16.msra.mxu0 %v1988_v29  ;;  %v1049_v29 = vld [vmem:[%s2822_s4 + $0x60] sm:$0xff] }
  0x60   :  { %964 = vmatprep.subr.bf16.mxu0 %v1993_v30  ;;  %v1844_v30 = vcombine.low %v1045_v28, %v1049_v29  ;;  %v1845_v31 = vcombine.high %v1045_v28, %v1049_v29 }
  0x62   :  { %1465 = vmatprep.subr.bf16.mxu1 %v1845_v31  ;;  %v1066_v31 = vld [vmem:[%s2822_s4 + $0xe8] sm:$0xff] }
  0x63   :  { %965 = vmatpush1.bf16.msra.mxu0 %v1991_v33  ;;  %1466 = vmatpush1.bf16.msra.mxu1 %v1844_v30  ;;  %v1057_v33 = vld [vmem:[%s2822_s4 + $0xa0] sm:$0xff]  ;;  %v1062_v30 = vld [vmem:[%s2822_s4 + $0xc8] sm:$0xff] }
  0x64   :  { %966 = vmatprep.subr.bf16.mxu0 %v1996_v34  ;;  %v1853_v34 = vcombine.high %v1053_v32, %v1057_v33  ;;  %v1852_v35 = vcombine.low %v1053_v32, %v1057_v33  ;;  %v1863_v33 = vcombine.high %v1062_v30, %v1066_v31 }
  0x66   :  { %1467 = vmatprep.subr.bf16.mxu1 %v1853_v34  ;;  %v1070_v34 = vld [vmem:[%s2822_s4 + $0x108] sm:$0xff] }
  0x67   :  { %967 = vmatpush1.bf16.msra.mxu0 %v1994_v37  ;;  %1468 = vmatpush1.bf16.msra.mxu1 %v1852_v35  ;;  %v1065_v37 = vld [vmem:[%s2822_s4 + $0xe0] sm:$0xff]  ;;  %v1074_v35 = vld [vmem:[%s2822_s4 + $0x128] sm:$0xff] }
  0x68   :  { %968 = vmatprep.subr.bf16.mxu0 %v1999_v40  ;;  %v1861_v38 = vcombine.high %v1061_v36, %v1065_v37  ;;  %v1860_v39 = vcombine.low %v1061_v36, %v1065_v37  ;;  %v1069_v40 = vld [vmem:[%s2822_s4 + $0x100] sm:$0xff]  ;;  %v1862_v36 = vcombine.low %v1062_v30, %v1066_v31  ;;  %v1871_v37 = vcombine.high %v1070_v34, %v1074_v35 }
  0x69   :  { %v1869_v42 = vcombine.high %v1069_v40, %v1073_v41 }
  0x6a   :  { %1469 = vmatprep.subr.bf16.mxu1 %v1861_v38  ;;  %v1078_v38 = vld [vmem:[%s2822_s4 + $0x148] sm:$0xff] }
  0x6b   :  { %969 = vmatpush1.bf16.msra.mxu0 %v1997_v43  ;;  %1470 = vmatpush1.bf16.msra.mxu1 %v1860_v39  ;;  %v1868_v43 = vcombine.low %v1069_v40, %v1073_v41  ;;  %v1082_v39 = vld [vmem:[%s2822_s4 + $0x168] sm:$0xff]  ;;  %v1870_v40 = vcombine.low %v1070_v34, %v1074_v35 }
  0x6c   :  { %970 = vmatprep.subr.bf16.mxu0 %v2002_v44  ;;  %1471 = vmatprep.subr.bf16.mxu1 %v1869_v42  ;;  %v1077_v44 = vld [vmem:[%s2822_s4 + $0x140] sm:$0xff]  ;;  %v1879_v41 = vcombine.high %v1078_v38, %v1082_v39  ;;  %v1086_v42 = vld [vmem:[%s2822_s4 + $0x188] sm:$0xff] }
  0x6f   :  { %971 = vmatpush1.bf16.msra.mxu0 %v2000_v46  ;;  %v1085_v46 = vld [vmem:[%s2822_s4 + $0x180] sm:$0xff]  ;;  %1472 = vmatpush1.bf16.msra.mxu1 %v1868_v43  ;;  %v1090_v43 = vld [vmem:[%s2822_s4 + $0x1a8] sm:$0xff] }
  0x70   :  { %972 = vmatprep.subr.bf16.mxu0 %v2005_v47  ;;  %v1876_v47 = vcombine.low %v1077_v44, %v1081_v45 }
  0x73   :  { %973 = vmatpush1.bf16.msra.mxu0 %v2003_v48  ;;  %v1877_v48 = vcombine.high %v1077_v44, %v1081_v45  ;;  %v1878_v44 = vcombine.low %v1078_v38, %v1082_v39  ;;  %v1887_v45 = vcombine.high %v1086_v42, %v1090_v43 }
  0x74   :  { %974 = vmatprep.subr.bf16.mxu0 %v2008_v49  ;;  %v1089_v49 = vld [vmem:[%s2822_s4 + $0x1a0] sm:$0xff] }
  0x75   :  { %1473 = vmatprep.subr.bf16.mxu1 %v1877_v48  ;;  %v1886_v48 = vcombine.low %v1086_v42, %v1090_v43  ;;  %v1080_v43 = vld [vmem:[%s2822_s4 + $0x158] sm:$0xff] }
  0x76   :  { %1474 = vmatpush1.bf16.msra.mxu1 %v1876_v47  ;;  %v1098_v47 = vld [vmem:[%s2822_s4 + $0x1e8] sm:$0xff] }
  0x77   :  { %975 = vmatpush1.bf16.msra.mxu0 %v2006_v50  ;;  %v2114_v50 = vmov 0  }
  0x78   :  { %976 = vmatprep.subr.bf16.mxu0 %v2011_v52  ;;  %1495 = vmatprep.mubr.bf16.mxu1 %v2114_v50  ;;  %v1885_v52 = vcombine.high %v1085_v46, %v1089_v49 }
  0x7a   :  { %1475 = vmatprep.subr.bf16.mxu1 %v1885_v52  ;;  %v1039_v52 = vld [vmem:[%s2822_s4 + $0x10] sm:$0xff] }
  0x7b   :  { %977 = vmatpush1.bf16.msra.mxu0 %v2009_v53  ;;  %v1038_v53 = vld [vmem:[%s2822_s4 + $0x8] sm:$0xff] }
  0x7c   :  { %978 = vmatprep.subr.bf16.mxu0 %v2017_v54  ;;  %v1042_v54 = vld [vmem:[%s2822_s4 + $0x28] sm:$0xff] }
  0x7f   :  { %979 = vmatpush1.bf16.msra.mxu0 %v2015_v55  ;;  %v1093_v55 = vld [vmem:[%s2822_s4 + $0x1c0] sm:$0xff] }
  0x80   :  { %989 = vmatprep.subr.bf16.mxu0 %v2023_v56  ;;  %v1097_v56 = vld [vmem:[%s2822_s4 + $0x1e0] sm:$0xff] }
  0x82   :  { %981 = vmatmul.mubr.bf16.vlgmr.msra.gmra.mrb[0].mxu0 %v2484_v57  ;;  %v1838_v57 = vcombine.low %v1038_v53, %v1042_v54 }
  0x83   :  { %990 = vmatpush1.bf16.msra.mxu0 %v2021_v58  ;;  %1021 = vmatprep.mubr.bf16.mxu0 %v217_v59  ;;  %v1884_v58 = vcombine.low %v1085_v46, %v1089_v49  ;;  %v1893_v59 = vcombine.high %v1093_v55, %v1097_v56  ;;  %v1094_v46 = vld [vmem:[%s2822_s4 + $0x1c8] sm:$0xff] }
  0x84   :  { %991 = vmatprep.subr.bf16.mxu0 %v2029_v60  ;;  %v1892_v60 = vcombine.low %v1093_v55, %v1097_v56  ;;  %v1895_v49 = vcombine.high %v1094_v46, %v1098_v47  ;;  %v1047_v56 = vld [vmem:[%s2822_s4 + $0x50] sm:$0xff] }
  0x85   :  { %1476 = vmatpush1.bf16.msra.mxu1 %v1884_v58 }
  0x86   :  { %1477 = vmatprep.subr.bf16.mxu1 %v1893_v59 }
  0x87   :  { %992 = vmatpush1.bf16.msra.mxu0 %v2027_v51  ;;  %v1839_v51 = vcombine.high %v1038_v53, %v1042_v54  ;;  %v1043_v53 = vld [vmem:[%s2822_s4 + $0x30] sm:$0xff]  ;;  %v1894_v54 = vcombine.low %v1094_v46, %v1098_v47  ;;  %v1088_v47 = vld [vmem:[%s2822_s4 + $0x198] sm:$0xff] }
  0x88   :  { %993 = vmatprep.subr.bf16.mxu0 %v2035_v61  ;;  %v1841_v55 = vcombine.high %v1039_v52, %v1043_v53  ;;  %v1840_v58 = vcombine.low %v1039_v52, %v1043_v53  ;;  %v1096_v53 = vld [vmem:[%s2822_s4 + $0x1d8] sm:$0xff] }
  0x89   :  { %1478 = vmatpush1.bf16.msra.mxu1 %v1892_v60  ;;  %v1055_v60 = vld [vmem:[%s2822_s4 + $0x90] sm:$0xff] }
  0x8a   :  { %1504 = vmatprep.subr.bf16.mxu1 %v1839_v51  ;;  %v1059_v51 = vld [vmem:[%s2822_s4 + $0xb0] sm:$0xff] }
  0x8b   :  { %994 = vmatpush1.bf16.msra.mxu0 %v2033_v62 }
  0x8c   :  { %995 = vmatprep.subr.bf16.mxu0 %v2041_v63 }
  0x8f   :  { %996 = vmatpush1.bf16.msra.mxu0 %v2039_v0 }
  0x90   :  { %997 = vmatprep.subr.bf16.mxu0 %v2047_v1  ;;  %v160_v1 = vsub.s32 0, %v2187_v12 }
  0x93   :  { %998 = vmatpush1.bf16.msra.mxu0 %v2045_v2  ;;  %v156_v2 = vld [vmem:[%s2823_s2] sm:$0x3] }
  0x94   :  { %999 = vmatprep.subr.bf16.mxu0 %v2053_v3  ;;  %v164_v3 = vsub.s32 1, %v2187_v12 }
  0x97   :  { %1000 = vmatpush1.bf16.msra.mxu0 %v2051_v4  ;;  %v161_v4 = vrot.slane %v156_v2, %v160_v1 }
  0x98   :  { %1001 = vmatprep.subr.bf16.mxu0 %v2059_v5  ;;  %v165_v5 = vrot.slane %v156_v2, %v164_v3  ;;  %v1856_v2 = vcombine.low %v1055_v60, %v1059_v51 }
  0x9b   :  { %1002 = vmatpush1.bf16.msra.mxu0 %v2057_v6 }
  0x9c   :  { %1003 = vmatprep.subr.bf16.mxu0 %v2065_v7 }
  0x9f   :  { %1004 = vmatpush1.bf16.msra.mxu0 %v2063_v8 }
  0xa0   :  { %1005 = vmatprep.subr.bf16.mxu0 %v2071_v9 }
  0xa3   :  { %1006 = vmatpush1.bf16.msra.mxu0 %v2069_v10 }
  0xa4   :  { %1007 = vmatprep.subr.bf16.mxu0 %v2077_v11 }
  0xa7   :  { %1008 = vmatpush1.bf16.msra.mxu0 %v2075_v13 }
  0xa8   :  { %1009 = vmatprep.subr.bf16.mxu0 %v2083_v14 }
  0xab   :  { %1010 = vmatpush1.bf16.msra.mxu0 %v2081_v15 }
  0xac   :  { %1011 = vmatprep.subr.bf16.mxu0 %v2089_v17 }
  0xaf   :  { %1012 = vmatpush1.bf16.msra.mxu0 %v2087_v18  ;;  %v1030_v18 = vld [vmem:[%s2826_s3] sm:$0x3] }
  0xb0   :  { %1013 = vmatprep.subr.bf16.mxu0 %v2095_v19 }
  0xb3   :  { %1014 = vmatpush1.bf16.msra.mxu0 %v2093_v20 }
  0xb4   :  { %1015 = vmatprep.subr.bf16.mxu0 %v2101_v21  ;;  %v1046_v21 = vld [vmem:[%s2822_s4 + $0x48] sm:$0xff] }
  0xb7   :  { %1016 = vmatpush1.bf16.msra.mxu0 %v2099_v22  ;;  %v1050_v22 = vld [vmem:[%s2822_s4 + $0x68] sm:$0xff] }
  0xb8   :  { %1017 = vmatprep.subr.bf16.mxu0 %v2107_v23  ;;  %v1846_v28 = vcombine.low %v1046_v21, %v1050_v22 }
  0xbb   :  { %1018 = vmatpush1.bf16.msra.mxu0 %v2105_v24 }
  0xbc   :  { %1019 = vmatprep.subr.bf16.mxu0 %v2110_v25  ;;  %v1847_v25 = vcombine.high %v1046_v21, %v1050_v22 }
  0xbf   :  { %1020 = vmatpush1.bf16.msra.mxu0 %v2108_v26  ;;  %v1054_v26 = vld [vmem:[%s2822_s4 + $0x88] sm:$0xff] }
  0xc2   :  { %1022 = vmatmul.mubr.bf16.vlgmr.msra.gmra.mrb[0].mxu0 %v215_v27  ;;  %v1058_v27 = vld [vmem:[%s2822_s4 + $0xa8] sm:$0xff] }
  0xc3   :  { %v1855_v29 = vcombine.high %v1054_v26, %v1058_v27  ;;  %v1854_v32 = vcombine.low %v1054_v26, %v1058_v27 }
 0x11e   :  { %v900_v61 = vpop.f32.mrb[0].mxu1 }
 0x11f   :  { %v902_v62 = vpop.f32.mrb[1].mxu1  ;;  %v901_v6 = vadd.f32 %v900_v61, %v161_v4 }
 0x120   :  { %v904_v63 = vpop.f32.mrb[2].mxu1  ;;  %v903_v7 = vadd.f32 %v902_v62, %v165_v5  ;;  %v1857_v62 = vcombine.high %v1055_v60, %v1059_v51  ;;  %v1071_v5 = vld [vmem:[%s2822_s4 + $0x110] sm:$0xff] }
 0x121   :  { %v905_v0 = vpop.f32.mrb[3].mxu1  ;;  %v1063_v63 = vld [vmem:[%s2822_s4 + $0xd0] sm:$0xff] }
 0x122   :  { %v1067_v0 = vld [vmem:[%s2822_s4 + $0xf0] sm:$0xff] }
 0x123   :  { %v1865_v4 = vcombine.high %v1063_v63, %v1067_v0 }
 0x195   :  { %v1023_v8 = vpop.f32.mrb[0].mxu0 }
 0x196   :  { %v1905_v9 = vadd.f32 %v1023_v8, %v901_v6  ;;  %v1025_v10 = vpop.f32.mrb[1].mxu0  ;;  %v1075_v6 = vld [vmem:[%s2822_s4 + $0x130] sm:$0xff] }
 0x197   :  { %v1907_v11 = vadd.f32 %v1025_v10, %v903_v7  ;;  %v1027_v13 = vpop.f32.mrb[2].mxu0  ;;  %v1864_v7 = vcombine.low %v1063_v63, %v1067_v0  ;;  %v1873_v8 = vcombine.high %v1071_v5, %v1075_v6  ;;  %v1083_v10 = vld [vmem:[%s2822_s4 + $0x170] sm:$0xff] }
 0x198   :  { %1627 = vst [vmem:[%s2824_s6] sm:$0x3] %v1905_v9  ;;  %v1028_v14 = vpop.f32.mrb[3].mxu0 }
 0x199   :  { %v1031_v15 = vmul.f32 0.5, %v1907_v11  ;;  %1628 = vst [vmem:[%s2825_s7] sm:$0x3] %v1907_v11  ;;  %v1872_v11 = vcombine.low %v1071_v5, %v1075_v6  ;;  %v1087_v14 = vld [vmem:[%s2822_s4 + $0x190] sm:$0xff]  ;;  %v1113_v5 = vsub.s32 2, %v2187_v12 }
 0x19b   :  { %v1032_v17 = vmul.f32 1.442695, %v1031_v15  ;;  %v1091_v15 = vld [vmem:[%s2822_s4 + $0x1b0] sm:$0xff] }
 0x19c   :  { %v1888_v21 = vcombine.low %v1087_v14, %v1091_v15 }
 0x19d   :  { %2111 = vpow2.f32 %v1032_v17 }
 0x1a7   :  { %v2112_v19 = vpop.eup %2111 }
 0x1a8   :  { %v1034_v20 = vmul.f32 %v2112_v19, %v1030_v18  ;;  %v1889_v18 = vcombine.high %v1087_v14, %v1091_v15  ;;  %v1095_v19 = vld [vmem:[%s2822_s4 + $0x1d0] sm:$0xff] }
 0x1aa   :  { %v1035_v23 = vadd.f32 %v1905_v9, %v1034_v20  ;;  %v1079_v9 = vld [vmem:[%s2822_s4 + $0x150] sm:$0xff] }
 0x1ab   :  { %v1881_v13 = vcombine.high %v1079_v9, %v1083_v10  ;;  %v1880_v17 = vcombine.low %v1079_v9, %v1083_v10  ;;  %v1099_v20 = vld [vmem:[%s2822_s4 + $0x1f0] sm:$0xff] }
 0x1ac   :  { %v2657_v24 = vpack.c.bf16 %v1035_v23, %v1035_v23  ;;  %v1897_v22 = vcombine.high %v1095_v19, %v1099_v20  ;;  %v1040_v23 = vld [vmem:[%s2822_s4 + $0x18] sm:$0xff]  ;;  %v1896_v26 = vcombine.low %v1095_v19, %v1099_v20  ;;  %v1125_v19 = vsub.s32 5, %v2187_v12 }
 0x1ae   :  { %1496 = vmatmul.mubr.bf16.vlgmr.msra.gmra.mrb[4].mxu1 %v2657_v24 }
 0x1af   :  { %1505 = vmatpush1.bf16.msra.mxu1 %v1838_v57  ;;  %1536 = vmatprep.mubr.bf16.mxu1 %v2114_v50  ;;  %v1051_v57 = vld [vmem:[%s2822_s4 + $0x70] sm:$0xff] }
 0x1b0   :  { %1506 = vmatprep.subr.bf16.mxu1 %v1847_v25  ;;  %v1849_v59 = vcombine.high %v1047_v56, %v1051_v57  ;;  %v1848_v61 = vcombine.low %v1047_v56, %v1051_v57  ;;  %v1044_v25 = vld [vmem:[%s2822_s4 + $0x38] sm:$0xff] }
 0x1b1   :  { %v1843_v27 = vcombine.high %v1040_v23, %v1044_v25  ;;  %v1842_v30 = vcombine.low %v1040_v23, %v1044_v25 }
 0x1b3   :  { %1507 = vmatpush1.bf16.msra.mxu1 %v1846_v28  ;;  %v1048_v28 = vld [vmem:[%s2822_s4 + $0x58] sm:$0xff] }
 0x1b4   :  { %1508 = vmatprep.subr.bf16.mxu1 %v1855_v29  ;;  %v1052_v29 = vld [vmem:[%s2822_s4 + $0x78] sm:$0xff] }
 0x1b5   :  { %v1851_v31 = vcombine.high %v1048_v28, %v1052_v29  ;;  %v1850_v34 = vcombine.low %v1048_v28, %v1052_v29 }
 0x1b7   :  { %1509 = vmatpush1.bf16.msra.mxu1 %v1854_v32  ;;  %v1056_v32 = vld [vmem:[%s2822_s4 + $0x98] sm:$0xff] }
 0x1b8   :  { %1510 = vmatprep.subr.bf16.mxu1 %v1863_v33  ;;  %v1060_v33 = vld [vmem:[%s2822_s4 + $0xb8] sm:$0xff] }
 0x1b9   :  { %v1859_v35 = vcombine.high %v1056_v32, %v1060_v33  ;;  %v1858_v38 = vcombine.low %v1056_v32, %v1060_v33 }
 0x1bb   :  { %1511 = vmatpush1.bf16.msra.mxu1 %v1862_v36  ;;  %v1064_v36 = vld [vmem:[%s2822_s4 + $0xd8] sm:$0xff] }
 0x1bc   :  { %1512 = vmatprep.subr.bf16.mxu1 %v1871_v37  ;;  %v1068_v37 = vld [vmem:[%s2822_s4 + $0xf8] sm:$0xff] }
 0x1bd   :  { %v1867_v39 = vcombine.high %v1064_v36, %v1068_v37 }
 0x1bf   :  { %1513 = vmatpush1.bf16.msra.mxu1 %v1870_v40  ;;  %v1072_v40 = vld [vmem:[%s2822_s4 + $0x118] sm:$0xff] }
 0x1c0   :  { %1514 = vmatprep.subr.bf16.mxu1 %v1879_v41  ;;  %v1866_v41 = vcombine.low %v1064_v36, %v1068_v37 }
 0x1c3   :  { %1515 = vmatpush1.bf16.msra.mxu1 %v1878_v44  ;;  %v1084_v44 = vld [vmem:[%s2822_s4 + $0x178] sm:$0xff] }
 0x1c4   :  { %1516 = vmatprep.subr.bf16.mxu1 %v1887_v45  ;;  %v1883_v46 = vcombine.high %v1080_v43, %v1084_v44 }
 0x1c7   :  { %1517 = vmatpush1.bf16.msra.mxu1 %v1886_v48  ;;  %v1092_v48 = vld [vmem:[%s2822_s4 + $0x1b8] sm:$0xff] }
 0x1c8   :  { %1518 = vmatprep.subr.bf16.mxu1 %v1895_v49  ;;  %v1882_v49 = vcombine.low %v1080_v43, %v1084_v44  ;;  %v1891_v52 = vcombine.high %v1088_v47, %v1092_v48 }
 0x1cb   :  { %1519 = vmatpush1.bf16.msra.mxu1 %v1894_v54  ;;  %v1100_v54 = vld [vmem:[%s2822_s4 + $0x1f8] sm:$0xff] }
 0x1cc   :  { %1545 = vmatprep.subr.bf16.mxu1 %v1841_v55  ;;  %v1890_v55 = vcombine.low %v1088_v47, %v1092_v48  ;;  %v1899_v56 = vcombine.high %v1096_v53, %v1100_v54  ;;  %v1898_v57 = vcombine.low %v1096_v53, %v1100_v54 }
 0x1ce   :  { %1537 = vmatmul.mubr.bf16.vlgmr.msra.gmra.mrb[8].mxu1 %v2657_v24 }
 0x1cf   :  { %1546 = vmatpush1.bf16.msra.mxu1 %v1840_v58  ;;  %1577 = vmatprep.mubr.bf16.mxu1 %v2114_v50  ;;  %v1101_v58 = vld [vmem:[%s2827_s5] sm:$0xff] }
 0x1d0   :  { %1547 = vmatprep.subr.bf16.mxu1 %v1849_v59  ;;  %v1106_v59 = vrot.slane %v1101_v58, %v160_v1  ;;  %v1110_v60 = vrot.slane %v1101_v58, %v164_v3  ;;  %v1114_v6 = vrot.slane %v1101_v58, %v1113_v5 }
 0x1d3   :  { %1548 = vmatpush1.bf16.msra.mxu1 %v1848_v61 }
 0x1d4   :  { %1549 = vmatprep.subr.bf16.mxu1 %v1857_v62 }
 0x1d7   :  { %1550 = vmatpush1.bf16.msra.mxu1 %v1856_v2 }
 0x1d8   :  { %1551 = vmatprep.subr.bf16.mxu1 %v1865_v4 }
 0x1db   :  { %1552 = vmatpush1.bf16.msra.mxu1 %v1864_v7 }
 0x1dc   :  { %1553 = vmatprep.subr.bf16.mxu1 %v1873_v8 }
 0x1df   :  { %1554 = vmatpush1.bf16.msra.mxu1 %v1872_v11 }
 0x1e0   :  { %1555 = vmatprep.subr.bf16.mxu1 %v1881_v13 }
 0x1e3   :  { %1556 = vmatpush1.bf16.msra.mxu1 %v1880_v17 }
 0x1e4   :  { %1557 = vmatprep.subr.bf16.mxu1 %v1889_v18  ;;  %v1121_v18 = vsub.s32 4, %v2187_v12 }
 0x1e6   :  { %v1122_v20 = vrot.slane %v1101_v58, %v1121_v18 }
 0x1e7   :  { %1558 = vmatpush1.bf16.msra.mxu1 %v1888_v21  ;;  %v1126_v21 = vrot.slane %v1101_v58, %v1125_v19 }
 0x1e8   :  { %1559 = vmatprep.subr.bf16.mxu1 %v1897_v22 }
 0x1eb   :  { %1560 = vmatpush1.bf16.msra.mxu1 %v1896_v26 }
 0x1ec   :  { %1586 = vmatprep.subr.bf16.mxu1 %v1843_v27 }
 0x1ee   :  { %1578 = vmatmul.mubr.bf16.vlgmr.msra.gmra.mrb[12].mxu1 %v2657_v24 }
 0x1ef   :  { %1587 = vmatpush1.bf16.msra.mxu1 %v1842_v30  ;;  %1618 = vmatprep.mubr.bf16.mxu1 %v2114_v50  ;;  %v1076_v50 = vld [vmem:[%s2822_s4 + $0x138] sm:$0xff]  ;;  %v1129_v30 = vsub.s32 6, %v2187_v12 }
 0x1f0   :  { %1588 = vmatprep.subr.bf16.mxu1 %v1851_v31  ;;  %v1875_v42 = vcombine.high %v1072_v40, %v1076_v50  ;;  %v1874_v45 = vcombine.low %v1072_v40, %v1076_v50  ;;  %v1133_v31 = vsub.s32 7, %v2187_v12 }
 0x1f1   :  { %v1130_v32 = vrot.slane %v1101_v58, %v1129_v30 }
 0x1f2   :  { %v1134_v33 = vrot.slane %v1101_v58, %v1133_v31 }
 0x1f3   :  { %1589 = vmatpush1.bf16.msra.mxu1 %v1850_v34 }
 0x1f4   :  { %1590 = vmatprep.subr.bf16.mxu1 %v1859_v35 }
 0x1f7   :  { %1591 = vmatpush1.bf16.msra.mxu1 %v1858_v38 }
 0x1f8   :  { %1592 = vmatprep.subr.bf16.mxu1 %v1867_v39 }
 0x1fb   :  { %1593 = vmatpush1.bf16.msra.mxu1 %v1866_v41 }
 0x1fc   :  { %1594 = vmatprep.subr.bf16.mxu1 %v1875_v42 }
 0x1ff   :  { %1595 = vmatpush1.bf16.msra.mxu1 %v1874_v45 }
 0x200   :  { %1596 = vmatprep.subr.bf16.mxu1 %v1883_v46 }
 0x203   :  { %1597 = vmatpush1.bf16.msra.mxu1 %v1882_v49 }
 0x204   :  { %1598 = vmatprep.subr.bf16.mxu1 %v1891_v52 }
 0x207   :  { %1599 = vmatpush1.bf16.msra.mxu1 %v1890_v55 }
 0x208   :  { %1600 = vmatprep.subr.bf16.mxu1 %v1899_v56 }
 0x20b   :  { %1601 = vmatpush1.bf16.msra.mxu1 %v1898_v57 }
 0x20e   :  { %1619 = vmatmul.mubr.bf16.vlgmr.msra.gmra.mrb[16].mxu1 %v2657_v24  ;;  %v1117_v24 = vsub.s32 3, %v2187_v12 }
 0x210   :  { %v1118_v7 = vrot.slane %v1101_v58, %v1117_v24 }
 0x281   :  { %v1497_v51 = vpop.f32.mrb[4].mxu1 }
 0x282   :  { %v1498_v61 = vadd.f32 %v1497_v51, %v1106_v59  ;;  %v1499_v62 = vpop.f32.mrb[5].mxu1 }
 0x283   :  { %v1500_v63 = vadd.f32 %v1499_v62, %v1110_v60  ;;  %v1501_v0 = vpop.f32.mrb[6].mxu1 }
 0x284   :  { %v1502_v2 = vpop.f32.mrb[7].mxu1 }
 0x285   :  { %v1900_v4 = vpack.c.bf16 %v1500_v63, %v1498_v61 }
 0x287   :  { %v1655_v14 = vrot.slane %v1900_v4, %v2196_v16 }
 0x2a1   :  { %v1538_v8 = vpop.f32.mrb[8].mxu1 }
 0x2a2   :  { %v1539_v9 = vadd.f32 %v1538_v8, %v1114_v6  ;;  %v1540_v10 = vpop.f32.mrb[9].mxu1 }
 0x2a3   :  { %v1541_v1 = vadd.f32 %v1540_v10, %v1118_v7  ;;  %v1542_v11 = vpop.f32.mrb[10].mxu1 }
 0x2a4   :  { %v1543_v13 = vpop.f32.mrb[11].mxu1 }
 0x2a5   :  { %v1901_v3 = vpack.c.bf16 %v1541_v1, %v1539_v9 }
 0x2a7   :  { %v1662_v15 = vrot.slane %v1901_v3, %v2196_v16 }
 0x2a9   :  { %v1677_v17 = vcombine.low %v1655_v14, %v1662_v15 }
 0x2ab   :  { %v1685_v43 = vrot.slane %v1677_v17, %v2196_v16 }
 0x2c1   :  { %v1579_v22 = vpop.f32.mrb[12].mxu1 }
 0x2c2   :  { %v1580_v23 = vadd.f32 %v1579_v22, %v1122_v20  ;;  %v1581_v25 = vpop.f32.mrb[13].mxu1 }
 0x2c3   :  { %v1582_v26 = vadd.f32 %v1581_v25, %v1126_v21  ;;  %v1583_v27 = vpop.f32.mrb[14].mxu1 }
 0x2c4   :  { %v1584_v28 = vpop.f32.mrb[15].mxu1 }
 0x2c5   :  { %v1902_v29 = vpack.c.bf16 %v1582_v26, %v1580_v23 }
 0x2c7   :  { %v1669_v50 = vrot.slane %v1902_v29, %v2196_v16 }
 0x2e1   :  { %v1620_v34 = vpop.f32.mrb[16].mxu1 }
 0x2e2   :  { %v1621_v35 = vadd.f32 %v1620_v34, %v1130_v32  ;;  %v1622_v36 = vpop.f32.mrb[17].mxu1 }
 0x2e3   :  { %v1623_v37 = vadd.f32 %v1622_v36, %v1134_v33  ;;  %v1624_v38 = vpop.f32.mrb[18].mxu1 }
 0x2e4   :  { %v1625_v39 = vpop.f32.mrb[19].mxu1 }
 0x2e5   :  { %v1903_v40 = vpack.c.bf16 %v1623_v37, %v1621_v35 }
 0x2e7   :  { %v1676_v41 = vrot.slane %v1903_v40, %v2196_v16 }
 0x2e9   :  { %v1678_v42 = vcombine.low %v1669_v50, %v1676_v41 }
 0x2eb   :  { %v1692_v44 = vrot.slane %v1678_v42, %v2196_v16 }
 0x2ed   :  { %v1693_v45 = vcombine.low %v1685_v43, %v1692_v44 }
 0x2ef   :  { %1695 = vst [vmem:[%s2828_s8] sm:$0xff] %v1693_v45 }

// kernel: vae_forward.17
= control target key start
LH: loop header
LB: loop body
LE: loop exit
PB: predicated region body
PF: predicated region fallthrough
CT: control target
= control target key end

     0   :  { %s856_s8 = smov 32   ;;  %vm454_vm0 = vcmask 261120   ;;  %vm456_vm1 = vcmask 523264   ;;  %vm458_vm2 = vcmask 785408   ;;  %s1152_s1 = inlined_call_operand.vmem [shape: bf16[256,128], index: 1, kind: input, shape index: {}]   ;;  %s1153_s0 = inlined_call_operand.vmem [shape: bf16[128,256], index: 0, kind: input, shape index: {}]   ;;  %s1154_s2 = inlined_call_operand.vmem [shape: f32[1,128], index: 2, kind: input, shape index: {}]   ;;  %s1155_s3 = inlined_call_operand.vmem [shape: f32[1,32], index: 3, kind: input, shape index: {}]   ;;  %s1156_s4 = inlined_call_operand.vmem [shape: f32[1,32], index: 4, kind: input, shape index: {}]   ;;  %s1157_s5 = inlined_call_operand.vmem [shape: bf16[128,128], index: 5, kind: output, shape index: {}]  }
   0x1   :  { %v812_v0 = vld [vmem:[%s1152_s1 + $0x40] sm:$0xff]   ;;  %v814_v2 = vld [vmem:[%s1152_s1 + $0x48] sm:$0xff]   ;;  %v816_v4 = vld [vmem:[%s1152_s1 + $0x50] sm:$0xff]  }
   0x2   :  { %v813_v1 = vld [vmem:[%s1152_s1] sm:$0xff]   ;;  %729 = vmatprep.subr.bf16.mxu0 %v812_v0  ;;  %793 = vmatprep.subr.bf16.mxu1 %v812_v0  ;;  %v815_v3 = vld [vmem:[%s1152_s1 + $0x8] sm:$0xff]   ;;  %v817_v5 = vld [vmem:[%s1152_s1 + $0x10] sm:$0xff]  }
   0x3   :  { %730 = vmatpush3.bf16.msra.mxu0 %v813_v1  ;;  %801 = vmatpush3.bf16.msra.mxu1 %v813_v1  ;;  %v818_v6 = vld [vmem:[%s1152_s1 + $0x58] sm:$0xff]   ;;  %v820_v8 = vld [vmem:[%s1152_s1 + $0x60] sm:$0xff]   ;;  %v822_v10 = vld [vmem:[%s1152_s1 + $0x68] sm:$0xff]  }
   0x4   :  { %731 = vmatprep.subr.bf16.mxu0 %v814_v2  ;;  %794 = vmatprep.subr.bf16.mxu1 %v814_v2  ;;  %v819_v7 = vld [vmem:[%s1152_s1 + $0x18] sm:$0xff]   ;;  %v821_v9 = vld [vmem:[%s1152_s1 + $0x20] sm:$0xff]   ;;  %v823_v12 = vld [vmem:[%s1152_s1 + $0x28] sm:$0xff]  }
   0x5   :  { %v830_v11 = vld [vmem:[%s1153_s0 + $0x4] ss:$8 sps:$4 sm:$0xff]   ;;  %v824_v14 = vld [vmem:[%s1152_s1 + $0x70] sm:$0xff]   ;;  %v826_v16 = vld [vmem:[%s1152_s1 + $0x78] sm:$0xff]  }
   0x6   :  { %v836_v13 = vld [vmem:[%s1153_s0 + $0x44] ss:$8 sps:$4 sm:$0xff]   ;;  %284 = vmatprep.mubr.bf16.mxu0 %v830_v11  ;;  %v825_v15 = vld [vmem:[%s1152_s1 + $0x30] sm:$0xff]   ;;  %v827_v17 = vld [vmem:[%s1152_s1 + $0x38] sm:$0xff]  }
   0x7   :  { %732 = vmatpush3.bf16.msra.mxu0 %v815_v3  ;;  %802 = vmatpush3.bf16.msra.mxu1 %v815_v3  ;;  %v828_v18 = vld [vmem:[%s1153_s0] ss:$8 sps:$4 sm:$0xff]   ;;  %v831_v20 = vld [vmem:[%s1153_s0 + $0x14] ss:$8 sps:$4 sm:$0xff]   ;;  %v833_v22 = vld [vmem:[%s1153_s0 + $0x10] ss:$8 sps:$4 sm:$0xff]  }
   0x8   :  { %733 = vmatprep.subr.bf16.mxu0 %v816_v4  ;;  %795 = vmatprep.subr.bf16.mxu1 %v816_v4  ;;  %v834_v19 = vld [vmem:[%s1153_s0 + $0x40] ss:$8 sps:$4 sm:$0xff]   ;;  %v840_v21 = vld [vmem:[%s1153_s0 + $0x54] ss:$8 sps:$4 sm:$0xff]   ;;  %v842_v23 = vld [vmem:[%s1153_s0 + $0x50] ss:$8 sps:$4 sm:$0xff]  }
   0x9   :  { %316 = vmatprep.mubr.bf16.mxu1 %v836_v13  ;;  %v837_v24 = vld [vmem:[%s1153_s0 + $0x24] ss:$8 sps:$4 sm:$0xff]   ;;  %v839_v26 = vld [vmem:[%s1153_s0 + $0x20] ss:$8 sps:$4 sm:$0xff]   ;;  %v843_v28 = vld [vmem:[%s1153_s0 + $0x34] ss:$8 sps:$4 sm:$0xff]  }
   0xa   :  { %v846_v25 = vld [vmem:[%s1153_s0 + $0x64] ss:$8 sps:$4 sm:$0xff]   ;;  %v848_v27 = vld [vmem:[%s1153_s0 + $0x60] ss:$8 sps:$4 sm:$0xff]   ;;  %v849_v29 = vld [vmem:[%s1153_s0 + $0x74] ss:$8 sps:$4 sm:$0xff]  }
   0xb   :  { %734 = vmatpush3.bf16.msra.mxu0 %v817_v5  ;;  %803 = vmatpush3.bf16.msra.mxu1 %v817_v5  ;;  %v845_v30 = vld [vmem:[%s1153_s0 + $0x30] ss:$8 sps:$4 sm:$0xff]   ;;  %v990_v44 = vld [vmem:[%s1154_s2] ss:$0 sm:$0xff]  ;;  %s855_s2 = smov 96  }
   0xc   :  { %735 = vmatprep.subr.bf16.mxu0 %v818_v6  ;;  %796 = vmatprep.subr.bf16.mxu1 %v818_v6  ;;  %v851_v31 = vld [vmem:[%s1153_s0 + $0x70] ss:$8 sps:$4 sm:$0xff]   ;;  %s854_s0 = smov 64  }
   0xf   :  { %736 = vmatpush3.bf16.msra.mxu0 %v819_v7  ;;  %804 = vmatpush3.bf16.msra.mxu1 %v819_v7 }
  0x10   :  { %737 = vmatprep.subr.bf16.mxu0 %v820_v8  ;;  %797 = vmatprep.subr.bf16.mxu1 %v820_v8 }
  0x13   :  { %738 = vmatpush3.bf16.msra.mxu0 %v821_v9  ;;  %805 = vmatpush3.bf16.msra.mxu1 %v821_v9 }
  0x14   :  { %739 = vmatprep.subr.bf16.mxu0 %v822_v10  ;;  %798 = vmatprep.subr.bf16.mxu1 %v822_v10 }
  0x17   :  { %740 = vmatpush3.bf16.msra.mxu0 %v823_v12  ;;  %806 = vmatpush3.bf16.msra.mxu1 %v823_v12 }
  0x18   :  { %741 = vmatprep.subr.bf16.mxu0 %v824_v14  ;;  %799 = vmatprep.subr.bf16.mxu1 %v824_v14 }
  0x1b   :  { %742 = vmatpush3.bf16.msra.mxu0 %v825_v15  ;;  %807 = vmatpush3.bf16.msra.mxu1 %v825_v15 }
  0x1c   :  { %743 = vmatprep.subr.bf16.mxu0 %v826_v16  ;;  %800 = vmatprep.subr.bf16.mxu1 %v826_v16 }
  0x1f   :  { %744 = vmatpush3.bf16.msra.mxu0 %v827_v17  ;;  %808 = vmatpush3.bf16.msra.mxu1 %v827_v17 }
  0x22   :  { %285 = vmatmul.mubr.bf16.vlgmr.msra.gmra.mrb[0].mxu0 %v828_v18  ;;  %317 = vmatmul.mubr.bf16.vlgmr.msra.gmra.mrb[0].mxu1 %v834_v19 }
  0x23   :  { %292 = vmatprep.mubr.bf16.mxu0 %v831_v20  ;;  %324 = vmatprep.mubr.bf16.mxu1 %v840_v21 }
  0x2a   :  { %293 = vmatmul.mubr.bf16.gmra.mrb[4].mxu0 %v833_v22  ;;  %325 = vmatmul.mubr.bf16.gmra.mrb[4].mxu1 %v842_v23 }
  0x2b   :  { %300 = vmatprep.mubr.bf16.mxu0 %v837_v24  ;;  %332 = vmatprep.mubr.bf16.mxu1 %v846_v25 }
  0x32   :  { %301 = vmatmul.mubr.bf16.gmra.mrb[8].mxu0 %v839_v26  ;;  %333 = vmatmul.mubr.bf16.gmra.mrb[8].mxu1 %v848_v27 }
  0x33   :  { %308 = vmatprep.mubr.bf16.mxu0 %v843_v28  ;;  %340 = vmatprep.mubr.bf16.mxu1 %v849_v29 }
  0x3a   :  { %309 = vmatmul.mubr.bf16.gmra.mrb[12].mxu0 %v845_v30  ;;  %341 = vmatmul.mubr.bf16.gmra.mrb[12].mxu1 %v851_v31 }
  0xf5   :  { %v745_v32 = vpop.f32.mrb[0].mxu0  ;;  %v769_v33 = vpop.f32.mrb[0].mxu1 }
  0xf6   :  { %v746_v34 = vpop.f32.mrb[1].mxu0  ;;  %v770_v35 = vpop.f32.mrb[1].mxu1 }
  0xf7   :  { %v747_v36 = vadd.f32 %v746_v34, %v745_v32  ;;  %v748_v37 = vpop.f32.mrb[2].mxu0  ;;  %v983_v38 = vadd.f32 %v770_v35, %v769_v33  ;;  %v772_v39 = vpop.f32.mrb[2].mxu1 }
  0xf8   :  { %v749_v40 = vpop.f32.mrb[3].mxu0  ;;  %v773_v41 = vpop.f32.mrb[3].mxu1 }
  0xf9   :  { %v750_v42 = vadd.f32 %v749_v40, %v748_v37  ;;  %v985_v43 = vadd.f32 %v773_v41, %v772_v39  ;;  %v996_v54 = vadd.f32 %v747_v36, %v990_v44  ;;  %v1033_v40 = vadd.f32 %v983_v38, %v990_v44 }
  0xfb   :  { %v993_v47 = vadd.f32 %v750_v42, %v990_v44  ;;  %v370_v61 = vmul.f32 %v996_v54, %v996_v54 }
  0xfd   :  { %v751_v45 = vpop.f32.mrb[4].mxu0  ;;  %v775_v46 = vpop.f32.mrb[4].mxu1  ;;  %v371_v60 = vmul.f32 %v993_v47, %v993_v47  ;;  %v349_v63 = vadd.f32 %v993_v47, %v996_v54 }
  0xfe   :  { %v752_v48 = vpop.f32.mrb[5].mxu0  ;;  %v776_v49 = vpop.f32.mrb[5].mxu1 }
  0xff   :  { %v753_v50 = vadd.f32 %v752_v48, %v751_v45  ;;  %v754_v51 = vpop.f32.mrb[6].mxu0  ;;  %v777_v52 = vadd.f32 %v776_v49, %v775_v46  ;;  %v778_v53 = vpop.f32.mrb[6].mxu1  ;;  %v386_v3 = vadd.f32 %v371_v60, %v370_v61  ;;  %v1043_v48 = vadd.f32 %v985_v43, %v990_v44 }
 0x100   :  { %v755_v55 = vpop.f32.mrb[7].mxu0  ;;  %v779_v56 = vpop.f32.mrb[7].mxu1 }
 0x101   :  { %v999_v57 = vadd.f32 %v753_v50, %v990_v44  ;;  %v756_v58 = vadd.f32 %v755_v55, %v754_v51  ;;  %v780_v59 = vadd.f32 %v779_v56, %v778_v53  ;;  %v378_v51 = vmul.f32 %v1033_v40, %v1033_v40 }
 0x102   :  { %v1051_v53 = vadd.f32 %v777_v52, %v990_v44 }
 0x103   :  { %v372_v62 = vmul.f32 %v999_v57, %v999_v57  ;;  %v1010_v0 = vadd.f32 %v756_v58, %v990_v44  ;;  %v350_v6 = vadd.f32 %v349_v63, %v999_v57  ;;  %v379_v58 = vmul.f32 %v1043_v48, %v1043_v48 }
 0x104   :  { %v1057_v43 = vadd.f32 %v780_v59, %v990_v44 }
 0x105   :  { %v757_v1 = vpop.f32.mrb[8].mxu0  ;;  %v781_v2 = vpop.f32.mrb[8].mxu1  ;;  %v387_v11 = vadd.f32 %v386_v3, %v372_v62  ;;  %v373_v14 = vmul.f32 %v1010_v0, %v1010_v0  ;;  %v351_v18 = vadd.f32 %v350_v6, %v1010_v0  ;;  %v380_v62 = vmul.f32 %v1051_v53, %v1051_v53 }
 0x106   :  { %v758_v4 = vpop.f32.mrb[9].mxu0  ;;  %v782_v5 = vpop.f32.mrb[9].mxu1  ;;  %v381_v3 = vmul.f32 %v1057_v43, %v1057_v43 }
 0x107   :  { %v759_v7 = vadd.f32 %v758_v4, %v757_v1  ;;  %v760_v8 = vpop.f32.mrb[10].mxu0  ;;  %v783_v9 = vadd.f32 %v782_v5, %v781_v2  ;;  %v784_v10 = vpop.f32.mrb[10].mxu1  ;;  %v388_v21 = vadd.f32 %v387_v11, %v373_v14 }
 0x108   :  { %v761_v12 = vpop.f32.mrb[11].mxu0  ;;  %v785_v13 = vpop.f32.mrb[11].mxu1 }
 0x109   :  { %v1016_v15 = vadd.f32 %v759_v7, %v990_v44  ;;  %v762_v16 = vadd.f32 %v761_v12, %v760_v8  ;;  %v786_v17 = vadd.f32 %v785_v13, %v784_v10  ;;  %v1063_v1 = vadd.f32 %v783_v9, %v990_v44 }
 0x10b   :  { %v374_v19 = vmul.f32 %v1016_v15, %v1016_v15  ;;  %v1022_v20 = vadd.f32 %v762_v16, %v990_v44  ;;  %v352_v22 = vadd.f32 %v351_v18, %v1016_v15  ;;  %v1067_v2 = vadd.f32 %v786_v17, %v990_v44 }
 0x10c   :  { %v382_v7 = vmul.f32 %v1063_v1, %v1063_v1 }
 0x10d   :  { %v763_v23 = vpop.f32.mrb[12].mxu0  ;;  %v787_v24 = vpop.f32.mrb[12].mxu1  ;;  %v389_v27 = vadd.f32 %v388_v21, %v374_v19  ;;  %v375_v28 = vmul.f32 %v1022_v20, %v1022_v20  ;;  %v353_v35 = vadd.f32 %v352_v22, %v1022_v20  ;;  %v383_v9 = vmul.f32 %v1067_v2, %v1067_v2 }
 0x10e   :  { %v764_v25 = vpop.f32.mrb[13].mxu0  ;;  %v788_v26 = vpop.f32.mrb[13].mxu1 }
 0x10f   :  { %v765_v29 = vadd.f32 %v764_v25, %v763_v23  ;;  %v766_v30 = vpop.f32.mrb[14].mxu0  ;;  %v789_v31 = vadd.f32 %v788_v26, %v787_v24  ;;  %v790_v32 = vpop.f32.mrb[14].mxu1  ;;  %v390_v41 = vadd.f32 %v389_v27, %v375_v28 }
 0x110   :  { %v767_v33 = vpop.f32.mrb[15].mxu0  ;;  %v791_v34 = vpop.f32.mrb[15].mxu1 }
 0x111   :  { %v1029_v36 = vadd.f32 %v765_v29, %v990_v44  ;;  %v768_v37 = vadd.f32 %v767_v33, %v766_v30  ;;  %v792_v39 = vadd.f32 %v791_v34, %v790_v32  ;;  %v1073_v5 = vadd.f32 %v789_v31, %v990_v44 }
 0x113   :  { %v354_v42 = vadd.f32 %v353_v35, %v1029_v36  ;;  %v376_v45 = vmul.f32 %v1029_v36, %v1029_v36  ;;  %v1039_v46 = vadd.f32 %v768_v37, %v990_v44  ;;  %v384_v12 = vmul.f32 %v1073_v5, %v1073_v5 }
 0x114   :  { %v1084_v13 = vadd.f32 %v792_v39, %v990_v44 }
 0x115   :  { %v391_v49 = vadd.f32 %v390_v41, %v376_v45  ;;  %v355_v50 = vadd.f32 %v354_v42, %v1039_v46  ;;  %v377_v38 = vmul.f32 %v1039_v46, %v1039_v46 }
 0x116   :  { %v385_v19 = vmul.f32 %v1084_v13, %v1084_v13 }
 0x117   :  { %v356_v55 = vadd.f32 %v355_v50, %v1033_v40  ;;  %v392_v56 = vadd.f32 %v391_v49, %v377_v38 }
 0x119   :  { %v357_v60 = vadd.f32 %v356_v55, %v1043_v48  ;;  %v393_v61 = vadd.f32 %v392_v56, %v378_v51 }
 0x11b   :  { %v394_v63 = vadd.f32 %v393_v61, %v379_v58  ;;  %v358_v52 = vadd.f32 %v357_v60, %v1051_v53 }
 0x11d   :  { %v359_v59 = vadd.f32 %v358_v52, %v1057_v43  ;;  %v395_v4 = vadd.f32 %v394_v63, %v380_v62  ;;  %v461_v62 = vlaneseq  ;;  %v439_v63 = vld [vmem:[%s1155_s3] sm:$0x1] }
 0x11f   :  { %v360_v6 = vadd.f32 %v359_v59, %v1063_v1  ;;  %v396_v8 = vadd.f32 %v395_v4, %v381_v3  ;;  %v462_v52 = vshrl.u32 %v461_v62, 7  ;;  %v441_v4 = vld [vmem:[%s1156_s4] sm:$0x1] }
 0x121   :  { %v397_v10 = vadd.f32 %v396_v8, %v382_v7  ;;  %v361_v11 = vadd.f32 %v360_v6, %v1067_v2  ;;  %v463_v7 = vsub.s32 0, %v462_v52 }
 0x123   :  { %v398_v14 = vadd.f32 %v397_v10, %v383_v9  ;;  %v362_v16 = vadd.f32 %v361_v11, %v1073_v5 }
 0x125   :  { %v399_v17 = vadd.f32 %v398_v14, %v384_v12  ;;  %v363_v18 = vadd.f32 %v362_v16, %v1084_v13 }
 0x127   :  { %v364_v21 = vrot.slane %v363_v18, 4  ;;  %v400_v22 = vadd.f32 %v399_v17, %v385_v19 }
 0x129   :  { %v365_v23 = vadd.f32 %v364_v21, %v363_v18  ;;  %v401_v24 = vrot.slane %v400_v22, 4 }
 0x12b   :  { %v366_v25 = vrot.slane %v365_v23, 2  ;;  %v402_v26 = vadd.f32 %v401_v24, %v400_v22 }
 0x12d   :  { %v367_v27 = vadd.f32 %v366_v25, %v365_v23  ;;  %v403_v28 = vrot.slane %v402_v26, 2 }
 0x12f   :  { %v368_v29 = vrot.slane %v367_v27, 1  ;;  %v404_v44 = vadd.f32 %v403_v28, %v402_v26 }
 0x131   :  { %v369_v30 = vadd.f32 %v368_v29, %v367_v27  ;;  %v405_v31 = vrot.slane %v404_v44, 1 }
 0x133   :  { %417 = vrot.lane.b32.xlu1 %v369_v30, %s854_s0  ;;  %408 = vrot.lane.b32.xlu0 %v369_v30, %s855_s2  ;;  %v406_v32 = vadd.f32 %v405_v31, %v404_v44 }
 0x137   :  { %421 = vrot.lane.b32.xlu1 %v406_v32, %s854_s0  ;;  %413 = vrot.lane.b32.xlu0 %v406_v32, %s855_s2 }
 0x13b   :  { %429 = vrot.lane.b32.xlu1 %v406_v32, %s856_s8  ;;  %425 = vrot.lane.b32.xlu0 %v369_v30, %s856_s8 }
 0x1a5   :  { %v418_v33 = vpop.permute.xlu1 %417  ;;  %v409_v34 = vpop.permute.xlu0 %408 }
 0x1a6   :  { %v411_v35 = vadd.f32 %v409_v34, %v369_v30 }
 0x1a8   :  { %v420_v45 = vadd.f32 %v418_v33, %v411_v35 }
 0x1a9   :  { %v422_v37 = vpop.permute.xlu1 %421  ;;  %v414_v39 = vpop.permute.xlu0 %413 }
 0x1aa   :  { %v416_v41 = vadd.f32 %v414_v39, %v406_v32 }
 0x1ac   :  { %v424_v42 = vadd.f32 %v422_v37, %v416_v41 }
 0x1ad   :  { %v430_v49 = vpop.permute.xlu1 %429  ;;  %v426_v50 = vpop.permute.xlu0 %425 }
 0x1ae   :  { %v432_v38 = vadd.f32 %v430_v49, %v424_v42  ;;  %v428_v51 = vadd.f32 %v426_v50, %v420_v45 }
 0x1b0   :  { %v433_v55 = vmul.f32 0.001953125, %v428_v51  ;;  %v434_v56 = vmul.f32 0.001953125, %v432_v38 }
 0x1b2   :  { %v435_v58 = vmul.f32 %v433_v55, %v433_v55 }
 0x1b4   :  { %v436_v60 = vsub.f32 %v434_v56, %v435_v58 }
 0x1b6   :  { %v437_v61 = vadd.f32 1e-05, %v436_v60 }
 0x1b8   :  { %852 = vrsqrt.f32 %v437_v61 }
 0x1c2   :  { %v853_v3 = vpop.eup %852 }
 0x1c3   :  { %v440_v59 = vmul.f32 %v853_v3, %v439_v63 }
 0x1c5   :  { %v442_v6 = vmul.f32 %v440_v59, %v433_v55  ;;  %448 = vrot.lane.b32.xlu1 %v440_v59, %s854_s0  ;;  %445 = vrot.lane.b32.xlu0 %v440_v59, %s856_s8 }
 0x1c7   :  { %v443_v8 = vsub.f32 %v441_v4, %v442_v6 }
 0x1c9   :  { %451 = vrot.lane.b32.xlu0 %v440_v59, %s855_s2  ;;  %v464_v9 = vrot.slane %v443_v8, %v463_v7 }
 0x1cb   :  { %465 = vrot.lane.b32.xlu1 %v464_v9, %s856_s8 }
 0x1cd   :  { %468 = vrot.lane.b32.xlu0 %v464_v9, %s854_s0 }
 0x1cf   :  { %471 = vrot.lane.b32.xlu1 %v464_v9, %s855_s2 }
 0x237   :  { %v446_v10 = vpop.permute.xlu0 %445  ;;  %v449_v11 = vpop.permute.xlu1 %448 }
 0x238   :  { %v455_v12 = vsel %vm454_vm0, %v440_v59, %v446_v10 }
 0x239   :  { %v457_v14 = vsel %vm456_vm1, %v455_v12, %v449_v11 }
 0x23b   :  { %v452_v16 = vpop.permute.xlu0 %451 }
 0x23c   :  { %v459_v17 = vsel %vm458_vm2, %v457_v14, %v452_v16 }
 0x23d   :  { %v466_v18 = vpop.permute.xlu1 %465  ;;  %v480_v19 = vrot.slane %v459_v17, %v463_v7 }
 0x23e   :  { %v474_v21 = vsel %vm454_vm0, %v443_v8, %v466_v18 }
 0x23f   :  { %v469_v22 = vpop.permute.xlu0 %468  ;;  %v481_v24 = vmul.f32 %v480_v19, %v996_v54  ;;  %v482_v25 = vmul.f32 %v480_v19, %v993_v47  ;;  %v483_v26 = vmul.f32 %v480_v19, %v999_v57  ;;  %v484_v27 = vmul.f32 %v480_v19, %v1010_v0 }
 0x240   :  { %v485_v28 = vmul.f32 %v480_v19, %v1016_v15  ;;  %v486_v29 = vmul.f32 %v480_v19, %v1022_v20  ;;  %v475_v44 = vsel %vm456_vm1, %v474_v21, %v469_v22  ;;  %v487_v30 = vmul.f32 %v480_v19, %v1029_v36 }
 0x241   :  { %v472_v23 = vpop.permute.xlu1 %471  ;;  %v488_v31 = vmul.f32 %v480_v19, %v1039_v46  ;;  %v489_v32 = vmul.f32 %v480_v19, %v1033_v40  ;;  %v490_v47 = vmul.f32 %v480_v19, %v1043_v48  ;;  %v491_v57 = vmul.f32 %v480_v19, %v1051_v53 }
 0x242   :  { %v476_v54 = vsel %vm458_vm2, %v475_v44, %v472_v23  ;;  %v492_v0 = vmul.f32 %v480_v19, %v1057_v43  ;;  %v493_v15 = vmul.f32 %v480_v19, %v1063_v1  ;;  %v494_v20 = vmul.f32 %v480_v19, %v1067_v2 }
 0x243   :  { %v500_v33 = vrot.slane %v476_v54, %v463_v7  ;;  %v495_v34 = vmul.f32 %v480_v19, %v1073_v5  ;;  %v496_v36 = vmul.f32 %v480_v19, %v1084_v13 }
 0x245   :  { %v501_v46 = vadd.f32 %v500_v33, %v481_v24  ;;  %v502_v35 = vadd.f32 %v500_v33, %v482_v25  ;;  %v503_v40 = vadd.f32 %v500_v33, %v483_v26  ;;  %v504_v37 = vadd.f32 %v500_v33, %v484_v27 }
 0x246   :  { %v505_v39 = vadd.f32 %v500_v33, %v485_v28  ;;  %v506_v41 = vadd.f32 %v500_v33, %v486_v29  ;;  %v507_v48 = vadd.f32 %v500_v33, %v487_v30  ;;  %v508_v42 = vadd.f32 %v500_v33, %v488_v31 }
 0x247   :  { %v509_v53 = vadd.f32 %v500_v33, %v489_v32  ;;  %v510_v45 = vadd.f32 %v500_v33, %v490_v47  ;;  %v511_v43 = vadd.f32 %v500_v33, %v491_v57  ;;  %v512_v49 = vadd.f32 %v500_v33, %v492_v0 }
 0x248   :  { %v513_v50 = vadd.f32 %v500_v33, %v493_v15  ;;  %v514_v1 = vadd.f32 %v500_v33, %v494_v20  ;;  %v515_v38 = vadd.f32 %v500_v33, %v495_v34  ;;  %v516_v2 = vadd.f32 %v500_v33, %v496_v36 }
 0x249   :  { %v517_v51 = vmax.f32 %v501_v46, 0.0  ;;  %v518_v5 = vmax.f32 %v502_v35, 0.0  ;;  %v519_v55 = vmax.f32 %v503_v40, 0.0  ;;  %v520_v13 = vmax.f32 %v504_v37, 0.0 }
 0x24a   :  { %v521_v56 = vmax.f32 %v505_v39, 0.0  ;;  %v522_v58 = vmax.f32 %v506_v41, 0.0  ;;  %v523_v60 = vmax.f32 %v507_v48, 0.0  ;;  %v524_v61 = vmax.f32 %v508_v42, 0.0 }
 0x24b   :  { %v525_v62 = vmax.f32 %v509_v53, 0.0  ;;  %v526_v63 = vmax.f32 %v510_v45, 0.0  ;;  %v527_v52 = vmax.f32 %v511_v43, 0.0  ;;  %v528_v3 = vmax.f32 %v512_v49, 0.0 }
 0x24c   :  { %v529_v59 = vmax.f32 %v513_v50, 0.0  ;;  %v530_v4 = vmax.f32 %v514_v1, 0.0  ;;  %v531_v6 = vmax.f32 %v515_v38, 0.0  ;;  %v532_v7 = vmax.f32 %v516_v2, 0.0 }
 0x24d   :  { %v685_v8 = vpack.c.bf16 %v518_v5, %v517_v51  ;;  %v690_v9 = vpack.c.bf16 %v520_v13, %v519_v55  ;;  %v695_v10 = vpack.c.bf16 %v522_v58, %v521_v56  ;;  %v700_v11 = vpack.c.bf16 %v524_v61, %v523_v60 }
 0x24e   :  { %v705_v12 = vpack.c.bf16 %v526_v63, %v525_v62  ;;  %v710_v14 = vpack.c.bf16 %v528_v3, %v527_v52  ;;  %v715_v16 = vpack.c.bf16 %v530_v4, %v529_v59  ;;  %v720_v17 = vpack.c.bf16 %v532_v7, %v531_v6 }
 0x24f   :  { %686 = vst [vmem:[%s1157_s5] sm:$0xff] %v685_v8   ;;  %722 = vst [vmem:[%s1157_s5 + $0x8] sm:$0xff] %v690_v9  }
 0x250   :  { %723 = vst [vmem:[%s1157_s5 + $0x10] sm:$0xff] %v695_v10   ;;  %724 = vst [vmem:[%s1157_s5 + $0x18] sm:$0xff] %v700_v11  }
 0x251   :  { %725 = vst [vmem:[%s1157_s5 + $0x20] sm:$0xff] %v705_v12   ;;  %726 = vst [vmem:[%s1157_s5 + $0x28] sm:$0xff] %v710_v14  }
 0x252   :  { %727 = vst [vmem:[%s1157_s5 + $0x30] sm:$0xff] %v715_v16   ;;  %728 = vst [vmem:[%s1157_s5 + $0x38] sm:$0xff] %v720_v17  }

// kernel: vae_forward.18
= control target key start
LH: loop header
LB: loop body
LE: loop exit
PB: predicated region body
PF: predicated region fallthrough
CT: control target
= control target key end

     0   :  { %s839_s12 = smov 0   ;;  %s973_s0 = inlined_call_operand.vmem [shape: bf16[512,128], index: 0, kind: input, shape index: {}]   ;;  %s974_s1 = inlined_call_operand.vmem [shape: bf16[128,128], index: 1, kind: input, shape index: {}]   ;;  %s975_s2 = inlined_call_operand.vmem [shape: f32[1,128], index: 2, kind: input, shape index: {}]   ;;  %s976_s3 = inlined_call_operand.vmem [shape: f32[512,128], index: 3, kind: output, shape index: {}]  }
   0x1 LB: > { %s655_s13 = sadd.s32 4294967295, %s817_s12   ;;  %p659_p0 = scmp.ge.s32.totalorder %s817_s12, 1  ;;  %s817_s12 = sphi %s839_s12, %s13_s12  }
   0x2   : > { %p138_p1 = scmp.lt.s32.totalorder %s817_s12, 3 }
   0x4   : > { %p139_p2 = pnand %p659_p0, %p138_p1 }
   0x5   : > { %v787_v0 = vld [vmem:[%s974_s1] sm:$0xff] (!%p139_p2)   ;;  %s660_s16 = sshll.u32 (!%p139_p2), %s655_s13, 5  ;;  %v788_v1 = vld [vmem:[%s974_s1 + $0x8] sm:$0xff] (!%p139_p2)   ;;  %v789_v2 = vld [vmem:[%s974_s1 + $0x10] sm:$0xff] (!%p139_p2)  }
   0x6   : > { %142 = sbr.rel (%p139_p2) target bundleno = 282 (0x11a), region = 32  ;;  %p163_p3 = scmp.lt.s32.totalorder (!%p139_p2), %s660_s16, 63  ;;  %715 = vmatprep.subr.bf16.mxu0 (!%p139_p2), %v787_v0  ;;  %763 = vmatprep.subr.bf16.mxu1 (!%p139_p2), %v787_v0  ;;  %v790_v3 = vld [vmem:[%s974_s1 + $0x18] sm:$0xff] (!%p139_p2)   ;;  %v791_v6 = vld [vmem:[%s974_s1 + $0x20] sm:$0xff] (!%p139_p2)   ;;  %v792_v7 = vld [vmem:[%s974_s1 + $0x28] sm:$0xff] (!%p139_p2)  }
   0x7   : > { %716 = vmatpush3.bf16.msra.mxu0 (!%p139_p2), %v787_v0  ;;  %771 = vmatpush3.bf16.msra.mxu1 (!%p139_p2), %v787_v0  ;;  %v793_v8 = vld [vmem:[%s974_s1 + $0x30] sm:$0xff] (!%p139_p2)   ;;  %v794_v9 = vld [vmem:[%s974_s1 + $0x38] sm:$0xff] (!%p139_p2)   ;;  %v898_v24 = vld [vmem:[%s975_s2] ss:$0 sm:$0xff] (!%p139_p2) }
   0x8   : > { %717 = vmatprep.subr.bf16.mxu0 (!%p139_p2), %v788_v1  ;;  %764 = vmatprep.subr.bf16.mxu1 (!%p139_p2), %v788_v1 }
   0xb   : > { %718 = vmatpush3.bf16.msra.mxu0 (!%p139_p2), %v788_v1  ;;  %772 = vmatpush3.bf16.msra.mxu1 (!%p139_p2), %v788_v1 }
   0xc   : > { %719 = vmatprep.subr.bf16.mxu0 (!%p139_p2), %v789_v2  ;;  %765 = vmatprep.subr.bf16.mxu1 (!%p139_p2), %v789_v2 }
   0xd   : > { %s978_s16 = smov (!%p163_p3, %s660_s16), 63 }
   0xe   : > { %s661_s21 = sshll.u32 %s978_s16, 2  ;;  %s663_s10 = sshll.u32 %s978_s16, 3 }
   0xf   : > { %s862_s24 = scalar_lea.vmem %s973_s0, %s661_s21  ;;  %720 = vmatpush3.bf16.msra.mxu0 %v789_v2  ;;  %773 = vmatpush3.bf16.msra.mxu1 %v789_v2  ;;  %s906_s14 = scalar_lea.vmem %s976_s3, %s663_s10 }
  0x10   : > { %v795_v4 = vld [vmem:[%s862_s24] sm:$0xff]   ;;  %721 = vmatprep.subr.bf16.mxu0 %v790_v3  ;;  %766 = vmatprep.subr.bf16.mxu1 %v790_v3  ;;  %v797_v10 = vld [vmem:[%s862_s24 + $0x8] sm:$0xff]   ;;  %v799_v12 = vld [vmem:[%s862_s24 + $0x10] sm:$0xff]  }
  0x11   : > { %v796_v5 = vld [vmem:[%s862_s24 + $0x40] sm:$0xff]   ;;  %731 = vmatprep.mubr.bf16.mxu0 %v795_v4  ;;  %v798_v11 = vld [vmem:[%s862_s24 + $0x48] sm:$0xff]   ;;  %v800_v13 = vld [vmem:[%s862_s24 + $0x50] sm:$0xff]  }
  0x12   : > { %747 = vmatprep.mubr.bf16.mxu1 %v796_v5  ;;  %v801_v14 = vld [vmem:[%s862_s24 + $0x18] sm:$0xff]   ;;  %v803_v16 = vld [vmem:[%s862_s24 + $0x20] sm:$0xff]   ;;  %v805_v18 = vld [vmem:[%s862_s24 + $0x28] sm:$0xff]  }
  0x13   : > { %722 = vmatpush3.bf16.msra.mxu0 %v790_v3  ;;  %774 = vmatpush3.bf16.msra.mxu1 %v790_v3  ;;  %v802_v15 = vld [vmem:[%s862_s24 + $0x58] sm:$0xff]   ;;  %v804_v17 = vld [vmem:[%s862_s24 + $0x60] sm:$0xff]   ;;  %v806_v19 = vld [vmem:[%s862_s24 + $0x68] sm:$0xff]  }
  0x14   : > { %723 = vmatprep.subr.bf16.mxu0 %v791_v6  ;;  %767 = vmatprep.subr.bf16.mxu1 %v791_v6  ;;  %v807_v20 = vld [vmem:[%s862_s24 + $0x30] sm:$0xff]   ;;  %v809_v22 = vld [vmem:[%s862_s24 + $0x38] sm:$0xff]  }
  0x15   : > { %v808_v21 = vld [vmem:[%s862_s24 + $0x70] sm:$0xff]   ;;  %v810_v23 = vld [vmem:[%s862_s24 + $0x78] sm:$0xff]  }
  0x17   : > { %724 = vmatpush3.bf16.msra.mxu0 %v791_v6  ;;  %775 = vmatpush3.bf16.msra.mxu1 %v791_v6 }
  0x18   : > { %725 = vmatprep.subr.bf16.mxu0 %v792_v7  ;;  %768 = vmatprep.subr.bf16.mxu1 %v792_v7 }
  0x1b   : > { %726 = vmatpush3.bf16.msra.mxu0 %v792_v7  ;;  %776 = vmatpush3.bf16.msra.mxu1 %v792_v7 }
  0x1c   : > { %727 = vmatprep.subr.bf16.mxu0 %v793_v8  ;;  %769 = vmatprep.subr.bf16.mxu1 %v793_v8 }
  0x1f   : > { %728 = vmatpush3.bf16.msra.mxu0 %v793_v8  ;;  %777 = vmatpush3.bf16.msra.mxu1 %v793_v8 }
  0x20   : > { %729 = vmatprep.subr.bf16.mxu0 %v794_v9  ;;  %770 = vmatprep.subr.bf16.mxu1 %v794_v9 }
  0x23   : > { %730 = vmatpush3.bf16.msra.mxu0 %v794_v9  ;;  %778 = vmatpush3.bf16.msra.mxu1 %v794_v9 }
  0x26   : > { %732 = vmatmul.mubr.bf16.vlgmr.msra.gmra.mrb[0].mxu0 %v797_v10  ;;  %748 = vmatmul.mubr.bf16.vlgmr.msra.gmra.mrb[0].mxu1 %v798_v11 }
  0x27   : > { %735 = vmatprep.mubr.bf16.mxu0 %v799_v12  ;;  %751 = vmatprep.mubr.bf16.mxu1 %v800_v13 }
  0x2e   : > { %736 = vmatmul.mubr.bf16.gmra.mrb[4].mxu0 %v801_v14  ;;  %752 = vmatmul.mubr.bf16.gmra.mrb[4].mxu1 %v802_v15 }
  0x2f   : > { %739 = vmatprep.mubr.bf16.mxu0 %v803_v16  ;;  %755 = vmatprep.mubr.bf16.mxu1 %v804_v17 }
  0x36   : > { %740 = vmatmul.mubr.bf16.gmra.mrb[8].mxu0 %v805_v18  ;;  %756 = vmatmul.mubr.bf16.gmra.mrb[8].mxu1 %v806_v19 }
  0x37   : > { %743 = vmatprep.mubr.bf16.mxu0 %v807_v20  ;;  %759 = vmatprep.mubr.bf16.mxu1 %v808_v21 }
  0x3e   : > { %744 = vmatmul.mubr.bf16.gmra.mrb[12].mxu0 %v809_v22  ;;  %760 = vmatmul.mubr.bf16.gmra.mrb[12].mxu1 %v810_v23 }
  0xf9   : > { %v733_v25 = vpop.f32.mrb[0].mxu0  ;;  %v749_v26 = vpop.f32.mrb[0].mxu1 }
  0xfa   : > { %v417_v27 = vadd.f32 %v733_v25, %v898_v24  ;;  %v481_v28 = vadd.f32 %v749_v26, %v898_v24  ;;  %v408_v29 = vpop.f32.mrb[1].mxu0  ;;  %v472_v30 = vpop.f32.mrb[1].mxu1 }
  0xfb   : > { %v409_v31 = vadd.f32 %v898_v24, %v408_v29  ;;  %v473_v32 = vadd.f32 %v898_v24, %v472_v30  ;;  %v734_v33 = vpop.f32.mrb[2].mxu0  ;;  %v750_v34 = vpop.f32.mrb[2].mxu1 }
  0xfc   : > { %v537_v35 = vmax.f32 %v417_v27, 0.0  ;;  %v553_v36 = vmax.f32 %v481_v28, 0.0  ;;  %v420_v37 = vadd.f32 %v734_v33, %v898_v24  ;;  %v484_v38 = vadd.f32 %v750_v34, %v898_v24  ;;  %v411_v39 = vpop.f32.mrb[3].mxu0  ;;  %v475_v40 = vpop.f32.mrb[3].mxu1 }
  0xfd   : > { %v535_v41 = vmax.f32 %v409_v31, 0.0  ;;  %v551_v42 = vmax.f32 %v473_v32, 0.0  ;;  %v412_v43 = vadd.f32 %v898_v24, %v411_v39  ;;  %v476_v44 = vadd.f32 %v898_v24, %v475_v40 }
  0xfe   : > { %569 = vst [vmem:[%s906_s14 + $0x10] sm:$0xff] %v537_v35  ;;  %585 = vst [vmem:[%s906_s14 + $0x90] sm:$0xff] %v553_v36  ;;  %v538_v45 = vmax.f32 %v420_v37, 0.0  ;;  %v554_v46 = vmax.f32 %v484_v38, 0.0 }
  0xff   : > { %567 = vst [vmem:[%s906_s14] sm:$0xff] %v535_v41  ;;  %583 = vst [vmem:[%s906_s14 + $0x80] sm:$0xff] %v551_v42  ;;  %v536_v47 = vmax.f32 %v412_v43, 0.0  ;;  %v552_v48 = vmax.f32 %v476_v44, 0.0 }
 0x100   : > { %570 = vst [vmem:[%s906_s14 + $0x18] sm:$0xff] %v538_v45  ;;  %586 = vst [vmem:[%s906_s14 + $0x98] sm:$0xff] %v554_v46 }
 0x101   : > { %568 = vst [vmem:[%s906_s14 + $0x8] sm:$0xff] %v536_v47  ;;  %584 = vst [vmem:[%s906_s14 + $0x88] sm:$0xff] %v552_v48  ;;  %v737_v49 = vpop.f32.mrb[4].mxu0  ;;  %v753_v50 = vpop.f32.mrb[4].mxu1 }
 0x102   : > { %v433_v51 = vadd.f32 %v737_v49, %v898_v24  ;;  %v497_v52 = vadd.f32 %v753_v50, %v898_v24  ;;  %v424_v53 = vpop.f32.mrb[5].mxu0  ;;  %v488_v54 = vpop.f32.mrb[5].mxu1 }
 0x103   : > { %v425_v55 = vadd.f32 %v898_v24, %v424_v53  ;;  %v489_v56 = vadd.f32 %v898_v24, %v488_v54  ;;  %v738_v57 = vpop.f32.mrb[6].mxu0  ;;  %v754_v58 = vpop.f32.mrb[6].mxu1 }
 0x104   : > { %v541_v59 = vmax.f32 %v433_v51, 0.0  ;;  %v557_v60 = vmax.f32 %v497_v52, 0.0  ;;  %v436_v61 = vadd.f32 %v738_v57, %v898_v24  ;;  %v500_v62 = vadd.f32 %v754_v58, %v898_v24  ;;  %v427_v63 = vpop.f32.mrb[7].mxu0  ;;  %v491_v0 = vpop.f32.mrb[7].mxu1 }
 0x105   : > { %v539_v1 = vmax.f32 %v425_v55, 0.0  ;;  %v555_v2 = vmax.f32 %v489_v56, 0.0  ;;  %v428_v3 = vadd.f32 %v898_v24, %v427_v63  ;;  %v492_v4 = vadd.f32 %v898_v24, %v491_v0 }
 0x106   : > { %573 = vst [vmem:[%s906_s14 + $0x30] sm:$0xff] %v541_v59  ;;  %589 = vst [vmem:[%s906_s14 + $0xb0] sm:$0xff] %v557_v60  ;;  %v542_v5 = vmax.f32 %v436_v61, 0.0  ;;  %v558_v6 = vmax.f32 %v500_v62, 0.0 }
 0x107   : > { %571 = vst [vmem:[%s906_s14 + $0x20] sm:$0xff] %v539_v1  ;;  %587 = vst [vmem:[%s906_s14 + $0xa0] sm:$0xff] %v555_v2  ;;  %v540_v7 = vmax.f32 %v428_v3, 0.0  ;;  %v556_v8 = vmax.f32 %v492_v4, 0.0 }
 0x108   : > { %574 = vst [vmem:[%s906_s14 + $0x38] sm:$0xff] %v542_v5  ;;  %590 = vst [vmem:[%s906_s14 + $0xb8] sm:$0xff] %v558_v6 }
 0x109   : > { %572 = vst [vmem:[%s906_s14 + $0x28] sm:$0xff] %v540_v7  ;;  %588 = vst [vmem:[%s906_s14 + $0xa8] sm:$0xff] %v556_v8  ;;  %v741_v9 = vpop.f32.mrb[8].mxu0  ;;  %v757_v10 = vpop.f32.mrb[8].mxu1 }
 0x10a   : > { %v449_v11 = vadd.f32 %v741_v9, %v898_v24  ;;  %v513_v12 = vadd.f32 %v757_v10, %v898_v24  ;;  %v440_v13 = vpop.f32.mrb[9].mxu0  ;;  %v504_v14 = vpop.f32.mrb[9].mxu1 }
 0x10b   : > { %v441_v15 = vadd.f32 %v898_v24, %v440_v13  ;;  %v505_v16 = vadd.f32 %v898_v24, %v504_v14  ;;  %v742_v17 = vpop.f32.mrb[10].mxu0  ;;  %v758_v18 = vpop.f32.mrb[10].mxu1 }
 0x10c   : > { %v545_v19 = vmax.f32 %v449_v11, 0.0  ;;  %v561_v20 = vmax.f32 %v513_v12, 0.0  ;;  %v452_v21 = vadd.f32 %v742_v17, %v898_v24  ;;  %v516_v22 = vadd.f32 %v758_v18, %v898_v24  ;;  %v443_v23 = vpop.f32.mrb[11].mxu0  ;;  %v507_v25 = vpop.f32.mrb[11].mxu1 }
 0x10d   : > { %v543_v26 = vmax.f32 %v441_v15, 0.0  ;;  %v559_v27 = vmax.f32 %v505_v16, 0.0  ;;  %v444_v28 = vadd.f32 %v898_v24, %v443_v23  ;;  %v508_v29 = vadd.f32 %v898_v24, %v507_v25 }
 0x10e   : > { %577 = vst [vmem:[%s906_s14 + $0x50] sm:$0xff] %v545_v19  ;;  %593 = vst [vmem:[%s906_s14 + $0xd0] sm:$0xff] %v561_v20  ;;  %v546_v30 = vmax.f32 %v452_v21, 0.0  ;;  %v562_v31 = vmax.f32 %v516_v22, 0.0 }
 0x10f   : > { %575 = vst [vmem:[%s906_s14 + $0x40] sm:$0xff] %v543_v26  ;;  %591 = vst [vmem:[%s906_s14 + $0xc0] sm:$0xff] %v559_v27  ;;  %v544_v32 = vmax.f32 %v444_v28, 0.0  ;;  %v560_v33 = vmax.f32 %v508_v29, 0.0 }
 0x110   : > { %578 = vst [vmem:[%s906_s14 + $0x58] sm:$0xff] %v546_v30  ;;  %594 = vst [vmem:[%s906_s14 + $0xd8] sm:$0xff] %v562_v31 }
 0x111   : > { %576 = vst [vmem:[%s906_s14 + $0x48] sm:$0xff] %v544_v32  ;;  %592 = vst [vmem:[%s906_s14 + $0xc8] sm:$0xff] %v560_v33  ;;  %v745_v34 = vpop.f32.mrb[12].mxu0  ;;  %v761_v35 = vpop.f32.mrb[12].mxu1 }
 0x112   : > { %v465_v36 = vadd.f32 %v745_v34, %v898_v24  ;;  %v529_v37 = vadd.f32 %v761_v35, %v898_v24  ;;  %v456_v38 = vpop.f32.mrb[13].mxu0  ;;  %v520_v39 = vpop.f32.mrb[13].mxu1 }
 0x113   : > { %v457_v40 = vadd.f32 %v898_v24, %v456_v38  ;;  %v521_v41 = vadd.f32 %v898_v24, %v520_v39  ;;  %v746_v42 = vpop.f32.mrb[14].mxu0  ;;  %v762_v43 = vpop.f32.mrb[14].mxu1 }
 0x114   : > { %v549_v44 = vmax.f32 %v465_v36, 0.0  ;;  %v565_v45 = vmax.f32 %v529_v37, 0.0  ;;  %v468_v46 = vadd.f32 %v746_v42, %v898_v24  ;;  %v532_v47 = vadd.f32 %v762_v43, %v898_v24  ;;  %v459_v48 = vpop.f32.mrb[15].mxu0  ;;  %v523_v49 = vpop.f32.mrb[15].mxu1 }
 0x115   : > { %v547_v50 = vmax.f32 %v457_v40, 0.0  ;;  %v563_v51 = vmax.f32 %v521_v41, 0.0  ;;  %v460_v52 = vadd.f32 %v898_v24, %v459_v48  ;;  %v524_v53 = vadd.f32 %v898_v24, %v523_v49 }
 0x116   : > { %581 = vst [vmem:[%s906_s14 + $0x70] sm:$0xff] %v549_v44  ;;  %597 = vst [vmem:[%s906_s14 + $0xf0] sm:$0xff] %v565_v45  ;;  %v550_v54 = vmax.f32 %v468_v46, 0.0  ;;  %v566_v55 = vmax.f32 %v532_v47, 0.0 }
 0x117   : > { %579 = vst [vmem:[%s906_s14 + $0x60] sm:$0xff] %v547_v50  ;;  %595 = vst [vmem:[%s906_s14 + $0xe0] sm:$0xff] %v563_v51  ;;  %v548_v56 = vmax.f32 %v460_v52, 0.0  ;;  %v564_v57 = vmax.f32 %v524_v53, 0.0 }
 0x118   : > { %582 = vst [vmem:[%s906_s14 + $0x78] sm:$0xff] %v550_v54  ;;  %598 = vst [vmem:[%s906_s14 + $0xf8] sm:$0xff] %v566_v55 }
 0x119   : > { %580 = vst [vmem:[%s906_s14 + $0x68] sm:$0xff] %v548_v56  ;;  %596 = vst [vmem:[%s906_s14 + $0xe8] sm:$0xff] %v564_v57 }
 0x11a PF: > { %s13_s12 = sadd.s32 1, %s817_s12  }
 0x11b   : > { %p10_p4 = scmp.ge.s32.totalorder %s13_s12, 4  }
 0x11d   :  { %12 = sbr.rel (!%p10_p4) target bundleno = 1 (0x1), region = 62 }

// kernel: vae_forward.19
= control target key start
LH: loop header
LB: loop body
LE: loop exit
PB: predicated region body
PF: predicated region fallthrough
CT: control target
= control target key end

     0   :  { %v52_v2 = vlaneseq  ;;  %v298_v9 = vmov 1983009808   ;;  %s420_s0 = inlined_call_operand.vmem [shape: f32[2,3072], index: 0, kind: input, shape index: {}]   ;;  %s421_s1 = inlined_call_operand.vmem [shape: f32[2,3072], index: 1, kind: input, shape index: {}]   ;;  %s422_s2 = inlined_call_operand.vmem [shape: f32[2,128], index: 2, kind: input, shape index: {}]   ;;  %s423_s3 = inlined_call_operand.vmem [shape: f32[2,128], index: 3, kind: input, shape index: {}]   ;;  %s424_s4 = inlined_call_operand.hbm [shape: f32[1,1], index: 4, kind: output, shape index: {}]  }
   0x1   :  { %v232_v0 = vld [vmem:[%s423_s3] sm:$0x3]  ;;  %v19_v4 = vld [vmem:[%s421_s1 + $0x8] sm:$0xff]  ;;  %v50_v10 = vunpack.c.l.s4 %v298_v9 }
   0x2   :  { %v18_v1 = vld [vmem:[%s421_s1] sm:$0xff]  ;;  %v236_v3 = vmul.f32 1.442695, %v232_v0  ;;  %v25_v7 = vld [vmem:[%s420_s0 + $0x8] sm:$0xff]  ;;  %v53_v11 = vshrl.u32 %v52_v2, 7 }
   0x3   :  { %v24_v5 = vld [vmem:[%s420_s0] sm:$0xff] }
   0x4   :  { %v231_v6 = vld [vmem:[%s422_s2] sm:$0x3]  ;;  %272 = vpow2.f32 %v236_v3  ;;  %v30_v8 = vsub.f32 %v18_v1, %v24_v5 }
   0x5   :  { %9 = vsyncpa [#allocation3], 0  ;;  %v31_v12 = vsub.f32 %v19_v4, %v25_v7  ;;  %v51_v14 = vunpack.c.0.s8 %v50_v10  ;;  %v233_v15 = vadd.f32 1.0, %v232_v0  ;;  %v234_v16 = vmul.f32 %v231_v6, %v231_v6  ;;  %v20_v23 = vld [vmem:[%s421_s1 + $0x10] sm:$0xff]  ;;  %v21_v37 = vld [vmem:[%s421_s1 + $0x18] sm:$0xff] }
   0x6   :  { %v36_v13 = vmul.f32 %v30_v8, %v30_v8  ;;  %v26_v24 = vld [vmem:[%s420_s0 + $0x10] sm:$0xff]  ;;  %vm174_vm0 = vcmask 1041408   ;;  %v27_v38 = vld [vmem:[%s420_s0 + $0x18] sm:$0xff]  ;;  %v22_v54 = vld [vmem:[%s421_s1 + $0x20] sm:$0xff]  ;;  %vm254_vm1 = vcmask 0  }
   0x7   :  { %v343_v18 = vsub.s32 %v51_v14, %v53_v11  ;;  %v37_v19 = vmul.f32 %v31_v12, %v31_v12  ;;  %v235_v22 = vsub.f32 %v233_v15, %v234_v16  ;;  %v32_v27 = vsub.f32 %v20_v23, %v26_v24  ;;  %v28_v55 = vld [vmem:[%s420_s0 + $0x20] sm:$0xff]  ;;  %v23_v7 = vld [vmem:[%s421_s1 + $0x28] sm:$0xff] }
   0x8   :  { %v48_v17 = vcombine.high %v36_v13, %v36_v13  ;;  %v33_v45 = vsub.f32 %v21_v37, %v27_v38  ;;  %v34_v62 = vsub.f32 %v22_v54, %v28_v55  ;;  %v29_v8 = vld [vmem:[%s420_s0 + $0x28] sm:$0xff]  ;;  %s299_s0 = smov [#allocation2]  }
   0x9   :  { %v55_v20 = vrot.slane %v36_v13, %v343_v18  ;;  %v65_v29 = vcombine.high %v37_v19, %v37_v19  ;;  %v72_v30 = vrot.slane %v37_v19, %v343_v18  ;;  %v38_v39 = vmul.f32 %v32_v27, %v32_v27  ;;  %s262_s1 = sshll.u32 %s299_s0, 4  ;;  %s263_s1 = int_to_ptr.vmem [resolvable:$true] %s262_s1 }
   0xa   :  { %v62_v21 = vrot.slane %v48_v17, %v343_v18  ;;  %v39_v56 = vmul.f32 %v33_v45, %v33_v45  ;;  %v40_v9 = vmul.f32 %v34_v62, %v34_v62  ;;  %v35_v15 = vsub.f32 %v23_v7, %v29_v8  ;;  %s274_s15 = scalar_lea.vmem %s263_s1, 16  ;;  %s278_s16 = scalar_lea.vmem %s263_s1, 32 }
   0xb   :  { %v63_v25 = vcombine.high %v55_v20, %v55_v20  ;;  %v175_v32 = vsel %vm174_vm0, %v55_v20, 0.0  ;;  %v79_v40 = vrot.slane %v65_v29, %v343_v18  ;;  %v80_v41 = vcombine.high %v72_v30, %v72_v30  ;;  %p275_p0 = scmp.ne.s32.totalorder %s263_s1, %s274_s15  ;;  %p279_p1 = scmp.lt.s32.totalorder %s263_s1, %s263_s1 }
   0xc   :  { %v64_v28 = vcombine.high %v62_v21, %v62_v21  ;;  %v178_v34 = vsel %vm174_vm0, %v62_v21, 0.0  ;;  %v182_v44 = vsel %vm174_vm0, %v72_v30, 0.0  ;;  %v82_v48 = vcombine.high %v38_v39, %v38_v39  ;;  %p280_p2 = scmp.lt.s32.totalorder %s278_s16, %s274_s15 }
   0xd   :  { %v176_v33 = vsel %vm174_vm0, %v63_v25, 0.0  ;;  %v81_v47 = vcombine.high %v79_v40, %v79_v40  ;;  %v89_v49 = vrot.slane %v38_v39, %v343_v18  ;;  %v184_v50 = vsel %vm174_vm0, %v80_v41, 0.0 }
   0xe   :  { %v273_v26 = vpop.eup %272  ;;  %v177_v36 = vadd.f32 %v176_v33, %v175_v32  ;;  %v180_v42 = vsel %vm174_vm0, %v64_v28, 0.0  ;;  %v186_v52 = vsel %vm174_vm0, %v79_v40, 0.0  ;;  %v96_v57 = vrot.slane %v82_v48, %v343_v18  ;;  %p281_p3 = por %p280_p2, %p279_p1 }
   0xf   :  { %v238_v31 = vsub.f32 %v235_v22, %v273_v26  ;;  %v97_v58 = vcombine.high %v89_v49, %v89_v49  ;;  %v188_v59 = vsel %vm174_vm0, %v81_v47, 0.0  ;;  %v190_v61 = vsel %vm174_vm0, %v89_v49, 0.0 }
  0x10   :  { %v179_v43 = vadd.f32 %v178_v34, %v177_v36  ;;  %v98_v0 = vcombine.high %v96_v57, %v96_v57  ;;  %v99_v1 = vcombine.high %v39_v56, %v39_v56  ;;  %v106_v2 = vrot.slane %v39_v56, %v343_v18  ;;  %p282_p4 = pnand %p281_p3, %p275_p0 }
  0x11   :  { %v239_v35 = vsel %vm174_vm0, %v238_v31, 0.0  ;;  %v192_v3 = vsel %vm174_vm0, %v97_v58, 0.0  ;;  %v194_v5 = vsel %vm174_vm0, %v96_v57, 0.0  ;;  %v116_v19 = vcombine.high %v40_v9, %v40_v9 }
  0x12   :  { %240 = vadd.xlane.f32.xlu0 %v239_v35  ;;  %v181_v46 = vadd.f32 %v180_v42, %v179_v43  ;;  %v113_v10 = vrot.slane %v99_v1, %v343_v18  ;;  %v114_v11 = vcombine.high %v106_v2, %v106_v2  ;;  %v196_v12 = vsel %vm174_vm0, %v98_v0, 0.0 }
  0x13   :  { %v198_v14 = vsel %vm174_vm0, %v106_v2, 0.0  ;;  %v123_v20 = vrot.slane %v40_v9, %v343_v18  ;;  %v41_v25 = vmul.f32 %v35_v15, %v35_v15  ;;  %v130_v26 = vrot.slane %v116_v19, %v343_v18 }
  0x14   :  { %v183_v51 = vadd.f32 %v182_v44, %v181_v46  ;;  %v115_v17 = vcombine.high %v113_v10, %v113_v10  ;;  %v200_v21 = vsel %vm174_vm0, %v114_v11, 0.0  ;;  %v202_v23 = vsel %vm174_vm0, %v113_v10, 0.0 }
  0x15   :  { %v131_v27 = vcombine.high %v123_v20, %v123_v20  ;;  %v206_v30 = vsel %vm174_vm0, %v123_v20, 0.0  ;;  %v132_v32 = vcombine.high %v130_v26, %v130_v26  ;;  %v133_v33 = vcombine.high %v41_v25, %v41_v25 }
  0x16   :  { %v185_v53 = vadd.f32 %v184_v50, %v183_v51  ;;  %v204_v28 = vsel %vm174_vm0, %v115_v17, 0.0  ;;  %v140_v34 = vrot.slane %v41_v25, %v343_v18  ;;  %v210_v37 = vsel %vm174_vm0, %v130_v26, 0.0 }
  0x17   :  { %v208_v35 = vsel %vm174_vm0, %v131_v27, 0.0  ;;  %v147_v39 = vrot.slane %v133_v33, %v343_v18  ;;  %v212_v41 = vsel %vm174_vm0, %v132_v32, 0.0 }
  0x18   :  { %v187_v60 = vadd.f32 %v186_v52, %v185_v53  ;;  %v148_v40 = vcombine.high %v140_v34, %v140_v34  ;;  %v214_v43 = vsel %vm174_vm0, %v140_v34, 0.0 }
  0x19   :  { %v149_v45 = vcombine.high %v147_v39, %v147_v39  ;;  %v218_v48 = vsel %vm174_vm0, %v147_v39, 0.0 }
  0x1a   :  { %v189_v63 = vadd.f32 %v188_v59, %v187_v60  ;;  %v216_v46 = vsel %vm174_vm0, %v148_v40, 0.0 }
  0x1b   :  { %v220_v50 = vsel %vm174_vm0, %v149_v45, 0.0 }
  0x1c   :  { %v191_v4 = vadd.f32 %v190_v61, %v189_v63 }
  0x1e   :  { %v193_v6 = vadd.f32 %v192_v3, %v191_v4 }
  0x20   :  { %v195_v13 = vadd.f32 %v194_v5, %v193_v6 }
  0x22   :  { %v197_v16 = vadd.f32 %v196_v12, %v195_v13 }
  0x24   :  { %v199_v22 = vadd.f32 %v198_v14, %v197_v16 }
  0x26   :  { %v201_v24 = vadd.f32 %v200_v21, %v199_v22 }
  0x28   :  { %v203_v29 = vadd.f32 %v202_v23, %v201_v24 }
  0x2a   :  { %v205_v31 = vadd.f32 %v204_v28, %v203_v29 }
  0x2c   :  { %v207_v36 = vadd.f32 %v206_v30, %v205_v31 }
  0x2e   :  { %v209_v38 = vadd.f32 %v208_v35, %v207_v36 }
  0x30   :  { %v211_v42 = vadd.f32 %v210_v37, %v209_v38 }
  0x32   :  { %v213_v44 = vadd.f32 %v212_v41, %v211_v42 }
  0x34   :  { %v215_v47 = vadd.f32 %v214_v43, %v213_v44 }
  0x36   :  { %v217_v49 = vadd.f32 %v216_v46, %v215_v47 }
  0x38   :  { %v219_v51 = vadd.f32 %v218_v48, %v217_v49 }
  0x3a   :  { %v221_v52 = vadd.f32 %v220_v50, %v219_v51 }
  0x3c   :  { %222 = vadd.xlane.f32.xlu0 %v221_v52 }
  0x9f   :  { %v241_v18 = vpop.xlane.xlu0 %240 }
  0xa0   :  { %v242_v53 = vmul.f32 -0.5, %v241_v18 }
  0xa2   :  { %v243_v54 = vsel %vm174_vm0, %v242_v53, 0.0 }
  0xa3   :  { %v244_v55 = vrot.slane %v243_v54, 4 }
  0xa5   :  { %v245_v56 = vadd.f32 %v244_v55, %v243_v54 }
  0xa7   :  { %v246_v57 = vrot.slane %v245_v56, 2 }
  0xa9   :  { %v247_v58 = vadd.f32 %v246_v57, %v245_v56 }
  0xab   :  { %v248_v61 = vrot.slane %v247_v58, 1 }
  0xad   :  { %v249_v1 = vadd.f32 %v248_v61, %v247_v58 }
  0xaf   :  { %v251_v4 = vmul.f32 0.5, %v249_v1 }
  0xb1   :  { %v252_v7 = vmul.f32 0.0003, %v251_v4 }
  0xc9   :  { %v223_v59 = vpop.xlane.xlu0 %222 }
  0xca   :  { %v224_v60 = vsel %vm174_vm0, %v223_v59, 0.0 }
  0xcb   :  { %v225_v62 = vrot.slane %v224_v60, 4 }
  0xcd   :  { %v226_v63 = vadd.f32 %v225_v62, %v224_v60 }
  0xcf   :  { %v227_v0 = vrot.slane %v226_v63, 2 }
  0xd1   :  { %v228_v2 = vadd.f32 %v227_v0, %v226_v63 }
  0xd3   :  { %v229_v3 = vrot.slane %v228_v2, 1 }
  0xd5   :  { %v230_v5 = vadd.f32 %v229_v3, %v228_v2 }
  0xd7   :  { %v250_v6 = vmul.f32 0.00016276042, %v230_v5 }
  0xd9   :  { %v253_v8 = vadd.f32 %v252_v7, %v250_v6 }
  0xdb   :  { %255 = vst.msk [vmem:[#allocation2] sm:$0x1] %vm254_vm1, %v253_v8 }
  0xdc   :  { %285 = shalt.err (!%p282_p4)
}
  0xdd   :  { %s286_s19 = scalar_lea.hbm %s424_s4, 16 }
  0xde   :  { %p287_p5 = scmp.ne.s32.totalorder %s424_s4, %s286_s19  ;;  %p290_p6 = scmp.lt.u32.totalorder %s286_s19, %s424_s4 }
  0xe0   :  { %p292_p7 = pnand %p290_p6, %p287_p5 }
  0xe2   :  { %295 = shalt.err (!%p292_p7)
}
  0xe3   :  { %265 = dma.vmem_to_hbm [thread:$0]  %s263_s1, 16, %s424_s4, [#allocation3]  }
  0xe4   :  { %296 = dma.done.wait [#allocation3], 16  }
  0xe5   :  { %297 = vsyncadd [#allocation3], 4294967280 }
  0xe6   :  { %269 = vsyncpa [#allocation3], 1 }

</bundles_post_ra>
